<compile_context>
chip_gen: v7x
topology: tpu7x:2x2x1
jax: 0.10.0
libtpu: 0.0.40
codegen_flags: <defaults>
</compile_context>

<pallas_src>
import math

import jax
import jax.numpy as jnp
from jax import lax
from jax.experimental import pallas as pl
from jax.experimental.pallas import tpu as pltpu

NBINS = 9
POOL = 7
_BIG = 1e30  # sentinel: forces gx == 0 pixels into bin 0 (all sector tests fail)


def _cdiv(a, b):
    return -(-a // b)


def _round_up(a, b):
    return _cdiv(a, b) * b


def _hog_kernel(x_ref, pwt_ref, ph_ref, out_ref):
    # x_ref:   (G, HP, WP)  reflect-padded images, zero-padded up to aligned HP/WP
    # pwt_ref: (wp, W)      transposed column-pooling 0/1 matrix (grid-invariant)
    # ph_ref:  (hp, H)      row-pooling 0/1 matrix (grid-invariant)
    # out_ref: (G, hp, nbins * wp)   bins blocked along the lane axis (lane-dense)
    G = x_ref.shape[0]
    hp, H = ph_ref.shape
    wp, W = pwt_ref.shape
    nbins = out_ref.shape[-1] // wp

    x = x_ref[...]                                   # (G, HP, WP)

    # Separable Sobel (cross-correlation, same math as F.conv2d groups=3):
    #   gx[y,x] = S[y,x]   - S[y,x+2],               S = vertical (1,2,1) smoothing
    #   gy[y,x] = D[y,x] + 2*D[y,x+1] + D[y,x+2],    D = vertical (1,0,-1) difference
    r0 = x[:, 0:H, :]
    r1 = x[:, 1:H + 1, :]
    r2 = x[:, 2:H + 2, :]
    smooth = r0 + 2.0 * r1 + r2                      # (G, H, WP)
    diff = r0 - r2                                   # (G, H, WP)

    gx = smooth[:, :, 0:W] - smooth[:, :, 2:W + 2]
    gy = diff[:, :, 0:W] + 2.0 * diff[:, :, 1:W + 1] + diff[:, :, 2:W + 2]

    norm = jnp.sqrt(gx * gx + gy * gy)               # (G, H, W)

    # bin = floor(atan2(gx, gy)/pi * nbins) mod nbins depends only on the line direction
    # phi = atan2(gx, gy) mod pi, so bin = #{k in 1..nbins-1 : phi >= k*pi/nbins}.
    # With s = |gx| and c = sign(gx)*gy (for gx != 0):
    #   phi >= k*pi/nbins   <=>   s*cos(k*pi/nbins) >= c*sin(k*pi/nbins)
    # gx == 0 must land in bin 0: force c to a huge positive value so every test fails
    # (sin(k*pi/nbins) > 0 for k = 1..nbins-1) instead of AND-ing a gx!=0 mask per test.
    s = jnp.abs(gx)
    c = jnp.where(gx > 0.0, gy, jnp.where(gx < 0.0, -gy, _BIG))

    # Broadcast the pooling matrices over the group axis once (hoisted out of the loop).
    pwt = jnp.broadcast_to(pwt_ref[...][None, :, :], (G, wp, W))   # (G, wp, W)
    ph = jnp.broadcast_to(ph_ref[...][None, :, :], (G, hp, H))     # (G, hp, H)

    hi = lax.Precision.HIGHEST  # keep f32 exactness of the norm values through the MXU

    def pool2d(img):            # (G, H, W) -> (G, hp, wp) via two batched MXU matmuls
        t = jnp.einsum("ghw,gpw->ghp", img, pwt, precision=hi,
                       preferred_element_type=jnp.float32)          # (G, H, wp)
        return jnp.einsum("gqh,ghp->gqp", ph, t, precision=hi,
                          preferred_element_type=jnp.float32)       # (G, hp, wp)

    # The sector tests are nested (phi >= (k+1)*a  =>  phi >= k*a), so the histogram for
    # bin b equals pool(S_b) - pool(S_{b+1}) where S_k = norm masked by (phi >= k*a) and
    # S_0 = norm.  Pool the cumulative images and difference them in pooled space.
    cum = [pool2d(norm)]
    for k in range(1, nbins):
        ck = math.cos(k * math.pi / nbins)
        sk = math.sin(k * math.pi / nbins)
        S = jnp.where(s * ck >= c * sk, norm, 0.0)                  # (G, H, W)
        cum.append(pool2d(S))

    hist = []
    sumsq = jnp.zeros((G, hp, wp), jnp.float32)
    for b in range(nbins):
        hb = cum[b] - cum[b + 1] if b + 1 < nbins else cum[b]
        hist.append(hb)
        sumsq = sumsq + hb * hb

    # F.normalize(p=2, dim=bins): v / max(||v||_2, 1e-12)  ==  v * rsqrt(max(sumsq, 1e-24))
    inv = lax.rsqrt(jnp.maximum(sumsq, 1e-24))                      # (G, hp, wp)
    for b in range(nbins):
        out_ref[:, :, b * wp:(b + 1) * wp] = hist[b] * inv


def hog_layer(x, nbins=NBINS, pool=POOL):
    """x: (B, 3, H, W). Returns (B, 3, nbins, H//pool, W//pool), matching HOGLayerC."""
    B, C, H, W = x.shape
    assert C == 3, "HOGLayerC uses groups=3 depthwise filters (RGB input)"
    assert H % pool == 0 and W % pool == 0
    assert H >= 2 and W >= 2, "reflect padding needs H, W >= 2"
    hp, wp = H // pool, W // pool
    N = B * C

    # Reflect pad (torch F.pad mode='reflect') and flatten (B, C) -> N images.
    xpad = jnp.pad(x.astype(jnp.float32), ((0, 0), (0, 0), (1, 1), (1, 1)),
                   mode="reflect")
    xpad = xpad.reshape(N, H + 2, W + 2)

    # Zero-pad the image block to sublane/lane-aligned sizes; the Sobel slices only read
    # rows [0, H+2) and cols [0, W+2), so the padding never contributes.
    HP = _round_up(H + 2, 8)
    WP = _round_up(W + 2, 128)
    xpad = jnp.pad(xpad, ((0, 0), (0, HP - (H + 2)), (0, WP - (W + 2))))

    # Group G images per grid step.  Cap the block size for small-VMEM parts (v5e/v7x)
    # and keep the grid >= 2 steps so both v7x TensorCores get work.
    G = 8
    bytes_per_img = HP * WP * 4
    while G > 1 and G * bytes_per_img > (4 << 20):
        G //= 2
    while G > 1 and _cdiv(N, G) < 2:
        G //= 2
    num_steps = _cdiv(N, G)
    Npad = num_steps * G
    if Npad != N:
        # Zero dummy images: gradients are 0 -> histogram 0 -> normalized output 0 (no NaN).
        xpad = jnp.pad(xpad, ((0, Npad - N), (0, 0), (0, 0)))

    # Grid-invariant 0/1 pooling matrices, built once in the wrapper (hoisted out of
    # the kernel; no per-step iota // pool integer division).
    colg = jnp.arange(W, dtype=jnp.int32) // pool
    p_wt = (jnp.arange(wp, dtype=jnp.int32)[:, None] == colg[None, :]).astype(jnp.float32)  # (wp, W)
    rowg = jnp.arange(H, dtype=jnp.int32) // pool
    p_h = (jnp.arange(hp, dtype=jnp.int32)[:, None] == rowg[None, :]).astype(jnp.float32)   # (hp, H)

    out = pl.pallas_call(
        _hog_kernel,
        out_shape=jax.ShapeDtypeStruct((Npad, hp, nbins * wp), jnp.float32),
        grid_spec=pltpu.PrefetchScalarGridSpec(
            num_scalar_prefetch=0,
            grid=(num_steps,),
            in_specs=[
                pl.BlockSpec((G, HP, WP), lambda i: (i, 0, 0)),
                pl.BlockSpec((wp, W), lambda i: (0, 0)),
                pl.BlockSpec((hp, H), lambda i: (0, 0)),
            ],
            out_specs=pl.BlockSpec((G, hp, nbins * wp), lambda i: (i, 0, 0)),
        ),
        compiler_params=pltpu.CompilerParams(
            dimension_semantics=("parallel",),
            vmem_limit_bytes=32 * 1024 * 1024,  # raise further for larger G on big images
        ),
    )(xpad, p_wt, p_h)

    # (Npad, hp, nbins*wp) -> drop padding -> (B, C, nbins, hp, wp)  (layout plumbing in XLA)
    out = out[:N].reshape(B, C, hp, nbins, wp)
    return jnp.transpose(out, (0, 1, 3, 2, 4))


def hog_ref(x, nbins=NBINS, pool=POOL):
    """Independent pure-JAX reference mirroring the PyTorch forward (no MXU rounding)."""
    B, C, H, W = x.shape
    xp = jnp.pad(x.astype(jnp.float32), ((0, 0), (0, 0), (1, 1), (1, 1)), mode="reflect")
    a = xp[..., 0:H, 0:W]
    b_ = xp[..., 0:H, 1:W + 1]
    c = xp[..., 0:H, 2:W + 2]
    d = xp[..., 1:H + 1, 0:W]
    f = xp[..., 1:H + 1, 2:W + 2]
    g = xp[..., 2:H + 2, 0:W]
    h_ = xp[..., 2:H + 2, 1:W + 1]
    i_ = xp[..., 2:H + 2, 2:W + 2]
    gx = a - c + 2.0 * d - 2.0 * f + g - i_        # weight_x = [[1,0,-1],[2,0,-2],[1,0,-1]]
    gy = a + 2.0 * b_ + c - g - 2.0 * h_ - i_      # weight_y = weight_x^T
    norm = jnp.sqrt(gx * gx + gy * gy)
    phase = jnp.arctan2(gx, gy) / math.pi * nbins
    bins = jnp.floor(phase).astype(jnp.int32) % nbins
    onehot = (bins[..., None] == jnp.arange(nbins)).astype(jnp.float32)   # (B,C,H,W,nb)
    hist = jnp.moveaxis(onehot * norm[..., None], -1, 2)                  # (B,C,nb,H,W)
    hp, wp = H // pool, W // pool
    hist = hist.reshape(B, C, nbins, hp, pool, wp, pool).sum(axis=(4, 6))
    denom = jnp.maximum(jnp.sqrt(jnp.sum(hist * hist, axis=2, keepdims=True)), 1e-12)
    return hist / denom


if __name__ == "__main__":
    key = jax.random.PRNGKey(0)
    B, C, H, W = 2, 3, 14, 14            # H, W divisible by pool=7
    x = jax.random.normal(key, (B, C, H, W), dtype=jnp.float32)

    out = jax.block_until_ready(hog_layer(x))
    assert out.shape == (B, C, NBINS, H // POOL, W // POOL)

    ref = hog_ref(x)
    if not bool(jnp.allclose(out, ref, rtol=1e-4, atol=1e-4)):
        max_err = float(jnp.max(jnp.abs(out - ref)))
        raise AssertionError(
            f"Pallas HOG kernel does not match reference (max abs err {max_err:.3e})")

    print("KERNEL_OK")
</pallas_src>

<mosaic_0001>
module attributes {stable_mosaic.version = 11 : i64} {
  func.func @_hog_kernel(%arg0: i32, %arg1: memref<4x16x128xf32, #tpu.memory_space<vmem>>, %arg2: memref<2x14xf32, #tpu.memory_space<vmem>>, %arg3: memref<2x14xf32, #tpu.memory_space<vmem>>, %arg4: memref<4x2x18xf32, #tpu.memory_space<vmem>>) attributes {dimension_semantics = [#tpu.dimension_semantics<parallel>], iteration_bounds = array<i64: 2>, scalar_prefetch = 0 : i64, scratch_operands = 0 : i64, tpu.core_type = #tpu.core_type<tc>, window_params = [{transform_indices = @transform_0, window_bounds = array<i64: 4, 16, 128>}, {pipeline_mode = #tpu.pipeline_mode<synchronous>, transform_indices = @transform_1, window_bounds = array<i64: 2, 14>}, {pipeline_mode = #tpu.pipeline_mode<synchronous>, transform_indices = @transform_2, window_bounds = array<i64: 2, 14>}, {transform_indices = @transform_3, window_bounds = array<i64: 4, 2, 18>}]} {
    %c0 = arith.constant 0 : index
    %c0_0 = arith.constant 0 : index
    %c0_1 = arith.constant 0 : index
    %0 = vector.load %arg1[%c0, %c0_0, %c0_1] : memref<4x16x128xf32, #tpu.memory_space<vmem>>, vector<4x16x128xf32>
    %1 = vector.extract_strided_slice %0 {offsets = [0, 0, 0], sizes = [4, 14, 128], strides = [1, 1, 1]} : vector<4x16x128xf32> to vector<4x14x128xf32>
    %2 = vector.extract_strided_slice %0 {offsets = [0, 1, 0], sizes = [4, 14, 128], strides = [1, 1, 1]} : vector<4x16x128xf32> to vector<4x14x128xf32>
    %3 = vector.extract_strided_slice %0 {offsets = [0, 2, 0], sizes = [4, 14, 128], strides = [1, 1, 1]} : vector<4x16x128xf32> to vector<4x14x128xf32>
    %cst = arith.constant 2.000000e+00 : f32
    %4 = vector.broadcast %cst : f32 to vector<4x14x128xf32>
    %5 = arith.mulf %4, %2 : vector<4x14x128xf32>
    %6 = arith.addf %1, %5 : vector<4x14x128xf32>
    %7 = arith.addf %6, %3 : vector<4x14x128xf32>
    %8 = arith.subf %1, %3 : vector<4x14x128xf32>
    %9 = vector.extract_strided_slice %7 {offsets = [0, 0, 0], sizes = [4, 14, 14], strides = [1, 1, 1]} : vector<4x14x128xf32> to vector<4x14x14xf32>
    %10 = vector.extract_strided_slice %7 {offsets = [0, 0, 2], sizes = [4, 14, 14], strides = [1, 1, 1]} : vector<4x14x128xf32> to vector<4x14x14xf32>
    %11 = arith.subf %9, %10 : vector<4x14x14xf32>
    %12 = vector.extract_strided_slice %8 {offsets = [0, 0, 0], sizes = [4, 14, 14], strides = [1, 1, 1]} : vector<4x14x128xf32> to vector<4x14x14xf32>
    %13 = vector.extract_strided_slice %8 {offsets = [0, 0, 1], sizes = [4, 14, 14], strides = [1, 1, 1]} : vector<4x14x128xf32> to vector<4x14x14xf32>
    %cst_2 = arith.constant 2.000000e+00 : f32
    %14 = vector.broadcast %cst_2 : f32 to vector<4x14x14xf32>
    %15 = arith.mulf %14, %13 : vector<4x14x14xf32>
    %16 = arith.addf %12, %15 : vector<4x14x14xf32>
    %17 = vector.extract_strided_slice %8 {offsets = [0, 0, 2], sizes = [4, 14, 14], strides = [1, 1, 1]} : vector<4x14x128xf32> to vector<4x14x14xf32>
    %18 = arith.addf %16, %17 : vector<4x14x14xf32>
    %19 = arith.mulf %11, %11 : vector<4x14x14xf32>
    %20 = arith.mulf %18, %18 : vector<4x14x14xf32>
    %21 = arith.addf %19, %20 : vector<4x14x14xf32>
    %22 = math.sqrt %21 : vector<4x14x14xf32>
    %23 = math.absf %11 : vector<4x14x14xf32>
    %cst_3 = arith.constant 0.000000e+00 : f32
    %24 = vector.broadcast %cst_3 : f32 to vector<4x14x14xf32>
    %25 = arith.cmpf ogt, %11, %24 : vector<4x14x14xf32>
    %cst_4 = arith.constant 0.000000e+00 : f32
    %26 = vector.broadcast %cst_4 : f32 to vector<4x14x14xf32>
    %27 = arith.cmpf olt, %11, %26 : vector<4x14x14xf32>
    %cst_5 = arith.constant 0.000000e+00 : f32
    %28 = vector.broadcast %cst_5 : f32 to vector<4x14x14xf32>
    %29 = arith.subf %28, %18 : vector<4x14x14xf32>
    %cst_6 = arith.constant 1.000000e+30 : f32
    %30 = vector.broadcast %cst_6 : f32 to vector<4x14x14xf32>
    %31 = arith.select %27, %29, %30 : vector<4x14x14xi1>, vector<4x14x14xf32>
    %32 = arith.select %25, %18, %31 : vector<4x14x14xi1>, vector<4x14x14xf32>
    %c0_7 = arith.constant 0 : index
    %c0_8 = arith.constant 0 : index
    %33 = vector.load %arg2[%c0_7, %c0_8] : memref<2x14xf32, #tpu.memory_space<vmem>>, vector<2x14xf32>
    %34 = vector.shape_cast %33 : vector<2x14xf32> to vector<1x2x14xf32>
    %35 = vector.shape_cast %34 : vector<1x2x14xf32> to vector<1x2x14xf32>
    %36 = vector.broadcast %35 : vector<1x2x14xf32> to vector<4x2x14xf32>
    %c0_9 = arith.constant 0 : index
    %c0_10 = arith.constant 0 : index
    %37 = vector.load %arg3[%c0_9, %c0_10] : memref<2x14xf32, #tpu.memory_space<vmem>>, vector<2x14xf32>
    %38 = vector.shape_cast %37 : vector<2x14xf32> to vector<1x2x14xf32>
    %39 = vector.shape_cast %38 : vector<1x2x14xf32> to vector<1x2x14xf32>
    %40 = vector.broadcast %39 : vector<1x2x14xf32> to vector<4x2x14xf32>
    "tpu.trace_start"() <{level = 10 : i32, message = "ghw,gpw->ghp"}> : () -> ()
    %cst_11 = arith.constant dense<0.000000e+00> : vector<4x14x2xf32>
    %41 = tpu.matmul %22, %36, %cst_11 {dimension_numbers = #tpu.dot_dimension_numbers<[2], [2], [1], [1], [0, 0, 0, 1, 1, 1], [0], [0]>, precision = #tpu.contract_precision<fp32>} : vector<4x14x14xf32>, vector<4x2x14xf32>, vector<4x14x2xf32> -> vector<4x14x2xf32>
    "tpu.trace_stop"() : () -> ()
    "tpu.trace_start"() <{level = 10 : i32, message = "gqh,ghp->gqp"}> : () -> ()
    %cst_12 = arith.constant dense<0.000000e+00> : vector<4x2x2xf32>
    %42 = tpu.matmul %40, %41, %cst_12 {dimension_numbers = #tpu.dot_dimension_numbers<[2], [1], [1], [2], [0, 0, 0, 1, 1, 2], [0], [0]>, precision = #tpu.contract_precision<fp32>} : vector<4x2x14xf32>, vector<4x14x2xf32>, vector<4x2x2xf32> -> vector<4x2x2xf32>
    "tpu.trace_stop"() : () -> ()
    %cst_13 = arith.constant 0.939692616 : f32
    %43 = vector.broadcast %cst_13 : f32 to vector<4x14x14xf32>
    %44 = arith.mulf %23, %43 : vector<4x14x14xf32>
    %cst_14 = arith.constant 0.342020154 : f32
    %45 = vector.broadcast %cst_14 : f32 to vector<4x14x14xf32>
    %46 = arith.mulf %32, %45 : vector<4x14x14xf32>
    %47 = arith.cmpf oge, %44, %46 : vector<4x14x14xf32>
    %cst_15 = arith.constant 0.000000e+00 : f32
    %48 = vector.broadcast %cst_15 : f32 to vector<4x14x14xf32>
    %49 = arith.select %47, %22, %48 : vector<4x14x14xi1>, vector<4x14x14xf32>
    "tpu.trace_start"() <{level = 10 : i32, message = "ghw,gpw->ghp"}> : () -> ()
    %cst_16 = arith.constant dense<0.000000e+00> : vector<4x14x2xf32>
    %50 = tpu.matmul %49, %36, %cst_16 {dimension_numbers = #tpu.dot_dimension_numbers<[2], [2], [1], [1], [0, 0, 0, 1, 1, 1], [0], [0]>, precision = #tpu.contract_precision<fp32>} : vector<4x14x14xf32>, vector<4x2x14xf32>, vector<4x14x2xf32> -> vector<4x14x2xf32>
    "tpu.trace_stop"() : () -> ()
    "tpu.trace_start"() <{level = 10 : i32, message = "gqh,ghp->gqp"}> : () -> ()
    %cst_17 = arith.constant dense<0.000000e+00> : vector<4x2x2xf32>
    %51 = tpu.matmul %40, %50, %cst_17 {dimension_numbers = #tpu.dot_dimension_numbers<[2], [1], [1], [2], [0, 0, 0, 1, 1, 2], [0], [0]>, precision = #tpu.contract_precision<fp32>} : vector<4x2x14xf32>, vector<4x14x2xf32>, vector<4x2x2xf32> -> vector<4x2x2xf32>
    "tpu.trace_stop"() : () -> ()
    %cst_18 = arith.constant 0.766044437 : f32
    %52 = vector.broadcast %cst_18 : f32 to vector<4x14x14xf32>
    %53 = arith.mulf %23, %52 : vector<4x14x14xf32>
    %cst_19 = arith.constant 0.642787635 : f32
    %54 = vector.broadcast %cst_19 : f32 to vector<4x14x14xf32>
    %55 = arith.mulf %32, %54 : vector<4x14x14xf32>
    %56 = arith.cmpf oge, %53, %55 : vector<4x14x14xf32>
    %cst_20 = arith.constant 0.000000e+00 : f32
    %57 = vector.broadcast %cst_20 : f32 to vector<4x14x14xf32>
    %58 = arith.select %56, %22, %57 : vector<4x14x14xi1>, vector<4x14x14xf32>
    "tpu.trace_start"() <{level = 10 : i32, message = "ghw,gpw->ghp"}> : () -> ()
    %cst_21 = arith.constant dense<0.000000e+00> : vector<4x14x2xf32>
    %59 = tpu.matmul %58, %36, %cst_21 {dimension_numbers = #tpu.dot_dimension_numbers<[2], [2], [1], [1], [0, 0, 0, 1, 1, 1], [0], [0]>, precision = #tpu.contract_precision<fp32>} : vector<4x14x14xf32>, vector<4x2x14xf32>, vector<4x14x2xf32> -> vector<4x14x2xf32>
    "tpu.trace_stop"() : () -> ()
    "tpu.trace_start"() <{level = 10 : i32, message = "gqh,ghp->gqp"}> : () -> ()
    %cst_22 = arith.constant dense<0.000000e+00> : vector<4x2x2xf32>
    %60 = tpu.matmul %40, %59, %cst_22 {dimension_numbers = #tpu.dot_dimension_numbers<[2], [1], [1], [2], [0, 0, 0, 1, 1, 2], [0], [0]>, precision = #tpu.contract_precision<fp32>} : vector<4x2x14xf32>, vector<4x14x2xf32>, vector<4x2x2xf32> -> vector<4x2x2xf32>
    "tpu.trace_stop"() : () -> ()
    %cst_23 = arith.constant 5.000000e-01 : f32
    %61 = vector.broadcast %cst_23 : f32 to vector<4x14x14xf32>
    %62 = arith.mulf %23, %61 : vector<4x14x14xf32>
    %cst_24 = arith.constant 0.866025388 : f32
    %63 = vector.broadcast %cst_24 : f32 to vector<4x14x14xf32>
    %64 = arith.mulf %32, %63 : vector<4x14x14xf32>
    %65 = arith.cmpf oge, %62, %64 : vector<4x14x14xf32>
    %cst_25 = arith.constant 0.000000e+00 : f32
    %66 = vector.broadcast %cst_25 : f32 to vector<4x14x14xf32>
    %67 = arith.select %65, %22, %66 : vector<4x14x14xi1>, vector<4x14x14xf32>
    "tpu.trace_start"() <{level = 10 : i32, message = "ghw,gpw->ghp"}> : () -> ()
    %cst_26 = arith.constant dense<0.000000e+00> : vector<4x14x2xf32>
    %68 = tpu.matmul %67, %36, %cst_26 {dimension_numbers = #tpu.dot_dimension_numbers<[2], [2], [1], [1], [0, 0, 0, 1, 1, 1], [0], [0]>, precision = #tpu.contract_precision<fp32>} : vector<4x14x14xf32>, vector<4x2x14xf32>, vector<4x14x2xf32> -> vector<4x14x2xf32>
    "tpu.trace_stop"() : () -> ()
    "tpu.trace_start"() <{level = 10 : i32, message = "gqh,ghp->gqp"}> : () -> ()
    %cst_27 = arith.constant dense<0.000000e+00> : vector<4x2x2xf32>
    %69 = tpu.matmul %40, %68, %cst_27 {dimension_numbers = #tpu.dot_dimension_numbers<[2], [1], [1], [2], [0, 0, 0, 1, 1, 2], [0], [0]>, precision = #tpu.contract_precision<fp32>} : vector<4x2x14xf32>, vector<4x14x2xf32>, vector<4x2x2xf32> -> vector<4x2x2xf32>
    "tpu.trace_stop"() : () -> ()
    %cst_28 = arith.constant 0.173648179 : f32
    %70 = vector.broadcast %cst_28 : f32 to vector<4x14x14xf32>
    %71 = arith.mulf %23, %70 : vector<4x14x14xf32>
    %cst_29 = arith.constant 0.984807729 : f32
    %72 = vector.broadcast %cst_29 : f32 to vector<4x14x14xf32>
    %73 = arith.mulf %32, %72 : vector<4x14x14xf32>
    %74 = arith.cmpf oge, %71, %73 : vector<4x14x14xf32>
    %cst_30 = arith.constant 0.000000e+00 : f32
    %75 = vector.broadcast %cst_30 : f32 to vector<4x14x14xf32>
    %76 = arith.select %74, %22, %75 : vector<4x14x14xi1>, vector<4x14x14xf32>
    "tpu.trace_start"() <{level = 10 : i32, message = "ghw,gpw->ghp"}> : () -> ()
    %cst_31 = arith.constant dense<0.000000e+00> : vector<4x14x2xf32>
    %77 = tpu.matmul %76, %36, %cst_31 {dimension_numbers = #tpu.dot_dimension_numbers<[2], [2], [1], [1], [0, 0, 0, 1, 1, 1], [0], [0]>, precision = #tpu.contract_precision<fp32>} : vector<4x14x14xf32>, vector<4x2x14xf32>, vector<4x14x2xf32> -> vector<4x14x2xf32>
    "tpu.trace_stop"() : () -> ()
    "tpu.trace_start"() <{level = 10 : i32, message = "gqh,ghp->gqp"}> : () -> ()
    %cst_32 = arith.constant dense<0.000000e+00> : vector<4x2x2xf32>
    %78 = tpu.matmul %40, %77, %cst_32 {dimension_numbers = #tpu.dot_dimension_numbers<[2], [1], [1], [2], [0, 0, 0, 1, 1, 2], [0], [0]>, precision = #tpu.contract_precision<fp32>} : vector<4x2x14xf32>, vector<4x14x2xf32>, vector<4x2x2xf32> -> vector<4x2x2xf32>
    "tpu.trace_stop"() : () -> ()
    %cst_33 = arith.constant -0.173648179 : f32
    %79 = vector.broadcast %cst_33 : f32 to vector<4x14x14xf32>
    %80 = arith.mulf %23, %79 : vector<4x14x14xf32>
    %cst_34 = arith.constant 0.984807729 : f32
    %81 = vector.broadcast %cst_34 : f32 to vector<4x14x14xf32>
    %82 = arith.mulf %32, %81 : vector<4x14x14xf32>
    %83 = arith.cmpf oge, %80, %82 : vector<4x14x14xf32>
    %cst_35 = arith.constant 0.000000e+00 : f32
    %84 = vector.broadcast %cst_35 : f32 to vector<4x14x14xf32>
    %85 = arith.select %83, %22, %84 : vector<4x14x14xi1>, vector<4x14x14xf32>
    "tpu.trace_start"() <{level = 10 : i32, message = "ghw,gpw->ghp"}> : () -> ()
    %cst_36 = arith.constant dense<0.000000e+00> : vector<4x14x2xf32>
    %86 = tpu.matmul %85, %36, %cst_36 {dimension_numbers = #tpu.dot_dimension_numbers<[2], [2], [1], [1], [0, 0, 0, 1, 1, 1], [0], [0]>, precision = #tpu.contract_precision<fp32>} : vector<4x14x14xf32>, vector<4x2x14xf32>, vector<4x14x2xf32> -> vector<4x14x2xf32>
    "tpu.trace_stop"() : () -> ()
    "tpu.trace_start"() <{level = 10 : i32, message = "gqh,ghp->gqp"}> : () -> ()
    %cst_37 = arith.constant dense<0.000000e+00> : vector<4x2x2xf32>
    %87 = tpu.matmul %40, %86, %cst_37 {dimension_numbers = #tpu.dot_dimension_numbers<[2], [1], [1], [2], [0, 0, 0, 1, 1, 2], [0], [0]>, precision = #tpu.contract_precision<fp32>} : vector<4x2x14xf32>, vector<4x14x2xf32>, vector<4x2x2xf32> -> vector<4x2x2xf32>
    "tpu.trace_stop"() : () -> ()
    %cst_38 = arith.constant -5.000000e-01 : f32
    %88 = vector.broadcast %cst_38 : f32 to vector<4x14x14xf32>
    %89 = arith.mulf %23, %88 : vector<4x14x14xf32>
    %cst_39 = arith.constant 0.866025388 : f32
    %90 = vector.broadcast %cst_39 : f32 to vector<4x14x14xf32>
    %91 = arith.mulf %32, %90 : vector<4x14x14xf32>
    %92 = arith.cmpf oge, %89, %91 : vector<4x14x14xf32>
    %cst_40 = arith.constant 0.000000e+00 : f32
    %93 = vector.broadcast %cst_40 : f32 to vector<4x14x14xf32>
    %94 = arith.select %92, %22, %93 : vector<4x14x14xi1>, vector<4x14x14xf32>
    "tpu.trace_start"() <{level = 10 : i32, message = "ghw,gpw->ghp"}> : () -> ()
    %cst_41 = arith.constant dense<0.000000e+00> : vector<4x14x2xf32>
    %95 = tpu.matmul %94, %36, %cst_41 {dimension_numbers = #tpu.dot_dimension_numbers<[2], [2], [1], [1], [0, 0, 0, 1, 1, 1], [0], [0]>, precision = #tpu.contract_precision<fp32>} : vector<4x14x14xf32>, vector<4x2x14xf32>, vector<4x14x2xf32> -> vector<4x14x2xf32>
    "tpu.trace_stop"() : () -> ()
    "tpu.trace_start"() <{level = 10 : i32, message = "gqh,ghp->gqp"}> : () -> ()
    %cst_42 = arith.constant dense<0.000000e+00> : vector<4x2x2xf32>
    %96 = tpu.matmul %40, %95, %cst_42 {dimension_numbers = #tpu.dot_dimension_numbers<[2], [1], [1], [2], [0, 0, 0, 1, 1, 2], [0], [0]>, precision = #tpu.contract_precision<fp32>} : vector<4x2x14xf32>, vector<4x14x2xf32>, vector<4x2x2xf32> -> vector<4x2x2xf32>
    "tpu.trace_stop"() : () -> ()
    %cst_43 = arith.constant -0.766044437 : f32
    %97 = vector.broadcast %cst_43 : f32 to vector<4x14x14xf32>
    %98 = arith.mulf %23, %97 : vector<4x14x14xf32>
    %cst_44 = arith.constant 0.642787635 : f32
    %99 = vector.broadcast %cst_44 : f32 to vector<4x14x14xf32>
    %100 = arith.mulf %32, %99 : vector<4x14x14xf32>
    %101 = arith.cmpf oge, %98, %100 : vector<4x14x14xf32>
    %cst_45 = arith.constant 0.000000e+00 : f32
    %102 = vector.broadcast %cst_45 : f32 to vector<4x14x14xf32>
    %103 = arith.select %101, %22, %102 : vector<4x14x14xi1>, vector<4x14x14xf32>
    "tpu.trace_start"() <{level = 10 : i32, message = "ghw,gpw->ghp"}> : () -> ()
    %cst_46 = arith.constant dense<0.000000e+00> : vector<4x14x2xf32>
    %104 = tpu.matmul %103, %36, %cst_46 {dimension_numbers = #tpu.dot_dimension_numbers<[2], [2], [1], [1], [0, 0, 0, 1, 1, 1], [0], [0]>, precision = #tpu.contract_precision<fp32>} : vector<4x14x14xf32>, vector<4x2x14xf32>, vector<4x14x2xf32> -> vector<4x14x2xf32>
    "tpu.trace_stop"() : () -> ()
    "tpu.trace_start"() <{level = 10 : i32, message = "gqh,ghp->gqp"}> : () -> ()
    %cst_47 = arith.constant dense<0.000000e+00> : vector<4x2x2xf32>
    %105 = tpu.matmul %40, %104, %cst_47 {dimension_numbers = #tpu.dot_dimension_numbers<[2], [1], [1], [2], [0, 0, 0, 1, 1, 2], [0], [0]>, precision = #tpu.contract_precision<fp32>} : vector<4x2x14xf32>, vector<4x14x2xf32>, vector<4x2x2xf32> -> vector<4x2x2xf32>
    "tpu.trace_stop"() : () -> ()
    %cst_48 = arith.constant -0.939692616 : f32
    %106 = vector.broadcast %cst_48 : f32 to vector<4x14x14xf32>
    %107 = arith.mulf %23, %106 : vector<4x14x14xf32>
    %cst_49 = arith.constant 0.342020154 : f32
    %108 = vector.broadcast %cst_49 : f32 to vector<4x14x14xf32>
    %109 = arith.mulf %32, %108 : vector<4x14x14xf32>
    %110 = arith.cmpf oge, %107, %109 : vector<4x14x14xf32>
    %cst_50 = arith.constant 0.000000e+00 : f32
    %111 = vector.broadcast %cst_50 : f32 to vector<4x14x14xf32>
    %112 = arith.select %110, %22, %111 : vector<4x14x14xi1>, vector<4x14x14xf32>
    "tpu.trace_start"() <{level = 10 : i32, message = "ghw,gpw->ghp"}> : () -> ()
    %cst_51 = arith.constant dense<0.000000e+00> : vector<4x14x2xf32>
    %113 = tpu.matmul %112, %36, %cst_51 {dimension_numbers = #tpu.dot_dimension_numbers<[2], [2], [1], [1], [0, 0, 0, 1, 1, 1], [0], [0]>, precision = #tpu.contract_precision<fp32>} : vector<4x14x14xf32>, vector<4x2x14xf32>, vector<4x14x2xf32> -> vector<4x14x2xf32>
    "tpu.trace_stop"() : () -> ()
    "tpu.trace_start"() <{level = 10 : i32, message = "gqh,ghp->gqp"}> : () -> ()
    %cst_52 = arith.constant dense<0.000000e+00> : vector<4x2x2xf32>
    %114 = tpu.matmul %40, %113, %cst_52 {dimension_numbers = #tpu.dot_dimension_numbers<[2], [1], [1], [2], [0, 0, 0, 1, 1, 2], [0], [0]>, precision = #tpu.contract_precision<fp32>} : vector<4x2x14xf32>, vector<4x14x2xf32>, vector<4x2x2xf32> -> vector<4x2x2xf32>
    %cst_53 = arith.constant 0.000000e+00 : f32
    "tpu.trace_stop"() : () -> ()
    %115 = vector.broadcast %cst_53 : f32 to vector<4x2x2xf32>
    %116 = arith.subf %42, %51 : vector<4x2x2xf32>
    %117 = arith.mulf %116, %116 : vector<4x2x2xf32>
    %118 = arith.addf %115, %117 : vector<4x2x2xf32>
    %119 = arith.subf %51, %60 : vector<4x2x2xf32>
    %120 = arith.mulf %119, %119 : vector<4x2x2xf32>
    %121 = arith.addf %118, %120 : vector<4x2x2xf32>
    %122 = arith.subf %60, %69 : vector<4x2x2xf32>
    %123 = arith.mulf %122, %122 : vector<4x2x2xf32>
    %124 = arith.addf %121, %123 : vector<4x2x2xf32>
    %125 = arith.subf %69, %78 : vector<4x2x2xf32>
    %126 = arith.mulf %125, %125 : vector<4x2x2xf32>
    %127 = arith.addf %124, %126 : vector<4x2x2xf32>
    %128 = arith.subf %78, %87 : vector<4x2x2xf32>
    %129 = arith.mulf %128, %128 : vector<4x2x2xf32>
    %130 = arith.addf %127, %129 : vector<4x2x2xf32>
    %131 = arith.subf %87, %96 : vector<4x2x2xf32>
    %132 = arith.mulf %131, %131 : vector<4x2x2xf32>
    %133 = arith.addf %130, %132 : vector<4x2x2xf32>
    %134 = arith.subf %96, %105 : vector<4x2x2xf32>
    %135 = arith.mulf %134, %134 : vector<4x2x2xf32>
    %136 = arith.addf %133, %135 : vector<4x2x2xf32>
    %137 = arith.subf %105, %114 : vector<4x2x2xf32>
    %138 = arith.mulf %137, %137 : vector<4x2x2xf32>
    %139 = arith.addf %136, %138 : vector<4x2x2xf32>
    %140 = arith.mulf %114, %114 : vector<4x2x2xf32>
    %141 = arith.addf %139, %140 : vector<4x2x2xf32>
    %cst_54 = arith.constant 1.000000e-24 : f32
    %142 = vector.broadcast %cst_54 : f32 to vector<4x2x2xf32>
    %143 = arith.maximumf %141, %142 : vector<4x2x2xf32>
    %144 = math.rsqrt %143 : vector<4x2x2xf32>
    %145 = arith.mulf %116, %144 : vector<4x2x2xf32>
    %c0_55 = arith.constant 0 : index
    %c0_56 = arith.constant 0 : index
    %c0_57 = arith.constant 0 : index
    %146 = vector.load %arg4[%c0_55, %c0_56, %c0_57] : memref<4x2x18xf32, #tpu.memory_space<vmem>>, vector<4x2x2xf32>
    tpu.vector_store %arg4[%c0_55, %c0_56, %c0_57], %145 {strides = array<i32>} : memref<4x2x18xf32, #tpu.memory_space<vmem>>, vector<4x2x2xf32>,
    %147 = arith.mulf %119, %144 : vector<4x2x2xf32>
    %c0_58 = arith.constant 0 : index
    %c0_59 = arith.constant 0 : index
    %c2 = arith.constant 2 : index
    %148 = vector.load %arg4[%c0_58, %c0_59, %c2] : memref<4x2x18xf32, #tpu.memory_space<vmem>>, vector<4x2x2xf32>
    tpu.vector_store %arg4[%c0_58, %c0_59, %c2], %147 {strides = array<i32>} : memref<4x2x18xf32, #tpu.memory_space<vmem>>, vector<4x2x2xf32>,
    %149 = arith.mulf %122, %144 : vector<4x2x2xf32>
    %c0_60 = arith.constant 0 : index
    %c0_61 = arith.constant 0 : index
    %c4 = arith.constant 4 : index
    %150 = vector.load %arg4[%c0_60, %c0_61, %c4] : memref<4x2x18xf32, #tpu.memory_space<vmem>>, vector<4x2x2xf32>
    tpu.vector_store %arg4[%c0_60, %c0_61, %c4], %149 {strides = array<i32>} : memref<4x2x18xf32, #tpu.memory_space<vmem>>, vector<4x2x2xf32>,
    %151 = arith.mulf %125, %144 : vector<4x2x2xf32>
    %c0_62 = arith.constant 0 : index
    %c0_63 = arith.constant 0 : index
    %c6 = arith.constant 6 : index
    %152 = vector.load %arg4[%c0_62, %c0_63, %c6] : memref<4x2x18xf32, #tpu.memory_space<vmem>>, vector<4x2x2xf32>
    tpu.vector_store %arg4[%c0_62, %c0_63, %c6], %151 {strides = array<i32>} : memref<4x2x18xf32, #tpu.memory_space<vmem>>, vector<4x2x2xf32>,
    %153 = arith.mulf %128, %144 : vector<4x2x2xf32>
    %c0_64 = arith.constant 0 : index
    %c0_65 = arith.constant 0 : index
    %c8 = arith.constant 8 : index
    %154 = vector.load %arg4[%c0_64, %c0_65, %c8] : memref<4x2x18xf32, #tpu.memory_space<vmem>>, vector<4x2x2xf32>
    tpu.vector_store %arg4[%c0_64, %c0_65, %c8], %153 {strides = array<i32>} : memref<4x2x18xf32, #tpu.memory_space<vmem>>, vector<4x2x2xf32>,
    %155 = arith.mulf %131, %144 : vector<4x2x2xf32>
    %c0_66 = arith.constant 0 : index
    %c0_67 = arith.constant 0 : index
    %c10 = arith.constant 10 : index
    %156 = vector.load %arg4[%c0_66, %c0_67, %c10] : memref<4x2x18xf32, #tpu.memory_space<vmem>>, vector<4x2x2xf32>
    tpu.vector_store %arg4[%c0_66, %c0_67, %c10], %155 {strides = array<i32>} : memref<4x2x18xf32, #tpu.memory_space<vmem>>, vector<4x2x2xf32>,
    %157 = arith.mulf %134, %144 : vector<4x2x2xf32>
    %c0_68 = arith.constant 0 : index
    %c0_69 = arith.constant 0 : index
    %c12 = arith.constant 12 : index
    %158 = vector.load %arg4[%c0_68, %c0_69, %c12] : memref<4x2x18xf32, #tpu.memory_space<vmem>>, vector<4x2x2xf32>
    tpu.vector_store %arg4[%c0_68, %c0_69, %c12], %157 {strides = array<i32>} : memref<4x2x18xf32, #tpu.memory_space<vmem>>, vector<4x2x2xf32>,
    %159 = arith.mulf %137, %144 : vector<4x2x2xf32>
    %c0_70 = arith.constant 0 : index
    %c0_71 = arith.constant 0 : index
    %c14 = arith.constant 14 : index
    %160 = vector.load %arg4[%c0_70, %c0_71, %c14] : memref<4x2x18xf32, #tpu.memory_space<vmem>>, vector<4x2x2xf32>
    tpu.vector_store %arg4[%c0_70, %c0_71, %c14], %159 {strides = array<i32>} : memref<4x2x18xf32, #tpu.memory_space<vmem>>, vector<4x2x2xf32>,
    %161 = arith.mulf %114, %144 : vector<4x2x2xf32>
    %c0_72 = arith.constant 0 : index
    %c0_73 = arith.constant 0 : index
    %c16 = arith.constant 16 : index
    %162 = vector.load %arg4[%c0_72, %c0_73, %c16] : memref<4x2x18xf32, #tpu.memory_space<vmem>>, vector<4x2x2xf32>
    tpu.vector_store %arg4[%c0_72, %c0_73, %c16], %161 {strides = array<i32>} : memref<4x2x18xf32, #tpu.memory_space<vmem>>, vector<4x2x2xf32>,
    return
  }
  func.func @transform_0(%arg0: i32) -> (i32, i32, i32) {
    %c0_i32 = arith.constant 0 : i32
    %c0_i32_0 = arith.constant 0 : i32
    %c0_i32_1 = arith.constant 0 : i32
    return %arg0, %c0_i32, %c0_i32_0 : i32, i32, i32
  }
  func.func @transform_1(%arg0: i32) -> (i32, i32) {
    %c0_i32 = arith.constant 0 : i32
    %c0_i32_0 = arith.constant 0 : i32
    %c0_i32_1 = arith.constant 0 : i32
    return %c0_i32, %c0_i32_0 : i32, i32
  }
  func.func @transform_2(%arg0: i32) -> (i32, i32) {
    %c0_i32 = arith.constant 0 : i32
    %c0_i32_0 = arith.constant 0 : i32
    %c0_i32_1 = arith.constant 0 : i32
    return %c0_i32, %c0_i32_0 : i32, i32
  }
  func.func @transform_3(%arg0: i32) -> (i32, i32, i32) {
    %c0_i32 = arith.constant 0 : i32
    %c0_i32_0 = arith.constant 0 : i32
    %c0_i32_1 = arith.constant 0 : i32
    return %arg0, %c0_i32, %c0_i32_0 : i32, i32, i32
  }
}

</mosaic_0001>

<bundles_post_ra>
// kernel: tpu_custom_call.1
= control target key start
LH: loop header
LB: loop body
LE: loop exit
PB: predicated region body
PF: predicated region fallthrough
CT: control target
= control target key end

     0   :  { %8 = vsyncpa [#allocation3], 0  ;;  %s44494_s0 = inlined_call_operand.hbm [shape: f32[8,16,128], index: 0, kind: input, shape index: {}]   ;;  %s44495_s1 = inlined_call_operand.vmem [shape: f32[2,14], index: 1, kind: input, shape index: {}]   ;;  %s44496_s2 = inlined_call_operand.vmem [shape: f32[2,14], index: 2, kind: input, shape index: {}]   ;;  %s44497_s3 = inlined_call_operand.hbm [shape: f32[8,2,18], index: 3, kind: output, shape index: {}]  }
   0x1   :  { %10 = vsyncpa [#allocation3 + $0x1], 0 }
   0x2   :  { %11 = vsyncpa [#allocation4], 0 }
   0x3   :  { %13 = vsyncpa [#allocation4 + $0x1], 0  ;;  %s41135_s12 = smov 0   ;;  %s41137_s13 = smov 0  }
   0x4   :  { %s41139_s14 = smov 0   ;;  %s41141_s15 = smov 0  }
   0x5 LB: > { %s41156_s16 = sadd.s32 4294967295, %s41095_s15   ;;  %s35639_s17 = sadd.s32 4294967294, %s41095_s15   ;;  %s41095_s15 = sphi %s41141_s15, %s44770_s15   ;;  %s41091_s14 = sphi %s41139_s14, %s44769_s14   ;;  %s41087_s13 = sphi %s41137_s13, %s44768_s13   ;;  %s41083_s12 = sphi %s41135_s12, %s44767_s12  }
   0x6   : > { %s41160_s18 = sadd.s32 1, %s41095_s15   ;;  %s26_s19 = sadd.s32 1, %s41091_s14 }
   0x7   : > { %s23_s20 = ssub.s32 %s41095_s15, %s41160_s18  ;;  %p33_p0 = scmp.ne.s32.totalorder %s41091_s14, %s41087_s13 }
   0x8   : > { %p24_p1 = scmp.eq.s32.totalorder %s23_s20, 0  ;;  %p34_p2 = scmp.eq.s32.totalorder %s41095_s15, 0 }
   0x9   : > { %p39_p3 = scmp.ne.s32.totalorder %s41087_s13, %s41083_s12  ;;  %p40_p4 = scmp.eq.s32.totalorder %s41156_s16, 0 }
   0xa   : > { %s41172_s21 = scalar_select %p24_p1, %s41091_s14, %s26_s19  }
   0xb   : > { %p41174_p5 = por %p34_p2, %p33_p0  ;;  %p41178_p6 = por %p40_p4, %p39_p3 }
   0xc   : > { %p105_p7 = scmp.eq.s32.totalorder %s41156_s16, 1  ;;  %p111_p8 = scmp.eq.s32.totalorder %s35639_s17, 1 }
   0xd   : > { %p40925_p10 = scmp.lt.s32.totalorder %s41095_s15, 2  ;;  %s137_s26 = sand.u32 1, %s41091_s14  }
   0xe   : > { %p41185_p11 = por %p105_p7, %p33_p0  ;;  %p41189_p12 = por %p111_p8, %p39_p3 }
   0xf   : > { %s35655_s27 = sshll.u32 %s41095_s15, 10  ;;  %s35642_s28 = sshll.u32 %s137_s26, 6 }
  0x10   : > { %s44545_s24 = scalar_select %p41185_p11, 1, 0 }
  0x11   : > { %s44546_s25 = scalar_select %p41189_p12, 1, 0 }
  0x12   : > { %s41198_s4 = scalar_lea.hbm %s44494_s0, %s35655_s27  ;;  %s141_s5 = scalar_lea.vmem [#allocation2], %s35642_s28 }
  0x13   : > { %s149_s6 = sshll.u32 %s141_s5, 4  ;;  %p41202_p13 = pnand %p40925_p10, %p41174_p5  ;;  %s41206_s6 = int_to_ptr.vmem [resolvable:$true] %s149_s6 }
  0x14   : > { %s41208_s8 = scalar_lea.sflag [#allocation3], %s137_s26  ;;  %s40999_s9 = scalar_lea.hbm %s41198_s4, 1024 }
  0x15   : > { %p41000_p0 = scmp.ne.s32.totalorder %s41198_s4, %s40999_s9  ;;  %p41001_p1 = pneg %p41202_p13 }
  0x16   : > { %s41004_s17 = scalar_lea.hbm %s44494_s0, 2048  ;;  %p41005_p4 = scmp.lt.u32.totalorder %s41198_s4, %s44494_s0 }
  0x17   : > { %p41002_p2 = pnand %p41001_p1, %p41000_p0  ;;  %p41006_p5 = scmp.lt.u32.totalorder %s41004_s17, %s40999_s9 }
  0x18   : > { %p41008_p8 = scmp.lt.u32.totalorder %s40999_s9, %s41198_s4 }
  0x19   : > { %p41003_p3 = pneg %p41002_p2  ;;  %p41007_p7 = por %p41006_p5, %p41005_p4 }
  0x1b   : > { %p41009_p10 = por %p41008_p8, %p41007_p7 }
  0x1d   : > { %p41010_p9 = pnand %p41009_p10, %p41003_p3 }
  0x1f   : > { %41013 = shalt.err (!%p41010_p9)
}
  0x20   : > { %s41014_s22 = scalar_lea.vmem %s41206_s6, 1024  ;;  %s41097_s26 = smov [#allocation2]  }
  0x21   : > { %p41015_p0 = scmp.ne.s32.totalorder %s41206_s6, %s41014_s22  ;;  %s41019_s27 = sshll.u32 %s41097_s26, 4  ;;  %s41020_s27 = int_to_ptr.vmem [resolvable:$false] %s41019_s27 }
  0x22   : > { %s41021_s28 = scalar_lea.vmem %s41020_s27, 2048  ;;  %p41022_p11 = scmp.lt.s32.totalorder %s41206_s6, %s41020_s27 }
  0x23   : > { %p41017_p2 = pnand %p41015_p0, %p41001_p1  ;;  %p41023_p4 = scmp.lt.s32.totalorder %s41021_s28, %s41014_s22 }
  0x25   : > { %p41018_p12 = pneg %p41017_p2  ;;  %p41024_p5 = por %p41023_p4, %p41022_p11 }
  0x27   : > { %p41025_p7 = pnand %p41024_p5, %p41018_p12 }
  0x29   : > { %41028 = shalt.err (!%p41025_p7)
}
  0x2a   : > { %s41098_s29 = smov 128   ;;  %s41099_s30 = smov 8  }
  0x2b   : > { %40920 = dma.hbm_to_vmem [thread:$0]  (!%p41202_p13), %s41198_s4, 1024, %s41206_s6, %s41208_s8, %s41098_s29, %s41098_s29, %s41099_s30  }
  0x2c   : > { %p35646_p9 = scmp.ge.s32.totalorder %s41095_s15, 1  ;;  %p157_p1 = scmp.lt.s32.totalorder %s41095_s15, 3 }
  0x2e   : > { %p158_p3 = pnand %p35646_p9, %p157_p1 }
  0x30   : > { %161 = sbr.rel (%p158_p3) target bundleno = 3815 (0xee7), region = 32 }
  0x37   : > { %s41239_s5 = sand.u32 1, %s41087_s13  }
  0x38   : > { %s35647_s9 = sshll.u32 %s41239_s5, 6  ;;  %s164_s10 = scalar_lea.sflag [#allocation3], %s41239_s5 }
  0x39   : > { %s41243_s11 = scalar_lea.vmem [#allocation2], %s35647_s9 }
  0x3a   : > { %41074 = dma.done.wait (%p41178_p6), %s164_s10, 1024  }
  0x3b   : > { %41076 = vsyncadd (%p41178_p6), %s164_s10, 4294966272  ;;  %v546_v0 = vld [vmem:[%s44495_s1] sm:$0x3]  ;;  %vm44500_vm0 = vcmask 113664   ;;  %v194_v1 = vld [vmem:[%s41243_s11 + $0x10] sm:$0xff]  ;;  %vm44499_vm1 = vcmask 1045504  }
  0x3c   : > { %v195_v2 = vld [vmem:[%s41243_s11 + $0x18] sm:$0xff]  ;;  %v41255_v3 = vsel %vm44500_vm0, %v546_v0, 0  ;;  %v257_v4 = vrot.slane %v194_v1, 2  ;;  %v192_v6 = vld [vmem:[%s41243_s11] sm:$0xff]  ;;  %v193_v7 = vld [vmem:[%s41243_s11 + $0x8] sm:$0xff]  ;;  %v202_v14 = vmul.f32 2.0, %v194_v1 }
  0x3d   : > { %v258_v5 = vrot.slane %v195_v2, 2  ;;  %v41260_v8 = vand.u32 4294901760, %v41255_v3  ;;  %v254_v9 = vrot.slane %v192_v6, 2  ;;  %v255_v10 = vrot.slane %v193_v7, 2  ;;  %s41100_s23 = smov 126   ;;  %s41101_s7 = smov 127  }
  0x3e   : > { %v203_v11 = vmul.f32 2.0, %v195_v2  ;;  %v201_v13 = vmul.f32 2.0, %v193_v7  ;;  %v200_v22 = vmul.f32 2.0, %v192_v6  ;;  %v220_v25 = vrot.slane %v202_v14, 1  ;;  %v198_v33 = vld [vmem:[%s41243_s11 + $0x30] sm:$0xff]  ;;  %v199_v34 = vld [vmem:[%s41243_s11 + $0x38] sm:$0xff] }
  0x3f   : > { %v259_v12 = vsel %vm44499_vm1, %v257_v4, %v258_v5  ;;  %v256_v16 = vsel %vm44499_vm1, %v254_v9, %v255_v10  ;;  %v41266_v17 = vsub.f32 %v193_v7, %v255_v10  ;;  %36953 = vmatprep.subr.mxu0 %v41260_v8  ;;  %36983 = vmatprep.subr.mxu1 %v41260_v8  ;;  %vm216_vm2 = vcmask 1046528   ;;  %v196_v35 = vld [vmem:[%s41243_s11 + $0x20] sm:$0xff]  ;;  %v197_v36 = vld [vmem:[%s41243_s11 + $0x28] sm:$0xff]  ;;  %s35648_s19 = sshll.u32 %s41239_s5, 3  ;;  %s41105_s20 = smov 2  }
  0x40   : > { %v41263_v15 = vsub.f32 %v194_v1, %v259_v12  ;;  %v41269_v18 = vsub.f32 %v192_v6, %v256_v16  ;;  %36954 = vmatpush3.xpose.msra.mxu0 %v41260_v8  ;;  %v41276_v20 = vsub.f32 %v195_v2, %v258_v5  ;;  %v221_v21 = vrot.slane %v203_v11, 1  ;;  %36984 = vmatpush3.xpose.msra.mxu1 %v41260_v8  ;;  %s44318_s22 = scalar_lea.vmem [#allocation5], %s35648_s19  ;;  %s41106_s26 = smov 4  }
  0x41   : > { %v331_v19 = vmul.f32 2.0, %v41266_v17  ;;  %v218_v24 = vrot.slane %v201_v13, 1  ;;  %v217_v26 = vrot.slane %v200_v22, 1  ;;  %v263_v41 = vrot.slane %v198_v33, 2  ;;  %s41107_s27 = smov 6   ;;  %s41108_s28 = smov 8  }
  0x42   : > { %390 = vrot.lane.b32.xlu1 %v41263_v15, %s41100_s23  ;;  %386 = vrot.lane.b32.xlu0 %v41269_v18, %s41100_s23  ;;  %v330_v23 = vmul.f32 2.0, %v41269_v18  ;;  %v333_v27 = vmul.f32 2.0, %v41276_v20  ;;  %v240_v28 = vadd.f32 %v221_v21, %v195_v2  ;;  %v332_v29 = vmul.f32 2.0, %v41263_v15  ;;  %s41109_s29 = smov 10   ;;  %s41110_s30 = smov 12  }
  0x43   : > { %v238_v30 = vadd.f32 %v218_v24, %v193_v7  ;;  %v222_v31 = vsel %vm216_vm2, %v220_v25, %v221_v21  ;;  %v219_v32 = vsel %vm216_vm2, %v217_v26, %v218_v24  ;;  %v264_v42 = vrot.slane %v199_v34, 2  ;;  %s41111_s9 = smov 14   ;;  %s41112_s10 = smov 16  }
  0x44   : > { %v41293_v37 = vadd.f32 %v258_v5, %v240_v28  ;;  %v239_v38 = vadd.f32 %v222_v31, %v194_v1  ;;  %v237_v40 = vadd.f32 %v219_v32, %v192_v6  ;;  %v260_v43 = vrot.slane %v196_v35, 2  ;;  %s35656_s11 = sshll.u32 %s41156_s16, 7  ;;  %s35566_s4 = sshll.u32 %s44318_s22, 4  ;;  %s44447_s4 = int_to_ptr.vmem [resolvable:$true] %s35566_s4 }
  0x45   : > { %v41296_v39 = vadd.f32 %v255_v10, %v238_v30  ;;  %v261_v44 = vrot.slane %v197_v36, 2  ;;  %v265_v47 = vsel %vm44499_vm1, %v263_v41, %v264_v42  ;;  %v206_v48 = vmul.f32 2.0, %v198_v33  ;;  %s35553_s16 = scalar_lea.sflag [#allocation4], %s41239_s5  ;;  %s41029_s8 = scalar_lea.vmem %s44447_s4, 128 }
  0x46   : > { %348 = vrot.lane.b32.xlu1 %v331_v19, %s41101_s7  ;;  %346 = vrot.lane.b32.xlu0 %v330_v23, %s41101_s7  ;;  %v41300_v45 = vadd.f32 %v259_v12, %v239_v38  ;;  %v41304_v46 = vadd.f32 %v256_v16, %v237_v40  ;;  %v207_v49 = vmul.f32 2.0, %v199_v34  ;;  %v204_v51 = vmul.f32 2.0, %v196_v35  ;;  %p41030_p6 = scmp.ne.s32.totalorder %s44447_s4, %s41029_s8  ;;  %p44764_p11 = scmp.ne.s32.totalorder %s44545_s24, 0 }
  0x47   : > { %v262_v50 = vsel %vm44499_vm1, %v260_v43, %v261_v44  ;;  %v205_v52 = vmul.f32 2.0, %v197_v36  ;;  %v41310_v53 = vsub.f32 %v198_v33, %v265_v47  ;;  %v226_v55 = vrot.slane %v206_v48, 1  ;;  %s41113_s17 = smov [#allocation5]  }
  0x48   : > { %v41314_v54 = vsub.f32 %v196_v35, %v262_v50  ;;  %v227_v56 = vrot.slane %v207_v49, 1  ;;  %v223_v57 = vrot.slane %v204_v51, 1  ;;  %v41319_v60 = vsub.f32 %v199_v34, %v264_v42  ;;  %p41031_p12 = pnand %p41030_p6, %p44764_p11  ;;  %s41033_s19 = sshll.u32 %s41113_s17, 4  ;;  %s41034_s19 = int_to_ptr.vmem [resolvable:$false] %s41033_s19 }
  0x49   : > { %v224_v58 = vrot.slane %v205_v52, 1  ;;  %v336_v59 = vmul.f32 2.0, %v41310_v53  ;;  %v41324_v62 = vsub.f32 %v197_v36, %v261_v44  ;;  %v41360_v13 = vsub.f32 %v41255_v3, %v41260_v8  ;;  %p41036_p8 = scmp.lt.s32.totalorder %s44447_s4, %s41034_s19 }
  0x4a   : > { %352 = vrot.lane.b32.xlu1 %v333_v27, %s41101_s7  ;;  %350 = vrot.lane.b32.xlu0 %v332_v29, %s41101_s7  ;;  %v334_v61 = vmul.f32 2.0, %v41314_v54  ;;  %v228_v63 = vsel %vm216_vm2, %v226_v55, %v227_v56  ;;  %v337_v1 = vmul.f32 2.0, %v41319_v60  ;;  %v244_v9 = vadd.f32 %v227_v56, %v199_v34  ;;  %p41032_p13 = pneg %p41031_p12 }
  0x4b   : > { %v225_v0 = vsel %vm216_vm2, %v223_v57, %v224_v58  ;;  %v243_v2 = vadd.f32 %v228_v63, %v198_v33  ;;  %v335_v4 = vmul.f32 2.0, %v41324_v62  ;;  %v242_v10 = vadd.f32 %v224_v58, %v197_v36 }
  0x4c   : > { %v241_v5 = vadd.f32 %v225_v0, %v196_v35  ;;  %v41344_v11 = vadd.f32 %v264_v42, %v244_v9  ;;  %v41363_v14 = vand.u32 4294901760, %v41360_v13 }
  0x4d   : > { %v41333_v6 = vadd.f32 %v265_v47, %v243_v2  ;;  %v41348_v12 = vadd.f32 %v261_v44, %v242_v10 }
  0x4e   : > { %304 = vrot.lane.b32.xlu1 %v41293_v37, %s41100_s23  ;;  %300 = vrot.lane.b32.xlu0 %v41296_v39, %s41100_s23  ;;  %v41336_v7 = vadd.f32 %v262_v50, %v241_v5  ;;  %v648_v16 = vsub.f32 %v41360_v13, %v41363_v14 }
  0x50   : > { %v41367_v19 = vand.u32 4294901760, %v648_v16 }
  0x52   : > { %302 = vrot.lane.b32.xlu1 %v41300_v45, %s41100_s23  ;;  %298 = vrot.lane.b32.xlu0 %v41304_v46, %s41100_s23 }
  0x53   : > { %36958 = vmatprep.subr.mxu0 %v41367_v19  ;;  %36988 = vmatprep.subr.mxu1 %v41367_v19 }
  0x56   : > { %392 = vrot.lane.b32.xlu1 %v41276_v20, %s41100_s23  ;;  %388 = vrot.lane.b32.xlu0 %v41266_v17, %s41100_s23 }
  0x5a   : > { %358 = vrot.lane.b32.xlu1 %v336_v59, %s41101_s7  ;;  %354 = vrot.lane.b32.xlu0 %v334_v61, %s41101_s7 }
  0x5e   : > { %360 = vrot.lane.b32.xlu1 %v337_v1, %s41101_s7  ;;  %356 = vrot.lane.b32.xlu0 %v335_v4, %s41101_s7  ;;  %s44443_s7 = scalar_lea.hbm %s44497_s3, %s35656_s11 }
  0x62   : > { %310 = vrot.lane.b32.xlu1 %v41333_v6, %s41100_s23  ;;  %306 = vrot.lane.b32.xlu0 %v41336_v7, %s41100_s23 }
  0x66   : > { %398 = vrot.lane.b32.xlu1 %v41310_v53, %s41100_s23  ;;  %394 = vrot.lane.b32.xlu0 %v41314_v54, %s41100_s23 }
  0x6a   : > { %312 = vrot.lane.b32.xlu1 %v41344_v11, %s41100_s23  ;;  %308 = vrot.lane.b32.xlu0 %v41348_v12, %s41100_s23 }
  0x6e   : > { %400 = vrot.lane.b32.xlu1 %v41319_v60, %s41100_s23  ;;  %396 = vrot.lane.b32.xlu0 %v41324_v62, %s41100_s23 }
  0xb4   : > { %v391_v21 = vpop.permute.xlu1 %390  ;;  %v387_v22 = vpop.permute.xlu0 %386 }
  0xb8   : > { %v349_v23 = vpop.permute.xlu1 %348  ;;  %v347_v24 = vpop.permute.xlu0 %346 }
  0xb9   : > { %v370_v27 = vadd.f32 %v347_v24, %v41269_v18  ;;  %v371_v47 = vadd.f32 %v349_v23, %v41266_v17 }
  0xbb   : > { %v41375_v31 = vadd.f32 %v387_v22, %v370_v27 }
  0xbc   : > { %v353_v25 = vpop.permute.xlu1 %352  ;;  %v351_v26 = vpop.permute.xlu0 %350 }
  0xbd   : > { %v372_v3 = vadd.f32 %v351_v26, %v41263_v15  ;;  %v522_v15 = vsub.f32 0.0, %v41375_v31  ;;  %v373_v18 = vadd.f32 %v353_v25, %v41276_v20 }
  0xbf   : > { %v41373_v30 = vadd.f32 %v391_v21, %v372_v3 }
  0xc0   : > { %v305_v28 = vpop.permute.xlu1 %304  ;;  %v301_v29 = vpop.permute.xlu0 %300 }
  0xc1   : > { %v524_v35 = vsub.f32 0.0, %v41373_v30  ;;  %v325_v36 = vsub.f32 %v41293_v37, %v305_v28  ;;  %v323_v42 = vsub.f32 %v41296_v39, %v301_v29 }
  0xc3   : > { %v501_v37 = vand.u32 2147483647, %v325_v36  ;;  %v421_v20 = vmul.f32 %v325_v36, %v325_v36  ;;  %v419_v50 = vmul.f32 %v323_v42, %v323_v42  ;;  %vm509_vm7 = vcmp.gt.f32.partialorder %v325_v36, 0.0 }
  0xc4   : > { %v303_v32 = vpop.permute.xlu1 %302  ;;  %v299_v34 = vpop.permute.xlu0 %298  ;;  %vm517_vm8 = vcmp.lt.f32.partialorder %v325_v36, 0.0  ;;  %v499_v51 = vand.u32 2147483647, %v323_v42  ;;  %vm515_vm9 = vcmp.lt.f32.partialorder %v323_v42, 0.0 }
  0xc5   : > { %v41378_v33 = vsub.f32 %v41300_v45, %v303_v32  ;;  %v41383_v38 = vsub.f32 %v41304_v46, %v299_v34  ;;  %v41399_v52 = vmul.f32 0.9396926, %v501_v37  ;;  %v41403_v56 = vmul.f32 0.76604444, %v501_v37 }
  0xc6   : > { %v41405_v57 = vmul.f32 0.5, %v501_v37  ;;  %v15966_v61 = vmul.f32 0.17364818, %v501_v37  ;;  %v41407_v63 = vmul.f32 -0.17364818, %v501_v37  ;;  %v41409_v0 = vmul.f32 -0.5, %v501_v37 }
  0xc7   : > { %vm508_vm3 = vcmp.gt.f32.partialorder %v41378_v33, 0.0  ;;  %vm516_vm4 = vcmp.lt.f32.partialorder %v41378_v33, 0.0  ;;  %vm506_vm5 = vcmp.gt.f32.partialorder %v41383_v38, 0.0  ;;  %vm514_vm6 = vcmp.lt.f32.partialorder %v41383_v38, 0.0 }
  0xc8   : > { %v532_v40 = vsel %vm516_vm4, %v524_v35, 1e+30  ;;  %v393_v41 = vpop.permute.xlu1 %392  ;;  %v530_v44 = vsel %vm514_vm6, %v522_v15, 1e+30  ;;  %v389_v49 = vpop.permute.xlu0 %388  ;;  %v27530_v1 = vmul.f32 -0.76604444, %v501_v37 }
  0xc9   : > { %v41392_v43 = vsel %vm508_vm3, %v41373_v30, %v532_v40  ;;  %v413_v45 = vadd.f32 %v393_v41, %v373_v18  ;;  %v41396_v46 = vsel %vm506_vm5, %v41375_v31, %v530_v44  ;;  %v411_v59 = vadd.f32 %v389_v49, %v371_v47 }
  0xca   : > { %v31382_v21 = vmul.f32 -0.9396926, %v501_v37  ;;  %vm507_vm4 = vcmp.gt.f32.partialorder %v323_v42, 0.0  ;;  %v4384_v26 = vmul.f32 0.9396926, %v499_v51  ;;  %v12104_v27 = vmul.f32 0.5, %v499_v51 }
  0xcb   : > { %v429_v48 = vmul.f32 %v413_v45, %v413_v45  ;;  %v525_v39 = vsub.f32 0.0, %v413_v45  ;;  %v427_v4 = vmul.f32 %v411_v59, %v411_v59  ;;  %v523_v5 = vsub.f32 0.0, %v411_v59 }
  0xcc   : > { %v359_v17 = vpop.permute.xlu1 %358  ;;  %v8244_v3 = vmul.f32 0.76604444, %v499_v51  ;;  %v15964_v28 = vmul.f32 0.17364818, %v499_v51  ;;  %v41423_v29 = vmul.f32 -0.17364818, %v499_v51 }
  0xcd   : > { %v41401_v55 = vadd.f32 %v429_v48, %v421_v20  ;;  %v533_v58 = vsel %vm517_vm8, %v525_v39, 1e+30  ;;  %v41413_v23 = vadd.f32 %v427_v4, %v419_v50  ;;  %v531_v24 = vsel %vm515_vm9, %v523_v5, 1e+30  ;;  %v355_v20 = vpop.permute.xlu0 %354 }
  0xce   : > { %v541_v2 = vsel %vm509_vm7, %v413_v45, %v533_v58  ;;  %v41425_v32 = vmul.f32 -0.5, %v499_v51  ;;  %v539_v34 = vsel %vm507_vm4, %v411_v59, %v531_v24  ;;  %v27528_v18 = vmul.f32 -0.76604444, %v499_v51 }
  0xcf   : > { %40975 = vrsqrt.f32 %v41401_v55  ;;  %v4394_v9 = vmul.f32 0.34202015, %v541_v2  ;;  %v8254_v10 = vmul.f32 0.64278764, %v541_v2  ;;  %v12114_v16 = vmul.f32 0.8660254, %v541_v2 }
  0xd0   : > { %v15974_v22 = vmul.f32 0.9848077, %v541_v2  ;;  %v41421_v25 = vpop.permute.xlu1 %360  ;;  %40977 = vrsqrt.f32 %v41413_v23  ;;  %v4392_v35 = vmul.f32 0.34202015, %v539_v34  ;;  %v8252_v36 = vmul.f32 0.64278764, %v539_v34 }
  0xd1   : > { %vm4402_vm10 = vcmp.ge.f32.partialorder %v41399_v52, %v4394_v9  ;;  %vm8262_vm11 = vcmp.ge.f32.partialorder %v41403_v56, %v8254_v10  ;;  %vm12122_vm12 = vcmp.ge.f32.partialorder %v41405_v57, %v12114_v16  ;;  %vm23686_vm13 = vcmp.ge.f32.partialorder %v41409_v0, %v12114_v16 }
  0xd2   : > { %vm15982_vm14 = vcmp.ge.f32.partialorder %v15966_v61, %v15974_v22  ;;  %vm19834_vm15 = vcmp.ge.f32.partialorder %v41407_v63, %v15974_v22  ;;  %vm27538_vm2 = vcmp.ge.f32.partialorder %v27530_v1, %v8254_v10  ;;  %v12112_v15 = vmul.f32 0.8660254, %v539_v34 }
  0xd3   : > { %v31380_v40 = vmul.f32 -0.9396926, %v499_v51  ;;  %v15972_v41 = vmul.f32 0.9848077, %v539_v34  ;;  %vm8260_vm6 = vcmp.ge.f32.partialorder %v8244_v3, %v8252_v36  ;;  %vm27536_vm4 = vcmp.ge.f32.partialorder %v27528_v18, %v8252_v36 }
  0xd4   : > { %vm12120_vm7 = vcmp.ge.f32.partialorder %v12104_v27, %v12112_v15  ;;  %vm23684_vm8 = vcmp.ge.f32.partialorder %v41425_v32, %v12112_v15  ;;  %v311_v44 = vpop.permute.xlu1 %310  ;;  %vm465_vm0 = vcmp.eq.f32.partialorder %v41401_v55, inf  ;;  %v468_v45 = vand.u32 2147483648, %v41401_v55 }
  0xd5   : > { %vm15980_vm9 = vcmp.ge.f32.partialorder %v15964_v28, %v15972_v41  ;;  %vm19832_vm1 = vcmp.ge.f32.partialorder %v41423_v29, %v15972_v41  ;;  %vm31388_vm3 = vcmp.ge.f32.partialorder %v31380_v40, %v4392_v35  ;;  %vm467_vm5 = vcmp.eq.f32.partialorder %v41401_v55, 0.0 }
  0xd6   : > { %v420_v63 = vmul.f32 %v41378_v33, %v41378_v33  ;;  %v428_v0 = vmul.f32 %v41373_v30, %v41373_v30  ;;  %v418_v4 = vmul.f32 %v41383_v38, %v41383_v38  ;;  %v426_v30 = vmul.f32 %v41375_v31, %v41375_v31 }
  0xd7   : > { %v374_v29 = vadd.f32 %v355_v20, %v41314_v54 }
  0xd8   : > { %v399_v58 = vpop.permute.xlu1 %398  ;;  %v41497_v10 = vadd.f32 %v428_v0, %v420_v63 }
  0xd9   : > { %v40976_v37 = vpop.eup %40975 }
  0xda   : > { %v464_v42 = vmul.f32 %v40976_v37, %v41401_v55  ;;  %v40978_v52 = vpop.eup %40977  ;;  %v41517_v37 = vadd.f32 %v426_v30, %v418_v4  ;;  %40979 = vrsqrt.f32 %v41497_v10 }
  0xdb   : > { %v450_v1 = vmul.f32 %v40978_v52, %v41413_v23 }
  0xdc   : > { %v466_v47 = vsel %vm465_vm0, %v41401_v55, %v464_v42  ;;  %v376_v55 = vadd.f32 %v359_v17, %v41310_v53  ;;  %vm44553_vm0 = vcmp.ge.f32.partialorder %v31382_v21, %v4394_v9  ;;  %v41475_v53 = vpop.permute.xlu0 %356  ;;  %v41478_v17 = vsub.f32 %v41333_v6, %v311_v44  ;;  %v313_v0 = vpop.permute.xlu1 %312 }
  0xdd   : > { %v41435_v48 = vsel %vm467_vm5, %v468_v45, %v466_v47  ;;  %v454_v6 = vand.u32 2147483648, %v41413_v23  ;;  %40981 = vrsqrt.f32 %v41517_v37 }
  0xde   : > { %v41440_v49 = vsel %vm4402_vm10, %v41435_v48, 0.0  ;;  %v41445_v50 = vsel %vm8262_vm11, %v41435_v48, 0.0  ;;  %v41450_v39 = vsel %vm12122_vm12, %v41435_v48, 0.0  ;;  %v41454_v51 = vsel %vm15982_vm14, %v41435_v48, 0.0 }
  0xdf   : > { %44548 = vst [vmem:[#allocation8_spill] sm:$0xff] %v41450_v39  ;;  %44549 = vst [vmem:[#allocation9_spill] sm:$0xff] %v41454_v51  ;;  %v41460_v59 = vsel %vm19834_vm15, %v41435_v48, 0.0  ;;  %v41465_v56 = vsel %vm23686_vm13, %v41435_v48, 0.0  ;;  %v41469_v57 = vsel %vm27538_vm2, %v41435_v48, 0.0  ;;  %v41473_v61 = vsel %vm44553_vm0, %v41435_v48, 0.0 }
  0xe0   : > { %44550 = vst [vmem:[#allocation10_spill] sm:$0xff] %v41460_v59  ;;  %44551 = vst [vmem:[#allocation11_spill] sm:$0xff] %v41465_v56  ;;  %v41482_v2 = vadd.f32 %v399_v58, %v376_v55  ;;  %vm520_vm10 = vcmp.lt.f32.partialorder %v41478_v17, 0.0  ;;  %vm451_vm11 = vcmp.eq.f32.partialorder %v41413_v23, inf  ;;  %vm453_vm12 = vcmp.eq.f32.partialorder %v41413_v23, 0.0 }
  0xe1   : > { %44552 = vst [vmem:[#allocation12_spill] sm:$0xff] %v41469_v57  ;;  %44554 = vst [vmem:[#allocation13_spill] sm:$0xff] %v41473_v61  ;;  %v452_v9 = vsel %vm451_vm11, %v41413_v23, %v450_v1  ;;  %vm44555_vm13 = vcmp.ge.f32.partialorder %v4384_v26, %v4392_v35  ;;  %v307_v23 = vpop.permute.xlu0 %306  ;;  %v504_v42 = vand.u32 2147483647, %v41478_v17  ;;  %vm512_vm14 = vcmp.gt.f32.partialorder %v41478_v17, 0.0 }
  0xe2   : > { %v528_v5 = vsub.f32 0.0, %v41482_v2  ;;  %v41499_v16 = vsel %vm453_vm12, %v454_v6, %v452_v9  ;;  %v41543_v32 = vsub.f32 %v41336_v7, %v307_v23  ;;  %vm444_vm0 = vcmp.eq.f32.partialorder %v41517_v37, inf }
  0xe3   : > { %v41503_v22 = vsel %vm44555_vm13, %v41499_v16, 0.0  ;;  %v41507_v24 = vsel %vm8260_vm6, %v41499_v16, 0.0  ;;  %v41511_v34 = vsel %vm12120_vm7, %v41499_v16, 0.0  ;;  %v41515_v31 = vsel %vm15980_vm9, %v41499_v16, 0.0 }
  0xe4   : > { %v536_v21 = vsel %vm520_vm10, %v528_v5, 1e+30  ;;  %44556 = vst [vmem:[#allocation14_spill] sm:$0xff] %v41511_v34  ;;  %44557 = vst [vmem:[#allocation15_spill] sm:$0xff] %v41515_v31  ;;  %v41523_v26 = vsel %vm19832_vm1, %v41499_v16, 0.0  ;;  %v41528_v3 = vsel %vm23684_vm8, %v41499_v16, 0.0  ;;  %v40980_v5 = vpop.eup %40979  ;;  %v377_v9 = vadd.f32 %v41421_v25, %v41319_v60 }
  0xe5   : > { %44558 = vst [vmem:[#allocation16_spill] sm:$0xff] %v41523_v26  ;;  %44559 = vst [vmem:[#allocation17_spill] sm:$0xff] %v41528_v3  ;;  %v41532_v27 = vsel %vm27536_vm4, %v41499_v16, 0.0  ;;  %v41536_v28 = vsel %vm31388_vm3, %v41499_v16, 0.0  ;;  %v41545_v15 = vmul.f32 0.9396926, %v504_v42  ;;  %v395_v41 = vpop.permute.xlu0 %394  ;;  %v544_v54 = vsel %vm512_vm14, %v41482_v2, %v536_v21 }
  0xe6   : > { %44560 = vst [vmem:[#allocation18_spill] sm:$0xff] %v41532_v27  ;;  %44561 = vst [vmem:[#allocation19_spill] sm:$0xff] %v41536_v28  ;;  %v41547_v36 = vmul.f32 0.76604444, %v504_v42  ;;  %v41549_v18 = vmul.f32 0.5, %v504_v42  ;;  %v41553_v40 = vmul.f32 -0.5, %v504_v42  ;;  %v41572_v63 = vadd.f32 %v395_v41, %v374_v29 }
  0xe7   : > { %v41551_v35 = vmul.f32 0.17364818, %v504_v42  ;;  %v41555_v44 = vmul.f32 -0.17364818, %v504_v42  ;;  %v41557_v45 = vmul.f32 -0.76604444, %v504_v42  ;;  %v40982_v29 = vpop.eup %40981  ;;  %v329_v28 = vsub.f32 %v41344_v11, %v313_v0 }
  0xe8   : > { %44562 = vst [vmem:[#allocation20_spill] sm:$0xff] %v41549_v18  ;;  %44564 = vst [vmem:[#allocation22_spill] sm:$0xff] %v41553_v40  ;;  %v41559_v47 = vmul.f32 -0.9396926, %v504_v42  ;;  %v41562_v7 = vmul.f32 0.34202015, %v544_v54  ;;  %v375_v40 = vadd.f32 %v41475_v53, %v41324_v62 }
  0xe9   : > { %44563 = vst [vmem:[#allocation21_spill] sm:$0xff] %v41551_v35  ;;  %44565 = vst [vmem:[#allocation23_spill] sm:$0xff] %v41555_v44  ;;  %v41564_v20 = vmul.f32 0.64278764, %v544_v54  ;;  %v41566_v55 = vmul.f32 0.8660254, %v544_v54  ;;  %v309_v42 = vpop.permute.xlu0 %308  ;;  %v425_v62 = vmul.f32 %v329_v28, %v329_v28 }
  0xea   : > { %44566 = vst [vmem:[#allocation24_spill] sm:$0xff] %v41557_v45  ;;  %44567 = vst [vmem:[#allocation25_spill] sm:$0xff] %v41559_v47  ;;  %v502_v58 = vand.u32 2147483647, %v41543_v32  ;;  %v41569_v52 = vmul.f32 0.9848077, %v544_v54  ;;  %v401_v47 = vpop.permute.xlu1 %400 }
  0xeb   : > { %44568 = vst [vmem:[#allocation26_spill] sm:$0xff] %v41562_v7  ;;  %44569 = vst [vmem:[#allocation27_spill] sm:$0xff] %v41564_v20  ;;  %vm518_vm1 = vcmp.lt.f32.partialorder %v41543_v32, 0.0  ;;  %vm510_vm4 = vcmp.gt.f32.partialorder %v41543_v32, 0.0  ;;  %v526_v1 = vsub.f32 0.0, %v41572_v63  ;;  %vm521_vm8 = vcmp.lt.f32.partialorder %v329_v28, 0.0 }
  0xec   : > { %44570 = vst [vmem:[#allocation28_spill] sm:$0xff] %v41566_v55  ;;  %44571 = vst [vmem:[#allocation29_spill] sm:$0xff] %v41569_v52  ;;  %v41597_v30 = vmul.f32 0.9396926, %v502_v58  ;;  %v41599_v21 = vmul.f32 0.76604444, %v502_v58 }
  0xed   : > { %v534_v23 = vsel %vm518_vm1, %v526_v1, 1e+30  ;;  %v41603_v41 = vmul.f32 0.5, %v502_v58  ;;  %v41605_v54 = vmul.f32 0.17364818, %v502_v58  ;;  %v41610_v61 = vmul.f32 -0.5, %v502_v58  ;;  %v397_v53 = vpop.permute.xlu0 %396 }
  0xee   : > { %v41607_v4 = vmul.f32 -0.17364818, %v502_v58  ;;  %v542_v6 = vsel %vm510_vm4, %v41572_v63, %v534_v23  ;;  %v41612_v60 = vmul.f32 -0.76604444, %v502_v58  ;;  %v41614_v25 = vmul.f32 -0.9396926, %v502_v58 }
  0xef   : > { %44572 = vst [vmem:[#allocation30_spill] sm:$0xff] %v41603_v41  ;;  %44573 = vst [vmem:[#allocation31_spill] sm:$0xff] %v41605_v54  ;;  %v41618_v1 = vmul.f32 %v40980_v5, %v41497_v10  ;;  %v41620_v45 = vmul.f32 0.34202015, %v542_v6  ;;  %v41622_v57 = vmul.f32 0.64278764, %v542_v6  ;;  %v443_v23 = vmul.f32 %v40982_v29, %v41517_v37 }
  0xf0   : > { %44574 = vst [vmem:[#allocation32_spill] sm:$0xff] %v41607_v4  ;;  %44575 = vst [vmem:[#allocation33_spill] sm:$0xff] %v41610_v61  ;;  %v41624_v27 = vmul.f32 0.8660254, %v542_v6  ;;  %v41629_v56 = vmul.f32 0.9848077, %v542_v6  ;;  %v417_v58 = vadd.f32 %v401_v47, %v377_v9  ;;  %v327_v47 = vsub.f32 %v41348_v12, %v309_v42 }
  0xf1   : > { %44576 = vst [vmem:[#allocation34_spill] sm:$0xff] %v41612_v60  ;;  %44577 = vst [vmem:[#allocation35_spill] sm:$0xff] %v41614_v25  ;;  %v505_v11 = vand.u32 2147483647, %v329_v28  ;;  %vm513_vm5 = vcmp.gt.f32.partialorder %v329_v28, 0.0  ;;  %v445_v5 = vsel %vm444_vm0, %v41517_v37, %v443_v23  ;;  %v415_v3 = vadd.f32 %v397_v53, %v375_v40 }
  0xf2   : > { %44578 = vst [vmem:[#allocation36_spill] sm:$0xff] %v41620_v45  ;;  %44579 = vst [vmem:[#allocation37_spill] sm:$0xff] %v41624_v27  ;;  %v433_v0 = vmul.f32 %v417_v58, %v417_v58  ;;  %v529_v6 = vsub.f32 0.0, %v417_v58  ;;  %v503_v9 = vand.u32 2147483647, %v327_v47  ;;  %vm458_vm0 = vcmp.eq.f32.partialorder %v41497_v10, inf }
  0xf3   : > { %44580 = vst [vmem:[#allocation38_spill] sm:$0xff] %v41629_v56  ;;  %v41651_v29 = vmul.f32 0.9396926, %v505_v11  ;;  %v41653_v61 = vmul.f32 0.76604444, %v505_v11  ;;  %v41655_v60 = vmul.f32 0.5, %v505_v11  ;;  %v423_v40 = vmul.f32 %v327_v47, %v327_v47 }
  0xf4   : > { %v41657_v44 = vmul.f32 -0.5, %v505_v11  ;;  %v41659_v25 = vadd.f32 %v433_v0, %v425_v62  ;;  %v537_v12 = vsel %vm521_vm8, %v529_v6, 1e+30  ;;  %v41661_v28 = vmul.f32 0.17364818, %v505_v11 }
  0xf5   : > { %v41663_v42 = vmul.f32 -0.17364818, %v505_v11  ;;  %v41665_v4 = vmul.f32 -0.76604444, %v505_v11  ;;  %v545_v23 = vsel %vm513_vm5, %v417_v58, %v537_v12  ;;  %v41668_v59 = vmul.f32 -0.9396926, %v505_v11 }
  0xf6   : > { %40983 = vrsqrt.f32 %v41659_v25  ;;  %vm511_vm9 = vcmp.gt.f32.partialorder %v327_v47, 0.0  ;;  %vm519_vm4 = vcmp.lt.f32.partialorder %v327_v47, 0.0  ;;  %v41671_v53 = vmul.f32 0.34202015, %v545_v23 }
  0xf7   : > { %v41673_v62 = vmul.f32 0.64278764, %v545_v23  ;;  %v12118_v0 = vmul.f32 0.8660254, %v545_v23  ;;  %v15978_v6 = vmul.f32 0.9848077, %v545_v23  ;;  %v431_v52 = vmul.f32 %v415_v3, %v415_v3 }
  0xf8   : > { %v41675_v26 = vmul.f32 0.9396926, %v503_v9  ;;  %v527_v35 = vsub.f32 0.0, %v415_v3  ;;  %vm4406_vm5 = vcmp.ge.f32.partialorder %v41651_v29, %v41671_v53  ;;  %v41682_v58 = vmul.f32 0.76604444, %v503_v9 }
  0xf9   : > { %vm8266_vm8 = vcmp.ge.f32.partialorder %v41653_v61, %v41673_v62  ;;  %vm12126_vm1 = vcmp.ge.f32.partialorder %v41655_v60, %v12118_v0  ;;  %vm15986_vm7 = vcmp.ge.f32.partialorder %v41661_v28, %v15978_v6  ;;  %vm19838_vm14 = vcmp.ge.f32.partialorder %v41663_v42, %v15978_v6 }
  0xfa   : > { %vm23690_vm6 = vcmp.ge.f32.partialorder %v41657_v44, %v12118_v0  ;;  %v41687_v11 = vmul.f32 0.5, %v503_v9  ;;  %vm27542_vm13 = vcmp.ge.f32.partialorder %v41665_v4, %v41673_v62  ;;  %vm31394_vm3 = vcmp.ge.f32.partialorder %v41668_v59, %v41671_v53 }
  0xfb   : > { %v41693_v12 = vadd.f32 %v431_v52, %v423_v40  ;;  %v535_v23 = vsel %vm519_vm4, %v527_v35, 1e+30  ;;  %v41696_v56 = vmul.f32 0.17364818, %v503_v9  ;;  %v41698_v54 = vmul.f32 -0.17364818, %v503_v9 }
  0xfc   : > { %v41700_v51 = vmul.f32 -0.5, %v503_v9  ;;  %v543_v31 = vsel %vm511_vm9, %v415_v3, %v535_v23  ;;  %v41703_v55 = vmul.f32 -0.76604444, %v503_v9  ;;  %v41705_v18 = vmul.f32 -0.9396926, %v503_v9 }
  0xfd   : > { %40985 = vrsqrt.f32 %v41693_v12  ;;  %vm446_vm12 = vcmp.eq.f32.partialorder %v41517_v37, 0.0  ;;  %v41709_v52 = vmul.f32 0.34202015, %v543_v31  ;;  %v41711_v40 = vmul.f32 0.64278764, %v543_v31 }
  0xfe   : > { %v41713_v35 = vmul.f32 0.8660254, %v543_v31  ;;  %v44581_v27 = vand.u32 2147483648, %v41517_v37  ;;  %v15976_v47 = vmul.f32 0.9848077, %v543_v31  ;;  %vm44582_vm9 = vcmask 113664  }
  0xff   : > { %v459_v9 = vsel %vm458_vm0, %v41497_v10, %v41618_v1  ;;  %vm44583_vm4 = vmmov %vm44582_vm9  ;;  %vm4404_vm2 = vcmp.ge.f32.partialorder %v41675_v26, %v41709_v52  ;;  %vm493_vm10 = vcmp.eq.f32.partialorder %v41659_v25, inf  ;;  %vm460_vm11 = vcmp.eq.f32.partialorder %v41497_v10, 0.0 }
 0x100   : > { %v41717_v41 = vsel %vm446_vm12, %v44581_v27, %v445_v5  ;;  %v553_v23 = vsel %vm44583_vm4, %v41499_v16, 0  ;;  %v40984_v39 = vpop.eup %40983  ;;  %vm15984_vm0 = vcmp.ge.f32.partialorder %v41696_v56, %v15976_v47  ;;  %vm19836_vm15 = vcmp.ge.f32.partialorder %v41698_v54, %v15976_v47 }
 0x101   : > { %v550_v3 = vsel %vm44582_vm9, %v41717_v41, 0  ;;  %v492_v31 = vmul.f32 %v40984_v39, %v41659_v25  ;;  %vm27540_vm4 = vcmp.ge.f32.partialorder %v41703_v55, %v41711_v40  ;;  %v496_v16 = vand.u32 2147483648, %v41659_v25 }
 0x102   : > { %vm31392_vm12 = vcmp.ge.f32.partialorder %v41705_v18, %v41709_v52  ;;  %vm495_vm9 = vcmp.eq.f32.partialorder %v41659_v25, 0.0  ;;  %v41747_v39 = vand.u32 4294901760, %v550_v3  ;;  %v44584_v27 = vand.u32 2147483648, %v41497_v10 }
 0x103   : > { %v494_v37 = vsel %vm493_vm10, %v41659_v25, %v492_v31  ;;  %v41755_v34 = vand.u32 4294901760, %v553_v23  ;;  %vm44585_vm10 = vcmask 113664   ;;  %v422_v0 = vmul.f32 %v41543_v32, %v41543_v32 }
 0x104   : > { %v41751_v1 = vsel %vm460_vm11, %v44584_v27, %v459_v9  ;;  %v41753_v5 = vsel %vm495_vm9, %v496_v16, %v494_v37  ;;  %vm44586_vm11 = vmmov %vm44585_vm10  ;;  %v41784_v61 = vsub.f32 %v550_v3, %v41747_v39  ;;  %v430_v4 = vmul.f32 %v41572_v63, %v41572_v63 }
 0x105   : > { %v41761_v20 = vsel %vm4406_vm5, %v41753_v5, 0.0  ;;  %v41767_v25 = vsel %vm8266_vm8, %v41753_v5, 0.0  ;;  %v41772_v10 = vsel %vm12126_vm1, %v41753_v5, 0.0  ;;  %v41777_v9 = vsel %vm15986_vm7, %v41753_v5, 0.0  ;;  %vm44593_vm8 = vmmov %vm44585_vm10 }
 0x106   : > { %v1048_v29 = vsel %vm44585_vm10, %v41751_v1, 0  ;;  %v1051_v31 = vsel %vm44586_vm11, %v41435_v48, 0  ;;  %v41789_v60 = vsel %vm19838_vm14, %v41753_v5, 0.0  ;;  %v41794_v28 = vsel %vm23690_vm6, %v41753_v5, 0.0  ;;  %vm44595_vm9 = vmmov %vm44593_vm8 }
 0x107   : > { %v40986_v16 = vpop.eup %40985  ;;  %v41800_v37 = vsel %vm27542_vm13, %v41753_v5, 0.0  ;;  %v41806_v48 = vsel %vm31394_vm3, %v41753_v5, 0.0  ;;  %v41808_v42 = vand.u32 4294901760, %v1048_v29  ;;  %v41811_v6 = vsub.f32 %v553_v23, %v41755_v34 }
 0x108   : > { %44587 = vst [vmem:[#allocation39_spill] sm:$0xff] %v41800_v37  ;;  %44588 = vst [vmem:[#allocation40_spill] sm:$0xff] %v41806_v48  ;;  %v41813_v44 = vand.u32 4294901760, %v1051_v31  ;;  %v478_v62 = vmul.f32 %v40986_v16, %v41693_v12  ;;  %vm479_vm6 = vcmp.eq.f32.partialorder %v41693_v12, inf  ;;  %vm481_vm3 = vcmp.eq.f32.partialorder %v41693_v12, 0.0 }
 0x109   : > { %v482_v59 = vand.u32 2147483648, %v41693_v12  ;;  %v626_v53 = vand.u32 4294901760, %v41784_v61  ;;  %v41826_v23 = vsub.f32 %v1048_v29, %v41808_v42  ;;  %v636_v32 = vand.u32 4294901760, %v41811_v6 }
 0x10a   : > { %v480_v3 = vsel %vm479_vm6, %v41693_v12, %v478_v62  ;;  %v41830_v27 = vsub.f32 %v1051_v31, %v41813_v44  ;;  %v424_v63 = vmul.f32 %v41478_v17, %v41478_v17  ;;  %v432_v16 = vmul.f32 %v41482_v2, %v41482_v2 }
 0x10b   : > { %v41836_v48 = vsel %vm481_vm3, %v482_v59, %v480_v3  ;;  %vm44589_vm7 = vcmp.ge.f32.partialorder %v41682_v58, %v41711_v40  ;;  %vm44590_vm13 = vcmp.ge.f32.partialorder %v41687_v11, %v41713_v35  ;;  %v438_v26 = vadd.f32 %v430_v4, %v422_v0 }
 0x10c   : > { %v41842_v12 = vsel %vm4404_vm2, %v41836_v48, 0.0  ;;  %v41848_v29 = vsel %vm44589_vm7, %v41836_v48, 0.0  ;;  %v41854_v17 = vsel %vm44590_vm13, %v41836_v48, 0.0  ;;  %v41859_v2 = vsel %vm15984_vm0, %v41836_v48, 0.0  ;;  %vm44596_vm0 = vmmov %vm44593_vm8 }
 0x10d   : > { %v627_v31 = vsub.f32 %v41784_v61, %v626_v53  ;;  %v1121_v62 = vand.u32 4294901760, %v41826_v23  ;;  %v637_v58 = vsub.f32 %v41811_v6, %v636_v32  ;;  %v1131_v59 = vand.u32 4294901760, %v41830_v27  ;;  %vm44597_vm10 = vmmov %vm44596_vm0 }
 0x10e   : > { %v41870_v11 = vsel %vm19836_vm15, %v41836_v48, 0.0  ;;  %vm44591_vm2 = vcmp.ge.f32.partialorder %v41700_v51, %v41713_v35  ;;  %v41882_v0 = vsel %vm27540_vm4, %v41836_v48, 0.0  ;;  %v41888_v4 = vsel %vm31392_vm12, %v41836_v48, 0.0  ;;  %vm44594_vm12 = vmmov %vm44593_vm8 }
 0x10f   : > { %v41876_v56 = vsel %vm44591_vm2, %v41836_v48, 0.0  ;;  %44592 = vst [vmem:[#allocation41_spill] sm:$0xff] %v41888_v4  ;;  %v440_v54 = vadd.f32 %v432_v16, %v424_v63  ;;  %40987 = vrsqrt.f32 %v438_v26  ;;  %v628_v47 = vand.u32 4294901760, %v627_v31 }
 0x110   : > { %v1122_v3 = vsub.f32 %v41826_v23, %v1121_v62  ;;  %v638_v51 = vand.u32 4294901760, %v637_v58  ;;  %v1132_v35 = vsub.f32 %v41830_v27, %v1131_v59  ;;  %vm472_vm15 = vcmp.eq.f32.partialorder %v438_v26, inf }
 0x111   : > { %40989 = vrsqrt.f32 %v440_v54  ;;  %36955 = vmatprep.mubr.f32.mxu0 %v628_v47  ;;  %vm486_vm14 = vcmp.eq.f32.partialorder %v440_v54, inf  ;;  %v475_v58 = vand.u32 2147483648, %v438_v26  ;;  %vm474_vm1 = vcmp.eq.f32.partialorder %v438_v26, 0.0 }
 0x112   : > { %v1123_v55 = vand.u32 4294901760, %v1122_v3  ;;  %v1133_v40 = vand.u32 4294901760, %v1132_v35  ;;  %36956 = vmatmul.mubr.f32.vlgmr.msra.gmra.mrb[0].mxu0 %v638_v51  ;;  %vm488_vm5 = vcmp.eq.f32.partialorder %v440_v54, 0.0  ;;  %v2041_v35 = vsel %vm44596_vm0, %v41753_v5, 0 }
 0x113   : > { %36960 = vmatprep.mubr.f32.mxu0 %v41747_v39  ;;  %36959 = vmatpush3.xpose.msra.mxu0 %v41367_v19  ;;  %vm41103_vm4 = vmmov 0   ;;  %vm44598_vm11 = vcmask 1045504  }
 0x114   : > { %36985 = vmatprep.mubr.f32.mxu1 %v1123_v55  ;;  %36963 = vmatprep.subr.mxu0 %v41360_v13  ;;  %vm44599_vm6 = vmmov %vm44598_vm11 }
 0x115   : > { %36986 = vmatmul.mubr.f32.vlgmr.msra.gmra.mrb[0].mxu1 %v1133_v40  ;;  %vm44601_vm3 = vmmov %vm44599_vm6 }
 0x116   : > { %36990 = vmatprep.mubr.f32.mxu1 %v41808_v42  ;;  %36989 = vmatpush3.xpose.msra.mxu1 %v41367_v19  ;;  %vm44602_vm7 = vmmov %vm44601_vm3 }
 0x117   : > { %36993 = vmatprep.subr.mxu1 %v41360_v13 }
 0x119   : > { %v40988_v18 = vpop.eup %40987 }
 0x11a   : > { %36961 = vmatmul.mubr.f32.vlgmr.msra.gmra.mrb[0].mxu0 %v41755_v34  ;;  %v471_v63 = vmul.f32 %v40988_v18, %v438_v26 }
 0x11b   : > { %v40990_v52 = vpop.eup %40989  ;;  %36965 = vmatprep.mubr.f32.mxu0 %v41784_v61  ;;  %36964 = vmatpush3.xpose.msra.mxu0 %v41360_v13  ;;  %v489_v61 = vand.u32 2147483648, %v440_v54 }
 0x11c   : > { %36968 = vmatprep.subr.mxu0 %v41260_v8  ;;  %v485_v16 = vmul.f32 %v40990_v52, %v440_v54  ;;  %v473_v31 = vsel %vm472_vm15, %v438_v26, %v471_v63  ;;  %vm44605_vm15 = vmmov %vm44596_vm0 }
 0x11d   : > { %36991 = vmatmul.mubr.f32.vlgmr.msra.gmra.mrb[0].mxu1 %v41813_v44  ;;  %v41909_v3 = vsel %vm474_vm1, %v475_v58, %v473_v31  ;;  %vm44607_vm1 = vmmov %vm44596_vm0 }
 0x11e   : > { %36995 = vmatprep.mubr.f32.mxu1 %v41826_v23  ;;  %36994 = vmatpush3.xpose.msra.mxu1 %v41360_v13  ;;  %v487_v47 = vsel %vm486_vm14, %v440_v54, %v485_v16  ;;  %v1543_v26 = vsel %vm44593_vm8, %v41909_v3, 0  ;;  %v1546_v54 = vsel %vm44595_vm9, %v41836_v48, 0  ;;  %vm44606_vm14 = vmmov %vm44596_vm0  ;;  %vm44609_vm8 = vcmp.ge.f32.partialorder %v41597_v30, %v41620_v45 }
 0x11f   : > { %36998 = vmatprep.subr.mxu1 %v41260_v8  ;;  %v41914_v23 = vsel %vm488_vm5, %v489_v61, %v487_v47  ;;  %v41922_v51 = vand.u32 4294901760, %v1543_v26  ;;  %v41937_v55 = vand.u32 4294901760, %v1546_v54  ;;  %vm44608_vm5 = vmmov %vm44596_vm0 }
 0x120   : > { %vm44611_vm9 = vmmov %vm44596_vm0 }
 0x121   : > { %v1615_v48 = vsub.f32 %v1543_v26, %v41922_v51  ;;  %v1625_v5 = vsub.f32 %v1546_v54, %v41937_v55  ;;  %v547_v26 = vld [vmem:[%s44496_s2] sm:$0x3] }
 0x122   : > { %36966 = vmatmul.mubr.f32.vlgmr.msra.gmra.mrb[0].mxu0 %v41811_v6  ;;  %v41943_v6 = vand.u32 4294901760, %v2041_v35 }
 0x123   : > { %36970 = vmatprep.mubr.f32.mxu0 %v626_v53  ;;  %36969 = vmatpush3.xpose.msra.mxu0 %v41260_v8  ;;  %v2038_v53 = vsel %vm44594_vm12, %v41914_v23, 0  ;;  %v1626_v18 = vand.u32 4294901760, %v1625_v5  ;;  %vm44610_vm12 = vcmp.ge.f32.partialorder %v41545_v15, %v41562_v7 }
 0x124   : > { %36973 = vmatprep.subr.mxu0 %v41363_v14 }
 0x125   : > { %36996 = vmatmul.mubr.f32.vlgmr.msra.gmra.mrb[0].mxu1 %v41830_v27  ;;  %v1616_v27 = vand.u32 4294901760, %v1615_v48  ;;  %v1627_v31 = vsub.f32 %v1625_v5, %v1626_v18 }
 0x126   : > { %37000 = vmatprep.mubr.f32.mxu1 %v1121_v62  ;;  %36999 = vmatpush3.xpose.msra.mxu1 %v41260_v8  ;;  %v41930_v62 = vand.u32 4294901760, %v2038_v53 }
 0x127   : > { %37003 = vmatprep.subr.mxu1 %v41363_v14  ;;  %v1617_v52 = vsub.f32 %v1615_v48, %v1616_v27  ;;  %v1628_v61 = vand.u32 4294901760, %v1627_v31 }
 0x129   : > { %v1618_v58 = vand.u32 4294901760, %v1617_v52 }
 0x12a   : > { %36971 = vmatmul.mubr.f32.vlgmr.msra.gmra.mrb[0].mxu0 %v636_v32  ;;  %v2110_v32 = vsub.f32 %v2038_v53, %v41930_v62  ;;  %v2533_v53 = vsel %vm44597_vm10, %v547_v26, 0  ;;  %vm44612_vm10 = vmmov %vm44596_vm0 }
 0x12b   : > { %36975 = vmatprep.mubr.f32.mxu0 %v41747_v39  ;;  %36974 = vmatpush3.xpose.msra.mxu0 %v41363_v14  ;;  %v5409_v30 = vsel %vm44612_vm10, %v41842_v12, 0  ;;  %vm44624_vm10 = vmmov %vm44596_vm0 }
 0x12c   : > { %36978 = vmatprep.subr.mxu0 %v41260_v8  ;;  %v2111_v40 = vand.u32 4294901760, %v2110_v32 }
 0x12d   : > { %37001 = vmatmul.mubr.f32.vlgmr.msra.gmra.mrb[0].mxu1 %v1131_v59  ;;  %v2120_v59 = vsub.f32 %v2041_v35, %v41943_v6 }
 0x12e   : > { %37005 = vmatprep.mubr.f32.mxu1 %v41808_v42  ;;  %37004 = vmatpush3.xpose.msra.mxu1 %v41363_v14  ;;  %v2112_v16 = vsub.f32 %v2110_v32, %v2111_v40 }
 0x12f   : > { %37008 = vmatprep.subr.mxu1 %v41260_v8  ;;  %v2121_v63 = vand.u32 4294901760, %v2120_v59 }
 0x130   : > { %v2113_v47 = vand.u32 4294901760, %v2112_v16 }
 0x132   : > { %36976 = vmatmul.mubr.f32.vlgmr.msra.gmra.mrb[0].mxu0 %v41755_v34 }
 0x133   : > { %36980 = vmatprep.mubr.f32.mxu0 %v41747_v39  ;;  %36979 = vmatpush3.xpose.msra.mxu0 %v41260_v8  ;;  %v2122_v39 = vsub.f32 %v2120_v59, %v2121_v63 }
 0x134   : > { %37013 = vmatprep.subr.mxu0 %v41260_v8 }
 0x135   : > { %37006 = vmatmul.mubr.f32.vlgmr.msra.gmra.mrb[0].mxu1 %v41813_v44 }
 0x136   : > { %37010 = vmatprep.mubr.f32.mxu1 %v41808_v42  ;;  %37009 = vmatpush3.xpose.msra.mxu1 %v41260_v8  ;;  %v2123_v42 = vand.u32 4294901760, %v2122_v39 }
 0x137   : > { %37043 = vmatprep.subr.mxu1 %v41260_v8 }
 0x13a   : > { %36981 = vmatmul.mubr.f32.vlgmr.msra.gmra.mrb[0].mxu0 %v41755_v34  ;;  %v44527_v34 = vmov 0.0|0.0  }
 0x13b   : > { %37014 = vmatpush3.xpose.msra.mxu0 %v41260_v8  ;;  %37015 = vmatprep.mubr.f32.mxu0 %v1618_v58 }
 0x13c   : > { %37018 = vmatprep.subr.mxu0 %v41367_v19 }
 0x13d   : > { %37011 = vmatmul.mubr.f32.vlgmr.msra.gmra.mrb[0].mxu1 %v41813_v44  ;;  %v44523_v44 = vmov 0.0  }
 0x13e   : > { %37044 = vmatpush3.xpose.msra.mxu1 %v41260_v8  ;;  %37045 = vmatprep.mubr.f32.mxu1 %v2113_v47 }
 0x13f   : > { %37016 = vmatmul.mubr.f32.vlgmr.msra.gmra.mrb[2].mxu0 %v1628_v61  ;;  %37048 = vmatprep.subr.mxu1 %v41367_v19 }
 0x140   : > { %37020 = vmatprep.mubr.f32.mxu0 %v41922_v51  ;;  %37019 = vmatpush3.xpose.msra.mxu0 %v41367_v19 }
 0x141   : > { %37046 = vmatmul.mubr.f32.vlgmr.msra.gmra.mrb[2].mxu1 %v2123_v42  ;;  %37023 = vmatprep.subr.mxu0 %v41360_v13 }
 0x142   : > { %37050 = vmatprep.mubr.f32.mxu1 %v41930_v62  ;;  %37049 = vmatpush3.xpose.msra.mxu1 %v41367_v19 }
 0x143   : > { %37053 = vmatprep.subr.mxu1 %v41360_v13 }
 0x147   : > { %37021 = vmatmul.mubr.f32.vlgmr.msra.gmra.mrb[2].mxu0 %v41937_v55 }
 0x148   : > { %37025 = vmatprep.mubr.f32.mxu0 %v1615_v48  ;;  %37024 = vmatpush3.xpose.msra.mxu0 %v41360_v13 }
 0x149   : > { %37051 = vmatmul.mubr.f32.vlgmr.msra.gmra.mrb[2].mxu1 %v41943_v6  ;;  %37028 = vmatprep.subr.mxu0 %v41260_v8 }
 0x14a   : > { %37055 = vmatprep.mubr.f32.mxu1 %v2110_v32  ;;  %37054 = vmatpush3.xpose.msra.mxu1 %v41360_v13 }
 0x14b   : > { %37058 = vmatprep.subr.mxu1 %v41260_v8 }
 0x14f   : > { %37026 = vmatmul.mubr.f32.vlgmr.msra.gmra.mrb[2].mxu0 %v1625_v5 }
 0x150   : > { %37030 = vmatprep.mubr.f32.mxu0 %v1616_v27  ;;  %37029 = vmatpush3.xpose.msra.mxu0 %v41260_v8 }
 0x151   : > { %37056 = vmatmul.mubr.f32.vlgmr.msra.gmra.mrb[2].mxu1 %v2120_v59  ;;  %37033 = vmatprep.subr.mxu0 %v41363_v14 }
 0x152   : > { %37060 = vmatprep.mubr.f32.mxu1 %v2111_v40  ;;  %37059 = vmatpush3.xpose.msra.mxu1 %v41260_v8 }
 0x153   : > { %37063 = vmatprep.subr.mxu1 %v41363_v14 }
 0x157   : > { %37031 = vmatmul.mubr.f32.vlgmr.msra.gmra.mrb[2].mxu0 %v1626_v18 }
 0x158   : > { %37035 = vmatprep.mubr.f32.mxu0 %v41922_v51  ;;  %37034 = vmatpush3.xpose.msra.mxu0 %v41363_v14 }
 0x159   : > { %37061 = vmatmul.mubr.f32.vlgmr.msra.gmra.mrb[2].mxu1 %v2121_v63  ;;  %37038 = vmatprep.subr.mxu0 %v41260_v8 }
 0x15a   : > { %37065 = vmatprep.mubr.f32.mxu1 %v41930_v62  ;;  %37064 = vmatpush3.xpose.msra.mxu1 %v41363_v14 }
 0x15b   : > { %37068 = vmatprep.subr.mxu1 %v41260_v8 }
 0x15f   : > { %37036 = vmatmul.mubr.f32.vlgmr.msra.gmra.mrb[2].mxu0 %v41937_v55 }
 0x160   : > { %37040 = vmatprep.mubr.f32.mxu0 %v41922_v51  ;;  %37039 = vmatpush3.xpose.msra.mxu0 %v41260_v8  ;;  %v42002_v51 = vand.u32 4294901760, %v2533_v53 }
 0x161   : > { %37066 = vmatmul.mubr.f32.vlgmr.msra.gmra.mrb[2].mxu1 %v41943_v6  ;;  %39545 = vmatprep.subr.bf16.mxu0 %v44527_v34 }
 0x162   : > { %37070 = vmatprep.mubr.f32.mxu1 %v41930_v62  ;;  %37069 = vmatpush3.xpose.msra.mxu1 %v41260_v8  ;;  %v42005_v54 = vsub.f32 %v2533_v53, %v42002_v51 }
 0x163   : > { %39563 = vmatprep.subr.bf16.mxu1 %v44527_v34 }
 0x164   : > { %v42008_v62 = vand.u32 4294901760, %v42005_v54 }
 0x167   : > { %37041 = vmatmul.mubr.f32.vlgmr.msra.gmra.mrb[2].mxu0 %v41937_v55 }
 0x168   : > { %37077 = vmatprep.mubr.msk.f32.mxu0 %vm41103_vm4, %v44523_v44 }
 0x169   : > { %37071 = vmatmul.mubr.f32.vlgmr.msra.gmra.mrb[2].mxu1 %v41943_v6  ;;  %v2608_v6 = vsub.f32 %v42005_v54, %v42008_v62 }
 0x16a   : > { %37119 = vmatprep.mubr.msk.f32.mxu1 %vm41103_vm4, %v44523_v44 }
 0x16b   : > { %v42014_v58 = vand.u32 4294901760, %v2608_v6 }
 0x20d   : > { %v36982_v35 = vpop.f32.mrb[0].mxu0 }
 0x20e   : > { %v2536_v55 = vsel %vm44598_vm11, %v36982_v35, 0  ;;  %v1037_v48 = vpop.f32.mrb[1].mxu0  ;;  %vm44613_vm11 = vmmov %vm44596_vm0 }
 0x20f   : > { %v2542_v32 = vand.u32 4294901760, %v2536_v55  ;;  %v2539_v27 = vand.u32 4294901760, %v1037_v48 }
 0x210   : > { %v37012_v5 = vpop.f32.mrb[0].mxu1 }
 0x211   : > { %v2998_v59 = vsel %vm44599_vm6, %v37012_v5, 0  ;;  %v1532_v40 = vpop.f32.mrb[1].mxu1  ;;  %v2624_v18 = vsub.f32 %v2536_v55, %v2542_v32  ;;  %v39546_v63 = vpack.c.bf16 %v2542_v32, %v2539_v27  ;;  %v2617_v16 = vsub.f32 %v1037_v48, %v2539_v27  ;;  %vm44614_vm6 = vmmov %vm44601_vm3 }
 0x212   : > { %v3004_v52 = vand.u32 4294901760, %v2998_v59  ;;  %v3001_v31 = vand.u32 4294901760, %v1532_v40  ;;  %v44600_v27 = vmov 0.0  }
 0x213   : > { %v2625_v39 = vand.u32 4294901760, %v2624_v18  ;;  %v2618_v61 = vand.u32 4294901760, %v2617_v16  ;;  %v39552_v42 = vpack.c.bf16 %v2624_v18, %v2617_v16  ;;  %39547 = vmatpush3.bf16.msra.mxu0 %v39546_v63 }
 0x214   : > { %v3086_v47 = vsub.f32 %v2998_v59, %v3004_v52  ;;  %v39564_v26 = vpack.c.bf16 %v3004_v52, %v3001_v31  ;;  %v3079_v53 = vsub.f32 %v1532_v40, %v3001_v31  ;;  %39548 = vmatprep.subr.bf16.mxu0 %v44527_v34 }
 0x215   : > { %v2626_v35 = vsub.f32 %v2624_v18, %v2625_v39  ;;  %v2619_v5 = vsub.f32 %v2617_v16, %v2618_v61  ;;  %v39558_v4 = vpack.c.bf16 %v2625_v39, %v2618_v61 }
 0x216   : > { %v3087_v44 = vand.u32 4294901760, %v3086_v47  ;;  %v3080_v55 = vand.u32 4294901760, %v3079_v53  ;;  %v39570_v37 = vpack.c.bf16 %v3086_v47, %v3079_v53  ;;  %39565 = vmatpush3.bf16.msra.mxu1 %v39564_v26  ;;  %37078 = vmatmul.mubr.f32.vlgmr.msra.gmra.mrb[4].mxu0 %v42014_v58 }
 0x217   : > { %v2627_v48 = vand.u32 4294901760, %v2626_v35  ;;  %v2620_v32 = vand.u32 4294901760, %v2619_v5  ;;  %39566 = vmatprep.subr.bf16.mxu1 %v44527_v34  ;;  %37084 = vmatprep.mubr.msk.f32.mxu0 %vm41103_vm4, %v44600_v27 }
 0x218   : > { %v3088_v6 = vsub.f32 %v3086_v47, %v3087_v44  ;;  %v3081_v59 = vsub.f32 %v3079_v53, %v3080_v55  ;;  %v39576_v40 = vpack.c.bf16 %v3087_v44, %v3080_v55 }
 0x219   : > { %37120 = vmatmul.mubr.f32.vlgmr.msra.gmra.mrb[4].mxu1 %v42014_v58  ;;  %v39549_v18 = vpack.c.bf16 %v2627_v48, %v2620_v32 }
 0x21a   : > { %v3089_v52 = vand.u32 4294901760, %v3088_v6  ;;  %v3082_v16 = vand.u32 4294901760, %v3081_v59  ;;  %37126 = vmatprep.mubr.msk.f32.mxu1 %vm41103_vm4, %v44600_v27 }
 0x21b   : > { %39550 = vmatpush3.bf16.msra.mxu0 %v39549_v18 }
 0x21c   : > { %v39567_v31 = vpack.c.bf16 %v3089_v52, %v3082_v16  ;;  %39551 = vmatprep.subr.bf16.mxu0 %v44527_v34 }
 0x21e   : > { %39568 = vmatpush3.bf16.msra.mxu1 %v39567_v31  ;;  %37085 = vmatmul.mubr.f32.vlgmr.msra.gmra.mrb[4].mxu0 %v42002_v51 }
 0x21f   : > { %39569 = vmatprep.subr.bf16.mxu1 %v44527_v34  ;;  %39553 = vmatpush3.bf16.msra.mxu0 %v39552_v42 }
 0x220   : > { %37091 = vmatprep.mubr.msk.f32.mxu0 %vm41103_vm4, %v44600_v27  ;;  %39554 = vmatprep.subr.bf16.mxu0 %v44527_v34 }
 0x221   : > { %37127 = vmatmul.mubr.f32.vlgmr.msra.gmra.mrb[4].mxu1 %v42002_v51 }
 0x222   : > { %39571 = vmatpush3.bf16.msra.mxu1 %v39570_v37  ;;  %37133 = vmatprep.mubr.msk.f32.mxu1 %vm41103_vm4, %v44600_v27 }
 0x223   : > { %39572 = vmatprep.subr.bf16.mxu1 %v44527_v34 }
 0x226   : > { %37092 = vmatmul.mubr.f32.vlgmr.msra.gmra.mrb[4].mxu0 %v42005_v54 }
 0x227   : > { %39556 = vmatpush3.bf16.msra.mxu0 %v39546_v63  ;;  %37098 = vmatprep.mubr.msk.f32.mxu0 %vm41103_vm4, %v44600_v27 }
 0x228   : > { %39557 = vmatprep.subr.bf16.mxu0 %v44527_v34 }
 0x229   : > { %37134 = vmatmul.mubr.f32.vlgmr.msra.gmra.mrb[4].mxu1 %v42005_v54 }
 0x22a   : > { %39574 = vmatpush3.bf16.msra.mxu1 %v39564_v26  ;;  %37140 = vmatprep.mubr.msk.f32.mxu1 %vm41103_vm4, %v44600_v27 }
 0x22b   : > { %39575 = vmatprep.subr.bf16.mxu1 %v44527_v34 }
 0x22e   : > { %37099 = vmatmul.mubr.f32.vlgmr.msra.gmra.mrb[4].mxu0 %v42008_v62 }
 0x22f   : > { %39559 = vmatpush3.bf16.msra.mxu0 %v39558_v4  ;;  %37105 = vmatprep.mubr.msk.f32.mxu0 %vm41103_vm4, %v44600_v27 }
 0x230   : > { %39560 = vmatprep.subr.bf16.mxu0 %v44527_v34 }
 0x231   : > { %37141 = vmatmul.mubr.f32.vlgmr.msra.gmra.mrb[4].mxu1 %v42008_v62 }
 0x232   : > { %39577 = vmatpush3.bf16.msra.mxu1 %v39576_v40  ;;  %37147 = vmatprep.mubr.msk.f32.mxu1 %vm41103_vm4, %v44600_v27 }
 0x233   : > { %39578 = vmatprep.subr.bf16.mxu1 %v44527_v34 }
 0x236   : > { %37106 = vmatmul.mubr.f32.vlgmr.msra.gmra.mrb[4].mxu0 %v42002_v51 }
 0x237   : > { %39562 = vmatpush3.bf16.msra.mxu0 %v39546_v63  ;;  %37112 = vmatprep.mubr.msk.f32.mxu0 %vm41103_vm4, %v44600_v27 }
 0x238   : > { %39581 = vmatprep.subr.bf16.mxu0 %v44527_v34 }
 0x239   : > { %37148 = vmatmul.mubr.f32.vlgmr.msra.gmra.mrb[4].mxu1 %v42002_v51 }
 0x23a   : > { %v37042_v37 = vpop.f32.mrb[2].mxu0  ;;  %39580 = vmatpush3.bf16.msra.mxu1 %v39564_v26  ;;  %37154 = vmatprep.mubr.msk.f32.mxu1 %vm41103_vm4, %v44600_v27 }
 0x23b   : > { %v3460_v4 = vsel %vm44601_vm3, %v37042_v37, 0  ;;  %v2027_v44 = vpop.f32.mrb[3].mxu0  ;;  %39599 = vmatprep.subr.bf16.mxu1 %v44527_v34 }
 0x23c   : > { %v3466_v39 = vand.u32 4294901760, %v3460_v4  ;;  %v37072_v47 = vpop.f32.mrb[2].mxu1  ;;  %v3463_v61 = vand.u32 4294901760, %v2027_v44 }
 0x23d   : > { %v3922_v63 = vsel %vm44602_vm7, %v37072_v47, 0  ;;  %v2522_v42 = vpop.f32.mrb[3].mxu1  ;;  %vm44615_vm7 = vmmov %vm44601_vm3 }
 0x23e   : > { %v3548_v53 = vsub.f32 %v3460_v4, %v3466_v39  ;;  %v3928_v35 = vand.u32 4294901760, %v3922_v63  ;;  %v42060_v5 = vpack.c.bf16 %v3466_v39, %v3463_v61  ;;  %v3541_v55 = vsub.f32 %v2027_v44, %v3463_v61  ;;  %37113 = vmatmul.mubr.f32.vlgmr.msra.gmra.mrb[4].mxu0 %v42002_v51 }
 0x23f   : > { %v3925_v26 = vand.u32 4294901760, %v2522_v42  ;;  %37161 = vmatprep.mubr.msk.f32.mxu0 %vm41103_vm4, %v44600_v27 }
 0x240   : > { %v3549_v48 = vand.u32 4294901760, %v3548_v53  ;;  %v4010_v6 = vsub.f32 %v3922_v63, %v3928_v35  ;;  %v3542_v32 = vand.u32 4294901760, %v3541_v55  ;;  %v39588_v59 = vpack.c.bf16 %v3548_v53, %v3541_v55  ;;  %39583 = vmatpush3.bf16.msra.mxu0 %v42060_v5 }
 0x241   : > { %v42066_v40 = vpack.c.bf16 %v3928_v35, %v3925_v26  ;;  %v4003_v52 = vsub.f32 %v2522_v42, %v3925_v26  ;;  %39584 = vmatprep.subr.bf16.mxu0 %v44527_v34  ;;  %37155 = vmatmul.mubr.f32.vlgmr.msra.gmra.mrb[4].mxu1 %v42002_v51 }
 0x242   : > { %v3550_v18 = vsub.f32 %v3548_v53, %v3549_v48  ;;  %v4011_v16 = vand.u32 4294901760, %v4010_v6  ;;  %v3543_v31 = vsub.f32 %v3541_v55, %v3542_v32  ;;  %v39594_v37 = vpack.c.bf16 %v3549_v48, %v3542_v32  ;;  %37203 = vmatprep.mubr.msk.f32.mxu1 %vm41103_vm4, %v44600_v27 }
 0x243   : > { %v4004_v4 = vand.u32 4294901760, %v4003_v52  ;;  %v39606_v44 = vpack.c.bf16 %v4010_v6, %v4003_v52  ;;  %39601 = vmatpush3.bf16.msra.mxu1 %v42066_v40  ;;  %37162 = vmatmul.mubr.f32.vlgmr.msra.gmra.mrb[6].mxu0 %v42014_v58  ;;  %v42082_v48 = vand.u32 2147483647, %v41383_v38  ;;  %v42098_v32 = vmul.f32 0.34202015, %v41396_v46 }
 0x244   : > { %v3551_v39 = vand.u32 4294901760, %v3550_v18  ;;  %v4012_v47 = vsub.f32 %v4010_v6, %v4011_v16  ;;  %v3544_v61 = vand.u32 4294901760, %v3543_v31  ;;  %39602 = vmatprep.subr.bf16.mxu1 %v44527_v34  ;;  %37168 = vmatprep.mubr.msk.f32.mxu0 %vm41103_vm4, %v44600_v27  ;;  %v42089_v6 = vand.u32 2147483647, %v41378_v33 }
 0x245   : > { %v4005_v63 = vsub.f32 %v4003_v52, %v4004_v4  ;;  %v39612_v42 = vpack.c.bf16 %v4011_v16, %v4004_v4  ;;  %v4383_v38 = vmul.f32 0.9396926, %v42082_v48  ;;  %44603 = vst [vmem:[#allocation42_spill] sm:$0xff] %v42098_v32  ;;  %v42102_v33 = vmul.f32 0.34202015, %v41392_v43 }
 0x246   : > { %v4013_v53 = vand.u32 4294901760, %v4012_v47  ;;  %37204 = vmatmul.mubr.f32.vlgmr.msra.gmra.mrb[6].mxu1 %v42014_v58  ;;  %v39585_v35 = vpack.c.bf16 %v3551_v39, %v3544_v61  ;;  %v4914_v47 = vsel %vm44608_vm5, %v41440_v49, 0  ;;  %vm44619_vm5 = vmmov %vm44596_vm0 }
 0x247   : > { %v4006_v55 = vand.u32 4294901760, %v4005_v63  ;;  %37210 = vmatprep.mubr.msk.f32.mxu1 %vm41103_vm4, %v44600_v27  ;;  %44604 = vst [vmem:[#allocation43_spill] sm:$0xff] %v42102_v33  ;;  %vm4399_vm13 = vcmp.ge.f32.partialorder %v4383_v38, %v42098_v32 }
 0x248   : > { %39586 = vmatpush3.bf16.msra.mxu0 %v39585_v35  ;;  %v4407_v52 = vsel %vm4399_vm13, %v41717_v41, 0.0  ;;  %vm44616_vm13 = vmmov %vm44601_vm3 }
 0x249   : > { %v39603_v26 = vpack.c.bf16 %v4013_v53, %v4006_v55  ;;  %39587 = vmatprep.subr.bf16.mxu0 %v44527_v34  ;;  %v4416_v16 = vsel %vm44605_vm15, %v4407_v52, 0 }
 0x24a   : > { %v42120_v4 = vand.u32 4294901760, %v4416_v16 }
 0x24b   : > { %39604 = vmatpush3.bf16.msra.mxu1 %v39603_v26  ;;  %37169 = vmatmul.mubr.f32.vlgmr.msra.gmra.mrb[6].mxu0 %v42002_v51 }
 0x24c   : > { %39605 = vmatprep.subr.bf16.mxu1 %v44527_v34  ;;  %39589 = vmatpush3.bf16.msra.mxu0 %v39588_v59  ;;  %v4385_v59 = vmul.f32 0.9396926, %v42089_v6 }
 0x24d   : > { %37175 = vmatprep.mubr.msk.f32.mxu0 %vm41103_vm4, %v44600_v27  ;;  %39590 = vmatprep.subr.bf16.mxu0 %v44527_v34 }
 0x24e   : > { %37211 = vmatmul.mubr.f32.vlgmr.msra.gmra.mrb[6].mxu1 %v42002_v51  ;;  %vm4401_vm2 = vcmp.ge.f32.partialorder %v4385_v59, %v42102_v33 }
 0x24f   : > { %39607 = vmatpush3.bf16.msra.mxu1 %v39606_v44  ;;  %37217 = vmatprep.mubr.msk.f32.mxu1 %vm41103_vm4, %v44600_v27  ;;  %v4409_v18 = vsel %vm4401_vm2, %v41751_v1, 0.0  ;;  %v4419_v44 = vsel %vm44607_vm1, %v41503_v22, 0  ;;  %v4488_v22 = vsub.f32 %v4416_v16, %v42120_v4  ;;  %vm44618_vm1 = vmmov %vm44596_vm0 }
 0x250   : > { %39608 = vmatprep.subr.bf16.mxu1 %v44527_v34  ;;  %v4911_v31 = vsel %vm44606_vm14, %v4409_v18, 0  ;;  %v42133_v61 = vand.u32 4294901760, %v4419_v44  ;;  %vm44617_vm14 = vmmov %vm44596_vm0 }
 0x251   : > { %v42127_v39 = vand.u32 4294901760, %v4911_v31  ;;  %v4489_v53 = vand.u32 4294901760, %v4488_v22 }
 0x252   : > { %v4498_v49 = vsub.f32 %v4419_v44, %v42133_v61  ;;  %v4411_v44 = vsel %vm44609_vm8, %v41909_v3, 0.0  ;;  %vm44620_vm8 = vmmov %vm44596_vm0 }
 0x253   : > { %37176 = vmatmul.mubr.f32.vlgmr.msra.gmra.mrb[6].mxu0 %v42005_v54  ;;  %v4983_v63 = vsub.f32 %v4911_v31, %v42127_v39  ;;  %v4490_v55 = vsub.f32 %v4488_v22, %v4489_v53 }
 0x254   : > { %39592 = vmatpush3.bf16.msra.mxu0 %v42060_v5  ;;  %37182 = vmatprep.mubr.msk.f32.mxu0 %vm41103_vm4, %v44600_v27  ;;  %v4499_v26 = vand.u32 4294901760, %v4498_v49 }
 0x255   : > { %39593 = vmatprep.subr.bf16.mxu0 %v44527_v34  ;;  %v4491_v59 = vand.u32 4294901760, %v4490_v55 }
 0x256   : > { %37218 = vmatmul.mubr.f32.vlgmr.msra.gmra.mrb[6].mxu1 %v42005_v54  ;;  %v4500_v52 = vsub.f32 %v4498_v49, %v4499_v26 }
 0x257   : > { %39610 = vmatpush3.bf16.msra.mxu1 %v42066_v40  ;;  %37224 = vmatprep.mubr.msk.f32.mxu1 %vm41103_vm4, %v44600_v27 }
 0x258   : > { %39611 = vmatprep.subr.bf16.mxu1 %v44527_v34 }
 0x25b   : > { %37183 = vmatmul.mubr.f32.vlgmr.msra.gmra.mrb[6].mxu0 %v42008_v62 }
 0x25c   : > { %39595 = vmatpush3.bf16.msra.mxu0 %v39594_v37  ;;  %37189 = vmatprep.mubr.msk.f32.mxu0 %vm41103_vm4, %v44600_v27  ;;  %v42139_v37 = vand.u32 4294901760, %v4914_v47 }
 0x25d   : > { %39596 = vmatprep.subr.bf16.mxu0 %v44527_v34 }
 0x25e   : > { %37225 = vmatmul.mubr.f32.vlgmr.msra.gmra.mrb[6].mxu1 %v42008_v62  ;;  %v4993_v35 = vsub.f32 %v4914_v47, %v42139_v37  ;;  %v4413_v47 = vsel %vm44610_vm12, %v41914_v23, 0.0  ;;  %vm44621_vm12 = vcmp.ge.f32.partialorder %v41599_v21, %v41622_v57 }
 0x25f   : > { %39613 = vmatpush3.bf16.msra.mxu1 %v39612_v42  ;;  %37231 = vmatprep.mubr.msk.f32.mxu1 %vm41103_vm4, %v44600_v27  ;;  %v4984_v42 = vand.u32 4294901760, %v4983_v63 }
 0x260   : > { %39614 = vmatprep.subr.bf16.mxu1 %v44527_v34  ;;  %v4994_v38 = vand.u32 4294901760, %v4993_v35 }
 0x262   : > { %v4995_v16 = vsub.f32 %v4993_v35, %v4994_v38 }
 0x263   : > { %37190 = vmatmul.mubr.f32.vlgmr.msra.gmra.mrb[6].mxu0 %v42002_v51 }
 0x264   : > { %39598 = vmatpush3.bf16.msra.mxu0 %v42060_v5  ;;  %37196 = vmatprep.mubr.msk.f32.mxu0 %vm41103_vm4, %v44600_v27  ;;  %v4985_v5 = vsub.f32 %v4983_v63, %v4984_v42  ;;  %v4996_v31 = vand.u32 4294901760, %v4995_v16 }
 0x265   : > { %37241 = vmatprep.subr.mxu0 %v41260_v8 }
 0x266   : > { %37232 = vmatmul.mubr.f32.vlgmr.msra.gmra.mrb[6].mxu1 %v42002_v51  ;;  %v4986_v18 = vand.u32 4294901760, %v4985_v5 }
 0x267   : > { %39616 = vmatpush3.bf16.msra.mxu1 %v42066_v40  ;;  %37238 = vmatprep.mubr.msk.f32.mxu1 %vm41103_vm4, %v44600_v27  ;;  %v4501_v40 = vand.u32 4294901760, %v4500_v52 }
 0x268   : > { %37271 = vmatprep.subr.mxu1 %v41260_v8 }
 0x26b   : > { %37197 = vmatmul.mubr.f32.vlgmr.msra.gmra.mrb[6].mxu0 %v42002_v51 }
 0x26c   : > { %37243 = vmatprep.mubr.f32.mxu0 %v4491_v59 }
 0x26d   : > { %37242 = vmatpush3.xpose.msra.mxu0 %v41260_v8 }
 0x26e   : > { %37239 = vmatmul.mubr.f32.vlgmr.msra.gmra.mrb[6].mxu1 %v42002_v51  ;;  %37246 = vmatprep.subr.mxu0 %v41367_v19 }
 0x26f   : > { %37273 = vmatprep.mubr.f32.mxu1 %v4986_v18 }
 0x270   : > { %37272 = vmatpush3.xpose.msra.mxu1 %v41260_v8  ;;  %37244 = vmatmul.mubr.f32.vlgmr.msra.gmra.mrb[8].mxu0 %v4501_v40 }
 0x271   : > { %37276 = vmatprep.subr.mxu1 %v41367_v19  ;;  %37248 = vmatprep.mubr.f32.mxu0 %v42120_v4 }
 0x272   : > { %37247 = vmatpush3.xpose.msra.mxu0 %v41367_v19 }
 0x273   : > { %37274 = vmatmul.mubr.f32.vlgmr.msra.gmra.mrb[8].mxu1 %v4996_v31  ;;  %37251 = vmatprep.subr.mxu0 %v41360_v13 }
 0x274   : > { %37278 = vmatprep.mubr.f32.mxu1 %v42127_v39  ;;  %37277 = vmatpush3.xpose.msra.mxu1 %v41367_v19 }
 0x275   : > { %37281 = vmatprep.subr.mxu1 %v41360_v13 }
 0x278   : > { %37249 = vmatmul.mubr.f32.vlgmr.msra.gmra.mrb[8].mxu0 %v42133_v61 }
 0x279   : > { %37253 = vmatprep.mubr.f32.mxu0 %v4488_v22  ;;  %37252 = vmatpush3.xpose.msra.mxu0 %v41360_v13  ;;  %v5406_v22 = vsel %vm44611_vm9, %v4411_v44, 0 }
 0x27a   : > { %37256 = vmatprep.subr.mxu0 %v41260_v8 }
 0x27b   : > { %37279 = vmatmul.mubr.f32.vlgmr.msra.gmra.mrb[8].mxu1 %v42139_v37 }
 0x27c   : > { %37283 = vmatprep.mubr.f32.mxu1 %v4983_v63  ;;  %37282 = vmatpush3.xpose.msra.mxu1 %v41360_v13  ;;  %v5901_v63 = vsel %vm44596_vm0, %v4413_v47, 0 }
 0x27d   : > { %37286 = vmatprep.subr.mxu1 %v41260_v8  ;;  %v42194_v15 = vand.u32 4294901760, %v5901_v63 }
 0x280   : > { %37254 = vmatmul.mubr.f32.vlgmr.msra.gmra.mrb[8].mxu0 %v4498_v49  ;;  %v5904_v49 = vsel %vm44613_vm11, %v41761_v20, 0  ;;  %v5973_v20 = vsub.f32 %v5901_v63, %v42194_v15  ;;  %vm44625_vm11 = vmmov %vm44596_vm0 }
 0x281   : > { %37258 = vmatprep.mubr.f32.mxu0 %v4489_v53  ;;  %37257 = vmatpush3.xpose.msra.mxu0 %v41260_v8  ;;  %v42188_v53 = vand.u32 4294901760, %v5406_v22  ;;  %v9269_v21 = vsel %vm44625_vm11, %v41848_v29, 0 }
 0x282   : > { %37261 = vmatprep.subr.mxu0 %v41363_v14 }
 0x283   : > { %37284 = vmatmul.mubr.f32.vlgmr.msra.gmra.mrb[8].mxu1 %v4993_v35  ;;  %v5478_v12 = vsub.f32 %v5406_v22, %v42188_v53  ;;  %v42202_v35 = vand.u32 4294901760, %v5904_v49 }
 0x284   : > { %37288 = vmatprep.mubr.f32.mxu1 %v4984_v42  ;;  %37287 = vmatpush3.xpose.msra.mxu1 %v41260_v8  ;;  %v42196_v42 = vand.u32 4294901760, %v5409_v30 }
 0x285   : > { %37291 = vmatprep.subr.mxu1 %v41363_v14  ;;  %v5983_v5 = vsub.f32 %v5904_v49, %v42202_v35 }
 0x286   : > { %v5488_v55 = vsub.f32 %v5409_v30, %v42196_v42 }
 0x287   : > { %v5984_v18 = vand.u32 4294901760, %v5983_v5 }
 0x288   : > { %37259 = vmatmul.mubr.f32.vlgmr.msra.gmra.mrb[8].mxu0 %v4499_v26  ;;  %v5479_v26 = vand.u32 4294901760, %v5478_v12  ;;  %v5489_v59 = vand.u32 4294901760, %v5488_v55 }
 0x289   : > { %37263 = vmatprep.mubr.f32.mxu0 %v42120_v4  ;;  %37262 = vmatpush3.xpose.msra.mxu0 %v41363_v14 }
 0x28a   : > { %37266 = vmatprep.subr.mxu0 %v41260_v8  ;;  %v5480_v52 = vsub.f32 %v5478_v12, %v5479_v26  ;;  %v5490_v40 = vsub.f32 %v5488_v55, %v5489_v59 }
 0x28b   : > { %37289 = vmatmul.mubr.f32.vlgmr.msra.gmra.mrb[8].mxu1 %v4994_v38  ;;  %v5974_v38 = vand.u32 4294901760, %v5973_v20 }
 0x28c   : > { %37293 = vmatprep.mubr.f32.mxu1 %v42127_v39  ;;  %37292 = vmatpush3.xpose.msra.mxu1 %v41363_v14  ;;  %v5481_v31 = vand.u32 4294901760, %v5480_v52  ;;  %v5491_v47 = vand.u32 4294901760, %v5490_v40 }
 0x28d   : > { %37296 = vmatprep.subr.mxu1 %v41260_v8  ;;  %v5975_v16 = vsub.f32 %v5973_v20, %v5974_v38 }
 0x28f   : > { %v5976_v44 = vand.u32 4294901760, %v5975_v16 }
 0x290   : > { %37264 = vmatmul.mubr.f32.vlgmr.msra.gmra.mrb[8].mxu0 %v42133_v61 }
 0x291   : > { %37268 = vmatprep.mubr.f32.mxu0 %v42120_v4  ;;  %37267 = vmatpush3.xpose.msra.mxu0 %v41260_v8  ;;  %v5985_v4 = vsub.f32 %v5983_v5, %v5984_v18 }
 0x292   : > { %37301 = vmatprep.subr.mxu0 %v41260_v8 }
 0x293   : > { %37294 = vmatmul.mubr.f32.vlgmr.msra.gmra.mrb[8].mxu1 %v42139_v37 }
 0x294   : > { %37298 = vmatprep.mubr.f32.mxu1 %v42127_v39  ;;  %37297 = vmatpush3.xpose.msra.mxu1 %v41260_v8  ;;  %v5986_v39 = vand.u32 4294901760, %v5985_v4 }
 0x295   : > { %37331 = vmatprep.subr.mxu1 %v41260_v8 }
 0x298   : > { %37269 = vmatmul.mubr.f32.vlgmr.msra.gmra.mrb[8].mxu0 %v42133_v61 }
 0x299   : > { %37302 = vmatpush3.xpose.msra.mxu0 %v41260_v8  ;;  %37303 = vmatprep.mubr.f32.mxu0 %v5481_v31 }
 0x29a   : > { %37306 = vmatprep.subr.mxu0 %v41367_v19 }
 0x29b   : > { %37299 = vmatmul.mubr.f32.vlgmr.msra.gmra.mrb[8].mxu1 %v42139_v37 }
 0x29c   : > { %37332 = vmatpush3.xpose.msra.mxu1 %v41260_v8  ;;  %37333 = vmatprep.mubr.f32.mxu1 %v5976_v44 }
 0x29d   : > { %37304 = vmatmul.mubr.f32.vlgmr.msra.gmra.mrb[10].mxu0 %v5491_v47  ;;  %37336 = vmatprep.subr.mxu1 %v41367_v19 }
 0x29e   : > { %37308 = vmatprep.mubr.f32.mxu0 %v42188_v53  ;;  %37307 = vmatpush3.xpose.msra.mxu0 %v41367_v19 }
 0x29f   : > { %37334 = vmatmul.mubr.f32.vlgmr.msra.gmra.mrb[10].mxu1 %v5986_v39  ;;  %37311 = vmatprep.subr.mxu0 %v41360_v13 }
 0x2a0   : > { %37338 = vmatprep.mubr.f32.mxu1 %v42194_v15  ;;  %37337 = vmatpush3.xpose.msra.mxu1 %v41367_v19 }
 0x2a1   : > { %37341 = vmatprep.subr.mxu1 %v41360_v13 }
 0x2a5   : > { %37309 = vmatmul.mubr.f32.vlgmr.msra.gmra.mrb[10].mxu0 %v42196_v42 }
 0x2a6   : > { %37313 = vmatprep.mubr.f32.mxu0 %v5478_v12  ;;  %37312 = vmatpush3.xpose.msra.mxu0 %v41360_v13 }
 0x2a7   : > { %37339 = vmatmul.mubr.f32.vlgmr.msra.gmra.mrb[10].mxu1 %v42202_v35  ;;  %37316 = vmatprep.subr.mxu0 %v41260_v8 }
 0x2a8   : > { %37343 = vmatprep.mubr.f32.mxu1 %v5973_v20  ;;  %37342 = vmatpush3.xpose.msra.mxu1 %v41360_v13 }
 0x2a9   : > { %37346 = vmatprep.subr.mxu1 %v41260_v8 }
 0x2ad   : > { %37314 = vmatmul.mubr.f32.vlgmr.msra.gmra.mrb[10].mxu0 %v5488_v55 }
 0x2ae   : > { %37318 = vmatprep.mubr.f32.mxu0 %v5479_v26  ;;  %37317 = vmatpush3.xpose.msra.mxu0 %v41260_v8 }
 0x2af   : > { %37344 = vmatmul.mubr.f32.vlgmr.msra.gmra.mrb[10].mxu1 %v5983_v5  ;;  %37321 = vmatprep.subr.mxu0 %v41363_v14 }
 0x2b0   : > { %37348 = vmatprep.mubr.f32.mxu1 %v5974_v38  ;;  %37347 = vmatpush3.xpose.msra.mxu1 %v41260_v8 }
 0x2b1   : > { %37351 = vmatprep.subr.mxu1 %v41363_v14 }
 0x2b5   : > { %37319 = vmatmul.mubr.f32.vlgmr.msra.gmra.mrb[10].mxu0 %v5489_v59 }
 0x2b6   : > { %37323 = vmatprep.mubr.f32.mxu0 %v42188_v53  ;;  %37322 = vmatpush3.xpose.msra.mxu0 %v41363_v14 }
 0x2b7   : > { %37349 = vmatmul.mubr.f32.vlgmr.msra.gmra.mrb[10].mxu1 %v5984_v18  ;;  %37326 = vmatprep.subr.mxu0 %v41260_v8 }
 0x2b8   : > { %37353 = vmatprep.mubr.f32.mxu1 %v42194_v15  ;;  %37352 = vmatpush3.xpose.msra.mxu1 %v41363_v14 }
 0x2b9   : > { %37356 = vmatprep.subr.mxu1 %v41260_v8 }
 0x2bd   : > { %37324 = vmatmul.mubr.f32.vlgmr.msra.gmra.mrb[10].mxu0 %v42196_v42 }
 0x2be   : > { %37328 = vmatprep.mubr.f32.mxu0 %v42188_v53  ;;  %37327 = vmatpush3.xpose.msra.mxu0 %v41260_v8 }
 0x2bf   : > { %37354 = vmatmul.mubr.f32.vlgmr.msra.gmra.mrb[10].mxu1 %v42202_v35  ;;  %39617 = vmatprep.subr.bf16.mxu0 %v44527_v34 }
 0x2c0   : > { %37358 = vmatprep.mubr.f32.mxu1 %v42194_v15  ;;  %37357 = vmatpush3.xpose.msra.mxu1 %v41260_v8 }
 0x2c1   : > { %39635 = vmatprep.subr.bf16.mxu1 %v44527_v34 }
 0x2c5   : > { %37329 = vmatmul.mubr.f32.vlgmr.msra.gmra.mrb[10].mxu0 %v42196_v42 }
 0x2c6   : > { %37365 = vmatprep.mubr.msk.f32.mxu0 %vm41103_vm4, %v44600_v27 }
 0x2c7   : > { %37359 = vmatmul.mubr.f32.vlgmr.msra.gmra.mrb[10].mxu1 %v42202_v35 }
 0x2c8   : > { %37407 = vmatprep.mubr.msk.f32.mxu1 %vm41103_vm4, %v44600_v27 }
 0x311   : > { %v42258_v61 = vpop.f32.mrb[4].mxu0 }
 0x312   : > { %v37114_v37 = vpop.f32.mrb[5].mxu0 }
 0x314   : > { %v42260_v22 = vpop.f32.mrb[4].mxu1 }
 0x315   : > { %v37156_v63 = vpop.f32.mrb[5].mxu1 }
 0x33e   : > { %v42262_v30 = vpop.f32.mrb[6].mxu0 }
 0x33f   : > { %v37198_v53 = vpop.f32.mrb[7].mxu0 }
 0x341   : > { %v42264_v49 = vpop.f32.mrb[6].mxu1 }
 0x342   : > { %v37240_v15 = vpop.f32.mrb[7].mxu1 }
 0x36b   : > { %v37270_v42 = vpop.f32.mrb[8].mxu0 }
 0x36c   : > { %v6396_v12 = vsel %vm44614_vm6, %v37270_v42, 0  ;;  %v4900_v20 = vpop.f32.mrb[9].mxu0  ;;  %vm44626_vm6 = vmmov %vm44596_vm0 }
 0x36d   : > { %v6402_v35 = vand.u32 4294901760, %v6396_v12  ;;  %v6399_v26 = vand.u32 4294901760, %v4900_v20 }
 0x36e   : > { %v37300_v55 = vpop.f32.mrb[8].mxu1 }
 0x36f   : > { %v6858_v5 = vsel %vm44601_vm3, %v37300_v55, 0  ;;  %v5395_v38 = vpop.f32.mrb[9].mxu1  ;;  %v6484_v59 = vsub.f32 %v6396_v12, %v6402_v35  ;;  %v39618_v18 = vpack.c.bf16 %v6402_v35, %v6399_v26  ;;  %v6477_v16 = vsub.f32 %v4900_v20, %v6399_v26 }
 0x370   : > { %v6864_v52 = vand.u32 4294901760, %v6858_v5  ;;  %v6861_v40 = vand.u32 4294901760, %v5395_v38 }
 0x371   : > { %v6485_v31 = vand.u32 4294901760, %v6484_v59  ;;  %v6478_v44 = vand.u32 4294901760, %v6477_v16  ;;  %v39624_v47 = vpack.c.bf16 %v6484_v59, %v6477_v16  ;;  %39619 = vmatpush3.bf16.msra.mxu0 %v39618_v18 }
 0x372   : > { %v6946_v4 = vsub.f32 %v6858_v5, %v6864_v52  ;;  %v39636_v39 = vpack.c.bf16 %v6864_v52, %v6861_v40  ;;  %v6939_v37 = vsub.f32 %v5395_v38, %v6861_v40  ;;  %39620 = vmatprep.subr.bf16.mxu0 %v44527_v34 }
 0x373   : > { %v6486_v63 = vsub.f32 %v6484_v59, %v6485_v31  ;;  %v6479_v15 = vsub.f32 %v6477_v16, %v6478_v44  ;;  %v39630_v42 = vpack.c.bf16 %v6485_v31, %v6478_v44 }
 0x374   : > { %v6947_v53 = vand.u32 4294901760, %v6946_v4  ;;  %v6940_v55 = vand.u32 4294901760, %v6939_v37  ;;  %v39642_v7 = vpack.c.bf16 %v6946_v4, %v6939_v37  ;;  %39637 = vmatpush3.bf16.msra.mxu1 %v39636_v39  ;;  %37366 = vmatmul.mubr.f32.vlgmr.msra.gmra.mrb[12].mxu0 %v42014_v58 }
 0x375   : > { %v6487_v12 = vand.u32 4294901760, %v6486_v63  ;;  %v6480_v35 = vand.u32 4294901760, %v6479_v15  ;;  %39638 = vmatprep.subr.bf16.mxu1 %v44527_v34  ;;  %37372 = vmatprep.mubr.msk.f32.mxu0 %vm41103_vm4, %v44600_v27 }
 0x376   : > { %v6948_v20 = vsub.f32 %v6946_v4, %v6947_v53  ;;  %v6941_v26 = vsub.f32 %v6939_v37, %v6940_v55  ;;  %v39648_v5 = vpack.c.bf16 %v6947_v53, %v6940_v55 }
 0x377   : > { %37408 = vmatmul.mubr.f32.vlgmr.msra.gmra.mrb[12].mxu1 %v42014_v58  ;;  %v39621_v59 = vpack.c.bf16 %v6487_v12, %v6480_v35 }
 0x378   : > { %v6949_v38 = vand.u32 4294901760, %v6948_v20  ;;  %v6942_v52 = vand.u32 4294901760, %v6941_v26  ;;  %37414 = vmatprep.mubr.msk.f32.mxu1 %vm41103_vm4, %v44600_v27 }
 0x379   : > { %39622 = vmatpush3.bf16.msra.mxu0 %v39621_v59 }
 0x37a   : > { %v39639_v16 = vpack.c.bf16 %v6949_v38, %v6942_v52  ;;  %39623 = vmatprep.subr.bf16.mxu0 %v44527_v34 }
 0x37c   : > { %39640 = vmatpush3.bf16.msra.mxu1 %v39639_v16  ;;  %37373 = vmatmul.mubr.f32.vlgmr.msra.gmra.mrb[12].mxu0 %v42002_v51 }
 0x37d   : > { %39641 = vmatprep.subr.bf16.mxu1 %v44527_v34  ;;  %39625 = vmatpush3.bf16.msra.mxu0 %v39624_v47 }
 0x37e   : > { %37379 = vmatprep.mubr.msk.f32.mxu0 %vm41103_vm4, %v44600_v27  ;;  %39626 = vmatprep.subr.bf16.mxu0 %v44527_v34 }
 0x37f   : > { %37415 = vmatmul.mubr.f32.vlgmr.msra.gmra.mrb[12].mxu1 %v42002_v51 }
 0x380   : > { %39643 = vmatpush3.bf16.msra.mxu1 %v39642_v7  ;;  %37421 = vmatprep.mubr.msk.f32.mxu1 %vm41103_vm4, %v44600_v27 }
 0x381   : > { %39644 = vmatprep.subr.bf16.mxu1 %v44527_v34 }
 0x384   : > { %37380 = vmatmul.mubr.f32.vlgmr.msra.gmra.mrb[12].mxu0 %v42005_v54 }
 0x385   : > { %39628 = vmatpush3.bf16.msra.mxu0 %v39618_v18  ;;  %37386 = vmatprep.mubr.msk.f32.mxu0 %vm41103_vm4, %v44600_v27 }
 0x386   : > { %39629 = vmatprep.subr.bf16.mxu0 %v44527_v34 }
 0x387   : > { %37422 = vmatmul.mubr.f32.vlgmr.msra.gmra.mrb[12].mxu1 %v42005_v54 }
 0x388   : > { %39646 = vmatpush3.bf16.msra.mxu1 %v39636_v39  ;;  %37428 = vmatprep.mubr.msk.f32.mxu1 %vm41103_vm4, %v44600_v27 }
 0x389   : > { %39647 = vmatprep.subr.bf16.mxu1 %v44527_v34 }
 0x38c   : > { %37387 = vmatmul.mubr.f32.vlgmr.msra.gmra.mrb[12].mxu0 %v42008_v62 }
 0x38d   : > { %39631 = vmatpush3.bf16.msra.mxu0 %v39630_v42  ;;  %37393 = vmatprep.mubr.msk.f32.mxu0 %vm41103_vm4, %v44600_v27 }
 0x38e   : > { %39632 = vmatprep.subr.bf16.mxu0 %v44527_v34 }
 0x38f   : > { %37429 = vmatmul.mubr.f32.vlgmr.msra.gmra.mrb[12].mxu1 %v42008_v62 }
 0x390   : > { %39649 = vmatpush3.bf16.msra.mxu1 %v39648_v5  ;;  %37435 = vmatprep.mubr.msk.f32.mxu1 %vm41103_vm4, %v44600_v27 }
 0x391   : > { %39650 = vmatprep.subr.bf16.mxu1 %v44527_v34 }
 0x394   : > { %37394 = vmatmul.mubr.f32.vlgmr.msra.gmra.mrb[12].mxu0 %v42002_v51 }
 0x395   : > { %39634 = vmatpush3.bf16.msra.mxu0 %v39618_v18  ;;  %37400 = vmatprep.mubr.msk.f32.mxu0 %vm41103_vm4, %v44600_v27 }
 0x396   : > { %39653 = vmatprep.subr.bf16.mxu0 %v44527_v34 }
 0x397   : > { %37436 = vmatmul.mubr.f32.vlgmr.msra.gmra.mrb[12].mxu1 %v42002_v51 }
 0x398   : > { %v37330_v7 = vpop.f32.mrb[10].mxu0  ;;  %39652 = vmatpush3.bf16.msra.mxu1 %v39636_v39  ;;  %37442 = vmatprep.mubr.msk.f32.mxu1 %vm41103_vm4, %v44600_v27 }
 0x399   : > { %v7320_v40 = vsel %vm44615_vm7, %v37330_v7, 0  ;;  %v5890_v31 = vpop.f32.mrb[11].mxu0  ;;  %39671 = vmatprep.subr.bf16.mxu1 %v44527_v34  ;;  %vm44631_vm7 = vmmov %vm44601_vm3 }
 0x39a   : > { %v7326_v4 = vand.u32 4294901760, %v7320_v40  ;;  %v37360_v44 = vpop.f32.mrb[10].mxu1  ;;  %v7323_v47 = vand.u32 4294901760, %v5890_v31 }
 0x39b   : > { %v7782_v18 = vsel %vm44616_vm13, %v37360_v44, 0  ;;  %v6385_v37 = vpop.f32.mrb[11].mxu1  ;;  %vm44632_vm13 = vmmov %vm44601_vm3 }
 0x39c   : > { %v7408_v63 = vsub.f32 %v7320_v40, %v7326_v4  ;;  %v7788_v53 = vand.u32 4294901760, %v7782_v18  ;;  %v42312_v15 = vpack.c.bf16 %v7326_v4, %v7323_v47  ;;  %v7401_v42 = vsub.f32 %v5890_v31, %v7323_v47  ;;  %37401 = vmatmul.mubr.f32.vlgmr.msra.gmra.mrb[12].mxu0 %v42002_v51 }
 0x39d   : > { %v7785_v39 = vand.u32 4294901760, %v6385_v37  ;;  %37449 = vmatprep.mubr.msk.f32.mxu0 %vm41103_vm4, %v44600_v27 }
 0x39e   : > { %v7409_v55 = vand.u32 4294901760, %v7408_v63  ;;  %v7870_v12 = vsub.f32 %v7782_v18, %v7788_v53  ;;  %v7402_v20 = vand.u32 4294901760, %v7401_v42  ;;  %v39660_v35 = vpack.c.bf16 %v7408_v63, %v7401_v42  ;;  %39655 = vmatpush3.bf16.msra.mxu0 %v42312_v15 }
 0x39f   : > { %v42318_v26 = vpack.c.bf16 %v7788_v53, %v7785_v39  ;;  %v7863_v5 = vsub.f32 %v6385_v37, %v7785_v39  ;;  %39656 = vmatprep.subr.bf16.mxu0 %v44527_v34  ;;  %37443 = vmatmul.mubr.f32.vlgmr.msra.gmra.mrb[12].mxu1 %v42002_v51  ;;  %v8243_v39 = vmul.f32 0.76604444, %v42082_v48 }
 0x3a0   : > { %v7410_v38 = vsub.f32 %v7408_v63, %v7409_v55  ;;  %v7871_v59 = vand.u32 4294901760, %v7870_v12  ;;  %v7403_v52 = vsub.f32 %v7401_v42, %v7402_v20  ;;  %v39666_v16 = vpack.c.bf16 %v7409_v55, %v7402_v20  ;;  %37491 = vmatprep.mubr.msk.f32.mxu1 %vm41103_vm4, %v44600_v27 }
 0x3a1   : > { %v7864_v7 = vand.u32 4294901760, %v7863_v5  ;;  %v39678_v40 = vpack.c.bf16 %v7870_v12, %v7863_v5  ;;  %39673 = vmatpush3.bf16.msra.mxu1 %v42318_v26  ;;  %37450 = vmatmul.mubr.f32.vlgmr.msra.gmra.mrb[14].mxu0 %v42014_v58  ;;  %v42344_v55 = vmul.f32 0.64278764, %v41396_v46  ;;  %v42348_v20 = vmul.f32 0.64278764, %v41392_v43 }
 0x3a2   : > { %v7411_v31 = vand.u32 4294901760, %v7410_v38  ;;  %v7872_v4 = vsub.f32 %v7870_v12, %v7871_v59  ;;  %v7404_v44 = vand.u32 4294901760, %v7403_v52  ;;  %39674 = vmatprep.subr.bf16.mxu1 %v44527_v34  ;;  %37456 = vmatprep.mubr.msk.f32.mxu0 %vm41103_vm4, %v44600_v27  ;;  %v8245_v12 = vmul.f32 0.76604444, %v42089_v6 }
 0x3a3   : > { %v7865_v47 = vsub.f32 %v7863_v5, %v7864_v7  ;;  %v39684_v18 = vpack.c.bf16 %v7871_v59, %v7864_v7  ;;  %vm8259_vm2 = vcmp.ge.f32.partialorder %v8243_v39, %v42344_v55  ;;  %v8279_v7 = vsel %vm44619_vm5, %v41507_v24, 0  ;;  %vm44635_vm5 = vmmov %vm44596_vm0 }
 0x3a4   : > { %v7873_v37 = vand.u32 4294901760, %v7872_v4  ;;  %37492 = vmatmul.mubr.f32.vlgmr.msra.gmra.mrb[14].mxu1 %v42014_v58  ;;  %v39657_v63 = vpack.c.bf16 %v7411_v31, %v7404_v44  ;;  %vm8261_vm15 = vcmp.ge.f32.partialorder %v8245_v12, %v42348_v20  ;;  %v8774_v31 = vsel %vm44620_vm8, %v41445_v50, 0  ;;  %vm44637_vm8 = vmmov %vm44596_vm0 }
 0x3a5   : > { %v7866_v53 = vand.u32 4294901760, %v7865_v47  ;;  %37498 = vmatprep.mubr.msk.f32.mxu1 %vm41103_vm4, %v44600_v27  ;;  %v8269_v5 = vsel %vm8261_vm15, %v41751_v1, 0.0  ;;  %v42379_v4 = vand.u32 4294901760, %v8279_v7 }
 0x3a6   : > { %39658 = vmatpush3.bf16.msra.mxu0 %v39657_v63  ;;  %v8771_v59 = vsel %vm44618_vm1, %v8269_v5, 0  ;;  %vm44634_vm1 = vmmov %vm44596_vm0 }
 0x3a7   : > { %v39675_v42 = vpack.c.bf16 %v7873_v37, %v7866_v53  ;;  %39659 = vmatprep.subr.bf16.mxu0 %v44527_v34  ;;  %v8358_v50 = vsub.f32 %v8279_v7, %v42379_v4  ;;  %v44622_v7 = vld [vmem:[#allocation27_spill] sm:$0xff]  ;;  %vm44647_vm11 = vmmov %vm44634_vm1 }
 0x3a8   : > { %vm44623_vm9 = vcmp.ge.f32.partialorder %v41547_v36, %v44622_v7 }
 0x3a9   : > { %39676 = vmatpush3.bf16.msra.mxu1 %v39675_v42  ;;  %37457 = vmatmul.mubr.f32.vlgmr.msra.gmra.mrb[14].mxu0 %v42002_v51  ;;  %v8359_v53 = vand.u32 4294901760, %v8358_v50 }
 0x3aa   : > { %39677 = vmatprep.subr.bf16.mxu1 %v44527_v34  ;;  %39661 = vmatpush3.bf16.msra.mxu0 %v39660_v35  ;;  %v8267_v35 = vsel %vm8259_vm2, %v41717_v41, 0.0  ;;  %vm44633_vm2 = vmmov %vm44601_vm3 }
 0x3ab   : > { %37463 = vmatprep.mubr.msk.f32.mxu0 %vm41103_vm4, %v44600_v27  ;;  %39662 = vmatprep.subr.bf16.mxu0 %v44527_v34  ;;  %v8276_v38 = vsel %vm44617_vm14, %v8267_v35, 0  ;;  %v8360_v12 = vsub.f32 %v8358_v50, %v8359_v53 }
 0x3ac   : > { %37499 = vmatmul.mubr.f32.vlgmr.msra.gmra.mrb[14].mxu1 %v42002_v51  ;;  %v42366_v52 = vand.u32 4294901760, %v8276_v38 }
 0x3ad   : > { %39679 = vmatpush3.bf16.msra.mxu1 %v39678_v40  ;;  %37505 = vmatprep.mubr.msk.f32.mxu1 %vm41103_vm4, %v44600_v27  ;;  %v42373_v40 = vand.u32 4294901760, %v8771_v59 }
 0x3ae   : > { %39680 = vmatprep.subr.bf16.mxu1 %v44527_v34  ;;  %v8348_v24 = vsub.f32 %v8276_v38, %v42366_v52 }
 0x3af   : > { %v8843_v44 = vsub.f32 %v8771_v59, %v42373_v40  ;;  %v8271_v59 = vsel %vm44621_vm12, %v41909_v3, 0.0  ;;  %vm44639_vm12 = vmmov %vm44596_vm0 }
 0x3b0   : > { %v8349_v47 = vand.u32 4294901760, %v8348_v24 }
 0x3b1   : > { %37464 = vmatmul.mubr.f32.vlgmr.msra.gmra.mrb[14].mxu0 %v42005_v54 }
 0x3b2   : > { %39664 = vmatpush3.bf16.msra.mxu0 %v42312_v15  ;;  %37470 = vmatprep.mubr.msk.f32.mxu0 %vm41103_vm4, %v44600_v27  ;;  %v8350_v63 = vsub.f32 %v8348_v24, %v8349_v47 }
 0x3b3   : > { %39665 = vmatprep.subr.bf16.mxu0 %v44527_v34 }
 0x3b4   : > { %37506 = vmatmul.mubr.f32.vlgmr.msra.gmra.mrb[14].mxu1 %v42005_v54  ;;  %v8351_v39 = vand.u32 4294901760, %v8350_v63 }
 0x3b5   : > { %39682 = vmatpush3.bf16.msra.mxu1 %v42318_v26  ;;  %37512 = vmatprep.mubr.msk.f32.mxu1 %vm41103_vm4, %v44600_v27 }
 0x3b6   : > { %39683 = vmatprep.subr.bf16.mxu1 %v44527_v34 }
 0x3b9   : > { %37471 = vmatmul.mubr.f32.vlgmr.msra.gmra.mrb[14].mxu0 %v42008_v62 }
 0x3ba   : > { %39667 = vmatpush3.bf16.msra.mxu0 %v39666_v16  ;;  %37477 = vmatprep.mubr.msk.f32.mxu0 %vm41103_vm4, %v44600_v27  ;;  %v42385_v16 = vand.u32 4294901760, %v8774_v31 }
 0x3bb   : > { %39668 = vmatprep.subr.bf16.mxu0 %v44527_v34 }
 0x3bc   : > { %37513 = vmatmul.mubr.f32.vlgmr.msra.gmra.mrb[14].mxu1 %v42008_v62  ;;  %v8853_v37 = vsub.f32 %v8774_v31, %v42385_v16  ;;  %v8273_v31 = vsel %vm44623_vm9, %v41914_v23, 0.0 }
 0x3bd   : > { %39685 = vmatpush3.bf16.msra.mxu1 %v39684_v18  ;;  %37519 = vmatprep.mubr.msk.f32.mxu1 %vm41103_vm4, %v44600_v27  ;;  %v8844_v18 = vand.u32 4294901760, %v8843_v44 }
 0x3be   : > { %39686 = vmatprep.subr.bf16.mxu1 %v44527_v34  ;;  %v8854_v42 = vand.u32 4294901760, %v8853_v37 }
 0x3c0   : > { %v8855_v5 = vsub.f32 %v8853_v37, %v8854_v42 }
 0x3c1   : > { %37478 = vmatmul.mubr.f32.vlgmr.msra.gmra.mrb[14].mxu0 %v42002_v51 }
 0x3c2   : > { %39670 = vmatpush3.bf16.msra.mxu0 %v42312_v15  ;;  %37484 = vmatprep.mubr.msk.f32.mxu0 %vm41103_vm4, %v44600_v27  ;;  %v8845_v15 = vsub.f32 %v8843_v44, %v8844_v18  ;;  %v8856_v38 = vand.u32 4294901760, %v8855_v5 }
 0x3c3   : > { %37529 = vmatprep.subr.mxu0 %v41260_v8 }
 0x3c4   : > { %37520 = vmatmul.mubr.f32.vlgmr.msra.gmra.mrb[14].mxu1 %v42002_v51  ;;  %v8846_v35 = vand.u32 4294901760, %v8845_v15 }
 0x3c5   : > { %39688 = vmatpush3.bf16.msra.mxu1 %v42318_v26  ;;  %37526 = vmatprep.mubr.msk.f32.mxu1 %vm41103_vm4, %v44600_v27  ;;  %v8361_v26 = vand.u32 4294901760, %v8360_v12 }
 0x3c6   : > { %37559 = vmatprep.subr.mxu1 %v41260_v8 }
 0x3c9   : > { %37485 = vmatmul.mubr.f32.vlgmr.msra.gmra.mrb[14].mxu0 %v42002_v51 }
 0x3ca   : > { %37531 = vmatprep.mubr.f32.mxu0 %v8351_v39 }
 0x3cb   : > { %37530 = vmatpush3.xpose.msra.mxu0 %v41260_v8 }
 0x3cc   : > { %37527 = vmatmul.mubr.f32.vlgmr.msra.gmra.mrb[14].mxu1 %v42002_v51  ;;  %37534 = vmatprep.subr.mxu0 %v41367_v19 }
 0x3cd   : > { %37561 = vmatprep.mubr.f32.mxu1 %v8846_v35 }
 0x3ce   : > { %37560 = vmatpush3.xpose.msra.mxu1 %v41260_v8  ;;  %37532 = vmatmul.mubr.f32.vlgmr.msra.gmra.mrb[16].mxu0 %v8361_v26 }
 0x3cf   : > { %37564 = vmatprep.subr.mxu1 %v41367_v19  ;;  %37536 = vmatprep.mubr.f32.mxu0 %v42366_v52 }
 0x3d0   : > { %37535 = vmatpush3.xpose.msra.mxu0 %v41367_v19 }
 0x3d1   : > { %37562 = vmatmul.mubr.f32.vlgmr.msra.gmra.mrb[16].mxu1 %v8856_v38  ;;  %37539 = vmatprep.subr.mxu0 %v41360_v13 }
 0x3d2   : > { %37566 = vmatprep.mubr.f32.mxu1 %v42373_v40  ;;  %37565 = vmatpush3.xpose.msra.mxu1 %v41367_v19 }
 0x3d3   : > { %37569 = vmatprep.subr.mxu1 %v41360_v13 }
 0x3d6   : > { %37537 = vmatmul.mubr.f32.vlgmr.msra.gmra.mrb[16].mxu0 %v42379_v4 }
 0x3d7   : > { %37541 = vmatprep.mubr.f32.mxu0 %v8348_v24  ;;  %37540 = vmatpush3.xpose.msra.mxu0 %v41360_v13  ;;  %v9266_v24 = vsel %vm44596_vm0, %v8271_v59, 0 }
 0x3d8   : > { %37544 = vmatprep.subr.mxu0 %v41260_v8 }
 0x3d9   : > { %37567 = vmatmul.mubr.f32.vlgmr.msra.gmra.mrb[16].mxu1 %v42385_v16 }
 0x3da   : > { %37571 = vmatprep.mubr.f32.mxu1 %v8843_v44  ;;  %37570 = vmatpush3.xpose.msra.mxu1 %v41360_v13  ;;  %v9761_v44 = vsel %vm44624_vm10, %v8273_v31, 0  ;;  %vm44646_vm10 = vmmov %vm44634_vm1 }
 0x3db   : > { %37574 = vmatprep.subr.mxu1 %v41260_v8  ;;  %v42440_v36 = vand.u32 4294901760, %v9761_v44 }
 0x3de   : > { %37542 = vmatmul.mubr.f32.vlgmr.msra.gmra.mrb[16].mxu0 %v8358_v50  ;;  %v9764_v50 = vsel %vm44626_vm6, %v41767_v25, 0  ;;  %v9833_v25 = vsub.f32 %v9761_v44, %v42440_v36  ;;  %vm44648_vm6 = vmmov %vm44634_vm1 }
 0x3df   : > { %37546 = vmatprep.mubr.f32.mxu0 %v8349_v47  ;;  %37545 = vmatpush3.xpose.msra.mxu0 %v41260_v8  ;;  %v42434_v47 = vand.u32 4294901760, %v9266_v24 }
 0x3e0   : > { %37549 = vmatprep.subr.mxu0 %v41363_v14 }
 0x3e1   : > { %37572 = vmatmul.mubr.f32.vlgmr.msra.gmra.mrb[16].mxu1 %v8853_v37  ;;  %v9338_v29 = vsub.f32 %v9266_v24, %v42434_v47  ;;  %v42448_v37 = vand.u32 4294901760, %v9764_v50 }
 0x3e2   : > { %37576 = vmatprep.mubr.f32.mxu1 %v8844_v18  ;;  %37575 = vmatpush3.xpose.msra.mxu1 %v41260_v8  ;;  %v42442_v18 = vand.u32 4294901760, %v9269_v21 }
 0x3e3   : > { %37579 = vmatprep.subr.mxu1 %v41363_v14  ;;  %v9843_v15 = vsub.f32 %v9764_v50, %v42448_v37 }
 0x3e4   : > { %v9348_v63 = vsub.f32 %v9269_v21, %v42442_v18 }
 0x3e5   : > { %v9844_v35 = vand.u32 4294901760, %v9843_v15 }
 0x3e6   : > { %37547 = vmatmul.mubr.f32.vlgmr.msra.gmra.mrb[16].mxu0 %v8359_v53  ;;  %v9339_v53 = vand.u32 4294901760, %v9338_v29  ;;  %v9349_v39 = vand.u32 4294901760, %v9348_v63 }
 0x3e7   : > { %37551 = vmatprep.mubr.f32.mxu0 %v42366_v52  ;;  %37550 = vmatpush3.xpose.msra.mxu0 %v41363_v14 }
 0x3e8   : > { %37554 = vmatprep.subr.mxu0 %v41260_v8  ;;  %v9340_v12 = vsub.f32 %v9338_v29, %v9339_v53  ;;  %v9350_v26 = vsub.f32 %v9348_v63, %v9349_v39 }
 0x3e9   : > { %37577 = vmatmul.mubr.f32.vlgmr.msra.gmra.mrb[16].mxu1 %v8854_v42  ;;  %v9834_v42 = vand.u32 4294901760, %v9833_v25 }
 0x3ea   : > { %37581 = vmatprep.mubr.f32.mxu1 %v42373_v40  ;;  %37580 = vmatpush3.xpose.msra.mxu1 %v41363_v14  ;;  %v9341_v38 = vand.u32 4294901760, %v9340_v12  ;;  %v9351_v31 = vand.u32 4294901760, %v9350_v26 }
 0x3eb   : > { %37584 = vmatprep.subr.mxu1 %v41260_v8  ;;  %v9835_v5 = vsub.f32 %v9833_v25, %v9834_v42 }
 0x3ed   : > { %v9836_v59 = vand.u32 4294901760, %v9835_v5 }
 0x3ee   : > { %37552 = vmatmul.mubr.f32.vlgmr.msra.gmra.mrb[16].mxu0 %v42379_v4 }
 0x3ef   : > { %37556 = vmatprep.mubr.f32.mxu0 %v42366_v52  ;;  %37555 = vmatpush3.xpose.msra.mxu0 %v41260_v8  ;;  %v9845_v52 = vsub.f32 %v9843_v15, %v9844_v35 }
 0x3f0   : > { %37589 = vmatprep.subr.mxu0 %v41260_v8 }
 0x3f1   : > { %37582 = vmatmul.mubr.f32.vlgmr.msra.gmra.mrb[16].mxu1 %v42385_v16 }
 0x3f2   : > { %37586 = vmatprep.mubr.f32.mxu1 %v42373_v40  ;;  %37585 = vmatpush3.xpose.msra.mxu1 %v41260_v8  ;;  %v9846_v40 = vand.u32 4294901760, %v9845_v52 }
 0x3f3   : > { %37619 = vmatprep.subr.mxu1 %v41260_v8 }
 0x3f6   : > { %37557 = vmatmul.mubr.f32.vlgmr.msra.gmra.mrb[16].mxu0 %v42379_v4 }
 0x3f7   : > { %37590 = vmatpush3.xpose.msra.mxu0 %v41260_v8  ;;  %37591 = vmatprep.mubr.f32.mxu0 %v9341_v38 }
 0x3f8   : > { %37594 = vmatprep.subr.mxu0 %v41367_v19 }
 0x3f9   : > { %37587 = vmatmul.mubr.f32.vlgmr.msra.gmra.mrb[16].mxu1 %v42385_v16 }
 0x3fa   : > { %37620 = vmatpush3.xpose.msra.mxu1 %v41260_v8  ;;  %37621 = vmatprep.mubr.f32.mxu1 %v9836_v59 }
 0x3fb   : > { %37592 = vmatmul.mubr.f32.vlgmr.msra.gmra.mrb[18].mxu0 %v9351_v31  ;;  %37624 = vmatprep.subr.mxu1 %v41367_v19 }
 0x3fc   : > { %37596 = vmatprep.mubr.f32.mxu0 %v42434_v47  ;;  %37595 = vmatpush3.xpose.msra.mxu0 %v41367_v19 }
 0x3fd   : > { %37622 = vmatmul.mubr.f32.vlgmr.msra.gmra.mrb[18].mxu1 %v9846_v40  ;;  %37599 = vmatprep.subr.mxu0 %v41360_v13 }
 0x3fe   : > { %37626 = vmatprep.mubr.f32.mxu1 %v42440_v36  ;;  %37625 = vmatpush3.xpose.msra.mxu1 %v41367_v19 }
 0x3ff   : > { %37629 = vmatprep.subr.mxu1 %v41360_v13 }
 0x403   : > { %37597 = vmatmul.mubr.f32.vlgmr.msra.gmra.mrb[18].mxu0 %v42442_v18 }
 0x404   : > { %37601 = vmatprep.mubr.f32.mxu0 %v9338_v29  ;;  %37600 = vmatpush3.xpose.msra.mxu0 %v41360_v13 }
 0x405   : > { %37627 = vmatmul.mubr.f32.vlgmr.msra.gmra.mrb[18].mxu1 %v42448_v37  ;;  %37604 = vmatprep.subr.mxu0 %v41260_v8 }
 0x406   : > { %37631 = vmatprep.mubr.f32.mxu1 %v9833_v25  ;;  %37630 = vmatpush3.xpose.msra.mxu1 %v41360_v13 }
 0x407   : > { %37634 = vmatprep.subr.mxu1 %v41260_v8 }
 0x40b   : > { %37602 = vmatmul.mubr.f32.vlgmr.msra.gmra.mrb[18].mxu0 %v9348_v63 }
 0x40c   : > { %37606 = vmatprep.mubr.f32.mxu0 %v9339_v53  ;;  %37605 = vmatpush3.xpose.msra.mxu0 %v41260_v8 }
 0x40d   : > { %37632 = vmatmul.mubr.f32.vlgmr.msra.gmra.mrb[18].mxu1 %v9843_v15  ;;  %37609 = vmatprep.subr.mxu0 %v41363_v14 }
 0x40e   : > { %37636 = vmatprep.mubr.f32.mxu1 %v9834_v42  ;;  %37635 = vmatpush3.xpose.msra.mxu1 %v41260_v8 }
 0x40f   : > { %37639 = vmatprep.subr.mxu1 %v41363_v14 }
 0x413   : > { %37607 = vmatmul.mubr.f32.vlgmr.msra.gmra.mrb[18].mxu0 %v9349_v39 }
 0x414   : > { %37611 = vmatprep.mubr.f32.mxu0 %v42434_v47  ;;  %37610 = vmatpush3.xpose.msra.mxu0 %v41363_v14 }
 0x415   : > { %37637 = vmatmul.mubr.f32.vlgmr.msra.gmra.mrb[18].mxu1 %v9844_v35  ;;  %37614 = vmatprep.subr.mxu0 %v41260_v8 }
 0x416   : > { %37641 = vmatprep.mubr.f32.mxu1 %v42440_v36  ;;  %37640 = vmatpush3.xpose.msra.mxu1 %v41363_v14 }
 0x417   : > { %37644 = vmatprep.subr.mxu1 %v41260_v8 }
 0x41b   : > { %37612 = vmatmul.mubr.f32.vlgmr.msra.gmra.mrb[18].mxu0 %v42442_v18 }
 0x41c   : > { %37616 = vmatprep.mubr.f32.mxu0 %v42434_v47  ;;  %37615 = vmatpush3.xpose.msra.mxu0 %v41260_v8 }
 0x41d   : > { %37642 = vmatmul.mubr.f32.vlgmr.msra.gmra.mrb[18].mxu1 %v42448_v37  ;;  %39689 = vmatprep.subr.bf16.mxu0 %v44527_v34 }
 0x41e   : > { %37646 = vmatprep.mubr.f32.mxu1 %v42440_v36  ;;  %37645 = vmatpush3.xpose.msra.mxu1 %v41260_v8 }
 0x41f   : > { %39707 = vmatprep.subr.bf16.mxu1 %v44527_v34 }
 0x423   : > { %37617 = vmatmul.mubr.f32.vlgmr.msra.gmra.mrb[18].mxu0 %v42442_v18 }
 0x424   : > { %37653 = vmatprep.mubr.msk.f32.mxu0 %vm41103_vm4, %v44600_v27 }
 0x425   : > { %37647 = vmatmul.mubr.f32.vlgmr.msra.gmra.mrb[18].mxu1 %v42448_v37 }
 0x426   : > { %37695 = vmatprep.mubr.msk.f32.mxu1 %vm41103_vm4, %v44600_v27 }
 0x46f   : > { %v42504_v4 = vpop.f32.mrb[12].mxu0 }
 0x470   : > { %v42508_v16 = vsub.f32 %v42258_v61, %v42504_v4  ;;  %v37402_v24 = vpop.f32.mrb[13].mxu0 }
 0x472   : > { %44627 = vst [vmem:[#allocation27_spill] sm:$0xff] %v42508_v16  ;;  %v42510_v44 = vpop.f32.mrb[12].mxu1 }
 0x473   : > { %v42514_v21 = vsub.f32 %v42260_v22, %v42510_v44  ;;  %v37444_v47 = vpop.f32.mrb[13].mxu1 }
 0x475   : > { %44628 = vst [vmem:[#allocation44_spill] sm:$0xff] %v42514_v21 }
 0x49c   : > { %v42516_v50 = vpop.f32.mrb[14].mxu0 }
 0x49d   : > { %v42520_v36 = vsub.f32 %v42262_v30, %v42516_v50  ;;  %v37486_v18 = vpop.f32.mrb[15].mxu0 }
 0x49f   : > { %44629 = vst [vmem:[#allocation45_spill] sm:$0xff] %v42520_v36  ;;  %v42522_v29 = vpop.f32.mrb[14].mxu1 }
 0x4a0   : > { %v42526_v61 = vsub.f32 %v42264_v49, %v42522_v29  ;;  %v37528_v37 = vpop.f32.mrb[15].mxu1 }
 0x4a2   : > { %44630 = vst [vmem:[#allocation46_spill] sm:$0xff] %v42526_v61 }
 0x4c9   : > { %v37558_v25 = vpop.f32.mrb[16].mxu0 }
 0x4ca   : > { %v10256_v63 = vsel %vm44601_vm3, %v37558_v25, 0  ;;  %v8760_v22 = vpop.f32.mrb[17].mxu0  ;;  %vm44649_vm3 = vmmov %vm44634_vm1 }
 0x4cb   : > { %v10262_v53 = vand.u32 4294901760, %v10256_v63  ;;  %v10259_v42 = vand.u32 4294901760, %v8760_v22 }
 0x4cc   : > { %v37588_v15 = vpop.f32.mrb[16].mxu1 }
 0x4cd   : > { %v10718_v39 = vsel %vm44631_vm7, %v37588_v15, 0  ;;  %v9255_v12 = vpop.f32.mrb[17].mxu1  ;;  %v10344_v30 = vsub.f32 %v10256_v63, %v10262_v53  ;;  %v39690_v5 = vpack.c.bf16 %v10262_v53, %v10259_v42  ;;  %v10337_v26 = vsub.f32 %v8760_v22, %v10259_v42  ;;  %vm44655_vm7 = vmmov %vm44633_vm2 }
 0x4ce   : > { %v10724_v35 = vand.u32 4294901760, %v10718_v39  ;;  %v10721_v38 = vand.u32 4294901760, %v9255_v12 }
 0x4cf   : > { %v10345_v52 = vand.u32 4294901760, %v10344_v30  ;;  %v10338_v49 = vand.u32 4294901760, %v10337_v26  ;;  %v39696_v31 = vpack.c.bf16 %v10344_v30, %v10337_v26  ;;  %39691 = vmatpush3.bf16.msra.mxu0 %v39690_v5 }
 0x4d0   : > { %v10806_v59 = vsub.f32 %v10718_v39, %v10724_v35  ;;  %v39708_v40 = vpack.c.bf16 %v10724_v35, %v10721_v38  ;;  %v10799_v24 = vsub.f32 %v9255_v12, %v10721_v38  ;;  %39692 = vmatprep.subr.bf16.mxu0 %v44527_v34 }
 0x4d1   : > { %v10346_v47 = vsub.f32 %v10344_v30, %v10345_v52  ;;  %v10339_v37 = vsub.f32 %v10337_v26, %v10338_v49  ;;  %v39702_v25 = vpack.c.bf16 %v10345_v52, %v10338_v49 }
 0x4d2   : > { %v10807_v18 = vand.u32 4294901760, %v10806_v59  ;;  %v10800_v15 = vand.u32 4294901760, %v10799_v24  ;;  %v39714_v45 = vpack.c.bf16 %v10806_v59, %v10799_v24  ;;  %39709 = vmatpush3.bf16.msra.mxu1 %v39708_v40  ;;  %37654 = vmatmul.mubr.f32.vlgmr.msra.gmra.mrb[20].mxu0 %v42014_v58 }
 0x4d3   : > { %v10347_v63 = vand.u32 4294901760, %v10346_v47  ;;  %v10340_v53 = vand.u32 4294901760, %v10339_v37  ;;  %39710 = vmatprep.subr.bf16.mxu1 %v44527_v34  ;;  %37660 = vmatprep.mubr.msk.f32.mxu0 %vm41103_vm4, %v44600_v27 }
 0x4d4   : > { %v10808_v22 = vsub.f32 %v10806_v59, %v10807_v18  ;;  %v10801_v42 = vsub.f32 %v10799_v24, %v10800_v15  ;;  %v39720_v39 = vpack.c.bf16 %v10807_v18, %v10800_v15 }
 0x4d5   : > { %37696 = vmatmul.mubr.f32.vlgmr.msra.gmra.mrb[20].mxu1 %v42014_v58  ;;  %v39693_v30 = vpack.c.bf16 %v10347_v63, %v10340_v53 }
 0x4d6   : > { %v10809_v12 = vand.u32 4294901760, %v10808_v22  ;;  %v10802_v35 = vand.u32 4294901760, %v10801_v42  ;;  %37702 = vmatprep.mubr.msk.f32.mxu1 %vm41103_vm4, %v44600_v27 }
 0x4d7   : > { %39694 = vmatpush3.bf16.msra.mxu0 %v39693_v30 }
 0x4d8   : > { %v39711_v26 = vpack.c.bf16 %v10809_v12, %v10802_v35  ;;  %39695 = vmatprep.subr.bf16.mxu0 %v44527_v34 }
 0x4da   : > { %39712 = vmatpush3.bf16.msra.mxu1 %v39711_v26  ;;  %37661 = vmatmul.mubr.f32.vlgmr.msra.gmra.mrb[20].mxu0 %v42002_v51 }
 0x4db   : > { %39713 = vmatprep.subr.bf16.mxu1 %v44527_v34  ;;  %39697 = vmatpush3.bf16.msra.mxu0 %v39696_v31 }
 0x4dc   : > { %37667 = vmatprep.mubr.msk.f32.mxu0 %vm41103_vm4, %v44600_v27  ;;  %39698 = vmatprep.subr.bf16.mxu0 %v44527_v34 }
 0x4dd   : > { %37703 = vmatmul.mubr.f32.vlgmr.msra.gmra.mrb[20].mxu1 %v42002_v51 }
 0x4de   : > { %39715 = vmatpush3.bf16.msra.mxu1 %v39714_v45  ;;  %37709 = vmatprep.mubr.msk.f32.mxu1 %vm41103_vm4, %v44600_v27 }
 0x4df   : > { %39716 = vmatprep.subr.bf16.mxu1 %v44527_v34 }
 0x4e2   : > { %37668 = vmatmul.mubr.f32.vlgmr.msra.gmra.mrb[20].mxu0 %v42005_v54 }
 0x4e3   : > { %39700 = vmatpush3.bf16.msra.mxu0 %v39690_v5  ;;  %37674 = vmatprep.mubr.msk.f32.mxu0 %vm41103_vm4, %v44600_v27 }
 0x4e4   : > { %39701 = vmatprep.subr.bf16.mxu0 %v44527_v34 }
 0x4e5   : > { %37710 = vmatmul.mubr.f32.vlgmr.msra.gmra.mrb[20].mxu1 %v42005_v54 }
 0x4e6   : > { %39718 = vmatpush3.bf16.msra.mxu1 %v39708_v40  ;;  %37716 = vmatprep.mubr.msk.f32.mxu1 %vm41103_vm4, %v44600_v27 }
 0x4e7   : > { %39719 = vmatprep.subr.bf16.mxu1 %v44527_v34 }
 0x4ea   : > { %37675 = vmatmul.mubr.f32.vlgmr.msra.gmra.mrb[20].mxu0 %v42008_v62 }
 0x4eb   : > { %39703 = vmatpush3.bf16.msra.mxu0 %v39702_v25  ;;  %37681 = vmatprep.mubr.msk.f32.mxu0 %vm41103_vm4, %v44600_v27 }
 0x4ec   : > { %39704 = vmatprep.subr.bf16.mxu0 %v44527_v34 }
 0x4ed   : > { %37717 = vmatmul.mubr.f32.vlgmr.msra.gmra.mrb[20].mxu1 %v42008_v62 }
 0x4ee   : > { %39721 = vmatpush3.bf16.msra.mxu1 %v39720_v39  ;;  %37723 = vmatprep.mubr.msk.f32.mxu1 %vm41103_vm4, %v44600_v27 }
 0x4ef   : > { %39722 = vmatprep.subr.bf16.mxu1 %v44527_v34 }
 0x4f2   : > { %37682 = vmatmul.mubr.f32.vlgmr.msra.gmra.mrb[20].mxu0 %v42002_v51 }
 0x4f3   : > { %39706 = vmatpush3.bf16.msra.mxu0 %v39690_v5  ;;  %37688 = vmatprep.mubr.msk.f32.mxu0 %vm41103_vm4, %v44600_v27 }
 0x4f4   : > { %39725 = vmatprep.subr.bf16.mxu0 %v44527_v34 }
 0x4f5   : > { %37724 = vmatmul.mubr.f32.vlgmr.msra.gmra.mrb[20].mxu1 %v42002_v51 }
 0x4f6   : > { %v37618_v45 = vpop.f32.mrb[18].mxu0  ;;  %39724 = vmatpush3.bf16.msra.mxu1 %v39708_v40  ;;  %37730 = vmatprep.mubr.msk.f32.mxu1 %vm41103_vm4, %v44600_v27 }
 0x4f7   : > { %v11180_v38 = vsel %vm44632_vm13, %v37618_v45, 0  ;;  %v9750_v52 = vpop.f32.mrb[19].mxu0  ;;  %39743 = vmatprep.subr.bf16.mxu1 %v44527_v34  ;;  %vm44656_vm13 = vmmov %vm44633_vm2 }
 0x4f8   : > { %v11186_v59 = vand.u32 4294901760, %v11180_v38  ;;  %v37648_v49 = vpop.f32.mrb[18].mxu1  ;;  %v11183_v31 = vand.u32 4294901760, %v9750_v52 }
 0x4f9   : > { %v11642_v5 = vsel %vm44633_vm2, %v37648_v49, 0  ;;  %v10245_v24 = vpop.f32.mrb[19].mxu1 }
 0x4fa   : > { %v11268_v47 = vsub.f32 %v11180_v38, %v11186_v59  ;;  %v11648_v18 = vand.u32 4294901760, %v11642_v5  ;;  %v42574_v37 = vpack.c.bf16 %v11186_v59, %v11183_v31  ;;  %v11261_v25 = vsub.f32 %v9750_v52, %v11183_v31  ;;  %37689 = vmatmul.mubr.f32.vlgmr.msra.gmra.mrb[20].mxu0 %v42002_v51 }
 0x4fb   : > { %v11645_v40 = vand.u32 4294901760, %v10245_v24  ;;  %37737 = vmatprep.mubr.msk.f32.mxu0 %vm41103_vm4, %v44600_v27 }
 0x4fc   : > { %v11269_v15 = vand.u32 4294901760, %v11268_v47  ;;  %v11730_v63 = vsub.f32 %v11642_v5, %v11648_v18  ;;  %v11262_v22 = vand.u32 4294901760, %v11261_v25  ;;  %v39732_v53 = vpack.c.bf16 %v11268_v47, %v11261_v25  ;;  %39727 = vmatpush3.bf16.msra.mxu0 %v42574_v37 }
 0x4fd   : > { %v42580_v42 = vpack.c.bf16 %v11648_v18, %v11645_v40  ;;  %v11723_v39 = vsub.f32 %v10245_v24, %v11645_v40  ;;  %39728 = vmatprep.subr.bf16.mxu0 %v44527_v34  ;;  %37731 = vmatmul.mubr.f32.vlgmr.msra.gmra.mrb[20].mxu1 %v42002_v51  ;;  %v12103_v40 = vmul.f32 0.5, %v42082_v48 }
 0x4fe   : > { %v11270_v12 = vsub.f32 %v11268_v47, %v11269_v15  ;;  %v11731_v30 = vand.u32 4294901760, %v11730_v63  ;;  %v11263_v35 = vsub.f32 %v11261_v25, %v11262_v22  ;;  %v39738_v26 = vpack.c.bf16 %v11269_v15, %v11262_v22  ;;  %37779 = vmatprep.mubr.msk.f32.mxu1 %vm41103_vm4, %v44600_v27 }
 0x4ff   : > { %v11724_v45 = vand.u32 4294901760, %v11723_v39  ;;  %v39750_v38 = vpack.c.bf16 %v11730_v63, %v11723_v39  ;;  %39745 = vmatpush3.bf16.msra.mxu1 %v42580_v42  ;;  %37738 = vmatmul.mubr.f32.vlgmr.msra.gmra.mrb[22].mxu0 %v42014_v58  ;;  %v42606_v15 = vmul.f32 0.8660254, %v41396_v46  ;;  %v42610_v22 = vmul.f32 0.8660254, %v41392_v43 }
 0x500   : > { %v11271_v52 = vand.u32 4294901760, %v11270_v12  ;;  %v11732_v59 = vsub.f32 %v11730_v63, %v11731_v30  ;;  %v11264_v49 = vand.u32 4294901760, %v11263_v35  ;;  %39746 = vmatprep.subr.bf16.mxu1 %v44527_v34  ;;  %37744 = vmatprep.mubr.msk.f32.mxu0 %vm41103_vm4, %v44600_v27  ;;  %v12105_v63 = vmul.f32 0.5, %v42089_v6 }
 0x501   : > { %v11725_v31 = vsub.f32 %v11723_v39, %v11724_v45  ;;  %v39756_v5 = vpack.c.bf16 %v11731_v30, %v11724_v45  ;;  %vm12119_vm15 = vcmp.ge.f32.partialorder %v12103_v40, %v42606_v15  ;;  %v44636_v45 = vld [vmem:[#allocation14_spill] sm:$0xff] }
 0x502   : > { %v11733_v24 = vand.u32 4294901760, %v11732_v59  ;;  %37780 = vmatmul.mubr.f32.vlgmr.msra.gmra.mrb[22].mxu1 %v42014_v58  ;;  %v39729_v47 = vpack.c.bf16 %v11271_v52, %v11264_v49  ;;  %vm12121_vm14 = vcmp.ge.f32.partialorder %v12105_v63, %v42610_v22  ;;  %v44638_v59 = vld [vmem:[#allocation8_spill] sm:$0xff] }
 0x503   : > { %v11726_v18 = vand.u32 4294901760, %v11725_v31  ;;  %37786 = vmatprep.mubr.msk.f32.mxu1 %vm41103_vm4, %v44600_v27  ;;  %v12129_v39 = vsel %vm12121_vm14, %v41751_v1, 0.0  ;;  %v12634_v49 = vsel %vm44639_vm12, %v44638_v59, 0  ;;  %vm44661_vm12 = vmmov %vm44649_vm3 }
 0x504   : > { %39730 = vmatpush3.bf16.msra.mxu0 %v39729_v47  ;;  %v12631_v30 = vsel %vm44635_vm5, %v12129_v39, 0  ;;  %vm44658_vm5 = vmmov %vm44649_vm3 }
 0x505   : > { %v39747_v25 = vpack.c.bf16 %v11733_v24, %v11726_v18  ;;  %39731 = vmatprep.subr.bf16.mxu0 %v44527_v34  ;;  %v42635_v52 = vand.u32 4294901760, %v12631_v30  ;;  %v42647_v24 = vand.u32 4294901760, %v12634_v49 }
 0x507   : > { %39748 = vmatpush3.bf16.msra.mxu1 %v39747_v25  ;;  %37745 = vmatmul.mubr.f32.vlgmr.msra.gmra.mrb[22].mxu0 %v42002_v51  ;;  %v12703_v47 = vsub.f32 %v12631_v30, %v42635_v52  ;;  %v12713_v40 = vsub.f32 %v12634_v49, %v42647_v24  ;;  %v44640_v49 = vld [vmem:[#allocation30_spill] sm:$0xff] }
 0x508   : > { %39749 = vmatprep.subr.bf16.mxu1 %v44527_v34  ;;  %39733 = vmatpush3.bf16.msra.mxu0 %v39732_v53  ;;  %v12127_v53 = vsel %vm12119_vm15, %v41717_v41, 0.0  ;;  %vm44657_vm15 = vmmov %vm44633_vm2 }
 0x509   : > { %37751 = vmatprep.mubr.msk.f32.mxu0 %vm41103_vm4, %v44600_v27  ;;  %39734 = vmatprep.subr.bf16.mxu0 %v44527_v34  ;;  %v12136_v12 = vsel %vm44634_vm1, %v12127_v53, 0  ;;  %v12714_v39 = vand.u32 4294901760, %v12713_v40 }
 0x50a   : > { %37787 = vmatmul.mubr.f32.vlgmr.msra.gmra.mrb[22].mxu1 %v42002_v51  ;;  %v42628_v35 = vand.u32 4294901760, %v12136_v12 }
 0x50b   : > { %39751 = vmatpush3.bf16.msra.mxu1 %v39750_v38  ;;  %37793 = vmatprep.mubr.msk.f32.mxu1 %vm41103_vm4, %v44600_v27  ;;  %v12139_v38 = vsel %vm44637_vm8, %v44636_v45, 0  ;;  %vm44659_vm8 = vmmov %vm44649_vm3 }
 0x50c   : > { %39752 = vmatprep.subr.bf16.mxu1 %v44527_v34  ;;  %v42641_v31 = vand.u32 4294901760, %v12139_v38 }
 0x50e   : > { %v12218_v25 = vsub.f32 %v12139_v38, %v42641_v31  ;;  %v12715_v38 = vsub.f32 %v12713_v40, %v12714_v39 }
 0x50f   : > { %37752 = vmatmul.mubr.f32.vlgmr.msra.gmra.mrb[22].mxu0 %v42005_v54 }
 0x510   : > { %39736 = vmatpush3.bf16.msra.mxu0 %v42574_v37  ;;  %37758 = vmatprep.mubr.msk.f32.mxu0 %vm41103_vm4, %v44600_v27  ;;  %v12219_v53 = vand.u32 4294901760, %v12218_v25  ;;  %v12716_v59 = vand.u32 4294901760, %v12715_v38 }
 0x511   : > { %39737 = vmatprep.subr.bf16.mxu0 %v44527_v34 }
 0x512   : > { %37794 = vmatmul.mubr.f32.vlgmr.msra.gmra.mrb[22].mxu1 %v42005_v54  ;;  %v12220_v30 = vsub.f32 %v12218_v25, %v12219_v53 }
 0x513   : > { %39754 = vmatpush3.bf16.msra.mxu1 %v42580_v42  ;;  %37800 = vmatprep.mubr.msk.f32.mxu1 %vm41103_vm4, %v44600_v27 }
 0x514   : > { %39755 = vmatprep.subr.bf16.mxu1 %v44527_v34 }
 0x517   : > { %37759 = vmatmul.mubr.f32.vlgmr.msra.gmra.mrb[22].mxu0 %v42008_v62 }
 0x518   : > { %39739 = vmatpush3.bf16.msra.mxu0 %v39738_v26  ;;  %37765 = vmatprep.mubr.msk.f32.mxu0 %vm41103_vm4, %v44600_v27  ;;  %v12208_v26 = vsub.f32 %v12136_v12, %v42628_v35 }
 0x519   : > { %39740 = vmatprep.subr.bf16.mxu0 %v44527_v34 }
 0x51a   : > { %37801 = vmatmul.mubr.f32.vlgmr.msra.gmra.mrb[22].mxu1 %v42008_v62  ;;  %v12209_v18 = vand.u32 4294901760, %v12208_v26 }
 0x51b   : > { %39757 = vmatpush3.bf16.msra.mxu1 %v39756_v5  ;;  %37807 = vmatprep.mubr.msk.f32.mxu1 %vm41103_vm4, %v44600_v27  ;;  %v12704_v5 = vand.u32 4294901760, %v12703_v47 }
 0x51c   : > { %39758 = vmatprep.subr.bf16.mxu1 %v44527_v34  ;;  %v12210_v63 = vsub.f32 %v12208_v26, %v12209_v18 }
 0x51e   : > { %v12211_v12 = vand.u32 4294901760, %v12210_v63  ;;  %v44641_v63 = vld [vmem:[#allocation37_spill] sm:$0xff] }
 0x51f   : > { %37766 = vmatmul.mubr.f32.vlgmr.msra.gmra.mrb[22].mxu0 %v42002_v51  ;;  %vm44642_vm9 = vcmp.ge.f32.partialorder %v44640_v49, %v44641_v63 }
 0x520   : > { %39742 = vmatpush3.bf16.msra.mxu0 %v42574_v37  ;;  %37772 = vmatprep.mubr.msk.f32.mxu0 %vm41103_vm4, %v44600_v27  ;;  %v12705_v37 = vsub.f32 %v12703_v47, %v12704_v5 }
 0x521   : > { %37817 = vmatprep.subr.mxu0 %v41260_v8 }
 0x522   : > { %37808 = vmatmul.mubr.f32.vlgmr.msra.gmra.mrb[22].mxu1 %v42002_v51  ;;  %v12706_v45 = vand.u32 4294901760, %v12705_v37  ;;  %v44644_v37 = vld [vmem:[#allocation28_spill] sm:$0xff] }
 0x523   : > { %39760 = vmatpush3.bf16.msra.mxu1 %v42580_v42  ;;  %37814 = vmatprep.mubr.msk.f32.mxu1 %vm41103_vm4, %v44600_v27  ;;  %v12221_v42 = vand.u32 4294901760, %v12220_v30  ;;  %v13129_v30 = vsel %vm44648_vm6, %v41854_v17, 0  ;;  %vm44671_vm6 = vmmov %vm44649_vm3 }
 0x524   : > { %37847 = vmatprep.subr.mxu1 %v41260_v8  ;;  %v42704_v38 = vand.u32 4294901760, %v13129_v30 }
 0x527   : > { %37773 = vmatmul.mubr.f32.vlgmr.msra.gmra.mrb[22].mxu0 %v42002_v51 }
 0x528   : > { %37819 = vmatprep.mubr.f32.mxu0 %v12211_v12 }
 0x529   : > { %37818 = vmatpush3.xpose.msra.mxu0 %v41260_v8 }
 0x52a   : > { %37815 = vmatmul.mubr.f32.vlgmr.msra.gmra.mrb[22].mxu1 %v42002_v51  ;;  %37822 = vmatprep.subr.mxu0 %v41367_v19 }
 0x52b   : > { %37849 = vmatprep.mubr.f32.mxu1 %v12706_v45 }
 0x52c   : > { %37848 = vmatpush3.xpose.msra.mxu1 %v41260_v8  ;;  %37820 = vmatmul.mubr.f32.vlgmr.msra.gmra.mrb[24].mxu0 %v12221_v42  ;;  %v13208_v42 = vsub.f32 %v13129_v30, %v42704_v38 }
 0x52d   : > { %37852 = vmatprep.subr.mxu1 %v41367_v19  ;;  %37824 = vmatprep.mubr.f32.mxu0 %v42628_v35 }
 0x52e   : > { %37823 = vmatpush3.xpose.msra.mxu0 %v41367_v19 }
 0x52f   : > { %37850 = vmatmul.mubr.f32.vlgmr.msra.gmra.mrb[24].mxu1 %v12716_v59  ;;  %37827 = vmatprep.subr.mxu0 %v41360_v13 }
 0x530   : > { %37854 = vmatprep.mubr.f32.mxu1 %v42635_v52  ;;  %37853 = vmatpush3.xpose.msra.mxu1 %v41367_v19 }
 0x531   : > { %37857 = vmatprep.subr.mxu1 %v41360_v13 }
 0x534   : > { %37825 = vmatmul.mubr.f32.vlgmr.msra.gmra.mrb[24].mxu0 %v42641_v31 }
 0x535   : > { %37829 = vmatprep.mubr.f32.mxu0 %v12208_v26  ;;  %37828 = vmatpush3.xpose.msra.mxu0 %v41360_v13  ;;  %v12131_v26 = vsel %vm44642_vm9, %v41909_v3, 0.0  ;;  %vm44663_vm9 = vmmov %vm44649_vm3 }
 0x536   : > { %37832 = vmatprep.subr.mxu0 %v41260_v8 }
 0x537   : > { %37855 = vmatmul.mubr.f32.vlgmr.msra.gmra.mrb[24].mxu1 %v42647_v24 }
 0x538   : > { %37859 = vmatprep.mubr.f32.mxu1 %v12703_v47  ;;  %37858 = vmatpush3.xpose.msra.mxu1 %v41360_v13  ;;  %v44643_v47 = vld [vmem:[#allocation20_spill] sm:$0xff] }
 0x539   : > { %37862 = vmatprep.subr.mxu1 %v41260_v8  ;;  %vm44645_vm0 = vcmp.ge.f32.partialorder %v44643_v47, %v44644_v37 }
 0x53a   : > { %v12133_v12 = vsel %vm44645_vm0, %v41914_v23, 0.0 }
 0x53c   : > { %37830 = vmatmul.mubr.f32.vlgmr.msra.gmra.mrb[24].mxu0 %v12218_v25  ;;  %v13621_v25 = vsel %vm44647_vm11, %v12133_v12, 0  ;;  %vm44670_vm11 = vmmov %vm44649_vm3 }
 0x53d   : > { %37834 = vmatprep.mubr.f32.mxu0 %v12209_v18  ;;  %37833 = vmatpush3.xpose.msra.mxu0 %v41260_v8  ;;  %v13126_v18 = vsel %vm44646_vm10, %v12131_v26, 0  ;;  %v42702_v45 = vand.u32 4294901760, %v13621_v25  ;;  %v13209_v26 = vand.u32 4294901760, %v13208_v42 }
 0x53e   : > { %37837 = vmatprep.subr.mxu0 %v41363_v14 }
 0x53f   : > { %37860 = vmatmul.mubr.f32.vlgmr.msra.gmra.mrb[24].mxu1 %v12713_v40  ;;  %v42696_v40 = vand.u32 4294901760, %v13126_v18 }
 0x540   : > { %37864 = vmatprep.mubr.f32.mxu1 %v12704_v5  ;;  %37863 = vmatpush3.xpose.msra.mxu1 %v41260_v8  ;;  %v13624_v5 = vsel %vm44649_vm3, %v41772_v10, 0  ;;  %v13693_v10 = vsub.f32 %v13621_v25, %v42702_v45  ;;  %v13210_v25 = vsub.f32 %v13208_v42, %v13209_v26 }
 0x541   : > { %37867 = vmatprep.subr.mxu1 %v41363_v14  ;;  %v13198_v17 = vsub.f32 %v13126_v18, %v42696_v40 }
 0x542   : > { %v13694_v49 = vand.u32 4294901760, %v13693_v10  ;;  %v13211_v34 = vand.u32 4294901760, %v13210_v25 }
 0x543   : > { %v13199_v59 = vand.u32 4294901760, %v13198_v17 }
 0x544   : > { %37835 = vmatmul.mubr.f32.vlgmr.msra.gmra.mrb[24].mxu0 %v12219_v53  ;;  %v42710_v53 = vand.u32 4294901760, %v13624_v5  ;;  %v13695_v18 = vsub.f32 %v13693_v10, %v13694_v49 }
 0x545   : > { %37839 = vmatprep.mubr.f32.mxu0 %v42628_v35  ;;  %37838 = vmatpush3.xpose.msra.mxu0 %v41363_v14  ;;  %v13200_v47 = vsub.f32 %v13198_v17, %v13199_v59 }
 0x546   : > { %37842 = vmatprep.subr.mxu0 %v41260_v8 }
 0x547   : > { %37865 = vmatmul.mubr.f32.vlgmr.msra.gmra.mrb[24].mxu1 %v12714_v39  ;;  %v13703_v39 = vsub.f32 %v13624_v5, %v42710_v53  ;;  %v13201_v30 = vand.u32 4294901760, %v13200_v47  ;;  %v13696_v5 = vand.u32 4294901760, %v13695_v18 }
 0x548   : > { %37869 = vmatprep.mubr.f32.mxu1 %v42635_v52  ;;  %37868 = vmatpush3.xpose.msra.mxu1 %v41363_v14 }
 0x549   : > { %37872 = vmatprep.subr.mxu1 %v41260_v8  ;;  %v13704_v12 = vand.u32 4294901760, %v13703_v39 }
 0x54c   : > { %37840 = vmatmul.mubr.f32.vlgmr.msra.gmra.mrb[24].mxu0 %v42641_v31 }
 0x54d   : > { %37844 = vmatprep.mubr.f32.mxu0 %v42628_v35  ;;  %37843 = vmatpush3.xpose.msra.mxu0 %v41260_v8  ;;  %v13705_v35 = vsub.f32 %v13703_v39, %v13704_v12 }
 0x54e   : > { %37877 = vmatprep.subr.mxu0 %v41260_v8 }
 0x54f   : > { %37870 = vmatmul.mubr.f32.vlgmr.msra.gmra.mrb[24].mxu1 %v42647_v24 }
 0x550   : > { %37874 = vmatprep.mubr.f32.mxu1 %v42635_v52  ;;  %37873 = vmatpush3.xpose.msra.mxu1 %v41260_v8  ;;  %v13706_v52 = vand.u32 4294901760, %v13705_v35  ;;  %v35238_v35 = vmul.f32 %v42526_v61, %v42526_v61 }
 0x551   : > { %37907 = vmatprep.subr.mxu1 %v41260_v8 }
 0x554   : > { %37845 = vmatmul.mubr.f32.vlgmr.msra.gmra.mrb[24].mxu0 %v42641_v31 }
 0x555   : > { %37878 = vmatpush3.xpose.msra.mxu0 %v41260_v8  ;;  %37879 = vmatprep.mubr.f32.mxu0 %v13201_v30 }
 0x556   : > { %37882 = vmatprep.subr.mxu0 %v41367_v19 }
 0x557   : > { %37875 = vmatmul.mubr.f32.vlgmr.msra.gmra.mrb[24].mxu1 %v42647_v24 }
 0x558   : > { %37908 = vmatpush3.xpose.msra.mxu1 %v41260_v8  ;;  %37909 = vmatprep.mubr.f32.mxu1 %v13696_v5 }
 0x559   : > { %37880 = vmatmul.mubr.f32.vlgmr.msra.gmra.mrb[26].mxu0 %v13211_v34  ;;  %37912 = vmatprep.subr.mxu1 %v41367_v19  ;;  %v44650_v34 = vmov 0.0|0.0  }
 0x55a   : > { %37884 = vmatprep.mubr.f32.mxu0 %v42696_v40  ;;  %37883 = vmatpush3.xpose.msra.mxu0 %v41367_v19 }
 0x55b   : > { %37910 = vmatmul.mubr.f32.vlgmr.msra.gmra.mrb[26].mxu1 %v13706_v52  ;;  %37887 = vmatprep.subr.mxu0 %v41360_v13 }
 0x55c   : > { %37914 = vmatprep.mubr.f32.mxu1 %v42702_v45  ;;  %37913 = vmatpush3.xpose.msra.mxu1 %v41367_v19 }
 0x55d   : > { %37917 = vmatprep.subr.mxu1 %v41360_v13 }
 0x561   : > { %37885 = vmatmul.mubr.f32.vlgmr.msra.gmra.mrb[26].mxu0 %v42704_v38 }
 0x562   : > { %37889 = vmatprep.mubr.f32.mxu0 %v13198_v17  ;;  %37888 = vmatpush3.xpose.msra.mxu0 %v41360_v13 }
 0x563   : > { %37915 = vmatmul.mubr.f32.vlgmr.msra.gmra.mrb[26].mxu1 %v42710_v53  ;;  %37892 = vmatprep.subr.mxu0 %v41260_v8 }
 0x564   : > { %37919 = vmatprep.mubr.f32.mxu1 %v13693_v10  ;;  %37918 = vmatpush3.xpose.msra.mxu1 %v41360_v13 }
 0x565   : > { %37922 = vmatprep.subr.mxu1 %v41260_v8 }
 0x569   : > { %37890 = vmatmul.mubr.f32.vlgmr.msra.gmra.mrb[26].mxu0 %v13208_v42 }
 0x56a   : > { %37894 = vmatprep.mubr.f32.mxu0 %v13199_v59  ;;  %37893 = vmatpush3.xpose.msra.mxu0 %v41260_v8 }
 0x56b   : > { %37920 = vmatmul.mubr.f32.vlgmr.msra.gmra.mrb[26].mxu1 %v13703_v39  ;;  %37897 = vmatprep.subr.mxu0 %v41363_v14 }
 0x56c   : > { %37924 = vmatprep.mubr.f32.mxu1 %v13694_v49  ;;  %37923 = vmatpush3.xpose.msra.mxu1 %v41260_v8 }
 0x56d   : > { %37927 = vmatprep.subr.mxu1 %v41363_v14 }
 0x571   : > { %37895 = vmatmul.mubr.f32.vlgmr.msra.gmra.mrb[26].mxu0 %v13209_v26 }
 0x572   : > { %37899 = vmatprep.mubr.f32.mxu0 %v42696_v40  ;;  %37898 = vmatpush3.xpose.msra.mxu0 %v41363_v14 }
 0x573   : > { %37925 = vmatmul.mubr.f32.vlgmr.msra.gmra.mrb[26].mxu1 %v13704_v12  ;;  %37902 = vmatprep.subr.mxu0 %v41260_v8  ;;  %v35237_v12 = vmul.f32 %v42520_v36, %v42520_v36 }
 0x574   : > { %37929 = vmatprep.mubr.f32.mxu1 %v42702_v45  ;;  %37928 = vmatpush3.xpose.msra.mxu1 %v41363_v14 }
 0x575   : > { %37932 = vmatprep.subr.mxu1 %v41260_v8 }
 0x579   : > { %37900 = vmatmul.mubr.f32.vlgmr.msra.gmra.mrb[26].mxu0 %v42704_v38 }
 0x57a   : > { %37904 = vmatprep.mubr.f32.mxu0 %v42696_v40  ;;  %37903 = vmatpush3.xpose.msra.mxu0 %v41260_v8 }
 0x57b   : > { %37930 = vmatmul.mubr.f32.vlgmr.msra.gmra.mrb[26].mxu1 %v42710_v53  ;;  %39761 = vmatprep.subr.bf16.mxu0 %v44650_v34 }
 0x57c   : > { %37934 = vmatprep.mubr.f32.mxu1 %v42702_v45  ;;  %37933 = vmatpush3.xpose.msra.mxu1 %v41260_v8  ;;  %v35235_v45 = vmul.f32 %v42508_v16, %v42508_v16 }
 0x57d   : > { %39779 = vmatprep.subr.bf16.mxu1 %v44650_v34 }
 0x581   : > { %37905 = vmatmul.mubr.f32.vlgmr.msra.gmra.mrb[26].mxu0 %v42704_v38 }
 0x582   : > { %37941 = vmatprep.mubr.msk.f32.mxu0 %vm41103_vm4, %v44600_v27 }
 0x583   : > { %37935 = vmatmul.mubr.f32.vlgmr.msra.gmra.mrb[26].mxu1 %v42710_v53 }
 0x584   : > { %37983 = vmatprep.mubr.msk.f32.mxu1 %vm41103_vm4, %v44600_v27 }
 0x5cd   : > { %v42766_v31 = vpop.f32.mrb[20].mxu0 }
 0x5ce   : > { %v42770_v24 = vsub.f32 %v42504_v4, %v42766_v31  ;;  %v37690_v40 = vpop.f32.mrb[21].mxu0  ;;  %v35236_v4 = vmul.f32 %v42514_v21, %v42514_v21 }
 0x5d0   : > { %44651 = vst [vmem:[#allocation14_spill] sm:$0xff] %v42770_v24  ;;  %v35247_v38 = vmul.f32 %v42770_v24, %v42770_v24  ;;  %v42776_v17 = vpop.f32.mrb[20].mxu1 }
 0x5d1   : > { %v42780_v53 = vsub.f32 %v42510_v44, %v42776_v17  ;;  %v37732_v10 = vpop.f32.mrb[21].mxu1 }
 0x5d2   : > { %v42782_v42 = vadd.f32 %v35247_v38, %v35235_v45 }
 0x5d3   : > { %44652 = vst [vmem:[#allocation8_spill] sm:$0xff] %v42780_v53  ;;  %v35248_v59 = vmul.f32 %v42780_v53, %v42780_v53 }
 0x5d5   : > { %v42788_v39 = vadd.f32 %v35248_v59, %v35236_v4 }
 0x5fa   : > { %v42790_v49 = vpop.f32.mrb[22].mxu0 }
 0x5fb   : > { %v42794_v26 = vsub.f32 %v42516_v50, %v42790_v49  ;;  %v37774_v47 = vpop.f32.mrb[23].mxu0 }
 0x5fd   : > { %44653 = vst [vmem:[#allocation30_spill] sm:$0xff] %v42794_v26  ;;  %v42796_v44 = vpop.f32.mrb[22].mxu1  ;;  %v35249_v18 = vmul.f32 %v42794_v26, %v42794_v26 }
 0x5fe   : > { %v42804_v25 = vsub.f32 %v42522_v29, %v42796_v44  ;;  %v37816_v30 = vpop.f32.mrb[23].mxu1 }
 0x5ff   : > { %v42808_v5 = vadd.f32 %v35249_v18, %v35237_v12 }
 0x600   : > { %44654 = vst [vmem:[#allocation37_spill] sm:$0xff] %v42804_v25  ;;  %v35250_v50 = vmul.f32 %v42804_v25, %v42804_v25 }
 0x602   : > { %v42812_v52 = vadd.f32 %v35250_v50, %v35238_v35 }
 0x627   : > { %v37846_v40 = vpop.f32.mrb[24].mxu0 }
 0x628   : > { %v14116_v45 = vsel %vm44655_vm7, %v37846_v40, 0  ;;  %v12620_v38 = vpop.f32.mrb[25].mxu0  ;;  %vm44672_vm7 = vmmov %vm44649_vm3 }
 0x629   : > { %v14122_v10 = vand.u32 4294901760, %v14116_v45  ;;  %v14119_v59 = vand.u32 4294901760, %v12620_v38 }
 0x62a   : > { %v37876_v4 = vpop.f32.mrb[24].mxu1 }
 0x62b   : > { %v14578_v29 = vsel %vm44656_vm13, %v37876_v4, 0  ;;  %v13115_v47 = vpop.f32.mrb[25].mxu1  ;;  %v14204_v30 = vsub.f32 %v14116_v45, %v14122_v10  ;;  %v39762_v61 = vpack.c.bf16 %v14122_v10, %v14119_v59  ;;  %v14197_v12 = vsub.f32 %v12620_v38, %v14119_v59  ;;  %vm44677_vm13 = vmmov %vm44633_vm2 }
 0x62c   : > { %v14584_v36 = vand.u32 4294901760, %v14578_v29  ;;  %v14581_v18 = vand.u32 4294901760, %v13115_v47 }
 0x62d   : > { %v14205_v26 = vand.u32 4294901760, %v14204_v30  ;;  %v14198_v25 = vand.u32 4294901760, %v14197_v12  ;;  %v39768_v35 = vpack.c.bf16 %v14204_v30, %v14197_v12  ;;  %39763 = vmatpush3.bf16.msra.mxu0 %v39762_v61 }
 0x62e   : > { %v14666_v21 = vsub.f32 %v14578_v29, %v14584_v36  ;;  %v39780_v50 = vpack.c.bf16 %v14584_v36, %v14581_v18  ;;  %v14659_v53 = vsub.f32 %v13115_v47, %v14581_v18  ;;  %39764 = vmatprep.subr.bf16.mxu0 %v44650_v34 }
 0x62f   : > { %v14206_v40 = vsub.f32 %v14204_v30, %v14205_v26  ;;  %v14199_v24 = vsub.f32 %v14197_v12, %v14198_v25  ;;  %v39774_v33 = vpack.c.bf16 %v14205_v26, %v14198_v25 }
 0x630   : > { %v14667_v16 = vand.u32 4294901760, %v14666_v21  ;;  %v14660_v4 = vand.u32 4294901760, %v14659_v53  ;;  %v39786_v32 = vpack.c.bf16 %v14666_v21, %v14659_v53  ;;  %39781 = vmatpush3.bf16.msra.mxu1 %v39780_v50  ;;  %37942 = vmatmul.mubr.f32.vlgmr.msra.gmra.mrb[28].mxu0 %v42014_v58 }
 0x631   : > { %v14207_v45 = vand.u32 4294901760, %v14206_v40  ;;  %v14200_v10 = vand.u32 4294901760, %v14199_v24  ;;  %39782 = vmatprep.subr.bf16.mxu1 %v44650_v34  ;;  %37948 = vmatprep.mubr.msk.f32.mxu0 %vm41103_vm4, %v44600_v27 }
 0x632   : > { %v14668_v38 = vsub.f32 %v14666_v21, %v14667_v16  ;;  %v14661_v36 = vsub.f32 %v14659_v53, %v14660_v4  ;;  %v39792_v59 = vpack.c.bf16 %v14667_v16, %v14660_v4 }
 0x633   : > { %37984 = vmatmul.mubr.f32.vlgmr.msra.gmra.mrb[28].mxu1 %v42014_v58  ;;  %v39765_v47 = vpack.c.bf16 %v14207_v45, %v14200_v10 }
 0x634   : > { %v14669_v29 = vand.u32 4294901760, %v14668_v38  ;;  %v14662_v26 = vand.u32 4294901760, %v14661_v36  ;;  %37990 = vmatprep.mubr.msk.f32.mxu1 %vm41103_vm4, %v44600_v27 }
 0x635   : > { %39766 = vmatpush3.bf16.msra.mxu0 %v39765_v47 }
 0x636   : > { %v39783_v25 = vpack.c.bf16 %v14669_v29, %v14662_v26  ;;  %39767 = vmatprep.subr.bf16.mxu0 %v44650_v34 }
 0x638   : > { %39784 = vmatpush3.bf16.msra.mxu1 %v39783_v25  ;;  %37949 = vmatmul.mubr.f32.vlgmr.msra.gmra.mrb[28].mxu0 %v42002_v51 }
 0x639   : > { %39785 = vmatprep.subr.bf16.mxu1 %v44650_v34  ;;  %39769 = vmatpush3.bf16.msra.mxu0 %v39768_v35 }
 0x63a   : > { %37955 = vmatprep.mubr.msk.f32.mxu0 %vm41103_vm4, %v44600_v27  ;;  %39770 = vmatprep.subr.bf16.mxu0 %v44650_v34 }
 0x63b   : > { %37991 = vmatmul.mubr.f32.vlgmr.msra.gmra.mrb[28].mxu1 %v42002_v51 }
 0x63c   : > { %39787 = vmatpush3.bf16.msra.mxu1 %v39786_v32  ;;  %37997 = vmatprep.mubr.msk.f32.mxu1 %vm41103_vm4, %v44600_v27 }
 0x63d   : > { %39788 = vmatprep.subr.bf16.mxu1 %v44650_v34 }
 0x640   : > { %37956 = vmatmul.mubr.f32.vlgmr.msra.gmra.mrb[28].mxu0 %v42005_v54 }
 0x641   : > { %39772 = vmatpush3.bf16.msra.mxu0 %v39762_v61  ;;  %37962 = vmatprep.mubr.msk.f32.mxu0 %vm41103_vm4, %v44600_v27 }
 0x642   : > { %39773 = vmatprep.subr.bf16.mxu0 %v44650_v34 }
 0x643   : > { %37998 = vmatmul.mubr.f32.vlgmr.msra.gmra.mrb[28].mxu1 %v42005_v54 }
 0x644   : > { %39790 = vmatpush3.bf16.msra.mxu1 %v39780_v50  ;;  %38004 = vmatprep.mubr.msk.f32.mxu1 %vm41103_vm4, %v44600_v27 }
 0x645   : > { %39791 = vmatprep.subr.bf16.mxu1 %v44650_v34 }
 0x648   : > { %37963 = vmatmul.mubr.f32.vlgmr.msra.gmra.mrb[28].mxu0 %v42008_v62 }
 0x649   : > { %39775 = vmatpush3.bf16.msra.mxu0 %v39774_v33  ;;  %37969 = vmatprep.mubr.msk.f32.mxu0 %vm41103_vm4, %v44600_v27 }
 0x64a   : > { %39776 = vmatprep.subr.bf16.mxu0 %v44650_v34 }
 0x64b   : > { %38005 = vmatmul.mubr.f32.vlgmr.msra.gmra.mrb[28].mxu1 %v42008_v62 }
 0x64c   : > { %39793 = vmatpush3.bf16.msra.mxu1 %v39792_v59  ;;  %38011 = vmatprep.mubr.msk.f32.mxu1 %vm41103_vm4, %v44600_v27 }
 0x64d   : > { %39794 = vmatprep.subr.bf16.mxu1 %v44650_v34 }
 0x650   : > { %37970 = vmatmul.mubr.f32.vlgmr.msra.gmra.mrb[28].mxu0 %v42002_v51 }
 0x651   : > { %39778 = vmatpush3.bf16.msra.mxu0 %v39762_v61  ;;  %37976 = vmatprep.mubr.msk.f32.mxu0 %vm41103_vm4, %v44600_v27 }
 0x652   : > { %39797 = vmatprep.subr.bf16.mxu0 %v44650_v34 }
 0x653   : > { %38012 = vmatmul.mubr.f32.vlgmr.msra.gmra.mrb[28].mxu1 %v42002_v51 }
 0x654   : > { %v37906_v32 = vpop.f32.mrb[26].mxu0  ;;  %39796 = vmatpush3.bf16.msra.mxu1 %v39780_v50  ;;  %38018 = vmatprep.mubr.msk.f32.mxu1 %vm41103_vm4, %v44600_v27 }
 0x655   : > { %v15040_v33 = vsel %vm44633_vm2, %v37906_v32, 0  ;;  %v13610_v16 = vpop.f32.mrb[27].mxu0  ;;  %39815 = vmatprep.subr.bf16.mxu1 %v44650_v34 }
 0x656   : > { %v15046_v21 = vand.u32 4294901760, %v15040_v33  ;;  %v37936_v24 = vpop.f32.mrb[26].mxu1  ;;  %v15043_v53 = vand.u32 4294901760, %v13610_v16 }
 0x657   : > { %v15502_v61 = vsel %vm44657_vm15, %v37936_v24, 0  ;;  %v14105_v30 = vpop.f32.mrb[27].mxu1  ;;  %vm44678_vm15 = vmmov %vm44633_vm2 }
 0x658   : > { %v15128_v12 = vsub.f32 %v15040_v33, %v15046_v21  ;;  %v15508_v18 = vand.u32 4294901760, %v15502_v61  ;;  %v42860_v35 = vpack.c.bf16 %v15046_v21, %v15043_v53  ;;  %v15121_v40 = vsub.f32 %v13610_v16, %v15043_v53  ;;  %37977 = vmatmul.mubr.f32.vlgmr.msra.gmra.mrb[28].mxu0 %v42002_v51 }
 0x659   : > { %v15505_v50 = vand.u32 4294901760, %v14105_v30  ;;  %38025 = vmatprep.mubr.msk.f32.mxu0 %vm41103_vm4, %v44600_v27 }
 0x65a   : > { %v15129_v4 = vand.u32 4294901760, %v15128_v12  ;;  %v15590_v45 = vsub.f32 %v15502_v61, %v15508_v18  ;;  %v15122_v38 = vand.u32 4294901760, %v15121_v40  ;;  %v39804_v10 = vpack.c.bf16 %v15128_v12, %v15121_v40  ;;  %39799 = vmatpush3.bf16.msra.mxu0 %v42860_v35 }
 0x65b   : > { %v42866_v36 = vpack.c.bf16 %v15508_v18, %v15505_v50  ;;  %v15583_v59 = vsub.f32 %v14105_v30, %v15505_v50  ;;  %39800 = vmatprep.subr.bf16.mxu0 %v44650_v34  ;;  %38019 = vmatmul.mubr.f32.vlgmr.msra.gmra.mrb[28].mxu1 %v42002_v51  ;;  %v15963_v50 = vmul.f32 0.17364818, %v42082_v48 }
 0x65c   : > { %v15130_v29 = vsub.f32 %v15128_v12, %v15129_v4  ;;  %v15591_v47 = vand.u32 4294901760, %v15590_v45  ;;  %v15123_v26 = vsub.f32 %v15121_v40, %v15122_v38  ;;  %v39810_v25 = vpack.c.bf16 %v15129_v4, %v15122_v38  ;;  %38067 = vmatprep.mubr.msk.f32.mxu1 %vm41103_vm4, %v44600_v27 }
 0x65d   : > { %v15584_v32 = vand.u32 4294901760, %v15583_v59  ;;  %v39822_v33 = vpack.c.bf16 %v15590_v45, %v15583_v59  ;;  %39817 = vmatpush3.bf16.msra.mxu1 %v42866_v36  ;;  %38026 = vmatmul.mubr.f32.vlgmr.msra.gmra.mrb[30].mxu0 %v42014_v58  ;;  %v42892_v4 = vmul.f32 0.9848077, %v41396_v46  ;;  %v42896_v38 = vmul.f32 0.9848077, %v41392_v43 }
 0x65e   : > { %v15131_v16 = vand.u32 4294901760, %v15130_v29  ;;  %v15592_v21 = vsub.f32 %v15590_v45, %v15591_v47  ;;  %v15124_v24 = vand.u32 4294901760, %v15123_v26  ;;  %39818 = vmatprep.subr.bf16.mxu1 %v44650_v34  ;;  %38032 = vmatprep.mubr.msk.f32.mxu0 %vm41103_vm4, %v44600_v27  ;;  %v15965_v45 = vmul.f32 0.17364818, %v42089_v6 }
 0x65f   : > { %v15585_v53 = vsub.f32 %v15583_v59, %v15584_v32  ;;  %v39828_v61 = vpack.c.bf16 %v15591_v47, %v15584_v32  ;;  %vm15979_vm14 = vcmp.ge.f32.partialorder %v15963_v50, %v42892_v4  ;;  %v44660_v47 = vld [vmem:[#allocation15_spill] sm:$0xff] }
 0x660   : > { %v15593_v30 = vand.u32 4294901760, %v15592_v21  ;;  %38068 = vmatmul.mubr.f32.vlgmr.msra.gmra.mrb[30].mxu1 %v42014_v58  ;;  %v39801_v12 = vpack.c.bf16 %v15131_v16, %v15124_v24  ;;  %vm15981_vm1 = vcmp.ge.f32.partialorder %v15965_v45, %v42896_v38  ;;  %v15999_v26 = vsel %vm44661_vm12, %v44660_v47, 0  ;;  %vm44681_vm12 = vmmov %vm44649_vm3 }
 0x661   : > { %v15586_v18 = vand.u32 4294901760, %v15585_v53  ;;  %38074 = vmatprep.mubr.msk.f32.mxu1 %vm41103_vm4, %v44600_v27  ;;  %v15989_v43 = vsel %vm15981_vm1, %v41751_v1, 0.0  ;;  %v42927_v21 = vand.u32 4294901760, %v15999_v26 }
 0x662   : > { %39802 = vmatpush3.bf16.msra.mxu0 %v39801_v12  ;;  %v16491_v59 = vsel %vm44659_vm8, %v15989_v43, 0  ;;  %vm44680_vm8 = vmmov %vm44649_vm3 }
 0x663   : > { %v39819_v40 = vpack.c.bf16 %v15593_v30, %v15586_v18  ;;  %39803 = vmatprep.subr.bf16.mxu0 %v44650_v34  ;;  %v42921_v32 = vand.u32 4294901760, %v16491_v59  ;;  %v16078_v12 = vsub.f32 %v15999_v26, %v42927_v21  ;;  %v44664_v26 = vld [vmem:[#allocation31_spill] sm:$0xff] }
 0x665   : > { %39820 = vmatpush3.bf16.msra.mxu1 %v39819_v40  ;;  %38033 = vmatmul.mubr.f32.vlgmr.msra.gmra.mrb[30].mxu0 %v42002_v51  ;;  %v16563_v53 = vsub.f32 %v16491_v59, %v42921_v32  ;;  %v16079_v50 = vand.u32 4294901760, %v16078_v12 }
 0x666   : > { %39821 = vmatprep.subr.bf16.mxu1 %v44650_v34  ;;  %39805 = vmatpush3.bf16.msra.mxu0 %v39804_v10  ;;  %v15987_v10 = vsel %vm15979_vm14, %v41717_v41, 0.0  ;;  %vm44679_vm14 = vmmov %vm44633_vm2 }
 0x667   : > { %38039 = vmatprep.mubr.msk.f32.mxu0 %vm41103_vm4, %v44600_v27  ;;  %39806 = vmatprep.subr.bf16.mxu0 %v44650_v34  ;;  %v15996_v46 = vsel %vm44658_vm5, %v15987_v10, 0  ;;  %v16080_v43 = vsub.f32 %v16078_v12, %v16079_v50 }
 0x668   : > { %38075 = vmatmul.mubr.f32.vlgmr.msra.gmra.mrb[30].mxu1 %v42002_v51  ;;  %v42914_v29 = vand.u32 4294901760, %v15996_v46 }
 0x669   : > { %39823 = vmatpush3.bf16.msra.mxu1 %v39822_v33  ;;  %38081 = vmatprep.mubr.msk.f32.mxu1 %vm41103_vm4, %v44600_v27  ;;  %v44662_v33 = vld [vmem:[#allocation9_spill] sm:$0xff] }
 0x66a   : > { %39824 = vmatprep.subr.bf16.mxu1 %v44650_v34  ;;  %v16494_v16 = vsel %vm44663_vm9, %v44662_v33, 0  ;;  %v44665_v33 = vld [vmem:[#allocation38_spill] sm:$0xff]  ;;  %vm44683_vm9 = vmmov %vm44649_vm3 }
 0x66b   : > { %v42933_v24 = vand.u32 4294901760, %v16494_v16  ;;  %vm44666_vm0 = vcmp.ge.f32.partialorder %v44664_v26, %v44665_v33 }
 0x66d   : > { %38040 = vmatmul.mubr.f32.vlgmr.msra.gmra.mrb[30].mxu0 %v42005_v54  ;;  %v16573_v18 = vsub.f32 %v16494_v16, %v42933_v24  ;;  %v15991_v16 = vsel %vm44666_vm0, %v41909_v3, 0.0  ;;  %vm44685_vm0 = vmmov %vm44649_vm3 }
 0x66e   : > { %39808 = vmatpush3.bf16.msra.mxu0 %v42860_v35  ;;  %38046 = vmatprep.mubr.msk.f32.mxu0 %vm41103_vm4, %v44600_v27 }
 0x66f   : > { %39809 = vmatprep.subr.bf16.mxu0 %v44650_v34  ;;  %v16574_v45 = vand.u32 4294901760, %v16573_v18 }
 0x670   : > { %38082 = vmatmul.mubr.f32.vlgmr.msra.gmra.mrb[30].mxu1 %v42005_v54 }
 0x671   : > { %39826 = vmatpush3.bf16.msra.mxu1 %v42866_v36  ;;  %38088 = vmatprep.mubr.msk.f32.mxu1 %vm41103_vm4, %v44600_v27  ;;  %v16575_v59 = vsub.f32 %v16573_v18, %v16574_v45 }
 0x672   : > { %39827 = vmatprep.subr.bf16.mxu1 %v44650_v34 }
 0x673   : > { %v16576_v47 = vand.u32 4294901760, %v16575_v59 }
 0x675   : > { %38047 = vmatmul.mubr.f32.vlgmr.msra.gmra.mrb[30].mxu0 %v42008_v62 }
 0x676   : > { %39811 = vmatpush3.bf16.msra.mxu0 %v39810_v25  ;;  %38053 = vmatprep.mubr.msk.f32.mxu0 %vm41103_vm4, %v44600_v27  ;;  %v16068_v25 = vsub.f32 %v15996_v46, %v42914_v29 }
 0x677   : > { %39812 = vmatprep.subr.bf16.mxu0 %v44650_v34 }
 0x678   : > { %38089 = vmatmul.mubr.f32.vlgmr.msra.gmra.mrb[30].mxu1 %v42008_v62  ;;  %v16069_v30 = vand.u32 4294901760, %v16068_v25 }
 0x679   : > { %39829 = vmatpush3.bf16.msra.mxu1 %v39828_v61  ;;  %38095 = vmatprep.mubr.msk.f32.mxu1 %vm41103_vm4, %v44600_v27  ;;  %v16564_v61 = vand.u32 4294901760, %v16563_v53 }
 0x67a   : > { %39830 = vmatprep.subr.bf16.mxu1 %v44650_v34  ;;  %v16070_v40 = vsub.f32 %v16068_v25, %v16069_v30 }
 0x67c   : > { %v16071_v10 = vand.u32 4294901760, %v16070_v40 }
 0x67d   : > { %38054 = vmatmul.mubr.f32.vlgmr.msra.gmra.mrb[30].mxu0 %v42002_v51 }
 0x67e   : > { %39814 = vmatpush3.bf16.msra.mxu0 %v42860_v35  ;;  %38060 = vmatprep.mubr.msk.f32.mxu0 %vm41103_vm4, %v44600_v27  ;;  %v16565_v35 = vsub.f32 %v16563_v53, %v16564_v61 }
 0x67f   : > { %38105 = vmatprep.subr.mxu0 %v41260_v8 }
 0x680   : > { %38096 = vmatmul.mubr.f32.vlgmr.msra.gmra.mrb[30].mxu1 %v42002_v51  ;;  %v16566_v46 = vand.u32 4294901760, %v16565_v35  ;;  %v16989_v35 = vsel %vm44649_vm3, %v41859_v2, 0  ;;  %vm44691_vm3 = vmmov %vm44685_vm0 }
 0x681   : > { %39832 = vmatpush3.bf16.msra.mxu1 %v42866_v36  ;;  %38102 = vmatprep.mubr.msk.f32.mxu1 %vm41103_vm4, %v44600_v27  ;;  %v16081_v36 = vand.u32 4294901760, %v16080_v43  ;;  %v42990_v43 = vand.u32 4294901760, %v16989_v35 }
 0x682   : > { %38135 = vmatprep.subr.mxu1 %v41260_v8 }
 0x685   : > { %38061 = vmatmul.mubr.f32.vlgmr.msra.gmra.mrb[30].mxu0 %v42002_v51 }
 0x686   : > { %38107 = vmatprep.mubr.f32.mxu0 %v16071_v10 }
 0x687   : > { %38106 = vmatpush3.xpose.msra.mxu0 %v41260_v8 }
 0x688   : > { %38103 = vmatmul.mubr.f32.vlgmr.msra.gmra.mrb[30].mxu1 %v42002_v51  ;;  %38110 = vmatprep.subr.mxu0 %v41367_v19 }
 0x689   : > { %38137 = vmatprep.mubr.f32.mxu1 %v16566_v46  ;;  %v17068_v46 = vsub.f32 %v16989_v35, %v42990_v43 }
 0x68a   : > { %38136 = vmatpush3.xpose.msra.mxu1 %v41260_v8  ;;  %38108 = vmatmul.mubr.f32.vlgmr.msra.gmra.mrb[32].mxu0 %v16081_v36 }
 0x68b   : > { %38140 = vmatprep.subr.mxu1 %v41367_v19  ;;  %38112 = vmatprep.mubr.f32.mxu0 %v42914_v29 }
 0x68c   : > { %38111 = vmatpush3.xpose.msra.mxu0 %v41367_v19 }
 0x68d   : > { %38138 = vmatmul.mubr.f32.vlgmr.msra.gmra.mrb[32].mxu1 %v16576_v47  ;;  %38115 = vmatprep.subr.mxu0 %v41360_v13  ;;  %v17069_v47 = vand.u32 4294901760, %v17068_v46 }
 0x68e   : > { %38142 = vmatprep.mubr.f32.mxu1 %v42921_v32  ;;  %38141 = vmatpush3.xpose.msra.mxu1 %v41367_v19 }
 0x68f   : > { %38145 = vmatprep.subr.mxu1 %v41360_v13 }
 0x692   : > { %38113 = vmatmul.mubr.f32.vlgmr.msra.gmra.mrb[32].mxu0 %v42927_v21 }
 0x693   : > { %38117 = vmatprep.mubr.f32.mxu0 %v16068_v25  ;;  %38116 = vmatpush3.xpose.msra.mxu0 %v41360_v13  ;;  %v44667_v25 = vld [vmem:[#allocation21_spill] sm:$0xff] }
 0x694   : > { %38120 = vmatprep.subr.mxu0 %v41260_v8 }
 0x695   : > { %38143 = vmatmul.mubr.f32.vlgmr.msra.gmra.mrb[32].mxu1 %v42933_v24 }
 0x696   : > { %38147 = vmatprep.mubr.f32.mxu1 %v16563_v53  ;;  %38146 = vmatpush3.xpose.msra.mxu1 %v41360_v13  ;;  %v44668_v53 = vld [vmem:[#allocation29_spill] sm:$0xff] }
 0x697   : > { %38150 = vmatprep.subr.mxu1 %v41260_v8  ;;  %vm44669_vm10 = vcmp.ge.f32.partialorder %v44667_v25, %v44668_v53 }
 0x698   : > { %v15993_v40 = vsel %vm44669_vm10, %v41914_v23, 0.0 }
 0x69a   : > { %38118 = vmatmul.mubr.f32.vlgmr.msra.gmra.mrb[32].mxu0 %v16078_v12  ;;  %v17481_v12 = vsel %vm44671_vm6, %v15993_v40, 0  ;;  %v17070_v40 = vsub.f32 %v17068_v46, %v17069_v47  ;;  %vm44690_vm6 = vmmov %vm44685_vm0 }
 0x69b   : > { %38122 = vmatprep.mubr.f32.mxu0 %v16069_v30  ;;  %38121 = vmatpush3.xpose.msra.mxu0 %v41260_v8  ;;  %v16986_v30 = vsel %vm44670_vm11, %v15991_v16, 0  ;;  %v42988_v10 = vand.u32 4294901760, %v17481_v12 }
 0x69c   : > { %38125 = vmatprep.subr.mxu0 %v41363_v14  ;;  %v17071_v35 = vand.u32 4294901760, %v17070_v40 }
 0x69d   : > { %38148 = vmatmul.mubr.f32.vlgmr.msra.gmra.mrb[32].mxu1 %v16573_v18  ;;  %v42982_v18 = vand.u32 4294901760, %v16986_v30 }
 0x69e   : > { %38152 = vmatprep.mubr.f32.mxu1 %v16564_v61  ;;  %38151 = vmatpush3.xpose.msra.mxu1 %v41260_v8  ;;  %v17484_v61 = vsel %vm44672_vm7, %v41777_v9, 0  ;;  %v17553_v9 = vsub.f32 %v17481_v12, %v42988_v10  ;;  %vm44692_vm7 = vmmov %vm44685_vm0 }
 0x69f   : > { %38155 = vmatprep.subr.mxu1 %v41363_v14  ;;  %v17058_v2 = vsub.f32 %v16986_v30, %v42982_v18 }
 0x6a0   : > { %v17554_v36 = vand.u32 4294901760, %v17553_v9 }
 0x6a1   : > { %v17059_v59 = vand.u32 4294901760, %v17058_v2 }
 0x6a2   : > { %38123 = vmatmul.mubr.f32.vlgmr.msra.gmra.mrb[32].mxu0 %v16079_v50  ;;  %v42996_v50 = vand.u32 4294901760, %v17484_v61  ;;  %v17555_v25 = vsub.f32 %v17553_v9, %v17554_v36 }
 0x6a3   : > { %38127 = vmatprep.mubr.f32.mxu0 %v42914_v29  ;;  %38126 = vmatpush3.xpose.msra.mxu0 %v41363_v14  ;;  %v17060_v26 = vsub.f32 %v17058_v2, %v17059_v59 }
 0x6a4   : > { %38130 = vmatprep.subr.mxu0 %v41260_v8  ;;  %v17556_v12 = vand.u32 4294901760, %v17555_v25 }
 0x6a5   : > { %38153 = vmatmul.mubr.f32.vlgmr.msra.gmra.mrb[32].mxu1 %v16574_v45  ;;  %v17563_v45 = vsub.f32 %v17484_v61, %v42996_v50  ;;  %v17061_v30 = vand.u32 4294901760, %v17060_v26 }
 0x6a6   : > { %38157 = vmatprep.mubr.f32.mxu1 %v42921_v32  ;;  %38156 = vmatpush3.xpose.msra.mxu1 %v41363_v14 }
 0x6a7   : > { %38160 = vmatprep.subr.mxu1 %v41260_v8  ;;  %v17564_v16 = vand.u32 4294901760, %v17563_v45 }
 0x6aa   : > { %38128 = vmatmul.mubr.f32.vlgmr.msra.gmra.mrb[32].mxu0 %v42927_v21 }
 0x6ab   : > { %38132 = vmatprep.mubr.f32.mxu0 %v42914_v29  ;;  %38131 = vmatpush3.xpose.msra.mxu0 %v41260_v8  ;;  %v17565_v29 = vsub.f32 %v17563_v45, %v17564_v16 }
 0x6ac   : > { %38165 = vmatprep.subr.mxu0 %v41260_v8 }
 0x6ad   : > { %38158 = vmatmul.mubr.f32.vlgmr.msra.gmra.mrb[32].mxu1 %v42933_v24 }
 0x6ae   : > { %38162 = vmatprep.mubr.f32.mxu1 %v42921_v32  ;;  %38161 = vmatpush3.xpose.msra.mxu1 %v41260_v8  ;;  %v17566_v32 = vand.u32 4294901760, %v17565_v29 }
 0x6af   : > { %38195 = vmatprep.subr.mxu1 %v41260_v8 }
 0x6b2   : > { %38133 = vmatmul.mubr.f32.vlgmr.msra.gmra.mrb[32].mxu0 %v42927_v21 }
 0x6b3   : > { %38166 = vmatpush3.xpose.msra.mxu0 %v41260_v8  ;;  %38167 = vmatprep.mubr.f32.mxu0 %v17061_v30 }
 0x6b4   : > { %38170 = vmatprep.subr.mxu0 %v41367_v19 }
 0x6b5   : > { %38163 = vmatmul.mubr.f32.vlgmr.msra.gmra.mrb[32].mxu1 %v42933_v24 }
 0x6b6   : > { %38196 = vmatpush3.xpose.msra.mxu1 %v41260_v8  ;;  %38197 = vmatprep.mubr.f32.mxu1 %v17556_v12 }
 0x6b7   : > { %38168 = vmatmul.mubr.f32.vlgmr.msra.gmra.mrb[34].mxu0 %v17071_v35  ;;  %38200 = vmatprep.subr.mxu1 %v41367_v19 }
 0x6b8   : > { %38172 = vmatprep.mubr.f32.mxu0 %v42982_v18  ;;  %38171 = vmatpush3.xpose.msra.mxu0 %v41367_v19 }
 0x6b9   : > { %38198 = vmatmul.mubr.f32.vlgmr.msra.gmra.mrb[34].mxu1 %v17566_v32  ;;  %38175 = vmatprep.subr.mxu0 %v41360_v13 }
 0x6ba   : > { %38202 = vmatprep.mubr.f32.mxu1 %v42988_v10  ;;  %38201 = vmatpush3.xpose.msra.mxu1 %v41367_v19 }
 0x6bb   : > { %38205 = vmatprep.subr.mxu1 %v41360_v13 }
 0x6bf   : > { %38173 = vmatmul.mubr.f32.vlgmr.msra.gmra.mrb[34].mxu0 %v42990_v43 }
 0x6c0   : > { %38177 = vmatprep.mubr.f32.mxu0 %v17058_v2  ;;  %38176 = vmatpush3.xpose.msra.mxu0 %v41360_v13 }
 0x6c1   : > { %38203 = vmatmul.mubr.f32.vlgmr.msra.gmra.mrb[34].mxu1 %v42996_v50  ;;  %38180 = vmatprep.subr.mxu0 %v41260_v8 }
 0x6c2   : > { %38207 = vmatprep.mubr.f32.mxu1 %v17553_v9  ;;  %38206 = vmatpush3.xpose.msra.mxu1 %v41360_v13 }
 0x6c3   : > { %38210 = vmatprep.subr.mxu1 %v41260_v8 }
 0x6c7   : > { %38178 = vmatmul.mubr.f32.vlgmr.msra.gmra.mrb[34].mxu0 %v17068_v46 }
 0x6c8   : > { %38182 = vmatprep.mubr.f32.mxu0 %v17059_v59  ;;  %38181 = vmatpush3.xpose.msra.mxu0 %v41260_v8 }
 0x6c9   : > { %38208 = vmatmul.mubr.f32.vlgmr.msra.gmra.mrb[34].mxu1 %v17563_v45  ;;  %38185 = vmatprep.subr.mxu0 %v41363_v14 }
 0x6ca   : > { %38212 = vmatprep.mubr.f32.mxu1 %v17554_v36  ;;  %38211 = vmatpush3.xpose.msra.mxu1 %v41260_v8 }
 0x6cb   : > { %38215 = vmatprep.subr.mxu1 %v41363_v14 }
 0x6cf   : > { %38183 = vmatmul.mubr.f32.vlgmr.msra.gmra.mrb[34].mxu0 %v17069_v47 }
 0x6d0   : > { %38187 = vmatprep.mubr.f32.mxu0 %v42982_v18  ;;  %38186 = vmatpush3.xpose.msra.mxu0 %v41363_v14 }
 0x6d1   : > { %38213 = vmatmul.mubr.f32.vlgmr.msra.gmra.mrb[34].mxu1 %v17564_v16  ;;  %38190 = vmatprep.subr.mxu0 %v41260_v8 }
 0x6d2   : > { %38217 = vmatprep.mubr.f32.mxu1 %v42988_v10  ;;  %38216 = vmatpush3.xpose.msra.mxu1 %v41363_v14 }
 0x6d3   : > { %38220 = vmatprep.subr.mxu1 %v41260_v8 }
 0x6d7   : > { %38188 = vmatmul.mubr.f32.vlgmr.msra.gmra.mrb[34].mxu0 %v42990_v43 }
 0x6d8   : > { %38192 = vmatprep.mubr.f32.mxu0 %v42982_v18  ;;  %38191 = vmatpush3.xpose.msra.mxu0 %v41260_v8 }
 0x6d9   : > { %38218 = vmatmul.mubr.f32.vlgmr.msra.gmra.mrb[34].mxu1 %v42996_v50  ;;  %39833 = vmatprep.subr.bf16.mxu0 %v44650_v34 }
 0x6da   : > { %38222 = vmatprep.mubr.f32.mxu1 %v42988_v10  ;;  %38221 = vmatpush3.xpose.msra.mxu1 %v41260_v8 }
 0x6db   : > { %39851 = vmatprep.subr.bf16.mxu1 %v44650_v34 }
 0x6df   : > { %38193 = vmatmul.mubr.f32.vlgmr.msra.gmra.mrb[34].mxu0 %v42990_v43 }
 0x6e0   : > { %38229 = vmatprep.mubr.msk.f32.mxu0 %vm41103_vm4, %v44600_v27 }
 0x6e1   : > { %38223 = vmatmul.mubr.f32.vlgmr.msra.gmra.mrb[34].mxu1 %v42996_v50 }
 0x6e2   : > { %38271 = vmatprep.mubr.msk.f32.mxu1 %vm41103_vm4, %v44600_v27 }
 0x72b   : > { %v43052_v21 = vpop.f32.mrb[28].mxu0 }
 0x72c   : > { %v43056_v24 = vsub.f32 %v42766_v31, %v43052_v21  ;;  %v37978_v18 = vpop.f32.mrb[29].mxu0 }
 0x72e   : > { %44673 = vst [vmem:[#allocation20_spill] sm:$0xff] %v43056_v24  ;;  %v35259_v61 = vmul.f32 %v43056_v24, %v43056_v24  ;;  %v43060_v10 = vpop.f32.mrb[28].mxu1 }
 0x72f   : > { %v43064_v43 = vsub.f32 %v42776_v17, %v43060_v10  ;;  %v38020_v2 = vpop.f32.mrb[29].mxu1 }
 0x730   : > { %v43067_v50 = vadd.f32 %v35259_v61, %v42782_v42 }
 0x731   : > { %44674 = vst [vmem:[#allocation28_spill] sm:$0xff] %v43064_v43  ;;  %v35260_v9 = vmul.f32 %v43064_v43, %v43064_v43 }
 0x733   : > { %v43072_v31 = vadd.f32 %v35260_v9, %v42788_v39 }
 0x758   : > { %v43074_v46 = vpop.f32.mrb[30].mxu0 }
 0x759   : > { %v43078_v59 = vsub.f32 %v42790_v49, %v43074_v46  ;;  %v38062_v45 = vpop.f32.mrb[31].mxu0 }
 0x75b   : > { %44675 = vst [vmem:[#allocation15_spill] sm:$0xff] %v43078_v59  ;;  %v43080_v36 = vpop.f32.mrb[30].mxu1  ;;  %v35261_v17 = vmul.f32 %v43078_v59, %v43078_v59 }
 0x75c   : > { %v43086_v42 = vsub.f32 %v42796_v44, %v43080_v36  ;;  %v38104_v47 = vpop.f32.mrb[31].mxu1 }
 0x75d   : > { %v43089_v39 = vadd.f32 %v35261_v17, %v42808_v5 }
 0x75e   : > { %44676 = vst [vmem:[#allocation9_spill] sm:$0xff] %v43086_v42  ;;  %v35262_v26 = vmul.f32 %v43086_v42, %v43086_v42 }
 0x760   : > { %v43094_v49 = vadd.f32 %v35262_v26, %v42812_v52 }
 0x785   : > { %v38134_v16 = vpop.f32.mrb[32].mxu0 }
 0x786   : > { %v17976_v25 = vsel %vm44677_vm13, %v38134_v16, 0  ;;  %v16480_v40 = vpop.f32.mrb[33].mxu0  ;;  %vm44693_vm13 = vmmov %vm44685_vm0 }
 0x787   : > { %v17982_v30 = vand.u32 4294901760, %v17976_v25  ;;  %v17979_v12 = vand.u32 4294901760, %v16480_v40 }
 0x788   : > { %v38164_v29 = vpop.f32.mrb[32].mxu1 }
 0x789   : > { %v18438_v44 = vsel %vm44633_vm2, %v38164_v29, 0  ;;  %v16975_v35 = vpop.f32.mrb[33].mxu1  ;;  %v18064_v32 = vsub.f32 %v17976_v25, %v17982_v30  ;;  %v39834_v5 = vpack.c.bf16 %v17982_v30, %v17979_v12  ;;  %v18057_v61 = vsub.f32 %v16480_v40, %v17979_v12 }
 0x78a   : > { %v18444_v18 = vand.u32 4294901760, %v18438_v44  ;;  %v18441_v2 = vand.u32 4294901760, %v16975_v35 }
 0x78b   : > { %v18065_v9 = vand.u32 4294901760, %v18064_v32  ;;  %v18058_v17 = vand.u32 4294901760, %v18057_v61  ;;  %v39840_v52 = vpack.c.bf16 %v18064_v32, %v18057_v61  ;;  %39835 = vmatpush3.bf16.msra.mxu0 %v39834_v5 }
 0x78c   : > { %v18526_v45 = vsub.f32 %v18438_v44, %v18444_v18  ;;  %v39852_v47 = vpack.c.bf16 %v18444_v18, %v18441_v2  ;;  %v18519_v26 = vsub.f32 %v16975_v35, %v18441_v2  ;;  %39836 = vmatprep.subr.bf16.mxu0 %v44650_v34 }
 0x78d   : > { %v18066_v16 = vsub.f32 %v18064_v32, %v18065_v9  ;;  %v18059_v59 = vsub.f32 %v18057_v61, %v18058_v17  ;;  %v39846_v43 = vpack.c.bf16 %v18065_v9, %v18058_v17 }
 0x78e   : > { %v18527_v42 = vand.u32 4294901760, %v18526_v45  ;;  %v18520_v29 = vand.u32 4294901760, %v18519_v26  ;;  %v39858_v24 = vpack.c.bf16 %v18526_v45, %v18519_v26  ;;  %39853 = vmatpush3.bf16.msra.mxu1 %v39852_v47  ;;  %38230 = vmatmul.mubr.f32.vlgmr.msra.gmra.mrb[36].mxu0 %v42014_v58 }
 0x78f   : > { %v18067_v25 = vand.u32 4294901760, %v18066_v16  ;;  %v18060_v30 = vand.u32 4294901760, %v18059_v59  ;;  %39854 = vmatprep.subr.bf16.mxu1 %v44650_v34  ;;  %38236 = vmatprep.mubr.msk.f32.mxu0 %vm41103_vm4, %v44600_v27 }
 0x790   : > { %v18528_v40 = vsub.f32 %v18526_v45, %v18527_v42  ;;  %v18521_v12 = vsub.f32 %v18519_v26, %v18520_v29  ;;  %v39864_v44 = vpack.c.bf16 %v18527_v42, %v18520_v29 }
 0x791   : > { %38272 = vmatmul.mubr.f32.vlgmr.msra.gmra.mrb[36].mxu1 %v42014_v58  ;;  %v39837_v32 = vpack.c.bf16 %v18067_v25, %v18060_v30 }
 0x792   : > { %v18529_v35 = vand.u32 4294901760, %v18528_v40  ;;  %v18522_v18 = vand.u32 4294901760, %v18521_v12  ;;  %38278 = vmatprep.mubr.msk.f32.mxu1 %vm41103_vm4, %v44600_v27 }
 0x793   : > { %39838 = vmatpush3.bf16.msra.mxu0 %v39837_v32 }
 0x794   : > { %v39855_v61 = vpack.c.bf16 %v18529_v35, %v18522_v18  ;;  %39839 = vmatprep.subr.bf16.mxu0 %v44650_v34 }
 0x796   : > { %39856 = vmatpush3.bf16.msra.mxu1 %v39855_v61  ;;  %38237 = vmatmul.mubr.f32.vlgmr.msra.gmra.mrb[36].mxu0 %v42002_v51 }
 0x797   : > { %39857 = vmatprep.subr.bf16.mxu1 %v44650_v34  ;;  %39841 = vmatpush3.bf16.msra.mxu0 %v39840_v52 }
 0x798   : > { %38243 = vmatprep.mubr.msk.f32.mxu0 %vm41103_vm4, %v44600_v27  ;;  %39842 = vmatprep.subr.bf16.mxu0 %v44650_v34 }
 0x799   : > { %38279 = vmatmul.mubr.f32.vlgmr.msra.gmra.mrb[36].mxu1 %v42002_v51 }
 0x79a   : > { %39859 = vmatpush3.bf16.msra.mxu1 %v39858_v24  ;;  %38285 = vmatprep.mubr.msk.f32.mxu1 %vm41103_vm4, %v44600_v27 }
 0x79b   : > { %39860 = vmatprep.subr.bf16.mxu1 %v44650_v34 }
 0x79e   : > { %38244 = vmatmul.mubr.f32.vlgmr.msra.gmra.mrb[36].mxu0 %v42005_v54 }
 0x79f   : > { %39844 = vmatpush3.bf16.msra.mxu0 %v39834_v5  ;;  %38250 = vmatprep.mubr.msk.f32.mxu0 %vm41103_vm4, %v44600_v27 }
 0x7a0   : > { %39845 = vmatprep.subr.bf16.mxu0 %v44650_v34 }
 0x7a1   : > { %38286 = vmatmul.mubr.f32.vlgmr.msra.gmra.mrb[36].mxu1 %v42005_v54 }
 0x7a2   : > { %39862 = vmatpush3.bf16.msra.mxu1 %v39852_v47  ;;  %38292 = vmatprep.mubr.msk.f32.mxu1 %vm41103_vm4, %v44600_v27 }
 0x7a3   : > { %39863 = vmatprep.subr.bf16.mxu1 %v44650_v34 }
 0x7a6   : > { %38251 = vmatmul.mubr.f32.vlgmr.msra.gmra.mrb[36].mxu0 %v42008_v62 }
 0x7a7   : > { %39847 = vmatpush3.bf16.msra.mxu0 %v39846_v43  ;;  %38257 = vmatprep.mubr.msk.f32.mxu0 %vm41103_vm4, %v44600_v27 }
 0x7a8   : > { %39848 = vmatprep.subr.bf16.mxu0 %v44650_v34 }
 0x7a9   : > { %38293 = vmatmul.mubr.f32.vlgmr.msra.gmra.mrb[36].mxu1 %v42008_v62 }
 0x7aa   : > { %39865 = vmatpush3.bf16.msra.mxu1 %v39864_v44  ;;  %38299 = vmatprep.mubr.msk.f32.mxu1 %vm41103_vm4, %v44600_v27 }
 0x7ab   : > { %39866 = vmatprep.subr.bf16.mxu1 %v44650_v34 }
 0x7ae   : > { %38258 = vmatmul.mubr.f32.vlgmr.msra.gmra.mrb[36].mxu0 %v42002_v51 }
 0x7af   : > { %39850 = vmatpush3.bf16.msra.mxu0 %v39834_v5  ;;  %38264 = vmatprep.mubr.msk.f32.mxu0 %vm41103_vm4, %v44600_v27 }
 0x7b0   : > { %39869 = vmatprep.subr.bf16.mxu0 %v44650_v34 }
 0x7b1   : > { %38300 = vmatmul.mubr.f32.vlgmr.msra.gmra.mrb[36].mxu1 %v42002_v51 }
 0x7b2   : > { %v38194_v24 = vpop.f32.mrb[34].mxu0  ;;  %39868 = vmatpush3.bf16.msra.mxu1 %v39852_v47  ;;  %38306 = vmatprep.mubr.msk.f32.mxu1 %vm41103_vm4, %v44600_v27 }
 0x7b3   : > { %v18900_v43 = vsel %vm44678_vm15, %v38194_v24, 0  ;;  %v17470_v59 = vpop.f32.mrb[35].mxu0  ;;  %39887 = vmatprep.subr.bf16.mxu1 %v44650_v34  ;;  %vm44694_vm15 = vmmov %vm44633_vm2 }
 0x7b4   : > { %v18906_v42 = vand.u32 4294901760, %v18900_v43  ;;  %v38224_v2 = vpop.f32.mrb[34].mxu1  ;;  %v18903_v9 = vand.u32 4294901760, %v17470_v59 }
 0x7b5   : > { %v19362_v5 = vsel %vm44679_vm14, %v38224_v2, 0  ;;  %v17965_v45 = vpop.f32.mrb[35].mxu1  ;;  %vm44695_vm14 = vmmov %vm44633_vm2 }
 0x7b6   : > { %v18988_v17 = vsub.f32 %v18900_v43, %v18906_v42  ;;  %v19368_v52 = vand.u32 4294901760, %v19362_v5  ;;  %v43142_v26 = vpack.c.bf16 %v18906_v42, %v18903_v9  ;;  %v18981_v16 = vsub.f32 %v17470_v59, %v18903_v9  ;;  %38265 = vmatmul.mubr.f32.vlgmr.msra.gmra.mrb[36].mxu0 %v42002_v51 }
 0x7b7   : > { %v19365_v47 = vand.u32 4294901760, %v17965_v45  ;;  %38313 = vmatprep.mubr.msk.f32.mxu0 %vm41103_vm4, %v44600_v27 }
 0x7b8   : > { %v18989_v29 = vand.u32 4294901760, %v18988_v17  ;;  %v19450_v25 = vsub.f32 %v19362_v5, %v19368_v52  ;;  %v18982_v40 = vand.u32 4294901760, %v18981_v16  ;;  %v39876_v30 = vpack.c.bf16 %v18988_v17, %v18981_v16  ;;  %39871 = vmatpush3.bf16.msra.mxu0 %v43142_v26 }
 0x7b9   : > { %v43148_v12 = vpack.c.bf16 %v19368_v52, %v19365_v47  ;;  %v19443_v44 = vsub.f32 %v17965_v45, %v19365_v47  ;;  %39872 = vmatprep.subr.bf16.mxu0 %v44650_v34  ;;  %38307 = vmatmul.mubr.f32.vlgmr.msra.gmra.mrb[36].mxu1 %v42002_v51  ;;  %v19823_v47 = vmul.f32 -0.17364818, %v42082_v48 }
 0x7ba   : > { %v18990_v35 = vsub.f32 %v18988_v17, %v18989_v29  ;;  %v19451_v32 = vand.u32 4294901760, %v19450_v25  ;;  %v18983_v18 = vsub.f32 %v18981_v16, %v18982_v40  ;;  %v39882_v61 = vpack.c.bf16 %v18989_v29, %v18982_v40  ;;  %38355 = vmatprep.mubr.msk.f32.mxu1 %vm41103_vm4, %v44600_v27 }
 0x7bb   : > { %v19444_v24 = vand.u32 4294901760, %v19443_v44  ;;  %v39894_v43 = vpack.c.bf16 %v19450_v25, %v19443_v44  ;;  %39889 = vmatpush3.bf16.msra.mxu1 %v43148_v12  ;;  %38314 = vmatmul.mubr.f32.vlgmr.msra.gmra.mrb[38].mxu0 %v42014_v58  ;;  %v19825_v29 = vmul.f32 -0.17364818, %v42089_v6  ;;  %vm19831_vm1 = vcmp.ge.f32.partialorder %v19823_v47, %v42892_v4 }
 0x7bc   : > { %v18991_v59 = vand.u32 4294901760, %v18990_v35  ;;  %v19452_v42 = vsub.f32 %v19450_v25, %v19451_v32  ;;  %v18984_v2 = vand.u32 4294901760, %v18983_v18  ;;  %39890 = vmatprep.subr.bf16.mxu1 %v44650_v34  ;;  %38320 = vmatprep.mubr.msk.f32.mxu0 %vm41103_vm4, %v44600_v27  ;;  %v19839_v25 = vsel %vm19831_vm1, %v41717_v41, 0.0  ;;  %v44682_v35 = vld [vmem:[#allocation16_spill] sm:$0xff]  ;;  %v44684_v18 = vld [vmem:[#allocation10_spill] sm:$0xff]  ;;  %vm44696_vm1 = vmmov %vm44633_vm2 }
 0x7bd   : > { %v19445_v9 = vsub.f32 %v19443_v44, %v19444_v24  ;;  %v39900_v5 = vpack.c.bf16 %v19451_v32, %v19444_v24  ;;  %vm19833_vm5 = vcmp.ge.f32.partialorder %v19825_v29, %v42896_v38  ;;  %v19848_v40 = vsel %vm44680_vm8, %v19839_v25, 0 }
 0x7be   : > { %v19453_v45 = vand.u32 4294901760, %v19452_v42  ;;  %38356 = vmatmul.mubr.f32.vlgmr.msra.gmra.mrb[38].mxu1 %v42014_v58  ;;  %v39873_v17 = vpack.c.bf16 %v18991_v59, %v18984_v2  ;;  %v19841_v4 = vsel %vm19833_vm5, %v41751_v1, 0.0  ;;  %v43190_v44 = vand.u32 4294901760, %v19848_v40 }
 0x7bf   : > { %v19446_v52 = vand.u32 4294901760, %v19445_v9  ;;  %38362 = vmatprep.mubr.msk.f32.mxu1 %vm41103_vm4, %v44600_v27  ;;  %v19851_v32 = vsel %vm44683_vm9, %v44682_v35, 0  ;;  %v20346_v24 = vsel %vm44685_vm0, %v44684_v18, 0  ;;  %vm44698_vm9 = vmmov %vm44685_vm0 }
 0x7c0   : > { %39874 = vmatpush3.bf16.msra.mxu0 %v39873_v17  ;;  %v43209_v59 = vand.u32 4294901760, %v20346_v24 }
 0x7c1   : > { %v39891_v16 = vpack.c.bf16 %v19453_v45, %v19446_v52  ;;  %39875 = vmatprep.subr.bf16.mxu0 %v44650_v34 }
 0x7c2   : > { %v20425_v45 = vsub.f32 %v20346_v24, %v43209_v59 }
 0x7c3   : > { %39892 = vmatpush3.bf16.msra.mxu1 %v39891_v16  ;;  %38321 = vmatmul.mubr.f32.vlgmr.msra.gmra.mrb[38].mxu0 %v42002_v51 }
 0x7c4   : > { %39893 = vmatprep.subr.bf16.mxu1 %v44650_v34  ;;  %39877 = vmatpush3.bf16.msra.mxu0 %v39876_v30  ;;  %v20343_v30 = vsel %vm44681_vm12, %v19841_v4, 0  ;;  %v20426_v16 = vand.u32 4294901760, %v20425_v45  ;;  %vm44697_vm12 = vmmov %vm44685_vm0 }
 0x7c5   : > { %38327 = vmatprep.mubr.msk.f32.mxu0 %vm41103_vm4, %v44600_v27  ;;  %39878 = vmatprep.subr.bf16.mxu0 %v44650_v34  ;;  %v43197_v38 = vand.u32 4294901760, %v20343_v30 }
 0x7c6   : > { %38363 = vmatmul.mubr.f32.vlgmr.msra.gmra.mrb[38].mxu1 %v42002_v51  ;;  %v20427_v4 = vsub.f32 %v20425_v45, %v20426_v16 }
 0x7c7   : > { %39895 = vmatpush3.bf16.msra.mxu1 %v39894_v43  ;;  %38369 = vmatprep.mubr.msk.f32.mxu1 %vm41103_vm4, %v44600_v27  ;;  %v43203_v43 = vand.u32 4294901760, %v19851_v32  ;;  %v20415_v42 = vsub.f32 %v20343_v30, %v43197_v38  ;;  %v44686_v30 = vld [vmem:[#allocation32_spill] sm:$0xff] }
 0x7c8   : > { %39896 = vmatprep.subr.bf16.mxu1 %v44650_v34  ;;  %vm44687_vm10 = vcmp.ge.f32.partialorder %v44686_v30, %v44665_v33  ;;  %v20841_v33 = vsel %vm44692_vm7, %v41870_v11, 0  ;;  %vm44707_vm7 = vmmov %vm44685_vm0 }
 0x7c9   : > { %v19930_v9 = vsub.f32 %v19851_v32, %v43203_v43  ;;  %v19843_v35 = vsel %vm44687_vm10, %v41909_v3, 0.0  ;;  %v44688_v32 = vld [vmem:[#allocation23_spill] sm:$0xff]  ;;  %vm44701_vm10 = vmmov %vm44685_vm0 }
 0x7ca   : > { %vm44689_vm11 = vcmp.ge.f32.partialorder %v44688_v32, %v44668_v53  ;;  %v20838_v24 = vsel %vm44690_vm6, %v19843_v35, 0 }
 0x7cb   : > { %38328 = vmatmul.mubr.f32.vlgmr.msra.gmra.mrb[38].mxu0 %v42005_v54  ;;  %v19931_v52 = vand.u32 4294901760, %v19930_v9  ;;  %v19845_v18 = vsel %vm44689_vm11, %v41914_v23, 0.0 }
 0x7cc   : > { %39880 = vmatpush3.bf16.msra.mxu0 %v43142_v26  ;;  %38334 = vmatprep.mubr.msk.f32.mxu0 %vm41103_vm4, %v44600_v27 }
 0x7cd   : > { %39881 = vmatprep.subr.bf16.mxu0 %v44650_v34  ;;  %v19932_v29 = vsub.f32 %v19930_v9, %v19931_v52 }
 0x7ce   : > { %38370 = vmatmul.mubr.f32.vlgmr.msra.gmra.mrb[38].mxu1 %v42005_v54 }
 0x7cf   : > { %39898 = vmatpush3.bf16.msra.mxu1 %v43148_v12  ;;  %38376 = vmatprep.mubr.msk.f32.mxu1 %vm41103_vm4, %v44600_v27 }
 0x7d0   : > { %39899 = vmatprep.subr.bf16.mxu1 %v44650_v34 }
 0x7d3   : > { %38335 = vmatmul.mubr.f32.vlgmr.msra.gmra.mrb[38].mxu0 %v42008_v62 }
 0x7d4   : > { %39883 = vmatpush3.bf16.msra.mxu0 %v39882_v61  ;;  %38341 = vmatprep.mubr.msk.f32.mxu0 %vm41103_vm4, %v44600_v27  ;;  %v19920_v61 = vsub.f32 %v19848_v40, %v43190_v44  ;;  %v20428_v40 = vand.u32 4294901760, %v20427_v4 }
 0x7d5   : > { %39884 = vmatprep.subr.bf16.mxu0 %v44650_v34 }
 0x7d6   : > { %38377 = vmatmul.mubr.f32.vlgmr.msra.gmra.mrb[38].mxu1 %v42008_v62  ;;  %v19921_v2 = vand.u32 4294901760, %v19920_v61 }
 0x7d7   : > { %39901 = vmatpush3.bf16.msra.mxu1 %v39900_v5  ;;  %38383 = vmatprep.mubr.msk.f32.mxu1 %vm41103_vm4, %v44600_v27  ;;  %v20416_v5 = vand.u32 4294901760, %v20415_v42 }
 0x7d8   : > { %39902 = vmatprep.subr.bf16.mxu1 %v44650_v34  ;;  %v19922_v17 = vsub.f32 %v19920_v61, %v19921_v2 }
 0x7da   : > { %v19923_v47 = vand.u32 4294901760, %v19922_v17 }
 0x7db   : > { %38342 = vmatmul.mubr.f32.vlgmr.msra.gmra.mrb[38].mxu0 %v42002_v51 }
 0x7dc   : > { %39886 = vmatpush3.bf16.msra.mxu0 %v43142_v26  ;;  %38348 = vmatprep.mubr.msk.f32.mxu0 %vm41103_vm4, %v44600_v27  ;;  %v20417_v26 = vsub.f32 %v20415_v42, %v20416_v5 }
 0x7dd   : > { %38393 = vmatprep.subr.mxu0 %v41260_v8 }
 0x7de   : > { %38384 = vmatmul.mubr.f32.vlgmr.msra.gmra.mrb[38].mxu1 %v42002_v51  ;;  %v20418_v25 = vand.u32 4294901760, %v20417_v26 }
 0x7df   : > { %39904 = vmatpush3.bf16.msra.mxu1 %v43148_v12  ;;  %38390 = vmatprep.mubr.msk.f32.mxu1 %vm41103_vm4, %v44600_v27  ;;  %v19933_v12 = vand.u32 4294901760, %v19932_v29 }
 0x7e0   : > { %38423 = vmatprep.subr.mxu1 %v41260_v8 }
 0x7e3   : > { %38349 = vmatmul.mubr.f32.vlgmr.msra.gmra.mrb[38].mxu0 %v42002_v51 }
 0x7e4   : > { %38395 = vmatprep.mubr.f32.mxu0 %v19923_v47 }
 0x7e5   : > { %38394 = vmatpush3.xpose.msra.mxu0 %v41260_v8 }
 0x7e6   : > { %38391 = vmatmul.mubr.f32.vlgmr.msra.gmra.mrb[38].mxu1 %v42002_v51  ;;  %38398 = vmatprep.subr.mxu0 %v41367_v19 }
 0x7e7   : > { %38425 = vmatprep.mubr.f32.mxu1 %v20418_v25 }
 0x7e8   : > { %38424 = vmatpush3.xpose.msra.mxu1 %v41260_v8  ;;  %38396 = vmatmul.mubr.f32.vlgmr.msra.gmra.mrb[40].mxu0 %v19933_v12 }
 0x7e9   : > { %38428 = vmatprep.subr.mxu1 %v41367_v19  ;;  %38400 = vmatprep.mubr.f32.mxu0 %v43190_v44 }
 0x7ea   : > { %38399 = vmatpush3.xpose.msra.mxu0 %v41367_v19 }
 0x7eb   : > { %38426 = vmatmul.mubr.f32.vlgmr.msra.gmra.mrb[40].mxu1 %v20428_v40  ;;  %38403 = vmatprep.subr.mxu0 %v41360_v13 }
 0x7ec   : > { %38430 = vmatprep.mubr.f32.mxu1 %v43197_v38  ;;  %38429 = vmatpush3.xpose.msra.mxu1 %v41367_v19 }
 0x7ed   : > { %38433 = vmatprep.subr.mxu1 %v41360_v13 }
 0x7f0   : > { %38401 = vmatmul.mubr.f32.vlgmr.msra.gmra.mrb[40].mxu0 %v43203_v43 }
 0x7f1   : > { %38405 = vmatprep.mubr.f32.mxu0 %v19920_v61  ;;  %38404 = vmatpush3.xpose.msra.mxu0 %v41360_v13  ;;  %v21333_v61 = vsel %vm44691_vm3, %v19845_v18, 0  ;;  %vm44706_vm3 = vmmov %vm44685_vm0 }
 0x7f2   : > { %38408 = vmatprep.subr.mxu0 %v41260_v8  ;;  %v43264_v53 = vand.u32 4294901760, %v21333_v61 }
 0x7f3   : > { %38431 = vmatmul.mubr.f32.vlgmr.msra.gmra.mrb[40].mxu1 %v43209_v59 }
 0x7f4   : > { %38435 = vmatprep.mubr.f32.mxu1 %v20415_v42  ;;  %38434 = vmatpush3.xpose.msra.mxu1 %v41360_v13  ;;  %v43258_v42 = vand.u32 4294901760, %v20838_v24 }
 0x7f5   : > { %38438 = vmatprep.subr.mxu1 %v41260_v8 }
 0x7f6   : > { %v20910_v11 = vsub.f32 %v20838_v24, %v43258_v42 }
 0x7f8   : > { %38406 = vmatmul.mubr.f32.vlgmr.msra.gmra.mrb[40].mxu0 %v19930_v9  ;;  %v43266_v9 = vand.u32 4294901760, %v20841_v33  ;;  %v20911_v17 = vand.u32 4294901760, %v20910_v11 }
 0x7f9   : > { %38410 = vmatprep.mubr.f32.mxu0 %v19921_v2  ;;  %38409 = vmatpush3.xpose.msra.mxu0 %v41260_v8  ;;  %v21336_v2 = vsel %vm44693_vm13, %v41789_v60, 0  ;;  %v21405_v60 = vsub.f32 %v21333_v61, %v43264_v53  ;;  %vm44708_vm13 = vmmov %vm44685_vm0 }
 0x7fa   : > { %38413 = vmatprep.subr.mxu0 %v41363_v14  ;;  %v20912_v47 = vsub.f32 %v20910_v11, %v20911_v17 }
 0x7fb   : > { %38436 = vmatmul.mubr.f32.vlgmr.msra.gmra.mrb[40].mxu1 %v20425_v45  ;;  %v20920_v45 = vsub.f32 %v20841_v33, %v43266_v9  ;;  %v21406_v26 = vand.u32 4294901760, %v21405_v60 }
 0x7fc   : > { %38440 = vmatprep.mubr.f32.mxu1 %v20416_v5  ;;  %38439 = vmatpush3.xpose.msra.mxu1 %v41260_v8  ;;  %v43272_v5 = vand.u32 4294901760, %v21336_v2  ;;  %v20913_v12 = vand.u32 4294901760, %v20912_v47 }
 0x7fd   : > { %38443 = vmatprep.subr.mxu1 %v41363_v14  ;;  %v21407_v25 = vsub.f32 %v21405_v60, %v21406_v26 }
 0x7ff   : > { %v21408_v40 = vand.u32 4294901760, %v21407_v25 }
 0x800   : > { %38411 = vmatmul.mubr.f32.vlgmr.msra.gmra.mrb[40].mxu0 %v19931_v52  ;;  %v21415_v52 = vsub.f32 %v21336_v2, %v43272_v5 }
 0x801   : > { %38415 = vmatprep.mubr.f32.mxu0 %v43190_v44  ;;  %38414 = vmatpush3.xpose.msra.mxu0 %v41363_v14 }
 0x802   : > { %38418 = vmatprep.subr.mxu0 %v41260_v8  ;;  %v21416_v29 = vand.u32 4294901760, %v21415_v52 }
 0x803   : > { %38441 = vmatmul.mubr.f32.vlgmr.msra.gmra.mrb[40].mxu1 %v20426_v16  ;;  %v20921_v16 = vand.u32 4294901760, %v20920_v45 }
 0x804   : > { %38445 = vmatprep.mubr.f32.mxu1 %v43197_v38  ;;  %38444 = vmatpush3.xpose.msra.mxu1 %v41363_v14 }
 0x805   : > { %38448 = vmatprep.subr.mxu1 %v41260_v8  ;;  %v20922_v4 = vsub.f32 %v20920_v45, %v20921_v16 }
 0x807   : > { %v20923_v30 = vand.u32 4294901760, %v20922_v4 }
 0x808   : > { %38416 = vmatmul.mubr.f32.vlgmr.msra.gmra.mrb[40].mxu0 %v43203_v43 }
 0x809   : > { %38420 = vmatprep.mubr.f32.mxu0 %v43190_v44  ;;  %38419 = vmatpush3.xpose.msra.mxu0 %v41260_v8  ;;  %v21417_v44 = vsub.f32 %v21415_v52, %v21416_v29 }
 0x80a   : > { %38453 = vmatprep.subr.mxu0 %v41260_v8 }
 0x80b   : > { %38446 = vmatmul.mubr.f32.vlgmr.msra.gmra.mrb[40].mxu1 %v43209_v59 }
 0x80c   : > { %38450 = vmatprep.mubr.f32.mxu1 %v43197_v38  ;;  %38449 = vmatpush3.xpose.msra.mxu1 %v41260_v8  ;;  %v21418_v38 = vand.u32 4294901760, %v21417_v44 }
 0x80d   : > { %38483 = vmatprep.subr.mxu1 %v41260_v8 }
 0x810   : > { %38421 = vmatmul.mubr.f32.vlgmr.msra.gmra.mrb[40].mxu0 %v43203_v43 }
 0x811   : > { %38454 = vmatpush3.xpose.msra.mxu0 %v41260_v8  ;;  %38455 = vmatprep.mubr.f32.mxu0 %v20913_v12 }
 0x812   : > { %38458 = vmatprep.subr.mxu0 %v41367_v19 }
 0x813   : > { %38451 = vmatmul.mubr.f32.vlgmr.msra.gmra.mrb[40].mxu1 %v43209_v59 }
 0x814   : > { %38484 = vmatpush3.xpose.msra.mxu1 %v41260_v8  ;;  %38485 = vmatprep.mubr.f32.mxu1 %v21408_v40 }
 0x815   : > { %38456 = vmatmul.mubr.f32.vlgmr.msra.gmra.mrb[42].mxu0 %v20923_v30  ;;  %38488 = vmatprep.subr.mxu1 %v41367_v19 }
 0x816   : > { %38460 = vmatprep.mubr.f32.mxu0 %v43258_v42  ;;  %38459 = vmatpush3.xpose.msra.mxu0 %v41367_v19 }
 0x817   : > { %38486 = vmatmul.mubr.f32.vlgmr.msra.gmra.mrb[42].mxu1 %v21418_v38  ;;  %38463 = vmatprep.subr.mxu0 %v41360_v13 }
 0x818   : > { %38490 = vmatprep.mubr.f32.mxu1 %v43264_v53  ;;  %38489 = vmatpush3.xpose.msra.mxu1 %v41367_v19 }
 0x819   : > { %38493 = vmatprep.subr.mxu1 %v41360_v13 }
 0x81d   : > { %38461 = vmatmul.mubr.f32.vlgmr.msra.gmra.mrb[42].mxu0 %v43266_v9 }
 0x81e   : > { %38465 = vmatprep.mubr.f32.mxu0 %v20910_v11  ;;  %38464 = vmatpush3.xpose.msra.mxu0 %v41360_v13 }
 0x81f   : > { %38491 = vmatmul.mubr.f32.vlgmr.msra.gmra.mrb[42].mxu1 %v43272_v5  ;;  %38468 = vmatprep.subr.mxu0 %v41260_v8 }
 0x820   : > { %38495 = vmatprep.mubr.f32.mxu1 %v21405_v60  ;;  %38494 = vmatpush3.xpose.msra.mxu1 %v41360_v13 }
 0x821   : > { %38498 = vmatprep.subr.mxu1 %v41260_v8 }
 0x825   : > { %38466 = vmatmul.mubr.f32.vlgmr.msra.gmra.mrb[42].mxu0 %v20920_v45 }
 0x826   : > { %38470 = vmatprep.mubr.f32.mxu0 %v20911_v17  ;;  %38469 = vmatpush3.xpose.msra.mxu0 %v41260_v8 }
 0x827   : > { %38496 = vmatmul.mubr.f32.vlgmr.msra.gmra.mrb[42].mxu1 %v21415_v52  ;;  %38473 = vmatprep.subr.mxu0 %v41363_v14 }
 0x828   : > { %38500 = vmatprep.mubr.f32.mxu1 %v21406_v26  ;;  %38499 = vmatpush3.xpose.msra.mxu1 %v41260_v8 }
 0x829   : > { %38503 = vmatprep.subr.mxu1 %v41363_v14 }
 0x82d   : > { %38471 = vmatmul.mubr.f32.vlgmr.msra.gmra.mrb[42].mxu0 %v20921_v16 }
 0x82e   : > { %38475 = vmatprep.mubr.f32.mxu0 %v43258_v42  ;;  %38474 = vmatpush3.xpose.msra.mxu0 %v41363_v14 }
 0x82f   : > { %38501 = vmatmul.mubr.f32.vlgmr.msra.gmra.mrb[42].mxu1 %v21416_v29  ;;  %38478 = vmatprep.subr.mxu0 %v41260_v8 }
 0x830   : > { %38505 = vmatprep.mubr.f32.mxu1 %v43264_v53  ;;  %38504 = vmatpush3.xpose.msra.mxu1 %v41363_v14 }
 0x831   : > { %38508 = vmatprep.subr.mxu1 %v41260_v8 }
 0x835   : > { %38476 = vmatmul.mubr.f32.vlgmr.msra.gmra.mrb[42].mxu0 %v43266_v9 }
 0x836   : > { %38480 = vmatprep.mubr.f32.mxu0 %v43258_v42  ;;  %38479 = vmatpush3.xpose.msra.mxu0 %v41260_v8 }
 0x837   : > { %38506 = vmatmul.mubr.f32.vlgmr.msra.gmra.mrb[42].mxu1 %v43272_v5  ;;  %39905 = vmatprep.subr.bf16.mxu0 %v44650_v34 }
 0x838   : > { %38510 = vmatprep.mubr.f32.mxu1 %v43264_v53  ;;  %38509 = vmatpush3.xpose.msra.mxu1 %v41260_v8 }
 0x839   : > { %39923 = vmatprep.subr.bf16.mxu1 %v44650_v34 }
 0x83d   : > { %38481 = vmatmul.mubr.f32.vlgmr.msra.gmra.mrb[42].mxu0 %v43266_v9 }
 0x83e   : > { %38517 = vmatprep.mubr.msk.f32.mxu0 %vm41103_vm4, %v44600_v27 }
 0x83f   : > { %38511 = vmatmul.mubr.f32.vlgmr.msra.gmra.mrb[42].mxu1 %v43272_v5 }
 0x840   : > { %38559 = vmatprep.mubr.msk.f32.mxu1 %vm41103_vm4, %v44600_v27 }
 0x889   : > { %v43328_v43 = vpop.f32.mrb[36].mxu0 }
 0x88a   : > { %v43332_v59 = vsub.f32 %v43052_v21, %v43328_v43  ;;  %v38266_v35 = vpop.f32.mrb[37].mxu0 }
 0x88c   : > { %v35271_v32 = vmul.f32 %v43332_v59, %v43332_v59  ;;  %v43336_v18 = vpop.f32.mrb[36].mxu1 }
 0x88d   : > { %v43340_v24 = vsub.f32 %v43060_v10, %v43336_v18  ;;  %v38308_v61 = vpop.f32.mrb[37].mxu1 }
 0x88e   : > { %v43343_v33 = vadd.f32 %v35271_v32, %v43067_v50 }
 0x88f   : > { %v35272_v42 = vmul.f32 %v43340_v24, %v43340_v24 }
 0x891   : > { %v43348_v21 = vadd.f32 %v35272_v42, %v43072_v31 }
 0x8b6   : > { %v43350_v2 = vpop.f32.mrb[38].mxu0 }
 0x8b7   : > { %v43354_v53 = vsub.f32 %v43074_v46, %v43350_v2  ;;  %v38350_v9 = vpop.f32.mrb[39].mxu0 }
 0x8b9   : > { %v43356_v11 = vpop.f32.mrb[38].mxu1  ;;  %v35273_v10 = vmul.f32 %v43354_v53, %v43354_v53 }
 0x8ba   : > { %v43362_v50 = vsub.f32 %v43080_v36, %v43356_v11  ;;  %v38392_v5 = vpop.f32.mrb[39].mxu1 }
 0x8bb   : > { %v43365_v31 = vadd.f32 %v35273_v10, %v43089_v39 }
 0x8bc   : > { %v35274_v60 = vmul.f32 %v43362_v50, %v43362_v50 }
 0x8be   : > { %v43370_v46 = vadd.f32 %v35274_v60, %v43094_v49 }
 0x8e3   : > { %v38422_v45 = vpop.f32.mrb[40].mxu0 }
 0x8e4   : > { %v21828_v17 = vsel %vm44633_vm2, %v38422_v45, 0  ;;  %v20332_v52 = vpop.f32.mrb[41].mxu0  ;;  %vm44709_vm2 = vmmov %vm44685_vm0 }
 0x8e5   : > { %v21834_v26 = vand.u32 4294901760, %v21828_v17  ;;  %v21831_v47 = vand.u32 4294901760, %v20332_v52 }
 0x8e6   : > { %v38452_v16 = vpop.f32.mrb[40].mxu1 }
 0x8e7   : > { %v22290_v36 = vsel %vm44694_vm15, %v38452_v16, 0  ;;  %v20827_v29 = vpop.f32.mrb[41].mxu1  ;;  %v21916_v25 = vsub.f32 %v21828_v17, %v21834_v26  ;;  %v39906_v39 = vpack.c.bf16 %v21834_v26, %v21831_v47  ;;  %v21909_v12 = vsub.f32 %v20332_v52, %v21831_v47  ;;  %vm44710_vm15 = vmmov %vm44696_vm1 }
 0x8e8   : > { %v22296_v4 = vand.u32 4294901760, %v22290_v36  ;;  %v22293_v44 = vand.u32 4294901760, %v20827_v29 }
 0x8e9   : > { %v21917_v40 = vand.u32 4294901760, %v21916_v25  ;;  %v21910_v38 = vand.u32 4294901760, %v21909_v12  ;;  %v39912_v49 = vpack.c.bf16 %v21916_v25, %v21909_v12  ;;  %39907 = vmatpush3.bf16.msra.mxu0 %v39906_v39 }
 0x8ea   : > { %v22378_v30 = vsub.f32 %v22290_v36, %v22296_v4  ;;  %v39924_v35 = vpack.c.bf16 %v22296_v4, %v22293_v44  ;;  %v22371_v32 = vsub.f32 %v20827_v29, %v22293_v44  ;;  %39908 = vmatprep.subr.bf16.mxu0 %v44650_v34 }
 0x8eb   : > { %v21918_v61 = vsub.f32 %v21916_v25, %v21917_v40  ;;  %v21911_v9 = vsub.f32 %v21909_v12, %v21910_v38  ;;  %v39918_v10 = vpack.c.bf16 %v21917_v40, %v21910_v38 }
 0x8ec   : > { %v22379_v42 = vand.u32 4294901760, %v22378_v30  ;;  %v22372_v5 = vand.u32 4294901760, %v22371_v32  ;;  %v39930_v60 = vpack.c.bf16 %v22378_v30, %v22371_v32  ;;  %39925 = vmatpush3.bf16.msra.mxu1 %v39924_v35  ;;  %38518 = vmatmul.mubr.f32.vlgmr.msra.gmra.mrb[44].mxu0 %v42014_v58 }
 0x8ed   : > { %v21919_v45 = vand.u32 4294901760, %v21918_v61  ;;  %v21912_v52 = vand.u32 4294901760, %v21911_v9  ;;  %39926 = vmatprep.subr.bf16.mxu1 %v44650_v34  ;;  %38524 = vmatprep.mubr.msk.f32.mxu0 %vm41103_vm4, %v44600_v27 }
 0x8ee   : > { %v22380_v17 = vsub.f32 %v22378_v30, %v22379_v42  ;;  %v22373_v26 = vsub.f32 %v22371_v32, %v22372_v5  ;;  %v39936_v16 = vpack.c.bf16 %v22379_v42, %v22372_v5 }
 0x8ef   : > { %38560 = vmatmul.mubr.f32.vlgmr.msra.gmra.mrb[44].mxu1 %v42014_v58  ;;  %v39909_v36 = vpack.c.bf16 %v21919_v45, %v21912_v52 }
 0x8f0   : > { %v22381_v47 = vand.u32 4294901760, %v22380_v17  ;;  %v22374_v29 = vand.u32 4294901760, %v22373_v26  ;;  %38566 = vmatprep.mubr.msk.f32.mxu1 %vm41103_vm4, %v44600_v27 }
 0x8f1   : > { %39910 = vmatpush3.bf16.msra.mxu0 %v39909_v36 }
 0x8f2   : > { %v39927_v25 = vpack.c.bf16 %v22381_v47, %v22374_v29  ;;  %39911 = vmatprep.subr.bf16.mxu0 %v44650_v34 }
 0x8f4   : > { %39928 = vmatpush3.bf16.msra.mxu1 %v39927_v25  ;;  %38525 = vmatmul.mubr.f32.vlgmr.msra.gmra.mrb[44].mxu0 %v42002_v51 }
 0x8f5   : > { %39929 = vmatprep.subr.bf16.mxu1 %v44650_v34  ;;  %39913 = vmatpush3.bf16.msra.mxu0 %v39912_v49 }
 0x8f6   : > { %38531 = vmatprep.mubr.msk.f32.mxu0 %vm41103_vm4, %v44600_v27  ;;  %39914 = vmatprep.subr.bf16.mxu0 %v44650_v34 }
 0x8f7   : > { %38567 = vmatmul.mubr.f32.vlgmr.msra.gmra.mrb[44].mxu1 %v42002_v51 }
 0x8f8   : > { %39931 = vmatpush3.bf16.msra.mxu1 %v39930_v60  ;;  %38573 = vmatprep.mubr.msk.f32.mxu1 %vm41103_vm4, %v44600_v27 }
 0x8f9   : > { %39932 = vmatprep.subr.bf16.mxu1 %v44650_v34 }
 0x8fc   : > { %38532 = vmatmul.mubr.f32.vlgmr.msra.gmra.mrb[44].mxu0 %v42005_v54 }
 0x8fd   : > { %39916 = vmatpush3.bf16.msra.mxu0 %v39906_v39  ;;  %38538 = vmatprep.mubr.msk.f32.mxu0 %vm41103_vm4, %v44600_v27 }
 0x8fe   : > { %39917 = vmatprep.subr.bf16.mxu0 %v44650_v34 }
 0x8ff   : > { %38574 = vmatmul.mubr.f32.vlgmr.msra.gmra.mrb[44].mxu1 %v42005_v54 }
 0x900   : > { %39934 = vmatpush3.bf16.msra.mxu1 %v39924_v35  ;;  %38580 = vmatprep.mubr.msk.f32.mxu1 %vm41103_vm4, %v44600_v27 }
 0x901   : > { %39935 = vmatprep.subr.bf16.mxu1 %v44650_v34 }
 0x904   : > { %38539 = vmatmul.mubr.f32.vlgmr.msra.gmra.mrb[44].mxu0 %v42008_v62 }
 0x905   : > { %39919 = vmatpush3.bf16.msra.mxu0 %v39918_v10  ;;  %38545 = vmatprep.mubr.msk.f32.mxu0 %vm41103_vm4, %v44600_v27 }
 0x906   : > { %39920 = vmatprep.subr.bf16.mxu0 %v44650_v34 }
 0x907   : > { %38581 = vmatmul.mubr.f32.vlgmr.msra.gmra.mrb[44].mxu1 %v42008_v62 }
 0x908   : > { %39937 = vmatpush3.bf16.msra.mxu1 %v39936_v16  ;;  %38587 = vmatprep.mubr.msk.f32.mxu1 %vm41103_vm4, %v44600_v27 }
 0x909   : > { %39938 = vmatprep.subr.bf16.mxu1 %v44650_v34 }
 0x90c   : > { %38546 = vmatmul.mubr.f32.vlgmr.msra.gmra.mrb[44].mxu0 %v42002_v51 }
 0x90d   : > { %39922 = vmatpush3.bf16.msra.mxu0 %v39906_v39  ;;  %38552 = vmatprep.mubr.msk.f32.mxu0 %vm41103_vm4, %v44600_v27 }
 0x90e   : > { %39941 = vmatprep.subr.bf16.mxu0 %v44650_v34 }
 0x90f   : > { %38588 = vmatmul.mubr.f32.vlgmr.msra.gmra.mrb[44].mxu1 %v42002_v51 }
 0x910   : > { %v38482_v4 = vpop.f32.mrb[42].mxu0  ;;  %39940 = vmatpush3.bf16.msra.mxu1 %v39924_v35  ;;  %38594 = vmatprep.mubr.msk.f32.mxu1 %vm41103_vm4, %v44600_v27 }
 0x911   : > { %v22752_v12 = vsel %vm44695_vm14, %v38482_v4, 0  ;;  %v21322_v44 = vpop.f32.mrb[43].mxu0  ;;  %39959 = vmatprep.subr.bf16.mxu1 %v44650_v34  ;;  %vm44711_vm14 = vmmov %vm44696_vm1 }
 0x912   : > { %v22758_v40 = vand.u32 4294901760, %v22752_v12  ;;  %v38512_v30 = vpop.f32.mrb[42].mxu1  ;;  %v22755_v38 = vand.u32 4294901760, %v21322_v44 }
 0x913   : > { %v23214_v39 = vsel %vm44696_vm1, %v38512_v30, 0  ;;  %v21817_v49 = vpop.f32.mrb[43].mxu1 }
 0x914   : > { %v22840_v32 = vsub.f32 %v22752_v12, %v22758_v40  ;;  %v23220_v61 = vand.u32 4294901760, %v23214_v39  ;;  %v43418_v42 = vpack.c.bf16 %v22758_v40, %v22755_v38  ;;  %v22833_v9 = vsub.f32 %v21322_v44, %v22755_v38  ;;  %38553 = vmatmul.mubr.f32.vlgmr.msra.gmra.mrb[44].mxu0 %v42002_v51 }
 0x915   : > { %v23217_v35 = vand.u32 4294901760, %v21817_v49  ;;  %38601 = vmatprep.mubr.msk.f32.mxu0 %vm41103_vm4, %v44600_v27 }
 0x916   : > { %v22841_v10 = vand.u32 4294901760, %v22840_v32  ;;  %v23302_v5 = vsub.f32 %v23214_v39, %v23220_v61  ;;  %v22834_v60 = vand.u32 4294901760, %v22833_v9  ;;  %v39948_v45 = vpack.c.bf16 %v22840_v32, %v22833_v9  ;;  %39943 = vmatpush3.bf16.msra.mxu0 %v43418_v42 }
 0x917   : > { %v43424_v17 = vpack.c.bf16 %v23220_v61, %v23217_v35  ;;  %v23295_v52 = vsub.f32 %v21817_v49, %v23217_v35  ;;  %39944 = vmatprep.subr.bf16.mxu0 %v44650_v34  ;;  %38595 = vmatmul.mubr.f32.vlgmr.msra.gmra.mrb[44].mxu1 %v42002_v51  ;;  %v23675_v61 = vmul.f32 -0.5, %v42082_v48 }
 0x918   : > { %v22842_v26 = vsub.f32 %v22840_v32, %v22841_v10  ;;  %v23303_v16 = vand.u32 4294901760, %v23302_v5  ;;  %v22835_v47 = vsub.f32 %v22833_v9, %v22834_v60  ;;  %v39954_v36 = vpack.c.bf16 %v22841_v10, %v22834_v60  ;;  %38643 = vmatprep.mubr.msk.f32.mxu1 %vm41103_vm4, %v44600_v27 }
 0x919   : > { %v23296_v29 = vand.u32 4294901760, %v23295_v52  ;;  %v39966_v25 = vpack.c.bf16 %v23302_v5, %v23295_v52  ;;  %39961 = vmatpush3.bf16.msra.mxu1 %v43424_v17  ;;  %38602 = vmatmul.mubr.f32.vlgmr.msra.gmra.mrb[46].mxu0 %v42014_v58  ;;  %v23677_v9 = vmul.f32 -0.5, %v42089_v6  ;;  %vm23683_vm5 = vcmp.ge.f32.partialorder %v23675_v61, %v42606_v15 }
 0x91a   : > { %v22843_v4 = vand.u32 4294901760, %v22842_v26  ;;  %v23304_v12 = vsub.f32 %v23302_v5, %v23303_v16  ;;  %v22836_v44 = vand.u32 4294901760, %v22835_v47  ;;  %39962 = vmatprep.subr.bf16.mxu1 %v44650_v34  ;;  %38608 = vmatprep.mubr.msk.f32.mxu0 %vm41103_vm4, %v44600_v27  ;;  %v23691_v35 = vsel %vm23683_vm5, %v41717_v41, 0.0  ;;  %v44700_v26 = vld [vmem:[#allocation11_spill] sm:$0xff]  ;;  %vm44712_vm5 = vmmov %vm44696_vm1 }
 0x91b   : > { %v23297_v40 = vsub.f32 %v23295_v52, %v23296_v29  ;;  %v39972_v30 = vpack.c.bf16 %v23303_v16, %v23296_v29  ;;  %vm23685_vm8 = vcmp.ge.f32.partialorder %v23677_v9, %v42610_v22  ;;  %v23700_v10 = vsel %vm44697_vm12, %v23691_v35, 0 }
 0x91c   : > { %v23305_v38 = vand.u32 4294901760, %v23304_v12  ;;  %38644 = vmatmul.mubr.f32.vlgmr.msra.gmra.mrb[46].mxu1 %v42014_v58  ;;  %v39945_v39 = vpack.c.bf16 %v22843_v4, %v22836_v44  ;;  %v23693_v15 = vsel %vm23685_vm8, %v41751_v1, 0.0  ;;  %v43466_v60 = vand.u32 4294901760, %v23700_v10 }
 0x91d   : > { %v23298_v49 = vand.u32 4294901760, %v23297_v40  ;;  %38650 = vmatprep.mubr.msk.f32.mxu1 %vm41103_vm4, %v44600_v27  ;;  %v24195_v5 = vsel %vm44698_vm9, %v23693_v15, 0  ;;  %v24198_v16 = vsel %vm44701_vm10, %v44700_v26, 0  ;;  %v44702_v15 = vld [vmem:[#allocation33_spill] sm:$0xff]  ;;  %vm44713_vm9 = vmmov %vm44685_vm0 }
 0x91e   : > { %39946 = vmatpush3.bf16.msra.mxu0 %v39945_v39  ;;  %v43473_v22 = vand.u32 4294901760, %v24195_v5  ;;  %v43485_v29 = vand.u32 4294901760, %v24198_v16  ;;  %vm44703_vm11 = vcmp.ge.f32.partialorder %v44702_v15, %v44641_v63  ;;  %v24693_v63 = vsel %vm44708_vm13, %v41876_v56, 0  ;;  %vm44715_vm10 = vmmov %vm44685_vm0 }
 0x91f   : > { %v39963_v32 = vpack.c.bf16 %v23305_v38, %v23298_v49  ;;  %39947 = vmatprep.subr.bf16.mxu0 %v44650_v34  ;;  %vm44723_vm13 = vmmov %vm44685_vm0 }
 0x920   : > { %v24277_v40 = vsub.f32 %v24198_v16, %v43485_v29 }
 0x921   : > { %39964 = vmatpush3.bf16.msra.mxu1 %v39963_v32  ;;  %38609 = vmatmul.mubr.f32.vlgmr.msra.gmra.mrb[46].mxu0 %v42002_v51 }
 0x922   : > { %39965 = vmatprep.subr.bf16.mxu1 %v44650_v34  ;;  %39949 = vmatpush3.bf16.msra.mxu0 %v39948_v45  ;;  %v44699_v45 = vld [vmem:[#allocation17_spill] sm:$0xff]  ;;  %v24278_v39 = vand.u32 4294901760, %v24277_v40 }
 0x923   : > { %38615 = vmatprep.mubr.msk.f32.mxu0 %vm41103_vm4, %v44600_v27  ;;  %39950 = vmatprep.subr.bf16.mxu0 %v44650_v34  ;;  %v23703_v52 = vsel %vm44685_vm0, %v44699_v45, 0 }
 0x924   : > { %38651 = vmatmul.mubr.f32.vlgmr.msra.gmra.mrb[46].mxu1 %v42002_v51  ;;  %v43479_v47 = vand.u32 4294901760, %v23703_v52  ;;  %v24279_v9 = vsub.f32 %v24277_v40, %v24278_v39 }
 0x925   : > { %39967 = vmatpush3.bf16.msra.mxu1 %v39966_v25  ;;  %38657 = vmatprep.mubr.msk.f32.mxu1 %vm41103_vm4, %v44600_v27  ;;  %v24267_v25 = vsub.f32 %v24195_v5, %v43473_v22  ;;  %v44704_v5 = vld [vmem:[#allocation22_spill] sm:$0xff] }
 0x926   : > { %39968 = vmatprep.subr.bf16.mxu1 %v44650_v34  ;;  %v23782_v12 = vsub.f32 %v23703_v52, %v43479_v47  ;;  %v24280_v35 = vand.u32 4294901760, %v24279_v9  ;;  %vm44705_vm6 = vcmp.ge.f32.partialorder %v44704_v5, %v44644_v37 }
 0x927   : > { %v24268_v44 = vand.u32 4294901760, %v24267_v25  ;;  %v23697_v45 = vsel %vm44705_vm6, %v41914_v23, 0.0 }
 0x928   : > { %v23783_v38 = vand.u32 4294901760, %v23782_v12  ;;  %v25185_v26 = vsel %vm44707_vm7, %v23697_v45, 0  ;;  %vm44722_vm7 = vmmov %vm44685_vm0 }
 0x929   : > { %38616 = vmatmul.mubr.f32.vlgmr.msra.gmra.mrb[46].mxu0 %v42005_v54  ;;  %v43540_v37 = vand.u32 4294901760, %v25185_v26 }
 0x92a   : > { %39952 = vmatpush3.bf16.msra.mxu0 %v43418_v42  ;;  %38622 = vmatprep.mubr.msk.f32.mxu0 %vm41103_vm4, %v44600_v27  ;;  %v23784_v32 = vsub.f32 %v23782_v12, %v23783_v38 }
 0x92b   : > { %39953 = vmatprep.subr.bf16.mxu0 %v44650_v34 }
 0x92c   : > { %38658 = vmatmul.mubr.f32.vlgmr.msra.gmra.mrb[46].mxu1 %v42005_v54 }
 0x92d   : > { %39970 = vmatpush3.bf16.msra.mxu1 %v43424_v17  ;;  %38664 = vmatprep.mubr.msk.f32.mxu1 %vm41103_vm4, %v44600_v27 }
 0x92e   : > { %39971 = vmatprep.subr.bf16.mxu1 %v44650_v34 }
 0x931   : > { %38623 = vmatmul.mubr.f32.vlgmr.msra.gmra.mrb[46].mxu0 %v42008_v62 }
 0x932   : > { %39955 = vmatpush3.bf16.msra.mxu0 %v39954_v36  ;;  %38629 = vmatprep.mubr.msk.f32.mxu0 %vm41103_vm4, %v44600_v27  ;;  %v23772_v36 = vsub.f32 %v23700_v10, %v43466_v60  ;;  %v23695_v10 = vsel %vm44703_vm11, %v41909_v3, 0.0  ;;  %vm44717_vm11 = vmmov %vm44685_vm0 }
 0x933   : > { %39956 = vmatprep.subr.bf16.mxu0 %v44650_v34  ;;  %v24690_v52 = vsel %vm44706_vm3, %v23695_v10, 0 }
 0x934   : > { %38665 = vmatmul.mubr.f32.vlgmr.msra.gmra.mrb[46].mxu1 %v42008_v62  ;;  %v23773_v4 = vand.u32 4294901760, %v23772_v36  ;;  %v43534_v16 = vand.u32 4294901760, %v24690_v52 }
 0x935   : > { %39973 = vmatpush3.bf16.msra.mxu1 %v39972_v30  ;;  %38671 = vmatprep.mubr.msk.f32.mxu1 %vm41103_vm4, %v44600_v27 }
 0x936   : > { %39974 = vmatprep.subr.bf16.mxu1 %v44650_v34  ;;  %v23774_v30 = vsub.f32 %v23772_v36, %v23773_v4  ;;  %v24762_v56 = vsub.f32 %v24690_v52, %v43534_v16 }
 0x938   : > { %v23775_v49 = vand.u32 4294901760, %v23774_v30 }
 0x939   : > { %38630 = vmatmul.mubr.f32.vlgmr.msra.gmra.mrb[46].mxu0 %v42002_v51 }
 0x93a   : > { %39958 = vmatpush3.bf16.msra.mxu0 %v43418_v42  ;;  %38636 = vmatprep.mubr.msk.f32.mxu0 %vm41103_vm4, %v44600_v27  ;;  %v24269_v42 = vsub.f32 %v24267_v25, %v24268_v44 }
 0x93b   : > { %38681 = vmatprep.subr.mxu0 %v41260_v8 }
 0x93c   : > { %38672 = vmatmul.mubr.f32.vlgmr.msra.gmra.mrb[46].mxu1 %v42002_v51  ;;  %v24270_v61 = vand.u32 4294901760, %v24269_v42 }
 0x93d   : > { %39976 = vmatpush3.bf16.msra.mxu1 %v43424_v17  ;;  %38678 = vmatprep.mubr.msk.f32.mxu1 %vm41103_vm4, %v44600_v27  ;;  %v23785_v17 = vand.u32 4294901760, %v23784_v32 }
 0x93e   : > { %38711 = vmatprep.subr.mxu1 %v41260_v8 }
 0x941   : > { %38637 = vmatmul.mubr.f32.vlgmr.msra.gmra.mrb[46].mxu0 %v42002_v51 }
 0x942   : > { %38683 = vmatprep.mubr.f32.mxu0 %v23775_v49 }
 0x943   : > { %38682 = vmatpush3.xpose.msra.mxu0 %v41260_v8 }
 0x944   : > { %38679 = vmatmul.mubr.f32.vlgmr.msra.gmra.mrb[46].mxu1 %v42002_v51  ;;  %38686 = vmatprep.subr.mxu0 %v41367_v19 }
 0x945   : > { %38713 = vmatprep.mubr.f32.mxu1 %v24270_v61 }
 0x946   : > { %38712 = vmatpush3.xpose.msra.mxu1 %v41260_v8  ;;  %38684 = vmatmul.mubr.f32.vlgmr.msra.gmra.mrb[48].mxu0 %v23785_v17 }
 0x947   : > { %38716 = vmatprep.subr.mxu1 %v41367_v19  ;;  %38688 = vmatprep.mubr.f32.mxu0 %v43466_v60 }
 0x948   : > { %38687 = vmatpush3.xpose.msra.mxu0 %v41367_v19 }
 0x949   : > { %38714 = vmatmul.mubr.f32.vlgmr.msra.gmra.mrb[48].mxu1 %v24280_v35  ;;  %38691 = vmatprep.subr.mxu0 %v41360_v13 }
 0x94a   : > { %38718 = vmatprep.mubr.f32.mxu1 %v43473_v22  ;;  %38717 = vmatpush3.xpose.msra.mxu1 %v41367_v19 }
 0x94b   : > { %38721 = vmatprep.subr.mxu1 %v41360_v13 }
 0x94e   : > { %38689 = vmatmul.mubr.f32.vlgmr.msra.gmra.mrb[48].mxu0 %v43479_v47 }
 0x94f   : > { %38693 = vmatprep.mubr.f32.mxu0 %v23772_v36  ;;  %38692 = vmatpush3.xpose.msra.mxu0 %v41360_v13  ;;  %v25188_v36 = vsel %vm44709_vm2, %v41794_v28, 0  ;;  %v25257_v28 = vsub.f32 %v25185_v26, %v43540_v37  ;;  %vm44724_vm2 = vmmov %vm44685_vm0 }
 0x950   : > { %38696 = vmatprep.subr.mxu0 %v41260_v8 }
 0x951   : > { %38719 = vmatmul.mubr.f32.vlgmr.msra.gmra.mrb[48].mxu1 %v43485_v29  ;;  %v25258_v30 = vand.u32 4294901760, %v25257_v28 }
 0x952   : > { %38723 = vmatprep.mubr.f32.mxu1 %v24267_v25  ;;  %38722 = vmatpush3.xpose.msra.mxu1 %v41360_v13  ;;  %v43542_v25 = vand.u32 4294901760, %v24693_v63 }
 0x953   : > { %38726 = vmatprep.subr.mxu1 %v41260_v8  ;;  %v25259_v49 = vsub.f32 %v25257_v28, %v25258_v30 }
 0x955   : > { %v25260_v9 = vand.u32 4294901760, %v25259_v49 }
 0x956   : > { %38694 = vmatmul.mubr.f32.vlgmr.msra.gmra.mrb[48].mxu0 %v23782_v12  ;;  %v24772_v12 = vsub.f32 %v24693_v63, %v43542_v25 }
 0x957   : > { %38698 = vmatprep.mubr.f32.mxu0 %v23773_v4  ;;  %38697 = vmatpush3.xpose.msra.mxu0 %v41260_v8  ;;  %v43548_v4 = vand.u32 4294901760, %v25188_v36 }
 0x958   : > { %38701 = vmatprep.subr.mxu0 %v41363_v14 }
 0x959   : > { %38724 = vmatmul.mubr.f32.vlgmr.msra.gmra.mrb[48].mxu1 %v24277_v40  ;;  %v25267_v40 = vsub.f32 %v25188_v36, %v43548_v4 }
 0x95a   : > { %38728 = vmatprep.mubr.f32.mxu1 %v24268_v44  ;;  %38727 = vmatpush3.xpose.msra.mxu1 %v41260_v8  ;;  %v24763_v44 = vand.u32 4294901760, %v24762_v56 }
 0x95b   : > { %38731 = vmatprep.subr.mxu1 %v41363_v14 }
 0x95c   : > { %v24764_v42 = vsub.f32 %v24762_v56, %v24763_v44 }
 0x95e   : > { %38699 = vmatmul.mubr.f32.vlgmr.msra.gmra.mrb[48].mxu0 %v23783_v38  ;;  %v24773_v38 = vand.u32 4294901760, %v24772_v12  ;;  %v24765_v61 = vand.u32 4294901760, %v24764_v42 }
 0x95f   : > { %38703 = vmatprep.mubr.f32.mxu0 %v43466_v60  ;;  %38702 = vmatpush3.xpose.msra.mxu0 %v41363_v14 }
 0x960   : > { %38706 = vmatprep.subr.mxu0 %v41260_v8  ;;  %v24774_v32 = vsub.f32 %v24772_v12, %v24773_v38 }
 0x961   : > { %38729 = vmatmul.mubr.f32.vlgmr.msra.gmra.mrb[48].mxu1 %v24278_v39  ;;  %v25268_v39 = vand.u32 4294901760, %v25267_v40 }
 0x962   : > { %38733 = vmatprep.mubr.f32.mxu1 %v43473_v22  ;;  %38732 = vmatpush3.xpose.msra.mxu1 %v41363_v14  ;;  %v24775_v17 = vand.u32 4294901760, %v24774_v32 }
 0x963   : > { %38736 = vmatprep.subr.mxu1 %v41260_v8 }
 0x966   : > { %38704 = vmatmul.mubr.f32.vlgmr.msra.gmra.mrb[48].mxu0 %v43479_v47 }
 0x967   : > { %38708 = vmatprep.mubr.f32.mxu0 %v43466_v60  ;;  %38707 = vmatpush3.xpose.msra.mxu0 %v41260_v8  ;;  %v25269_v60 = vsub.f32 %v25267_v40, %v25268_v39 }
 0x968   : > { %38741 = vmatprep.subr.mxu0 %v41260_v8 }
 0x969   : > { %38734 = vmatmul.mubr.f32.vlgmr.msra.gmra.mrb[48].mxu1 %v43485_v29 }
 0x96a   : > { %38738 = vmatprep.mubr.f32.mxu1 %v43473_v22  ;;  %38737 = vmatpush3.xpose.msra.mxu1 %v41260_v8  ;;  %v25270_v22 = vand.u32 4294901760, %v25269_v60 }
 0x96b   : > { %38771 = vmatprep.subr.mxu1 %v41260_v8 }
 0x96e   : > { %38709 = vmatmul.mubr.f32.vlgmr.msra.gmra.mrb[48].mxu0 %v43479_v47 }
 0x96f   : > { %38742 = vmatpush3.xpose.msra.mxu0 %v41260_v8  ;;  %38743 = vmatprep.mubr.f32.mxu0 %v24765_v61 }
 0x970   : > { %38746 = vmatprep.subr.mxu0 %v41367_v19 }
 0x971   : > { %38739 = vmatmul.mubr.f32.vlgmr.msra.gmra.mrb[48].mxu1 %v43485_v29 }
 0x972   : > { %38772 = vmatpush3.xpose.msra.mxu1 %v41260_v8  ;;  %38773 = vmatprep.mubr.f32.mxu1 %v25260_v9 }
 0x973   : > { %38744 = vmatmul.mubr.f32.vlgmr.msra.gmra.mrb[50].mxu0 %v24775_v17  ;;  %38776 = vmatprep.subr.mxu1 %v41367_v19 }
 0x974   : > { %38748 = vmatprep.mubr.f32.mxu0 %v43534_v16  ;;  %38747 = vmatpush3.xpose.msra.mxu0 %v41367_v19 }
 0x975   : > { %38774 = vmatmul.mubr.f32.vlgmr.msra.gmra.mrb[50].mxu1 %v25270_v22  ;;  %38751 = vmatprep.subr.mxu0 %v41360_v13 }
 0x976   : > { %38778 = vmatprep.mubr.f32.mxu1 %v43540_v37  ;;  %38777 = vmatpush3.xpose.msra.mxu1 %v41367_v19 }
 0x977   : > { %38781 = vmatprep.subr.mxu1 %v41360_v13 }
 0x97b   : > { %38749 = vmatmul.mubr.f32.vlgmr.msra.gmra.mrb[50].mxu0 %v43542_v25 }
 0x97c   : > { %38753 = vmatprep.mubr.f32.mxu0 %v24762_v56  ;;  %38752 = vmatpush3.xpose.msra.mxu0 %v41360_v13 }
 0x97d   : > { %38779 = vmatmul.mubr.f32.vlgmr.msra.gmra.mrb[50].mxu1 %v43548_v4  ;;  %38756 = vmatprep.subr.mxu0 %v41260_v8 }
 0x97e   : > { %38783 = vmatprep.mubr.f32.mxu1 %v25257_v28  ;;  %38782 = vmatpush3.xpose.msra.mxu1 %v41360_v13 }
 0x97f   : > { %38786 = vmatprep.subr.mxu1 %v41260_v8 }
 0x983   : > { %38754 = vmatmul.mubr.f32.vlgmr.msra.gmra.mrb[50].mxu0 %v24772_v12 }
 0x984   : > { %38758 = vmatprep.mubr.f32.mxu0 %v24763_v44  ;;  %38757 = vmatpush3.xpose.msra.mxu0 %v41260_v8 }
 0x985   : > { %38784 = vmatmul.mubr.f32.vlgmr.msra.gmra.mrb[50].mxu1 %v25267_v40  ;;  %38761 = vmatprep.subr.mxu0 %v41363_v14 }
 0x986   : > { %38788 = vmatprep.mubr.f32.mxu1 %v25258_v30  ;;  %38787 = vmatpush3.xpose.msra.mxu1 %v41260_v8 }
 0x987   : > { %38791 = vmatprep.subr.mxu1 %v41363_v14 }
 0x98b   : > { %38759 = vmatmul.mubr.f32.vlgmr.msra.gmra.mrb[50].mxu0 %v24773_v38 }
 0x98c   : > { %38763 = vmatprep.mubr.f32.mxu0 %v43534_v16  ;;  %38762 = vmatpush3.xpose.msra.mxu0 %v41363_v14 }
 0x98d   : > { %38789 = vmatmul.mubr.f32.vlgmr.msra.gmra.mrb[50].mxu1 %v25268_v39  ;;  %38766 = vmatprep.subr.mxu0 %v41260_v8 }
 0x98e   : > { %38793 = vmatprep.mubr.f32.mxu1 %v43540_v37  ;;  %38792 = vmatpush3.xpose.msra.mxu1 %v41363_v14 }
 0x98f   : > { %38796 = vmatprep.subr.mxu1 %v41260_v8 }
 0x993   : > { %38764 = vmatmul.mubr.f32.vlgmr.msra.gmra.mrb[50].mxu0 %v43542_v25 }
 0x994   : > { %38768 = vmatprep.mubr.f32.mxu0 %v43534_v16  ;;  %38767 = vmatpush3.xpose.msra.mxu0 %v41260_v8 }
 0x995   : > { %38794 = vmatmul.mubr.f32.vlgmr.msra.gmra.mrb[50].mxu1 %v43548_v4  ;;  %39977 = vmatprep.subr.bf16.mxu0 %v44650_v34 }
 0x996   : > { %38798 = vmatprep.mubr.f32.mxu1 %v43540_v37  ;;  %38797 = vmatpush3.xpose.msra.mxu1 %v41260_v8 }
 0x997   : > { %39995 = vmatprep.subr.bf16.mxu1 %v44650_v34 }
 0x99b   : > { %38769 = vmatmul.mubr.f32.vlgmr.msra.gmra.mrb[50].mxu0 %v43542_v25 }
 0x99c   : > { %38805 = vmatprep.mubr.msk.f32.mxu0 %vm41103_vm4, %v44600_v27 }
 0x99d   : > { %38799 = vmatmul.mubr.f32.vlgmr.msra.gmra.mrb[50].mxu1 %v43548_v4 }
 0x99e   : > { %38847 = vmatprep.mubr.msk.f32.mxu1 %vm41103_vm4, %v44600_v27 }
 0x9e7   : > { %v43604_v47 = vpop.f32.mrb[44].mxu0 }
 0x9e8   : > { %v43608_v29 = vsub.f32 %v43328_v43, %v43604_v47  ;;  %v38554_v35 = vpop.f32.mrb[45].mxu0 }
 0x9ea   : > { %v35283_v15 = vmul.f32 %v43608_v29, %v43608_v29  ;;  %v43612_v10 = vpop.f32.mrb[44].mxu1 }
 0x9eb   : > { %v43616_v5 = vsub.f32 %v43336_v18, %v43612_v10  ;;  %v38596_v45 = vpop.f32.mrb[45].mxu1 }
 0x9ec   : > { %v43619_v52 = vadd.f32 %v35283_v15, %v43343_v33 }
 0x9ed   : > { %v35284_v26 = vmul.f32 %v43616_v5, %v43616_v5 }
 0x9ef   : > { %v43624_v43 = vadd.f32 %v35284_v26, %v43348_v21 }
 0xa14   : > { %v43626_v63 = vpop.f32.mrb[46].mxu0 }
 0xa15   : > { %v43630_v16 = vsub.f32 %v43350_v2, %v43626_v63  ;;  %v38638_v36 = vpop.f32.mrb[47].mxu0 }
 0xa17   : > { %v43632_v37 = vpop.f32.mrb[46].mxu1  ;;  %v35285_v18 = vmul.f32 %v43630_v16, %v43630_v16 }
 0xa18   : > { %v43638_v33 = vsub.f32 %v43356_v11, %v43632_v37  ;;  %v38680_v25 = vpop.f32.mrb[47].mxu1 }
 0xa19   : > { %v43641_v21 = vadd.f32 %v35285_v18, %v43365_v31 }
 0xa1a   : > { %v35286_v56 = vmul.f32 %v43638_v33, %v43638_v33 }
 0xa1c   : > { %v43646_v2 = vadd.f32 %v35286_v56, %v43370_v46 }
 0xa41   : > { %v38710_v4 = vpop.f32.mrb[48].mxu0 }
 0xa42   : > { %v25680_v28 = vsel %vm44710_vm15, %v38710_v4, 0  ;;  %v24184_v12 = vpop.f32.mrb[49].mxu0  ;;  %vm44726_vm15 = vmmov %vm44685_vm0 }
 0xa43   : > { %v25686_v44 = vand.u32 4294901760, %v25680_v28  ;;  %v25683_v30 = vand.u32 4294901760, %v24184_v12 }
 0xa44   : > { %v38740_v40 = vpop.f32.mrb[48].mxu1 }
 0xa45   : > { %v26142_v11 = vsel %vm44711_vm14, %v38740_v40, 0  ;;  %v24679_v38 = vpop.f32.mrb[49].mxu1  ;;  %v25768_v42 = vsub.f32 %v25680_v28, %v25686_v44  ;;  %v39978_v31 = vpack.c.bf16 %v25686_v44, %v25683_v30  ;;  %v25761_v49 = vsub.f32 %v24184_v12, %v25683_v30  ;;  %vm44727_vm14 = vmmov %vm44696_vm1 }
 0xa46   : > { %v26148_v39 = vand.u32 4294901760, %v26142_v11  ;;  %v26145_v32 = vand.u32 4294901760, %v24679_v38 }
 0xa47   : > { %v25769_v61 = vand.u32 4294901760, %v25768_v42  ;;  %v25762_v9 = vand.u32 4294901760, %v25761_v49  ;;  %v39984_v46 = vpack.c.bf16 %v25768_v42, %v25761_v49  ;;  %39979 = vmatpush3.bf16.msra.mxu0 %v39978_v31 }
 0xa48   : > { %v26230_v60 = vsub.f32 %v26142_v11, %v26148_v39  ;;  %v39996_v17 = vpack.c.bf16 %v26148_v39, %v26145_v32  ;;  %v26223_v22 = vsub.f32 %v24679_v38, %v26145_v32  ;;  %39980 = vmatprep.subr.bf16.mxu0 %v44650_v34 }
 0xa49   : > { %v25770_v35 = vsub.f32 %v25768_v42, %v25769_v61  ;;  %v25763_v45 = vsub.f32 %v25761_v49, %v25762_v9  ;;  %v39990_v26 = vpack.c.bf16 %v25769_v61, %v25762_v9 }
 0xa4a   : > { %v26231_v15 = vand.u32 4294901760, %v26230_v60  ;;  %v26224_v36 = vand.u32 4294901760, %v26223_v22  ;;  %v40002_v18 = vpack.c.bf16 %v26230_v60, %v26223_v22  ;;  %39997 = vmatpush3.bf16.msra.mxu1 %v39996_v17  ;;  %38806 = vmatmul.mubr.f32.vlgmr.msra.gmra.mrb[52].mxu0 %v42014_v58 }
 0xa4b   : > { %v25771_v25 = vand.u32 4294901760, %v25770_v35  ;;  %v25764_v4 = vand.u32 4294901760, %v25763_v45  ;;  %39998 = vmatprep.subr.bf16.mxu1 %v44650_v34  ;;  %38812 = vmatprep.mubr.msk.f32.mxu0 %vm41103_vm4, %v44600_v27 }
 0xa4c   : > { %v26232_v56 = vsub.f32 %v26230_v60, %v26231_v15  ;;  %v26225_v28 = vsub.f32 %v26223_v22, %v26224_v36  ;;  %v40008_v12 = vpack.c.bf16 %v26231_v15, %v26224_v36 }
 0xa4d   : > { %38848 = vmatmul.mubr.f32.vlgmr.msra.gmra.mrb[52].mxu1 %v42014_v58  ;;  %v39981_v40 = vpack.c.bf16 %v25771_v25, %v25764_v4 }
 0xa4e   : > { %v26233_v44 = vand.u32 4294901760, %v26232_v56  ;;  %v26226_v30 = vand.u32 4294901760, %v26225_v28  ;;  %38854 = vmatprep.mubr.msk.f32.mxu1 %vm41103_vm4, %v44600_v27 }
 0xa4f   : > { %39982 = vmatpush3.bf16.msra.mxu0 %v39981_v40 }
 0xa50   : > { %v39999_v11 = vpack.c.bf16 %v26233_v44, %v26226_v30  ;;  %39983 = vmatprep.subr.bf16.mxu0 %v44650_v34 }
 0xa52   : > { %40000 = vmatpush3.bf16.msra.mxu1 %v39999_v11  ;;  %38813 = vmatmul.mubr.f32.vlgmr.msra.gmra.mrb[52].mxu0 %v42002_v51 }
 0xa53   : > { %40001 = vmatprep.subr.bf16.mxu1 %v44650_v34  ;;  %39985 = vmatpush3.bf16.msra.mxu0 %v39984_v46 }
 0xa54   : > { %38819 = vmatprep.mubr.msk.f32.mxu0 %vm41103_vm4, %v44600_v27  ;;  %39986 = vmatprep.subr.bf16.mxu0 %v44650_v34 }
 0xa55   : > { %38855 = vmatmul.mubr.f32.vlgmr.msra.gmra.mrb[52].mxu1 %v42002_v51 }
 0xa56   : > { %40003 = vmatpush3.bf16.msra.mxu1 %v40002_v18  ;;  %38861 = vmatprep.mubr.msk.f32.mxu1 %vm41103_vm4, %v44600_v27 }
 0xa57   : > { %40004 = vmatprep.subr.bf16.mxu1 %v44650_v34 }
 0xa5a   : > { %38820 = vmatmul.mubr.f32.vlgmr.msra.gmra.mrb[52].mxu0 %v42005_v54 }
 0xa5b   : > { %39988 = vmatpush3.bf16.msra.mxu0 %v39978_v31  ;;  %38826 = vmatprep.mubr.msk.f32.mxu0 %vm41103_vm4, %v44600_v27 }
 0xa5c   : > { %39989 = vmatprep.subr.bf16.mxu0 %v44650_v34 }
 0xa5d   : > { %38862 = vmatmul.mubr.f32.vlgmr.msra.gmra.mrb[52].mxu1 %v42005_v54 }
 0xa5e   : > { %40006 = vmatpush3.bf16.msra.mxu1 %v39996_v17  ;;  %38868 = vmatprep.mubr.msk.f32.mxu1 %vm41103_vm4, %v44600_v27 }
 0xa5f   : > { %40007 = vmatprep.subr.bf16.mxu1 %v44650_v34 }
 0xa62   : > { %38827 = vmatmul.mubr.f32.vlgmr.msra.gmra.mrb[52].mxu0 %v42008_v62 }
 0xa63   : > { %39991 = vmatpush3.bf16.msra.mxu0 %v39990_v26  ;;  %38833 = vmatprep.mubr.msk.f32.mxu0 %vm41103_vm4, %v44600_v27 }
 0xa64   : > { %39992 = vmatprep.subr.bf16.mxu0 %v44650_v34 }
 0xa65   : > { %38869 = vmatmul.mubr.f32.vlgmr.msra.gmra.mrb[52].mxu1 %v42008_v62 }
 0xa66   : > { %40009 = vmatpush3.bf16.msra.mxu1 %v40008_v12  ;;  %38875 = vmatprep.mubr.msk.f32.mxu1 %vm41103_vm4, %v44600_v27 }
 0xa67   : > { %40010 = vmatprep.subr.bf16.mxu1 %v44650_v34 }
 0xa6a   : > { %38834 = vmatmul.mubr.f32.vlgmr.msra.gmra.mrb[52].mxu0 %v42002_v51 }
 0xa6b   : > { %39994 = vmatpush3.bf16.msra.mxu0 %v39978_v31  ;;  %38840 = vmatprep.mubr.msk.f32.mxu0 %vm41103_vm4, %v44600_v27 }
 0xa6c   : > { %40013 = vmatprep.subr.bf16.mxu0 %v44650_v34 }
 0xa6d   : > { %38876 = vmatmul.mubr.f32.vlgmr.msra.gmra.mrb[52].mxu1 %v42002_v51 }
 0xa6e   : > { %v38770_v38 = vpop.f32.mrb[50].mxu0  ;;  %40012 = vmatpush3.bf16.msra.mxu1 %v39996_v17  ;;  %38882 = vmatprep.mubr.msk.f32.mxu1 %vm41103_vm4, %v44600_v27 }
 0xa6f   : > { %v26604_v42 = vsel %vm44696_vm1, %v38770_v38, 0  ;;  %v25174_v39 = vpop.f32.mrb[51].mxu0  ;;  %40031 = vmatprep.subr.bf16.mxu1 %v44650_v34 }
 0xa70   : > { %v26610_v49 = vand.u32 4294901760, %v26604_v42  ;;  %v38800_v32 = vpop.f32.mrb[50].mxu1  ;;  %v26607_v61 = vand.u32 4294901760, %v25174_v39 }
 0xa71   : > { %v27066_v31 = vsel %vm44712_vm5, %v38800_v32, 0  ;;  %v25669_v60 = vpop.f32.mrb[51].mxu1  ;;  %vm44728_vm5 = vmmov %vm44696_vm1 }
 0xa72   : > { %v26692_v9 = vsub.f32 %v26604_v42, %v26610_v49  ;;  %v27072_v46 = vand.u32 4294901760, %v27066_v31  ;;  %v43694_v22 = vpack.c.bf16 %v26610_v49, %v26607_v61  ;;  %v26685_v35 = vsub.f32 %v25174_v39, %v26607_v61  ;;  %38841 = vmatmul.mubr.f32.vlgmr.msra.gmra.mrb[52].mxu0 %v42002_v51 }
 0xa73   : > { %v27069_v17 = vand.u32 4294901760, %v25669_v60  ;;  %38889 = vmatprep.mubr.msk.f32.mxu0 %vm41103_vm4, %v44600_v27 }
 0xa74   : > { %v26693_v15 = vand.u32 4294901760, %v26692_v9  ;;  %v27154_v45 = vsub.f32 %v27066_v31, %v27072_v46  ;;  %v26686_v26 = vand.u32 4294901760, %v26685_v35  ;;  %v40020_v36 = vpack.c.bf16 %v26692_v9, %v26685_v35  ;;  %40015 = vmatpush3.bf16.msra.mxu0 %v43694_v22 }
 0xa75   : > { %v43700_v18 = vpack.c.bf16 %v27072_v46, %v27069_v17  ;;  %v27147_v25 = vsub.f32 %v25669_v60, %v27069_v17  ;;  %40016 = vmatprep.subr.bf16.mxu0 %v44650_v34  ;;  %38883 = vmatmul.mubr.f32.vlgmr.msra.gmra.mrb[52].mxu1 %v42002_v51  ;;  %v27527_v60 = vmul.f32 -0.76604444, %v42082_v48 }
 0xa76   : > { %v26694_v56 = vsub.f32 %v26692_v9, %v26693_v15  ;;  %v27155_v4 = vand.u32 4294901760, %v27154_v45  ;;  %v26687_v28 = vsub.f32 %v26685_v35, %v26686_v26  ;;  %v40026_v12 = vpack.c.bf16 %v26693_v15, %v26686_v26  ;;  %38931 = vmatprep.mubr.msk.f32.mxu1 %vm41103_vm4, %v44600_v27 }
 0xa77   : > { %v27148_v44 = vand.u32 4294901760, %v27147_v25  ;;  %v40038_v40 = vpack.c.bf16 %v27154_v45, %v27147_v25  ;;  %40033 = vmatpush3.bf16.msra.mxu1 %v43700_v18  ;;  %38890 = vmatmul.mubr.f32.vlgmr.msra.gmra.mrb[54].mxu0 %v42014_v58  ;;  %v27529_v9 = vmul.f32 -0.76604444, %v42089_v6  ;;  %vm27535_vm8 = vcmp.ge.f32.partialorder %v27527_v60, %v42344_v55 }
 0xa78   : > { %v26695_v30 = vand.u32 4294901760, %v26694_v56  ;;  %v27156_v11 = vsub.f32 %v27154_v45, %v27155_v4  ;;  %v26688_v38 = vand.u32 4294901760, %v26687_v28  ;;  %40034 = vmatprep.subr.bf16.mxu1 %v44650_v34  ;;  %38896 = vmatprep.mubr.msk.f32.mxu0 %vm41103_vm4, %v44600_v27  ;;  %v27543_v46 = vsel %vm27535_vm8, %v41717_v41, 0.0  ;;  %v44714_v45 = vld [vmem:[#allocation18_spill] sm:$0xff]  ;;  %vm44729_vm8 = vmmov %vm44696_vm1 }
 0xa79   : > { %v27149_v42 = vsub.f32 %v27147_v25, %v27148_v44  ;;  %v40044_v39 = vpack.c.bf16 %v27155_v4, %v27148_v44  ;;  %vm27537_vm12 = vcmp.ge.f32.partialorder %v27529_v9, %v42348_v20  ;;  %v27552_v35 = vsel %vm44713_vm9, %v27543_v46, 0  ;;  %v44718_v9 = vld [vmem:[#allocation34_spill] sm:$0xff] }
 0xa7a   : > { %v27157_v49 = vand.u32 4294901760, %v27156_v11  ;;  %38932 = vmatmul.mubr.f32.vlgmr.msra.gmra.mrb[54].mxu1 %v42014_v58  ;;  %v40017_v32 = vpack.c.bf16 %v26695_v30, %v26688_v38  ;;  %v27545_v55 = vsel %vm27537_vm12, %v41751_v1, 0.0  ;;  %v43742_v15 = vand.u32 4294901760, %v27552_v35 }
 0xa7b   : > { %v27150_v61 = vand.u32 4294901760, %v27149_v42  ;;  %38938 = vmatprep.mubr.msk.f32.mxu1 %vm41103_vm4, %v44600_v27  ;;  %v28047_v17 = vsel %vm44685_vm0, %v27545_v55, 0  ;;  %v27555_v26 = vsel %vm44715_vm10, %v44714_v45, 0  ;;  %vm44719_vm6 = vcmp.ge.f32.partialorder %v44718_v9, %v41622_v57  ;;  %v44720_v55 = vld [vmem:[#allocation24_spill] sm:$0xff]  ;;  %vm44732_vm10 = vmmov %vm44685_vm0 }
 0xa7c   : > { %40018 = vmatpush3.bf16.msra.mxu0 %v40017_v32  ;;  %v43749_v20 = vand.u32 4294901760, %v28047_v17  ;;  %v43755_v56 = vand.u32 4294901760, %v27555_v26  ;;  %v27624_v4 = vsub.f32 %v27552_v35, %v43742_v15  ;;  %v27547_v46 = vsel %vm44719_vm6, %v41909_v3, 0.0  ;;  %vm44736_vm6 = vmmov %vm44685_vm0 }
 0xa7d   : > { %v40035_v31 = vpack.c.bf16 %v27157_v49, %v27150_v61  ;;  %40019 = vmatprep.subr.bf16.mxu0 %v44650_v34  ;;  %vm44721_vm3 = vcmp.ge.f32.partialorder %v44720_v55, %v44622_v7  ;;  %v28545_v57 = vsel %vm44724_vm2, %v41882_v0, 0  ;;  %vm44744_vm2 = vmmov %vm44685_vm0 }
 0xa7e   : > { %v27625_v44 = vand.u32 4294901760, %v27624_v4  ;;  %v27549_v35 = vsel %vm44721_vm3, %v41914_v23, 0.0 }
 0xa7f   : > { %40036 = vmatpush3.bf16.msra.mxu1 %v40035_v31  ;;  %38897 = vmatmul.mubr.f32.vlgmr.msra.gmra.mrb[54].mxu0 %v42002_v51  ;;  %v29037_v45 = vsel %vm44723_vm13, %v27549_v35, 0  ;;  %vm44743_vm13 = vmmov %vm44685_vm0 }
 0xa80   : > { %40037 = vmatprep.subr.bf16.mxu1 %v44650_v34  ;;  %40021 = vmatpush3.bf16.msra.mxu0 %v40020_v36  ;;  %v44716_v36 = vld [vmem:[#allocation12_spill] sm:$0xff]  ;;  %v27626_v38 = vsub.f32 %v27624_v4, %v27625_v44  ;;  %v43816_v7 = vand.u32 4294901760, %v29037_v45 }
 0xa81   : > { %38903 = vmatprep.mubr.msk.f32.mxu0 %vm41103_vm4, %v44600_v27  ;;  %40022 = vmatprep.subr.bf16.mxu0 %v44650_v34  ;;  %v28050_v25 = vsel %vm44717_vm11, %v44716_v36, 0  ;;  %v44725_v36 = vld [vmem:[#allocation39_spill] sm:$0xff]  ;;  %vm44734_vm11 = vmmov %vm44685_vm0 }
 0xa82   : > { %38939 = vmatmul.mubr.f32.vlgmr.msra.gmra.mrb[54].mxu1 %v42002_v51  ;;  %v43761_v28 = vand.u32 4294901760, %v28050_v25  ;;  %v27627_v49 = vand.u32 4294901760, %v27626_v38 }
 0xa83   : > { %40039 = vmatpush3.bf16.msra.mxu1 %v40038_v40  ;;  %38945 = vmatprep.mubr.msk.f32.mxu1 %vm41103_vm4, %v44600_v27  ;;  %v27634_v40 = vsub.f32 %v27555_v26, %v43755_v56 }
 0xa84   : > { %40040 = vmatprep.subr.bf16.mxu1 %v44650_v34  ;;  %v28129_v11 = vsub.f32 %v28050_v25, %v43761_v28  ;;  %v29040_v25 = vsel %vm44726_vm15, %v44725_v36, 0  ;;  %vm44746_vm15 = vmmov %vm44685_vm0 }
 0xa85   : > { %v27635_v42 = vand.u32 4294901760, %v27634_v40 }
 0xa87   : > { %38904 = vmatmul.mubr.f32.vlgmr.msra.gmra.mrb[54].mxu0 %v42005_v54  ;;  %v27636_v32 = vsub.f32 %v27634_v40, %v27635_v42 }
 0xa88   : > { %40024 = vmatpush3.bf16.msra.mxu0 %v43694_v22  ;;  %38910 = vmatprep.mubr.msk.f32.mxu0 %vm41103_vm4, %v44600_v27 }
 0xa89   : > { %40025 = vmatprep.subr.bf16.mxu0 %v44650_v34 }
 0xa8a   : > { %38946 = vmatmul.mubr.f32.vlgmr.msra.gmra.mrb[54].mxu1 %v42005_v54 }
 0xa8b   : > { %40042 = vmatpush3.bf16.msra.mxu1 %v43700_v18  ;;  %38952 = vmatprep.mubr.msk.f32.mxu1 %vm41103_vm4, %v44600_v27 }
 0xa8c   : > { %40043 = vmatprep.subr.bf16.mxu1 %v44650_v34 }
 0xa8f   : > { %38911 = vmatmul.mubr.f32.vlgmr.msra.gmra.mrb[54].mxu0 %v42008_v62 }
 0xa90   : > { %40027 = vmatpush3.bf16.msra.mxu0 %v40026_v12  ;;  %38917 = vmatprep.mubr.msk.f32.mxu0 %vm41103_vm4, %v44600_v27  ;;  %v28119_v12 = vsub.f32 %v28047_v17, %v43749_v20  ;;  %v28542_v17 = vsel %vm44722_vm7, %v27547_v46, 0 }
 0xa91   : > { %40028 = vmatprep.subr.bf16.mxu0 %v44650_v34  ;;  %v43810_v26 = vand.u32 4294901760, %v28542_v17 }
 0xa92   : > { %38953 = vmatmul.mubr.f32.vlgmr.msra.gmra.mrb[54].mxu1 %v42008_v62  ;;  %v28120_v30 = vand.u32 4294901760, %v28119_v12 }
 0xa93   : > { %40045 = vmatpush3.bf16.msra.mxu1 %v40044_v39  ;;  %38959 = vmatprep.mubr.msk.f32.mxu1 %vm41103_vm4, %v44600_v27  ;;  %v28130_v39 = vand.u32 4294901760, %v28129_v11  ;;  %v28614_v0 = vsub.f32 %v28542_v17, %v43810_v26 }
 0xa94   : > { %40046 = vmatprep.subr.bf16.mxu1 %v44650_v34 }
 0xa95   : > { %v28131_v31 = vsub.f32 %v28129_v11, %v28130_v39 }
 0xa97   : > { %38918 = vmatmul.mubr.f32.vlgmr.msra.gmra.mrb[54].mxu0 %v42002_v51  ;;  %v28132_v60 = vand.u32 4294901760, %v28131_v31 }
 0xa98   : > { %40030 = vmatpush3.bf16.msra.mxu0 %v43694_v22  ;;  %38924 = vmatprep.mubr.msk.f32.mxu0 %vm41103_vm4, %v44600_v27  ;;  %v28121_v22 = vsub.f32 %v28119_v12, %v28120_v30 }
 0xa99   : > { %38969 = vmatprep.subr.mxu0 %v41260_v8 }
 0xa9a   : > { %38960 = vmatmul.mubr.f32.vlgmr.msra.gmra.mrb[54].mxu1 %v42002_v51  ;;  %v28122_v61 = vand.u32 4294901760, %v28121_v22 }
 0xa9b   : > { %40048 = vmatpush3.bf16.msra.mxu1 %v43700_v18  ;;  %38966 = vmatprep.mubr.msk.f32.mxu1 %vm41103_vm4, %v44600_v27  ;;  %v27637_v18 = vand.u32 4294901760, %v27636_v32 }
 0xa9c   : > { %38999 = vmatprep.subr.mxu1 %v41260_v8 }
 0xa9f   : > { %38925 = vmatmul.mubr.f32.vlgmr.msra.gmra.mrb[54].mxu0 %v42002_v51 }
 0xaa0   : > { %38971 = vmatprep.mubr.f32.mxu0 %v27627_v49 }
 0xaa1   : > { %38970 = vmatpush3.xpose.msra.mxu0 %v41260_v8 }
 0xaa2   : > { %38967 = vmatmul.mubr.f32.vlgmr.msra.gmra.mrb[54].mxu1 %v42002_v51  ;;  %38974 = vmatprep.subr.mxu0 %v41367_v19 }
 0xaa3   : > { %39001 = vmatprep.mubr.f32.mxu1 %v28122_v61 }
 0xaa4   : > { %39000 = vmatpush3.xpose.msra.mxu1 %v41260_v8  ;;  %38972 = vmatmul.mubr.f32.vlgmr.msra.gmra.mrb[56].mxu0 %v27637_v18 }
 0xaa5   : > { %39004 = vmatprep.subr.mxu1 %v41367_v19  ;;  %38976 = vmatprep.mubr.f32.mxu0 %v43742_v15 }
 0xaa6   : > { %38975 = vmatpush3.xpose.msra.mxu0 %v41367_v19 }
 0xaa7   : > { %39002 = vmatmul.mubr.f32.vlgmr.msra.gmra.mrb[56].mxu1 %v28132_v60  ;;  %38979 = vmatprep.subr.mxu0 %v41360_v13 }
 0xaa8   : > { %39006 = vmatprep.mubr.f32.mxu1 %v43749_v20  ;;  %39005 = vmatpush3.xpose.msra.mxu1 %v41367_v19 }
 0xaa9   : > { %39009 = vmatprep.subr.mxu1 %v41360_v13 }
 0xaac   : > { %38977 = vmatmul.mubr.f32.vlgmr.msra.gmra.mrb[56].mxu0 %v43755_v56 }
 0xaad   : > { %38981 = vmatprep.mubr.f32.mxu0 %v27624_v4  ;;  %38980 = vmatpush3.xpose.msra.mxu0 %v41360_v13  ;;  %v43818_v4 = vand.u32 4294901760, %v28545_v57 }
 0xaae   : > { %38984 = vmatprep.subr.mxu0 %v41260_v8 }
 0xaaf   : > { %39007 = vmatmul.mubr.f32.vlgmr.msra.gmra.mrb[56].mxu1 %v43761_v28 }
 0xab0   : > { %39011 = vmatprep.mubr.f32.mxu1 %v28119_v12  ;;  %39010 = vmatpush3.xpose.msra.mxu1 %v41360_v13  ;;  %v43824_v12 = vand.u32 4294901760, %v29040_v25 }
 0xab1   : > { %39014 = vmatprep.subr.mxu1 %v41260_v8 }
 0xab4   : > { %38982 = vmatmul.mubr.f32.vlgmr.msra.gmra.mrb[56].mxu0 %v27634_v40  ;;  %v28624_v40 = vsub.f32 %v28545_v57, %v43818_v4 }
 0xab5   : > { %38986 = vmatprep.mubr.f32.mxu0 %v27625_v44  ;;  %38985 = vmatpush3.xpose.msra.mxu0 %v41260_v8  ;;  %v29109_v44 = vsub.f32 %v29037_v45, %v43816_v7 }
 0xab6   : > { %38989 = vmatprep.subr.mxu0 %v41363_v14 }
 0xab7   : > { %39012 = vmatmul.mubr.f32.vlgmr.msra.gmra.mrb[56].mxu1 %v28129_v11  ;;  %v29119_v11 = vsub.f32 %v29040_v25, %v43824_v12  ;;  %v29110_v38 = vand.u32 4294901760, %v29109_v44 }
 0xab8   : > { %39016 = vmatprep.mubr.f32.mxu1 %v28120_v30  ;;  %39015 = vmatpush3.xpose.msra.mxu1 %v41260_v8  ;;  %v28615_v30 = vand.u32 4294901760, %v28614_v0 }
 0xab9   : > { %39019 = vmatprep.subr.mxu1 %v41363_v14  ;;  %v29111_v49 = vsub.f32 %v29109_v44, %v29110_v38 }
 0xaba   : > { %v28616_v22 = vsub.f32 %v28614_v0, %v28615_v30 }
 0xabb   : > { %v29112_v31 = vand.u32 4294901760, %v29111_v49 }
 0xabc   : > { %38987 = vmatmul.mubr.f32.vlgmr.msra.gmra.mrb[56].mxu0 %v27635_v42  ;;  %v28625_v42 = vand.u32 4294901760, %v28624_v40  ;;  %v28617_v61 = vand.u32 4294901760, %v28616_v22 }
 0xabd   : > { %38991 = vmatprep.mubr.f32.mxu0 %v43742_v15  ;;  %38990 = vmatpush3.xpose.msra.mxu0 %v41363_v14 }
 0xabe   : > { %38994 = vmatprep.subr.mxu0 %v41260_v8  ;;  %v28626_v32 = vsub.f32 %v28624_v40, %v28625_v42 }
 0xabf   : > { %39017 = vmatmul.mubr.f32.vlgmr.msra.gmra.mrb[56].mxu1 %v28130_v39  ;;  %v29120_v39 = vand.u32 4294901760, %v29119_v11 }
 0xac0   : > { %39021 = vmatprep.mubr.f32.mxu1 %v43749_v20  ;;  %39020 = vmatpush3.xpose.msra.mxu1 %v41363_v14  ;;  %v28627_v18 = vand.u32 4294901760, %v28626_v32 }
 0xac1   : > { %39024 = vmatprep.subr.mxu1 %v41260_v8 }
 0xac4   : > { %38992 = vmatmul.mubr.f32.vlgmr.msra.gmra.mrb[56].mxu0 %v43755_v56 }
 0xac5   : > { %38996 = vmatprep.mubr.f32.mxu0 %v43742_v15  ;;  %38995 = vmatpush3.xpose.msra.mxu0 %v41260_v8  ;;  %v29121_v15 = vsub.f32 %v29119_v11, %v29120_v39 }
 0xac6   : > { %39029 = vmatprep.subr.mxu0 %v41260_v8 }
 0xac7   : > { %39022 = vmatmul.mubr.f32.vlgmr.msra.gmra.mrb[56].mxu1 %v43761_v28 }
 0xac8   : > { %39026 = vmatprep.mubr.f32.mxu1 %v43749_v20  ;;  %39025 = vmatpush3.xpose.msra.mxu1 %v41260_v8  ;;  %v29122_v20 = vand.u32 4294901760, %v29121_v15 }
 0xac9   : > { %39059 = vmatprep.subr.mxu1 %v41260_v8 }
 0xacc   : > { %38997 = vmatmul.mubr.f32.vlgmr.msra.gmra.mrb[56].mxu0 %v43755_v56 }
 0xacd   : > { %39030 = vmatpush3.xpose.msra.mxu0 %v41260_v8  ;;  %39031 = vmatprep.mubr.f32.mxu0 %v28617_v61 }
 0xace   : > { %39034 = vmatprep.subr.mxu0 %v41367_v19 }
 0xacf   : > { %39027 = vmatmul.mubr.f32.vlgmr.msra.gmra.mrb[56].mxu1 %v43761_v28 }
 0xad0   : > { %39060 = vmatpush3.xpose.msra.mxu1 %v41260_v8  ;;  %39061 = vmatprep.mubr.f32.mxu1 %v29112_v31 }
 0xad1   : > { %39032 = vmatmul.mubr.f32.vlgmr.msra.gmra.mrb[58].mxu0 %v28627_v18  ;;  %39064 = vmatprep.subr.mxu1 %v41367_v19 }
 0xad2   : > { %39036 = vmatprep.mubr.f32.mxu0 %v43810_v26  ;;  %39035 = vmatpush3.xpose.msra.mxu0 %v41367_v19 }
 0xad3   : > { %39062 = vmatmul.mubr.f32.vlgmr.msra.gmra.mrb[58].mxu1 %v29122_v20  ;;  %39039 = vmatprep.subr.mxu0 %v41360_v13 }
 0xad4   : > { %39066 = vmatprep.mubr.f32.mxu1 %v43816_v7  ;;  %39065 = vmatpush3.xpose.msra.mxu1 %v41367_v19 }
 0xad5   : > { %39069 = vmatprep.subr.mxu1 %v41360_v13 }
 0xad9   : > { %39037 = vmatmul.mubr.f32.vlgmr.msra.gmra.mrb[58].mxu0 %v43818_v4 }
 0xada   : > { %39041 = vmatprep.mubr.f32.mxu0 %v28614_v0  ;;  %39040 = vmatpush3.xpose.msra.mxu0 %v41360_v13 }
 0xadb   : > { %39067 = vmatmul.mubr.f32.vlgmr.msra.gmra.mrb[58].mxu1 %v43824_v12  ;;  %39044 = vmatprep.subr.mxu0 %v41260_v8 }
 0xadc   : > { %39071 = vmatprep.mubr.f32.mxu1 %v29109_v44  ;;  %39070 = vmatpush3.xpose.msra.mxu1 %v41360_v13 }
 0xadd   : > { %39074 = vmatprep.subr.mxu1 %v41260_v8 }
 0xae1   : > { %39042 = vmatmul.mubr.f32.vlgmr.msra.gmra.mrb[58].mxu0 %v28624_v40 }
 0xae2   : > { %39046 = vmatprep.mubr.f32.mxu0 %v28615_v30  ;;  %39045 = vmatpush3.xpose.msra.mxu0 %v41260_v8 }
 0xae3   : > { %39072 = vmatmul.mubr.f32.vlgmr.msra.gmra.mrb[58].mxu1 %v29119_v11  ;;  %39049 = vmatprep.subr.mxu0 %v41363_v14 }
 0xae4   : > { %39076 = vmatprep.mubr.f32.mxu1 %v29110_v38  ;;  %39075 = vmatpush3.xpose.msra.mxu1 %v41260_v8 }
 0xae5   : > { %39079 = vmatprep.subr.mxu1 %v41363_v14 }
 0xae9   : > { %39047 = vmatmul.mubr.f32.vlgmr.msra.gmra.mrb[58].mxu0 %v28625_v42 }
 0xaea   : > { %39051 = vmatprep.mubr.f32.mxu0 %v43810_v26  ;;  %39050 = vmatpush3.xpose.msra.mxu0 %v41363_v14 }
 0xaeb   : > { %39077 = vmatmul.mubr.f32.vlgmr.msra.gmra.mrb[58].mxu1 %v29120_v39  ;;  %39054 = vmatprep.subr.mxu0 %v41260_v8 }
 0xaec   : > { %39081 = vmatprep.mubr.f32.mxu1 %v43816_v7  ;;  %39080 = vmatpush3.xpose.msra.mxu1 %v41363_v14 }
 0xaed   : > { %39084 = vmatprep.subr.mxu1 %v41260_v8 }
 0xaf1   : > { %39052 = vmatmul.mubr.f32.vlgmr.msra.gmra.mrb[58].mxu0 %v43818_v4 }
 0xaf2   : > { %39056 = vmatprep.mubr.f32.mxu0 %v43810_v26  ;;  %39055 = vmatpush3.xpose.msra.mxu0 %v41260_v8 }
 0xaf3   : > { %39082 = vmatmul.mubr.f32.vlgmr.msra.gmra.mrb[58].mxu1 %v43824_v12  ;;  %40049 = vmatprep.subr.bf16.mxu0 %v44650_v34 }
 0xaf4   : > { %39086 = vmatprep.mubr.f32.mxu1 %v43816_v7  ;;  %39085 = vmatpush3.xpose.msra.mxu1 %v41260_v8 }
 0xaf5   : > { %40067 = vmatprep.subr.bf16.mxu1 %v44650_v34 }
 0xaf9   : > { %39057 = vmatmul.mubr.f32.vlgmr.msra.gmra.mrb[58].mxu0 %v43818_v4 }
 0xafa   : > { %39093 = vmatprep.mubr.msk.f32.mxu0 %vm41103_vm4, %v44600_v27 }
 0xafb   : > { %39087 = vmatmul.mubr.f32.vlgmr.msra.gmra.mrb[58].mxu1 %v43824_v12 }
 0xafc   : > { %39135 = vmatprep.mubr.msk.f32.mxu1 %vm41103_vm4, %v44600_v27 }
 0xb45   : > { %v43880_v56 = vpop.f32.mrb[52].mxu0 }
 0xb46   : > { %v43884_v28 = vsub.f32 %v43604_v47, %v43880_v56  ;;  %v38842_v60 = vpop.f32.mrb[53].mxu0 }
 0xb48   : > { %v35295_v9 = vmul.f32 %v43884_v28, %v43884_v28  ;;  %v43888_v46 = vpop.f32.mrb[52].mxu1 }
 0xb49   : > { %v43892_v55 = vsub.f32 %v43612_v10, %v43888_v46  ;;  %v38884_v35 = vpop.f32.mrb[53].mxu1 }
 0xb4a   : > { %v43895_v17 = vadd.f32 %v35295_v9, %v43619_v52 }
 0xb4b   : > { %v35296_v45 = vmul.f32 %v43892_v55, %v43892_v55 }
 0xb4d   : > { %v43900_v47 = vadd.f32 %v35296_v45, %v43624_v43 }
 0xb72   : > { %v43902_v57 = vpop.f32.mrb[54].mxu0 }
 0xb73   : > { %v43906_v26 = vsub.f32 %v43626_v63, %v43902_v57  ;;  %v38926_v36 = vpop.f32.mrb[55].mxu0 }
 0xb75   : > { %v43908_v25 = vpop.f32.mrb[54].mxu1  ;;  %v35297_v10 = vmul.f32 %v43906_v26, %v43906_v26 }
 0xb76   : > { %v43914_v52 = vsub.f32 %v43632_v37, %v43908_v25  ;;  %v38968_v7 = vpop.f32.mrb[55].mxu1 }
 0xb77   : > { %v43917_v43 = vadd.f32 %v35297_v10, %v43641_v21 }
 0xb78   : > { %v35298_v4 = vmul.f32 %v43914_v52, %v43914_v52 }
 0xb7a   : > { %v43922_v63 = vadd.f32 %v35298_v4, %v43646_v2 }
 0xb9f   : > { %v38998_v0 = vpop.f32.mrb[56].mxu0 }
 0xba0   : > { %v29532_v12 = vsel %vm44727_vm14, %v38998_v0, 0  ;;  %v28036_v44 = vpop.f32.mrb[57].mxu0  ;;  %vm44748_vm14 = vmmov %vm44685_vm0 }
 0xba1   : > { %v29538_v40 = vand.u32 4294901760, %v29532_v12  ;;  %v29535_v11 = vand.u32 4294901760, %v28036_v44 }
 0xba2   : > { %v39028_v30 = vpop.f32.mrb[56].mxu1 }
 0xba3   : > { %v29994_v37 = vsel %vm44696_vm1, %v39028_v30, 0  ;;  %v28531_v38 = vpop.f32.mrb[57].mxu1  ;;  %v29620_v42 = vsub.f32 %v29532_v12, %v29538_v40  ;;  %v40050_v21 = vpack.c.bf16 %v29538_v40, %v29535_v11  ;;  %v29613_v39 = vsub.f32 %v28036_v44, %v29535_v11 }
 0xba4   : > { %v30000_v22 = vand.u32 4294901760, %v29994_v37  ;;  %v29997_v49 = vand.u32 4294901760, %v28531_v38 }
 0xba5   : > { %v29621_v32 = vand.u32 4294901760, %v29620_v42  ;;  %v29614_v15 = vand.u32 4294901760, %v29613_v39  ;;  %v40056_v2 = vpack.c.bf16 %v29620_v42, %v29613_v39  ;;  %40051 = vmatpush3.bf16.msra.mxu0 %v40050_v21 }
 0xba6   : > { %v30082_v61 = vsub.f32 %v29994_v37, %v30000_v22  ;;  %v40068_v31 = vpack.c.bf16 %v30000_v22, %v29997_v49  ;;  %v30075_v18 = vsub.f32 %v28531_v38, %v29997_v49  ;;  %40052 = vmatprep.subr.bf16.mxu0 %v44650_v34 }
 0xba7   : > { %v29622_v20 = vsub.f32 %v29620_v42, %v29621_v32  ;;  %v29615_v9 = vsub.f32 %v29613_v39, %v29614_v15  ;;  %v40062_v35 = vpack.c.bf16 %v29621_v32, %v29614_v15 }
 0xba8   : > { %v30083_v60 = vand.u32 4294901760, %v30082_v61  ;;  %v30076_v45 = vand.u32 4294901760, %v30075_v18  ;;  %v40074_v36 = vpack.c.bf16 %v30082_v61, %v30075_v18  ;;  %40069 = vmatpush3.bf16.msra.mxu1 %v40068_v31  ;;  %39094 = vmatmul.mubr.f32.vlgmr.msra.gmra.mrb[60].mxu0 %v42014_v58 }
 0xba9   : > { %v29623_v10 = vand.u32 4294901760, %v29622_v20  ;;  %v29616_v4 = vand.u32 4294901760, %v29615_v9  ;;  %40070 = vmatprep.subr.bf16.mxu1 %v44650_v34  ;;  %39100 = vmatprep.mubr.msk.f32.mxu0 %vm41103_vm4, %v44600_v27 }
 0xbaa   : > { %v30084_v7 = vsub.f32 %v30082_v61, %v30083_v60  ;;  %v30077_v0 = vsub.f32 %v30075_v18, %v30076_v45  ;;  %v40080_v12 = vpack.c.bf16 %v30083_v60, %v30076_v45 }
 0xbab   : > { %39136 = vmatmul.mubr.f32.vlgmr.msra.gmra.mrb[60].mxu1 %v42014_v58  ;;  %v40053_v40 = vpack.c.bf16 %v29623_v10, %v29616_v4 }
 0xbac   : > { %v30085_v44 = vand.u32 4294901760, %v30084_v7  ;;  %v30078_v30 = vand.u32 4294901760, %v30077_v0  ;;  %39142 = vmatprep.mubr.msk.f32.mxu1 %vm41103_vm4, %v44600_v27 }
 0xbad   : > { %40054 = vmatpush3.bf16.msra.mxu0 %v40053_v40 }
 0xbae   : > { %v40071_v11 = vpack.c.bf16 %v30085_v44, %v30078_v30  ;;  %40055 = vmatprep.subr.bf16.mxu0 %v44650_v34 }
 0xbb0   : > { %40072 = vmatpush3.bf16.msra.mxu1 %v40071_v11  ;;  %39101 = vmatmul.mubr.f32.vlgmr.msra.gmra.mrb[60].mxu0 %v42002_v51 }
 0xbb1   : > { %40073 = vmatprep.subr.bf16.mxu1 %v44650_v34  ;;  %40057 = vmatpush3.bf16.msra.mxu0 %v40056_v2 }
 0xbb2   : > { %39107 = vmatprep.mubr.msk.f32.mxu0 %vm41103_vm4, %v44600_v27  ;;  %40058 = vmatprep.subr.bf16.mxu0 %v44650_v34 }
 0xbb3   : > { %39143 = vmatmul.mubr.f32.vlgmr.msra.gmra.mrb[60].mxu1 %v42002_v51 }
 0xbb4   : > { %40075 = vmatpush3.bf16.msra.mxu1 %v40074_v36  ;;  %39149 = vmatprep.mubr.msk.f32.mxu1 %vm41103_vm4, %v44600_v27 }
 0xbb5   : > { %40076 = vmatprep.subr.bf16.mxu1 %v44650_v34 }
 0xbb8   : > { %39108 = vmatmul.mubr.f32.vlgmr.msra.gmra.mrb[60].mxu0 %v42005_v54 }
 0xbb9   : > { %40060 = vmatpush3.bf16.msra.mxu0 %v40050_v21  ;;  %39114 = vmatprep.mubr.msk.f32.mxu0 %vm41103_vm4, %v44600_v27 }
 0xbba   : > { %40061 = vmatprep.subr.bf16.mxu0 %v44650_v34 }
 0xbbb   : > { %39150 = vmatmul.mubr.f32.vlgmr.msra.gmra.mrb[60].mxu1 %v42005_v54 }
 0xbbc   : > { %40078 = vmatpush3.bf16.msra.mxu1 %v40068_v31  ;;  %39156 = vmatprep.mubr.msk.f32.mxu1 %vm41103_vm4, %v44600_v27 }
 0xbbd   : > { %40079 = vmatprep.subr.bf16.mxu1 %v44650_v34 }
 0xbc0   : > { %39115 = vmatmul.mubr.f32.vlgmr.msra.gmra.mrb[60].mxu0 %v42008_v62 }
 0xbc1   : > { %40063 = vmatpush3.bf16.msra.mxu0 %v40062_v35  ;;  %39121 = vmatprep.mubr.msk.f32.mxu0 %vm41103_vm4, %v44600_v27 }
 0xbc2   : > { %40064 = vmatprep.subr.bf16.mxu0 %v44650_v34 }
 0xbc3   : > { %39157 = vmatmul.mubr.f32.vlgmr.msra.gmra.mrb[60].mxu1 %v42008_v62 }
 0xbc4   : > { %40081 = vmatpush3.bf16.msra.mxu1 %v40080_v12  ;;  %39163 = vmatprep.mubr.msk.f32.mxu1 %vm41103_vm4, %v44600_v27 }
 0xbc5   : > { %40082 = vmatprep.subr.bf16.mxu1 %v44650_v34 }
 0xbc8   : > { %39122 = vmatmul.mubr.f32.vlgmr.msra.gmra.mrb[60].mxu0 %v42002_v51 }
 0xbc9   : > { %40066 = vmatpush3.bf16.msra.mxu0 %v40050_v21  ;;  %39128 = vmatprep.mubr.msk.f32.mxu0 %vm41103_vm4, %v44600_v27 }
 0xbca   : > { %40085 = vmatprep.subr.bf16.mxu0 %v44650_v34 }
 0xbcb   : > { %39164 = vmatmul.mubr.f32.vlgmr.msra.gmra.mrb[60].mxu1 %v42002_v51 }
 0xbcc   : > { %v39058_v37 = vpop.f32.mrb[58].mxu0  ;;  %40084 = vmatpush3.bf16.msra.mxu1 %v40068_v31  ;;  %39170 = vmatprep.mubr.msk.f32.mxu1 %vm41103_vm4, %v44600_v27 }
 0xbcd   : > { %v30456_v38 = vsel %vm44728_vm5, %v39058_v37, 0  ;;  %v29026_v42 = vpop.f32.mrb[59].mxu0  ;;  %40103 = vmatprep.subr.bf16.mxu1 %v44650_v34  ;;  %vm44749_vm5 = vmmov %vm44696_vm1 }
 0xbce   : > { %v30462_v22 = vand.u32 4294901760, %v30456_v38  ;;  %v39088_v39 = vpop.f32.mrb[58].mxu1  ;;  %v30459_v49 = vand.u32 4294901760, %v29026_v42 }
 0xbcf   : > { %v30918_v21 = vsel %vm44729_vm8, %v39088_v39, 0  ;;  %v29521_v32 = vpop.f32.mrb[59].mxu1  ;;  %vm44750_vm8 = vmmov %vm44696_vm1 }
 0xbd0   : > { %v30544_v61 = vsub.f32 %v30456_v38, %v30462_v22  ;;  %v30924_v15 = vand.u32 4294901760, %v30918_v21  ;;  %v43970_v2 = vpack.c.bf16 %v30462_v22, %v30459_v49  ;;  %v30537_v18 = vsub.f32 %v29026_v42, %v30459_v49  ;;  %39129 = vmatmul.mubr.f32.vlgmr.msra.gmra.mrb[60].mxu0 %v42002_v51 }
 0xbd1   : > { %v30921_v31 = vand.u32 4294901760, %v29521_v32  ;;  %39177 = vmatprep.mubr.msk.f32.mxu0 %vm41103_vm4, %v44600_v27 }
 0xbd2   : > { %v30545_v20 = vand.u32 4294901760, %v30544_v61  ;;  %v31006_v60 = vsub.f32 %v30918_v21, %v30924_v15  ;;  %v30538_v9 = vand.u32 4294901760, %v30537_v18  ;;  %v40092_v35 = vpack.c.bf16 %v30544_v61, %v30537_v18  ;;  %40087 = vmatpush3.bf16.msra.mxu0 %v43970_v2 }
 0xbd3   : > { %v43976_v45 = vpack.c.bf16 %v30924_v15, %v30921_v31  ;;  %v30999_v36 = vsub.f32 %v29521_v32, %v30921_v31  ;;  %40088 = vmatprep.subr.bf16.mxu0 %v44650_v34  ;;  %39171 = vmatmul.mubr.f32.vlgmr.msra.gmra.mrb[60].mxu1 %v42002_v51  ;;  %v31379_v21 = vmul.f32 -0.9396926, %v42082_v48  ;;  %v31381_v32 = vmul.f32 -0.9396926, %v42089_v6 }
 0xbd4   : > { %v30546_v10 = vsub.f32 %v30544_v61, %v30545_v20  ;;  %v31007_v7 = vand.u32 4294901760, %v31006_v60  ;;  %v30539_v4 = vsub.f32 %v30537_v18, %v30538_v9  ;;  %v40098_v0 = vpack.c.bf16 %v30545_v20, %v30538_v9  ;;  %39219 = vmatprep.mubr.msk.f32.mxu1 %vm41103_vm4, %v44600_v27  ;;  %v44730_v61 = vld [vmem:[#allocation42_spill] sm:$0xff]  ;;  %v44731_v18 = vld [vmem:[#allocation43_spill] sm:$0xff] }
 0xbd5   : > { %v31000_v12 = vand.u32 4294901760, %v30999_v36  ;;  %v40110_v44 = vpack.c.bf16 %v31006_v60, %v30999_v36  ;;  %40105 = vmatpush3.bf16.msra.mxu1 %v43976_v45  ;;  %39178 = vmatmul.mubr.f32.vlgmr.msra.gmra.mrb[62].mxu0 %v42014_v58  ;;  %vm31387_vm12 = vcmp.ge.f32.partialorder %v31379_v21, %v44730_v61  ;;  %vm31389_vm9 = vcmp.ge.f32.partialorder %v31381_v32, %v44731_v18  ;;  %v44733_v20 = vld [vmem:[#allocation19_spill] sm:$0xff]  ;;  %v44738_v32 = vld [vmem:[#allocation36_spill] sm:$0xff]  ;;  %v44741_v18 = vld [vmem:[#allocation26_spill] sm:$0xff] }
 0xbd6   : > { %v30547_v40 = vand.u32 4294901760, %v30546_v10  ;;  %v31008_v30 = vsub.f32 %v31006_v60, %v31007_v7  ;;  %v30540_v11 = vand.u32 4294901760, %v30539_v4  ;;  %40106 = vmatprep.subr.bf16.mxu1 %v44650_v34  ;;  %39184 = vmatprep.mubr.msk.f32.mxu0 %vm41103_vm4, %v44600_v27  ;;  %v31395_v15 = vsel %vm31387_vm12, %v41717_v41, 0.0  ;;  %v44737_v21 = vld [vmem:[#allocation35_spill] sm:$0xff]  ;;  %vm44751_vm12 = vmmov %vm44696_vm1 }
 0xbd7   : > { %v31001_v37 = vsub.f32 %v30999_v36, %v31000_v12  ;;  %v40116_v38 = vpack.c.bf16 %v31007_v7, %v31000_v12  ;;  %v31397_v48 = vsel %vm31389_vm9, %v41751_v1, 0.0  ;;  %v31404_v6 = vsel %vm44685_vm0, %v31395_v15, 0  ;;  %v44735_v1 = vld [vmem:[#allocation13_spill] sm:$0xff] }
 0xbd8   : > { %v31009_v42 = vand.u32 4294901760, %v31008_v30  ;;  %39220 = vmatmul.mubr.f32.vlgmr.msra.gmra.mrb[62].mxu1 %v42014_v58  ;;  %v40089_v22 = vpack.c.bf16 %v30547_v40, %v30540_v11  ;;  %v31899_v31 = vsel %vm44732_vm10, %v31397_v48, 0  ;;  %v44018_v41 = vand.u32 4294901760, %v31404_v6  ;;  %v44740_v15 = vld [vmem:[#allocation25_spill] sm:$0xff] }
 0xbd9   : > { %v31002_v39 = vand.u32 4294901760, %v31001_v37  ;;  %39226 = vmatprep.mubr.msk.f32.mxu1 %vm41103_vm4, %v44600_v27  ;;  %v31407_v60 = vsel %vm44734_vm11, %v44733_v20, 0  ;;  %v44025_v9 = vand.u32 4294901760, %v31899_v31  ;;  %vm44739_vm3 = vcmp.ge.f32.partialorder %v44737_v21, %v44738_v32  ;;  %v44745_v20 = vld [vmem:[#allocation41_spill] sm:$0xff] }
 0xbda   : > { %40090 = vmatpush3.bf16.msra.mxu0 %v40089_v22  ;;  %v44031_v36 = vand.u32 4294901760, %v31407_v60  ;;  %v31476_v10 = vsub.f32 %v31404_v6, %v44018_v41  ;;  %v31399_v61 = vsel %vm44739_vm3, %v41909_v3, 0.0  ;;  %vm44742_vm7 = vcmp.ge.f32.partialorder %v44740_v15, %v44741_v18 }
 0xbdb   : > { %v40107_v49 = vpack.c.bf16 %v31009_v42, %v31002_v39  ;;  %40091 = vmatprep.subr.bf16.mxu0 %v44650_v34  ;;  %v31971_v4 = vsub.f32 %v31899_v31, %v44025_v9  ;;  %v31401_v48 = vsel %vm44742_vm7, %v41914_v23, 0.0  ;;  %v32394_v6 = vsel %vm44743_vm13, %v31399_v61, 0 }
 0xbdc   : > { %v31486_v12 = vsub.f32 %v31407_v60, %v44031_v36  ;;  %v32889_v31 = vsel %vm44744_vm2, %v31401_v48, 0  ;;  %v32397_v3 = vsel %vm44746_vm15, %v44745_v20, 0  ;;  %v44086_v60 = vand.u32 4294901760, %v32394_v6 }
 0xbdd   : > { %40108 = vmatpush3.bf16.msra.mxu1 %v40107_v49  ;;  %39185 = vmatmul.mubr.f32.vlgmr.msra.gmra.mrb[62].mxu0 %v42002_v51  ;;  %v44092_v23 = vand.u32 4294901760, %v32889_v31  ;;  %vm35372_vm9 = vcmask 25616   ;;  %vm35397_vm0 = vcmask 42016   ;;  %vm35422_vm10 = vcmask 58416  }
 0xbde   : > { %40109 = vmatprep.subr.bf16.mxu1 %v44650_v34  ;;  %40093 = vmatpush3.bf16.msra.mxu0 %v40092_v35  ;;  %v31902_v35 = vsel %vm44736_vm6, %v44735_v1, 0  ;;  %v31487_v11 = vand.u32 4294901760, %v31486_v12  ;;  %v44747_v1 = vld [vmem:[#allocation40_spill] sm:$0xff]  ;;  %vm35447_vm11 = vcmask 74816   ;;  %vm35472_vm6 = vcmask 91216  }
 0xbdf   : > { %39191 = vmatprep.mubr.msk.f32.mxu0 %vm41103_vm4, %v44600_v27  ;;  %40094 = vmatprep.subr.bf16.mxu0 %v44650_v34  ;;  %v44037_v7 = vand.u32 4294901760, %v31902_v35  ;;  %vm35497_vm3 = vcmask 107616   ;;  %vm35522_vm7 = vcmask 124016   ;;  %vm35547_vm13 = vcmask 140416  }
 0xbe0   : > { %39227 = vmatmul.mubr.f32.vlgmr.msra.gmra.mrb[62].mxu1 %v42002_v51  ;;  %v31488_v42 = vsub.f32 %v31486_v12, %v31487_v11 }
 0xbe1   : > { %40111 = vmatpush3.bf16.msra.mxu1 %v40110_v44  ;;  %39233 = vmatprep.mubr.msk.f32.mxu1 %vm41103_vm4, %v44600_v27  ;;  %v31972_v44 = vand.u32 4294901760, %v31971_v4  ;;  %v31981_v40 = vsub.f32 %v31902_v35, %v44037_v7  ;;  %v32892_v35 = vsel %vm44748_vm14, %v44747_v1, 0 }
 0xbe2   : > { %40112 = vmatprep.subr.bf16.mxu1 %v44650_v34 }
 0xbe3   : > { %v31982_v37 = vand.u32 4294901760, %v31981_v40 }
 0xbe5   : > { %39192 = vmatmul.mubr.f32.vlgmr.msra.gmra.mrb[62].mxu0 %v42005_v54  ;;  %v31983_v39 = vsub.f32 %v31981_v40, %v31982_v37 }
 0xbe6   : > { %40096 = vmatpush3.bf16.msra.mxu0 %v43970_v2  ;;  %39198 = vmatprep.mubr.msk.f32.mxu0 %vm41103_vm4, %v44600_v27 }
 0xbe7   : > { %40097 = vmatprep.subr.bf16.mxu0 %v44650_v34  ;;  %v31984_v49 = vand.u32 4294901760, %v31983_v39 }
 0xbe8   : > { %39234 = vmatmul.mubr.f32.vlgmr.msra.gmra.mrb[62].mxu1 %v42005_v54 }
 0xbe9   : > { %40114 = vmatpush3.bf16.msra.mxu1 %v43976_v45  ;;  %39240 = vmatprep.mubr.msk.f32.mxu1 %vm41103_vm4, %v44600_v27 }
 0xbea   : > { %40115 = vmatprep.subr.bf16.mxu1 %v44650_v34 }
 0xbed   : > { %39199 = vmatmul.mubr.f32.vlgmr.msra.gmra.mrb[62].mxu0 %v42008_v62 }
 0xbee   : > { %40099 = vmatpush3.bf16.msra.mxu0 %v40098_v0  ;;  %39205 = vmatprep.mubr.msk.f32.mxu0 %vm41103_vm4, %v44600_v27  ;;  %v31477_v0 = vand.u32 4294901760, %v31476_v10 }
 0xbef   : > { %40100 = vmatprep.subr.bf16.mxu0 %v44650_v34 }
 0xbf0   : > { %39241 = vmatmul.mubr.f32.vlgmr.msra.gmra.mrb[62].mxu1 %v42008_v62  ;;  %v31478_v30 = vsub.f32 %v31476_v10, %v31477_v0 }
 0xbf1   : > { %40117 = vmatpush3.bf16.msra.mxu1 %v40116_v38  ;;  %39247 = vmatprep.mubr.msk.f32.mxu1 %vm41103_vm4, %v44600_v27 }
 0xbf2   : > { %40118 = vmatprep.subr.bf16.mxu1 %v44650_v34  ;;  %v31479_v38 = vand.u32 4294901760, %v31478_v30 }
 0xbf5   : > { %39206 = vmatmul.mubr.f32.vlgmr.msra.gmra.mrb[62].mxu0 %v42002_v51 }
 0xbf6   : > { %40102 = vmatpush3.bf16.msra.mxu0 %v43970_v2  ;;  %39212 = vmatprep.mubr.msk.f32.mxu0 %vm41103_vm4, %v44600_v27  ;;  %v31973_v2 = vsub.f32 %v31971_v4, %v31972_v44 }
 0xbf7   : > { %39257 = vmatprep.subr.mxu0 %v41260_v8 }
 0xbf8   : > { %39248 = vmatmul.mubr.f32.vlgmr.msra.gmra.mrb[62].mxu1 %v42002_v51  ;;  %v31974_v22 = vand.u32 4294901760, %v31973_v2 }
 0xbf9   : > { %40120 = vmatpush3.bf16.msra.mxu1 %v43976_v45  ;;  %39254 = vmatprep.mubr.msk.f32.mxu1 %vm41103_vm4, %v44600_v27  ;;  %v31489_v45 = vand.u32 4294901760, %v31488_v42 }
 0xbfa   : > { %39287 = vmatprep.subr.mxu1 %v41260_v8 }
 0xbfd   : > { %39213 = vmatmul.mubr.f32.vlgmr.msra.gmra.mrb[62].mxu0 %v42002_v51 }
 0xbfe   : > { %39259 = vmatprep.mubr.f32.mxu0 %v31479_v38 }
 0xbff   : > { %39258 = vmatpush3.xpose.msra.mxu0 %v41260_v8 }
 0xc00   : > { %39255 = vmatmul.mubr.f32.vlgmr.msra.gmra.mrb[62].mxu1 %v42002_v51  ;;  %39262 = vmatprep.subr.mxu0 %v41367_v19 }
 0xc01   : > { %39289 = vmatprep.mubr.f32.mxu1 %v31974_v22 }
 0xc02   : > { %39288 = vmatpush3.xpose.msra.mxu1 %v41260_v8  ;;  %39260 = vmatmul.mubr.f32.vlgmr.msra.gmra.mrb[64].mxu0 %v31489_v45 }
 0xc03   : > { %39292 = vmatprep.subr.mxu1 %v41367_v19  ;;  %39264 = vmatprep.mubr.f32.mxu0 %v44018_v41 }
 0xc04   : > { %39263 = vmatpush3.xpose.msra.mxu0 %v41367_v19 }
 0xc05   : > { %39290 = vmatmul.mubr.f32.vlgmr.msra.gmra.mrb[64].mxu1 %v31984_v49  ;;  %39267 = vmatprep.subr.mxu0 %v41360_v13 }
 0xc06   : > { %39294 = vmatprep.mubr.f32.mxu1 %v44025_v9  ;;  %39293 = vmatpush3.xpose.msra.mxu1 %v41367_v19 }
 0xc07   : > { %39297 = vmatprep.subr.mxu1 %v41360_v13 }
 0xc0a   : > { %39265 = vmatmul.mubr.f32.vlgmr.msra.gmra.mrb[64].mxu0 %v44031_v36 }
 0xc0b   : > { %39269 = vmatprep.mubr.f32.mxu0 %v31476_v10  ;;  %39268 = vmatpush3.xpose.msra.mxu0 %v41360_v13  ;;  %v44094_v10 = vand.u32 4294901760, %v32397_v3 }
 0xc0c   : > { %39272 = vmatprep.subr.mxu0 %v41260_v8 }
 0xc0d   : > { %39295 = vmatmul.mubr.f32.vlgmr.msra.gmra.mrb[64].mxu1 %v44037_v7 }
 0xc0e   : > { %39299 = vmatprep.mubr.f32.mxu1 %v31971_v4  ;;  %39298 = vmatpush3.xpose.msra.mxu1 %v41360_v13  ;;  %v32466_v4 = vsub.f32 %v32394_v6, %v44086_v60 }
 0xc0f   : > { %39302 = vmatprep.subr.mxu1 %v41260_v8 }
 0xc12   : > { %39270 = vmatmul.mubr.f32.vlgmr.msra.gmra.mrb[64].mxu0 %v31486_v12  ;;  %v32961_v12 = vsub.f32 %v32889_v31, %v44092_v23 }
 0xc13   : > { %39274 = vmatprep.mubr.f32.mxu0 %v31477_v0  ;;  %39273 = vmatpush3.xpose.msra.mxu0 %v41260_v8  ;;  %v44100_v0 = vand.u32 4294901760, %v32892_v35 }
 0xc14   : > { %39277 = vmatprep.subr.mxu0 %v41363_v14 }
 0xc15   : > { %39300 = vmatmul.mubr.f32.vlgmr.msra.gmra.mrb[64].mxu1 %v31981_v40  ;;  %v32467_v40 = vand.u32 4294901760, %v32466_v4  ;;  %v32971_v30 = vsub.f32 %v32892_v35, %v44100_v0 }
 0xc16   : > { %39304 = vmatprep.mubr.f32.mxu1 %v31972_v44  ;;  %39303 = vmatpush3.xpose.msra.mxu1 %v41260_v8  ;;  %v32476_v44 = vsub.f32 %v32397_v3, %v44094_v10 }
 0xc17   : > { %39307 = vmatprep.subr.mxu1 %v41363_v14  ;;  %v32972_v38 = vand.u32 4294901760, %v32971_v30 }
 0xc18   : > { %v32477_v2 = vand.u32 4294901760, %v32476_v44 }
 0xc1a   : > { %39275 = vmatmul.mubr.f32.vlgmr.msra.gmra.mrb[64].mxu0 %v31487_v11  ;;  %v32962_v11 = vand.u32 4294901760, %v32961_v12  ;;  %v32478_v22 = vsub.f32 %v32476_v44, %v32477_v2 }
 0xc1b   : > { %39279 = vmatprep.mubr.f32.mxu0 %v44018_v41  ;;  %39278 = vmatpush3.xpose.msra.mxu0 %v41363_v14 }
 0xc1c   : > { %39282 = vmatprep.subr.mxu0 %v41260_v8  ;;  %v32963_v42 = vsub.f32 %v32961_v12, %v32962_v11  ;;  %v32479_v49 = vand.u32 4294901760, %v32478_v22 }
 0xc1d   : > { %39305 = vmatmul.mubr.f32.vlgmr.msra.gmra.mrb[64].mxu1 %v31982_v37  ;;  %v32468_v37 = vsub.f32 %v32466_v4, %v32467_v40 }
 0xc1e   : > { %39309 = vmatprep.mubr.f32.mxu1 %v44025_v9  ;;  %39308 = vmatpush3.xpose.msra.mxu1 %v41363_v14  ;;  %v32964_v45 = vand.u32 4294901760, %v32963_v42 }
 0xc1f   : > { %39312 = vmatprep.subr.mxu1 %v41260_v8  ;;  %v32469_v39 = vand.u32 4294901760, %v32468_v37 }
 0xc22   : > { %39280 = vmatmul.mubr.f32.vlgmr.msra.gmra.mrb[64].mxu0 %v44031_v36 }
 0xc23   : > { %39284 = vmatprep.mubr.f32.mxu0 %v44018_v41  ;;  %39283 = vmatpush3.xpose.msra.mxu0 %v41260_v8  ;;  %v32973_v41 = vsub.f32 %v32971_v30, %v32972_v38 }
 0xc24   : > { %39317 = vmatprep.subr.mxu0 %v41260_v8 }
 0xc25   : > { %39310 = vmatmul.mubr.f32.vlgmr.msra.gmra.mrb[64].mxu1 %v44037_v7 }
 0xc26   : > { %39314 = vmatprep.mubr.f32.mxu1 %v44025_v9  ;;  %39313 = vmatpush3.xpose.msra.mxu1 %v41260_v8  ;;  %v32974_v9 = vand.u32 4294901760, %v32973_v41 }
 0xc27   : > { %39347 = vmatprep.subr.mxu1 %v41260_v8 }
 0xc2a   : > { %39285 = vmatmul.mubr.f32.vlgmr.msra.gmra.mrb[64].mxu0 %v44031_v36 }
 0xc2b   : > { %39318 = vmatpush3.xpose.msra.mxu0 %v41260_v8  ;;  %39319 = vmatprep.mubr.f32.mxu0 %v32469_v39 }
 0xc2c   : > { %39322 = vmatprep.subr.mxu0 %v41367_v19 }
 0xc2d   : > { %39315 = vmatmul.mubr.f32.vlgmr.msra.gmra.mrb[64].mxu1 %v44037_v7 }
 0xc2e   : > { %39348 = vmatpush3.xpose.msra.mxu1 %v41260_v8  ;;  %39349 = vmatprep.mubr.f32.mxu1 %v32964_v45 }
 0xc2f   : > { %39320 = vmatmul.mubr.f32.vlgmr.msra.gmra.mrb[66].mxu0 %v32479_v49  ;;  %39352 = vmatprep.subr.mxu1 %v41367_v19 }
 0xc30   : > { %39324 = vmatprep.mubr.f32.mxu0 %v44086_v60  ;;  %39323 = vmatpush3.xpose.msra.mxu0 %v41367_v19 }
 0xc31   : > { %39350 = vmatmul.mubr.f32.vlgmr.msra.gmra.mrb[66].mxu1 %v32974_v9  ;;  %39327 = vmatprep.subr.mxu0 %v41360_v13 }
 0xc32   : > { %39354 = vmatprep.mubr.f32.mxu1 %v44092_v23  ;;  %39353 = vmatpush3.xpose.msra.mxu1 %v41367_v19 }
 0xc33   : > { %39357 = vmatprep.subr.mxu1 %v41360_v13 }
 0xc37   : > { %39325 = vmatmul.mubr.f32.vlgmr.msra.gmra.mrb[66].mxu0 %v44094_v10 }
 0xc38   : > { %39329 = vmatprep.mubr.f32.mxu0 %v32466_v4  ;;  %39328 = vmatpush3.xpose.msra.mxu0 %v41360_v13 }
 0xc39   : > { %39355 = vmatmul.mubr.f32.vlgmr.msra.gmra.mrb[66].mxu1 %v44100_v0  ;;  %39332 = vmatprep.subr.mxu0 %v41260_v8 }
 0xc3a   : > { %39359 = vmatprep.mubr.f32.mxu1 %v32961_v12  ;;  %39358 = vmatpush3.xpose.msra.mxu1 %v41360_v13 }
 0xc3b   : > { %39362 = vmatprep.subr.mxu1 %v41260_v8 }
 0xc3f   : > { %39330 = vmatmul.mubr.f32.vlgmr.msra.gmra.mrb[66].mxu0 %v32476_v44 }
 0xc40   : > { %39334 = vmatprep.mubr.f32.mxu0 %v32467_v40  ;;  %39333 = vmatpush3.xpose.msra.mxu0 %v41260_v8 }
 0xc41   : > { %39360 = vmatmul.mubr.f32.vlgmr.msra.gmra.mrb[66].mxu1 %v32971_v30  ;;  %39337 = vmatprep.subr.mxu0 %v41363_v14 }
 0xc42   : > { %39364 = vmatprep.mubr.f32.mxu1 %v32962_v11  ;;  %39363 = vmatpush3.xpose.msra.mxu1 %v41260_v8 }
 0xc43   : > { %39367 = vmatprep.subr.mxu1 %v41363_v14 }
 0xc47   : > { %39335 = vmatmul.mubr.f32.vlgmr.msra.gmra.mrb[66].mxu0 %v32477_v2 }
 0xc48   : > { %39339 = vmatprep.mubr.f32.mxu0 %v44086_v60  ;;  %39338 = vmatpush3.xpose.msra.mxu0 %v41363_v14 }
 0xc49   : > { %39365 = vmatmul.mubr.f32.vlgmr.msra.gmra.mrb[66].mxu1 %v32972_v38  ;;  %39342 = vmatprep.subr.mxu0 %v41260_v8 }
 0xc4a   : > { %39369 = vmatprep.mubr.f32.mxu1 %v44092_v23  ;;  %39368 = vmatpush3.xpose.msra.mxu1 %v41363_v14 }
 0xc4b   : > { %39372 = vmatprep.subr.mxu1 %v41260_v8 }
 0xc4f   : > { %39340 = vmatmul.mubr.f32.vlgmr.msra.gmra.mrb[66].mxu0 %v44094_v10 }
 0xc50   : > { %39344 = vmatprep.mubr.f32.mxu0 %v44086_v60  ;;  %39343 = vmatpush3.xpose.msra.mxu0 %v41260_v8 }
 0xc51   : > { %39370 = vmatmul.mubr.f32.vlgmr.msra.gmra.mrb[66].mxu1 %v44100_v0  ;;  %40121 = vmatprep.subr.bf16.mxu0 %v44650_v34 }
 0xc52   : > { %39374 = vmatprep.mubr.f32.mxu1 %v44092_v23  ;;  %39373 = vmatpush3.xpose.msra.mxu1 %v41260_v8 }
 0xc53   : > { %40139 = vmatprep.subr.bf16.mxu1 %v44650_v34 }
 0xc57   : > { %39345 = vmatmul.mubr.f32.vlgmr.msra.gmra.mrb[66].mxu0 %v44094_v10 }
 0xc58   : > { %39381 = vmatprep.mubr.msk.f32.mxu0 %vm41103_vm4, %v44600_v27 }
 0xc59   : > { %39375 = vmatmul.mubr.f32.vlgmr.msra.gmra.mrb[66].mxu1 %v44100_v0 }
 0xc5a   : > { %39423 = vmatprep.mubr.msk.f32.mxu1 %vm41103_vm4, %v44600_v27 }
 0xca3   : > { %v44156_v13 = vpop.f32.mrb[60].mxu0 }
 0xca4   : > { %v44160_v14 = vsub.f32 %v43880_v56, %v44156_v13  ;;  %v39130_v19 = vpop.f32.mrb[61].mxu0 }
 0xca6   : > { %v35307_v8 = vmul.f32 %v44160_v14, %v44160_v14  ;;  %v44164_v36 = vpop.f32.mrb[60].mxu1 }
 0xca7   : > { %v44168_v7 = vsub.f32 %v43888_v46, %v44164_v36  ;;  %v39172_v21 = vpop.f32.mrb[61].mxu1 }
 0xca8   : > { %v44171_v32 = vadd.f32 %v35307_v8, %v43895_v17 }
 0xca9   : > { %v35308_v61 = vmul.f32 %v44168_v7, %v44168_v7 }
 0xcab   : > { %v44176_v56 = vadd.f32 %v35308_v61, %v43900_v47 }
 0xcd0   : > { %v44178_v15 = vpop.f32.mrb[62].mxu0 }
 0xcd1   : > { %v44182_v18 = vsub.f32 %v43902_v57, %v44178_v15  ;;  %v39214_v48 = vpop.f32.mrb[63].mxu0 }
 0xcd3   : > { %v44184_v6 = vpop.f32.mrb[62].mxu1  ;;  %v35309_v46 = vmul.f32 %v44182_v18, %v44182_v18 }
 0xcd4   : > { %v44190_v17 = vsub.f32 %v43908_v25, %v44184_v6  ;;  %v39256_v31 = vpop.f32.mrb[63].mxu1 }
 0xcd5   : > { %v44193_v47 = vadd.f32 %v35309_v46, %v43917_v43 }
 0xcd6   : > { %v35310_v20 = vmul.f32 %v44190_v17, %v44190_v17 }
 0xcd8   : > { %v44198_v57 = vadd.f32 %v35310_v20, %v43922_v63 }
 0xcfd   : > { %v39286_v3 = vpop.f32.mrb[64].mxu0 }
 0xcfe   : > { %v33384_v60 = vsel %vm44696_vm1, %v39286_v3, 0  ;;  %v31888_v1 = vpop.f32.mrb[65].mxu0 }
 0xcff   : > { %v33390_v35 = vand.u32 4294901760, %v33384_v60  ;;  %v33387_v10 = vand.u32 4294901760, %v31888_v1 }
 0xd00   : > { %v39316_v23 = vpop.f32.mrb[64].mxu1 }
 0xd01   : > { %v33846_v25 = vsel %vm44749_vm5, %v39316_v23, 0  ;;  %v32383_v4 = vpop.f32.mrb[65].mxu1  ;;  %v33472_v0 = vsub.f32 %v33384_v60, %v33390_v35  ;;  %v40122_v43 = vpack.c.bf16 %v33390_v35, %v33387_v10  ;;  %v33465_v44 = vsub.f32 %v31888_v1, %v33387_v10 }
 0xd02   : > { %v33852_v12 = vand.u32 4294901760, %v33846_v25  ;;  %v33849_v40 = vand.u32 4294901760, %v32383_v4 }
 0xd03   : > { %v33473_v30 = vand.u32 4294901760, %v33472_v0  ;;  %v33466_v2 = vand.u32 4294901760, %v33465_v44  ;;  %v40128_v63 = vpack.c.bf16 %v33472_v0, %v33465_v44  ;;  %40123 = vmatpush3.bf16.msra.mxu0 %v40122_v43 }
 0xd04   : > { %v33934_v11 = vsub.f32 %v33846_v25, %v33852_v12  ;;  %v40140_v37 = vpack.c.bf16 %v33852_v12, %v33849_v40  ;;  %v33927_v38 = vsub.f32 %v32383_v4, %v33849_v40  ;;  %40124 = vmatprep.subr.bf16.mxu0 %v44650_v34 }
 0xd05   : > { %v33474_v42 = vsub.f32 %v33472_v0, %v33473_v30  ;;  %v33467_v39 = vsub.f32 %v33465_v44, %v33466_v2  ;;  %v40134_v41 = vpack.c.bf16 %v33473_v30, %v33466_v2 }
 0xd06   : > { %v33935_v22 = vand.u32 4294901760, %v33934_v11  ;;  %v33928_v45 = vand.u32 4294901760, %v33927_v38  ;;  %v40146_v49 = vpack.c.bf16 %v33934_v11, %v33927_v38  ;;  %40141 = vmatpush3.bf16.msra.mxu1 %v40140_v37  ;;  %39382 = vmatmul.mubr.f32.vlgmr.msra.gmra.mrb[68].mxu0 %v42014_v58 }
 0xd07   : > { %v33475_v9 = vand.u32 4294901760, %v33474_v42  ;;  %v33468_v8 = vand.u32 4294901760, %v33467_v39  ;;  %40142 = vmatprep.subr.bf16.mxu1 %v44650_v34  ;;  %39388 = vmatprep.mubr.msk.f32.mxu0 %vm41103_vm4, %v44600_v27 }
 0xd08   : > { %v33936_v19 = vsub.f32 %v33934_v11, %v33935_v22  ;;  %v33929_v21 = vsub.f32 %v33927_v38, %v33928_v45  ;;  %v40152_v61 = vpack.c.bf16 %v33935_v22, %v33928_v45 }
 0xd09   : > { %39424 = vmatmul.mubr.f32.vlgmr.msra.gmra.mrb[68].mxu1 %v42014_v58  ;;  %v40125_v46 = vpack.c.bf16 %v33475_v9, %v33468_v8 }
 0xd0a   : > { %v33937_v48 = vand.u32 4294901760, %v33936_v19  ;;  %v33930_v31 = vand.u32 4294901760, %v33929_v21  ;;  %39430 = vmatprep.mubr.msk.f32.mxu1 %vm41103_vm4, %v44600_v27 }
 0xd0b   : > { %40126 = vmatpush3.bf16.msra.mxu0 %v40125_v46 }
 0xd0c   : > { %v40143_v20 = vpack.c.bf16 %v33937_v48, %v33930_v31  ;;  %40127 = vmatprep.subr.bf16.mxu0 %v44650_v34 }
 0xd0e   : > { %40144 = vmatpush3.bf16.msra.mxu1 %v40143_v20  ;;  %39389 = vmatmul.mubr.f32.vlgmr.msra.gmra.mrb[68].mxu0 %v42002_v51 }
 0xd0f   : > { %40145 = vmatprep.subr.bf16.mxu1 %v44650_v34  ;;  %40129 = vmatpush3.bf16.msra.mxu0 %v40128_v63 }
 0xd10   : > { %39395 = vmatprep.mubr.msk.f32.mxu0 %vm41103_vm4, %v44600_v27  ;;  %40130 = vmatprep.subr.bf16.mxu0 %v44650_v34 }
 0xd11   : > { %39431 = vmatmul.mubr.f32.vlgmr.msra.gmra.mrb[68].mxu1 %v42002_v51 }
 0xd12   : > { %40147 = vmatpush3.bf16.msra.mxu1 %v40146_v49  ;;  %39437 = vmatprep.mubr.msk.f32.mxu1 %vm41103_vm4, %v44600_v27 }
 0xd13   : > { %40148 = vmatprep.subr.bf16.mxu1 %v44650_v34 }
 0xd16   : > { %39396 = vmatmul.mubr.f32.vlgmr.msra.gmra.mrb[68].mxu0 %v42005_v54 }
 0xd17   : > { %40132 = vmatpush3.bf16.msra.mxu0 %v40122_v43  ;;  %39402 = vmatprep.mubr.msk.f32.mxu0 %vm41103_vm4, %v44600_v27 }
 0xd18   : > { %40133 = vmatprep.subr.bf16.mxu0 %v44650_v34 }
 0xd19   : > { %39438 = vmatmul.mubr.f32.vlgmr.msra.gmra.mrb[68].mxu1 %v42005_v54 }
 0xd1a   : > { %40150 = vmatpush3.bf16.msra.mxu1 %v40140_v37  ;;  %39444 = vmatprep.mubr.msk.f32.mxu1 %vm41103_vm4, %v44600_v27 }
 0xd1b   : > { %40151 = vmatprep.subr.bf16.mxu1 %v44650_v34 }
 0xd1e   : > { %39403 = vmatmul.mubr.f32.vlgmr.msra.gmra.mrb[68].mxu0 %v42008_v62 }
 0xd1f   : > { %40135 = vmatpush3.bf16.msra.mxu0 %v40134_v41  ;;  %39409 = vmatprep.mubr.msk.f32.mxu0 %vm41103_vm4, %v44600_v27 }
 0xd20   : > { %40136 = vmatprep.subr.bf16.mxu0 %v44650_v34 }
 0xd21   : > { %39445 = vmatmul.mubr.f32.vlgmr.msra.gmra.mrb[68].mxu1 %v42008_v62 }
 0xd22   : > { %40153 = vmatpush3.bf16.msra.mxu1 %v40152_v61  ;;  %39451 = vmatprep.mubr.msk.f32.mxu1 %vm41103_vm4, %v44600_v27 }
 0xd23   : > { %40154 = vmatprep.subr.bf16.mxu1 %v44650_v34 }
 0xd26   : > { %39410 = vmatmul.mubr.f32.vlgmr.msra.gmra.mrb[68].mxu0 %v42002_v51 }
 0xd27   : > { %40138 = vmatpush3.bf16.msra.mxu0 %v40122_v43  ;;  %39416 = vmatprep.mubr.msk.f32.mxu0 %vm41103_vm4, %v44600_v27 }
 0xd28   : > { %40157 = vmatprep.subr.bf16.mxu0 %v44650_v34 }
 0xd29   : > { %39452 = vmatmul.mubr.f32.vlgmr.msra.gmra.mrb[68].mxu1 %v42002_v51 }
 0xd2a   : > { %v39346_v3 = vpop.f32.mrb[66].mxu0  ;;  %40156 = vmatpush3.bf16.msra.mxu1 %v40140_v37  ;;  %39458 = vmatprep.mubr.msk.f32.mxu1 %vm41103_vm4, %v44600_v27 }
 0xd2b   : > { %v34308_v60 = vsel %vm44750_vm8, %v39346_v3, 0  ;;  %v32878_v1 = vpop.f32.mrb[67].mxu0  ;;  %40175 = vmatprep.subr.bf16.mxu1 %v44650_v34 }
 0xd2c   : > { %v34314_v35 = vand.u32 4294901760, %v34308_v60  ;;  %v39376_v23 = vpop.f32.mrb[66].mxu1  ;;  %v34311_v10 = vand.u32 4294901760, %v32878_v1 }
 0xd2d   : > { %v34770_v25 = vsel %vm44751_vm12, %v39376_v23, 0  ;;  %v33373_v4 = vpop.f32.mrb[67].mxu1 }
 0xd2e   : > { %v34396_v0 = vsub.f32 %v34308_v60, %v34314_v35  ;;  %v34776_v12 = vand.u32 4294901760, %v34770_v25  ;;  %v44246_v43 = vpack.c.bf16 %v34314_v35, %v34311_v10  ;;  %v34389_v44 = vsub.f32 %v32878_v1, %v34311_v10  ;;  %39417 = vmatmul.mubr.f32.vlgmr.msra.gmra.mrb[68].mxu0 %v42002_v51 }
 0xd2f   : > { %v34773_v40 = vand.u32 4294901760, %v33373_v4  ;;  %39465 = vmatprep.mubr.msk.f32.mxu0 %vm41103_vm4, %v44600_v27 }
 0xd30   : > { %v34397_v30 = vand.u32 4294901760, %v34396_v0  ;;  %v34858_v11 = vsub.f32 %v34770_v25, %v34776_v12  ;;  %v34390_v2 = vand.u32 4294901760, %v34389_v44  ;;  %v40164_v63 = vpack.c.bf16 %v34396_v0, %v34389_v44  ;;  %40159 = vmatpush3.bf16.msra.mxu0 %v44246_v43 }
 0xd31   : > { %v40176_v37 = vpack.c.bf16 %v34776_v12, %v34773_v40  ;;  %v34851_v38 = vsub.f32 %v33373_v4, %v34773_v40  ;;  %40160 = vmatprep.subr.bf16.mxu0 %v44650_v34  ;;  %39459 = vmatmul.mubr.f32.vlgmr.msra.gmra.mrb[68].mxu1 %v42002_v51  ;;  %v44753_v40 = vld [vmem:[#allocation20_spill] sm:$0xff] }
 0xd32   : > { %v34398_v42 = vsub.f32 %v34396_v0, %v34397_v30  ;;  %v34859_v22 = vand.u32 4294901760, %v34858_v11  ;;  %v34391_v39 = vsub.f32 %v34389_v44, %v34390_v2  ;;  %v40170_v41 = vpack.c.bf16 %v34397_v30, %v34390_v2  ;;  %39507 = vmatprep.mubr.msk.f32.mxu1 %vm41103_vm4, %v44600_v27  ;;  %v44752_v44 = vld [vmem:[#allocation14_spill] sm:$0xff] }
 0xd33   : > { %v34852_v45 = vand.u32 4294901760, %v34851_v38  ;;  %v40182_v49 = vpack.c.bf16 %v34858_v11, %v34851_v38  ;;  %40177 = vmatpush3.bf16.msra.mxu1 %v40176_v37  ;;  %39466 = vmatmul.mubr.f32.vlgmr.msra.gmra.mrb[70].mxu0 %v42014_v58 }
 0xd34   : > { %v34399_v9 = vand.u32 4294901760, %v34398_v42  ;;  %v34860_v19 = vsub.f32 %v34858_v11, %v34859_v22  ;;  %v34392_v8 = vand.u32 4294901760, %v34391_v39  ;;  %40178 = vmatprep.subr.bf16.mxu1 %v44650_v34  ;;  %39472 = vmatprep.mubr.msk.f32.mxu0 %vm41103_vm4, %v44600_v27  ;;  %v44755_v39 = vld [vmem:[#allocation8_spill] sm:$0xff] }
 0xd35   : > { %v34853_v21 = vsub.f32 %v34851_v38, %v34852_v45  ;;  %v40188_v61 = vpack.c.bf16 %v34859_v22, %v34852_v45  ;;  %v44754_v38 = vld [vmem:[#allocation27_spill] sm:$0xff]  ;;  %v44756_v45 = vld [vmem:[#allocation28_spill] sm:$0xff] }
 0xd36   : > { %v34861_v48 = vand.u32 4294901760, %v34860_v19  ;;  %39508 = vmatmul.mubr.f32.vlgmr.msra.gmra.mrb[70].mxu1 %v42014_v58  ;;  %v40161_v46 = vpack.c.bf16 %v34399_v9, %v34392_v8  ;;  %v44757_v19 = vld [vmem:[#allocation44_spill] sm:$0xff] }
 0xd37   : > { %v34854_v31 = vand.u32 4294901760, %v34853_v21  ;;  %39514 = vmatprep.mubr.msk.f32.mxu1 %vm41103_vm4, %v44600_v27 }
 0xd38   : > { %40162 = vmatpush3.bf16.msra.mxu0 %v40161_v46 }
 0xd39   : > { %v40179_v20 = vpack.c.bf16 %v34861_v48, %v34854_v31  ;;  %40163 = vmatprep.subr.bf16.mxu0 %v44650_v34 }
 0xd3b   : > { %40180 = vmatpush3.bf16.msra.mxu1 %v40179_v20  ;;  %39473 = vmatmul.mubr.f32.vlgmr.msra.gmra.mrb[70].mxu0 %v42002_v51 }
 0xd3c   : > { %40181 = vmatprep.subr.bf16.mxu1 %v44650_v34  ;;  %40165 = vmatpush3.bf16.msra.mxu0 %v40164_v63 }
 0xd3d   : > { %39479 = vmatprep.mubr.msk.f32.mxu0 %vm41103_vm4, %v44600_v27  ;;  %40166 = vmatprep.subr.bf16.mxu0 %v44650_v34 }
 0xd3e   : > { %39515 = vmatmul.mubr.f32.vlgmr.msra.gmra.mrb[70].mxu1 %v42002_v51 }
 0xd3f   : > { %40183 = vmatpush3.bf16.msra.mxu1 %v40182_v49  ;;  %39521 = vmatprep.mubr.msk.f32.mxu1 %vm41103_vm4, %v44600_v27 }
 0xd40   : > { %40184 = vmatprep.subr.bf16.mxu1 %v44650_v34 }
 0xd43   : > { %39480 = vmatmul.mubr.f32.vlgmr.msra.gmra.mrb[70].mxu0 %v42005_v54 }
 0xd44   : > { %40168 = vmatpush3.bf16.msra.mxu0 %v44246_v43  ;;  %39486 = vmatprep.mubr.msk.f32.mxu0 %vm41103_vm4, %v44600_v27 }
 0xd45   : > { %40169 = vmatprep.subr.bf16.mxu0 %v44650_v34 }
 0xd46   : > { %39522 = vmatmul.mubr.f32.vlgmr.msra.gmra.mrb[70].mxu1 %v42005_v54 }
 0xd47   : > { %40186 = vmatpush3.bf16.msra.mxu1 %v40176_v37  ;;  %39528 = vmatprep.mubr.msk.f32.mxu1 %vm41103_vm4, %v44600_v27 }
 0xd48   : > { %40187 = vmatprep.subr.bf16.mxu1 %v44650_v34 }
 0xd4b   : > { %39487 = vmatmul.mubr.f32.vlgmr.msra.gmra.mrb[70].mxu0 %v42008_v62 }
 0xd4c   : > { %40171 = vmatpush3.bf16.msra.mxu0 %v40170_v41  ;;  %39493 = vmatprep.mubr.msk.f32.mxu0 %vm41103_vm4, %v44600_v27 }
 0xd4d   : > { %40172 = vmatprep.subr.bf16.mxu0 %v44650_v34 }
 0xd4e   : > { %39529 = vmatmul.mubr.f32.vlgmr.msra.gmra.mrb[70].mxu1 %v42008_v62 }
 0xd4f   : > { %40189 = vmatpush3.bf16.msra.mxu1 %v40188_v61  ;;  %39535 = vmatprep.mubr.msk.f32.mxu1 %vm41103_vm4, %v44600_v27 }
 0xd50   : > { %40190 = vmatprep.subr.bf16.mxu1 %v44650_v34 }
 0xd53   : > { %39494 = vmatmul.mubr.f32.vlgmr.msra.gmra.mrb[70].mxu0 %v42002_v51 }
 0xd54   : > { %40174 = vmatpush3.bf16.msra.mxu0 %v44246_v43  ;;  %39500 = vmatprep.mubr.msk.f32.mxu0 %vm41103_vm4, %v44600_v27 }
 0xd56   : > { %39536 = vmatmul.mubr.f32.vlgmr.msra.gmra.mrb[70].mxu1 %v42002_v51 }
 0xd57   : > { %40192 = vmatpush3.bf16.msra.mxu1 %v40176_v37  ;;  %39542 = vmatprep.mubr.msk.f32.mxu1 %vm41103_vm4, %v44600_v27  ;;  %vm35347_vm4 = vcmask 9216  }
 0xd5b   : > { %39501 = vmatmul.mubr.f32.vlgmr.msra.gmra.mrb[70].mxu0 %v42002_v51 }
 0xd5e   : > { %39543 = vmatmul.mubr.f32.vlgmr.msra.gmra.mrb[70].mxu1 %v42002_v51 }
 0xe01   : > { %v33841_v54 = vpop.f32.mrb[68].mxu0 }
 0xe02   : > { %v35315_v62 = vsub.f32 %v44156_v13, %v33841_v54  ;;  %v39418_v58 = vpop.f32.mrb[69].mxu0  ;;  %v35327_v23 = vmul.f32 %v33841_v54, %v33841_v54 }
 0xe04   : > { %v35319_v34 = vmul.f32 %v35315_v62, %v35315_v62  ;;  %v34303_v3 = vpop.f32.mrb[68].mxu1 }
 0xe05   : > { %v35316_v60 = vsub.f32 %v44164_v36, %v34303_v3  ;;  %v39460_v1 = vpop.f32.mrb[69].mxu1  ;;  %v35328_v4 = vmul.f32 %v34303_v3, %v34303_v3 }
 0xe06   : > { %v35323_v35 = vadd.f32 %v35319_v34, %v44171_v32 }
 0xe07   : > { %v35320_v10 = vmul.f32 %v35316_v60, %v35316_v60 }
 0xe08   : > { %v35331_v25 = vadd.f32 %v35327_v23, %v35323_v35  ;;  %v44759_v35 = vld [vmem:[#allocation15_spill] sm:$0xff] }
 0xe09   : > { %v35324_v27 = vadd.f32 %v35320_v10, %v44176_v56 }
 0xe0a   : > { %v35335_v0 = vmax.f32 %v35331_v25, 1e-24 }
 0xe0b   : > { %v35332_v51 = vadd.f32 %v35328_v4, %v35324_v27 }
 0xe0c   : > { %40991 = vrsqrt.f32 %v35335_v0 }
 0xe0d   : > { %v35336_v12 = vmax.f32 %v35332_v51, 1e-24 }
 0xe0f   : > { %40993 = vrsqrt.f32 %v35336_v12  ;;  %v44760_v12 = vld [vmem:[#allocation37_spill] sm:$0xff] }
 0xe16   : > { %v40992_v13 = vpop.eup %40991 }
 0xe17   : > { %v35527_v43 = vmul.f32 %v40992_v13, %v33841_v54  ;;  %v35352_v36 = vmul.f32 %v40992_v13, %v44752_v44  ;;  %v35377_v30 = vmul.f32 %v40992_v13, %v44753_v40  ;;  %v35402_v32 = vmul.f32 %v40992_v13, %v43332_v59 }
 0xe18   : > { %v35427_v11 = vmul.f32 %v40992_v13, %v43608_v29  ;;  %v35452_v56 = vmul.f32 %v40992_v13, %v43884_v28  ;;  %v35477_v2 = vmul.f32 %v40992_v13, %v44160_v14  ;;  %v35502_v63 = vmul.f32 %v40992_v13, %v35315_v62 }
 0xe19   : > { %v40994_v37 = vpop.eup %40993  ;;  %35360 = vrot.lane.b32.xlu0 %v35352_v36, %s41105_s20  ;;  %v35343_v42 = vmul.f32 %v40992_v13, %v44754_v38 }
 0xe1a   : > { %v35528_v22 = vmul.f32 %v40994_v37, %v34303_v3  ;;  %v35353_v41 = vmul.f32 %v40994_v37, %v44755_v39  ;;  %v35378_v49 = vmul.f32 %v40994_v37, %v44756_v45  ;;  %v35403_v59 = vmul.f32 %v40994_v37, %v43340_v24 }
 0xe1b   : > { %v35428_v29 = vmul.f32 %v40994_v37, %v43616_v5  ;;  %v35453_v28 = vmul.f32 %v40994_v37, %v43892_v55  ;;  %v35478_v14 = vmul.f32 %v40994_v37, %v44168_v7  ;;  %v35503_v9 = vmul.f32 %v40994_v37, %v35316_v60  ;;  %35348 = vst.msk [vmem:[%s44318_s22] sm:$0x3] %vm35347_vm4, %v35343_v42 }
 0xe1c   : > { %35362 = vrot.lane.b32.xlu1 %v35353_v41, %s41105_s20  ;;  %v35344_v8 = vmul.f32 %v40994_v37, %v44757_v19 }
 0xe1d   : > { %35385 = vrot.lane.b32.xlu0 %v35377_v30, %s41106_s26 }
 0xe1e   : > { %35349 = vst.msk [vmem:[%s44318_s22 + $0x2] sm:$0x3] %vm35347_vm4, %v35344_v8 }
 0xe20   : > { %35387 = vrot.lane.b32.xlu1 %v35378_v49, %s41106_s26 }
 0xe21   : > { %35410 = vrot.lane.b32.xlu0 %v35402_v32, %s41107_s27  ;;  %v44763_v32 = vld [vmem:[#allocation45_spill] sm:$0xff] }
 0xe24   : > { %35412 = vrot.lane.b32.xlu1 %v35403_v59, %s41107_s27 }
 0xe25   : > { %35435 = vrot.lane.b32.xlu0 %v35427_v11, %s41108_s28 }
 0xe28   : > { %35437 = vrot.lane.b32.xlu1 %v35428_v29, %s41108_s28 }
 0xe29   : > { %35460 = vrot.lane.b32.xlu0 %v35452_v56, %s41109_s29 }
 0xe2c   : > { %35462 = vrot.lane.b32.xlu1 %v35453_v28, %s41109_s29 }
 0xe2d   : > { %35485 = vrot.lane.b32.xlu0 %v35477_v2, %s41110_s30 }
 0xe2e   : > { %v34765_v24 = vpop.f32.mrb[70].mxu0 }
 0xe2f   : > { %v35317_v5 = vsub.f32 %v44178_v15, %v34765_v24  ;;  %v39502_v55 = vpop.f32.mrb[71].mxu0  ;;  %v35329_v20 = vmul.f32 %v34765_v24, %v34765_v24 }
 0xe30   : > { %35487 = vrot.lane.b32.xlu1 %v35478_v14, %s41110_s30 }
 0xe31   : > { %v35227_v7 = vpop.f32.mrb[70].mxu1  ;;  %v35321_v61 = vmul.f32 %v35317_v5, %v35317_v5  ;;  %35510 = vrot.lane.b32.xlu0 %v35502_v63, %s41111_s9 }
 0xe32   : > { %v35318_v21 = vsub.f32 %v44184_v6, %v35227_v7  ;;  %v39544_v48 = vpop.f32.mrb[71].mxu1  ;;  %v35330_v15 = vmul.f32 %v35227_v7, %v35227_v7 }
 0xe33   : > { %v35325_v31 = vadd.f32 %v35321_v61, %v44193_v47  ;;  %v44758_v47 = vld [vmem:[#allocation30_spill] sm:$0xff] }
 0xe34   : > { %v35322_v46 = vmul.f32 %v35318_v21, %v35318_v21  ;;  %35512 = vrot.lane.b32.xlu1 %v35503_v9, %s41111_s9 }
 0xe35   : > { %v35333_v62 = vadd.f32 %v35329_v20, %v35325_v31  ;;  %35535 = vrot.lane.b32.xlu0 %v35527_v43, %s41112_s10  ;;  %v44761_v43 = vld [vmem:[#allocation9_spill] sm:$0xff] }
 0xe36   : > { %v35326_v54 = vadd.f32 %v35322_v46, %v44198_v57 }
 0xe37   : > { %v35337_v6 = vmax.f32 %v35333_v62, 1e-24 }
 0xe38   : > { %v35334_v58 = vadd.f32 %v35330_v15, %v35326_v54  ;;  %35537 = vrot.lane.b32.xlu1 %v35528_v22, %s41112_s10 }
 0xe39   : > { %40995 = vrsqrt.f32 %v35337_v6 }
 0xe3a   : > { %v35338_v34 = vmax.f32 %v35334_v58, 1e-24 }
 0xe3c   : > { %40997 = vrsqrt.f32 %v35338_v34 }
 0xe43   : > { %v40996_v3 = vpop.eup %40995 }
 0xe44   : > { %v35529_v60 = vmul.f32 %v40996_v3, %v34765_v24  ;;  %v35354_v1 = vmul.f32 %v40996_v3, %v44758_v47  ;;  %v35379_v23 = vmul.f32 %v40996_v3, %v44759_v35  ;;  %v35404_v57 = vmul.f32 %v40996_v3, %v43354_v53 }
 0xe45   : > { %v35429_v25 = vmul.f32 %v40996_v3, %v43630_v16  ;;  %v35454_v27 = vmul.f32 %v40996_v3, %v43906_v26  ;;  %v35479_v4 = vmul.f32 %v40996_v3, %v44182_v18  ;;  %v35504_v0 = vmul.f32 %v40996_v3, %v35317_v5  ;;  %v44762_v18 = vld [vmem:[#allocation46_spill] sm:$0xff] }
 0xe46   : > { %v40998_v10 = vpop.eup %40997  ;;  %35364 = vrot.lane.b32.xlu0 %v35354_v1, %s41105_s20  ;;  %v35345_v11 = vmul.f32 %v40996_v3, %v44763_v32 }
 0xe47   : > { %v35530_v51 = vmul.f32 %v40998_v10, %v35227_v7  ;;  %v35355_v13 = vmul.f32 %v40998_v10, %v44760_v12  ;;  %v35380_v44 = vmul.f32 %v40998_v10, %v44761_v43  ;;  %v35405_v36 = vmul.f32 %v40998_v10, %v43362_v50 }
 0xe48   : > { %v35430_v53 = vmul.f32 %v40998_v10, %v43638_v33  ;;  %v35455_v16 = vmul.f32 %v40998_v10, %v43914_v52  ;;  %v35480_v26 = vmul.f32 %v40998_v10, %v44190_v17  ;;  %v35505_v40 = vmul.f32 %v40998_v10, %v35318_v21  ;;  %35350 = vst.msk [vmem:[%s44318_s22 + $0x4] sm:$0x3] %vm35347_vm4, %v35345_v11 }
 0xe49   : > { %35366 = vrot.lane.b32.xlu1 %v35355_v13, %s41105_s20  ;;  %v35346_v30 = vmul.f32 %v40998_v10, %v44762_v18 }
 0xe4a   : > { %35389 = vrot.lane.b32.xlu0 %v35379_v23, %s41106_s26 }
 0xe4b   : > { %35351 = vst.msk [vmem:[%s44318_s22 + $0x6] sm:$0x3] %vm35347_vm4, %v35346_v30 }
 0xe4d   : > { %35391 = vrot.lane.b32.xlu1 %v35380_v44, %s41106_s26  ;;  %s41035_s26 = scalar_lea.vmem %s41034_s19, 256 }
 0xe4e   : > { %35414 = vrot.lane.b32.xlu0 %v35404_v57, %s41107_s27  ;;  %p41037_p10 = scmp.lt.s32.totalorder %s41035_s26, %s41029_s8 }
 0xe50   : > { %p41038_p0 = por %p41037_p10, %p41036_p8 }
 0xe51   : > { %35416 = vrot.lane.b32.xlu1 %v35405_v36, %s41107_s27 }
 0xe52   : > { %35439 = vrot.lane.b32.xlu0 %v35429_v25, %s41108_s28  ;;  %p41039_p2 = pnand %p41038_p0, %p41032_p13 }
 0xe55   : > { %35441 = vrot.lane.b32.xlu1 %v35430_v53, %s41108_s28 }
 0xe56   : > { %35464 = vrot.lane.b32.xlu0 %v35454_v27, %s41109_s29 }
 0xe59   : > { %35466 = vrot.lane.b32.xlu1 %v35455_v16, %s41109_s29 }
 0xe5a   : > { %35489 = vrot.lane.b32.xlu0 %v35479_v4, %s41110_s30 }
 0xe5d   : > { %35491 = vrot.lane.b32.xlu1 %v35480_v26, %s41110_s30 }
 0xe5e   : > { %35514 = vrot.lane.b32.xlu0 %v35504_v0, %s41111_s9 }
 0xe61   : > { %35516 = vrot.lane.b32.xlu1 %v35505_v40, %s41111_s9 }
 0xe62   : > { %35539 = vrot.lane.b32.xlu0 %v35529_v60, %s41112_s10 }
 0xe65   : > { %35541 = vrot.lane.b32.xlu1 %v35530_v51, %s41112_s10 }
 0xe8b   : > { %v35361_v50 = vpop.permute.xlu0 %35360 }
 0xe8c   : > { %35373 = vst.msk [vmem:[%s44318_s22] sm:$0x3] %vm35372_vm9, %v35361_v50 }
 0xe8e   : > { %v35363_v33 = vpop.permute.xlu1 %35362 }
 0xe8f   : > { %35374 = vst.msk [vmem:[%s44318_s22 + $0x2] sm:$0x3] %vm35372_vm9, %v35363_v33  ;;  %v35386_v52 = vpop.permute.xlu0 %35385 }
 0xe90   : > { %35398 = vst.msk [vmem:[%s44318_s22] sm:$0x3] %vm35397_vm0, %v35386_v52 }
 0xe92   : > { %v35388_v17 = vpop.permute.xlu1 %35387 }
 0xe93   : > { %35399 = vst.msk [vmem:[%s44318_s22 + $0x2] sm:$0x3] %vm35397_vm0, %v35388_v17  ;;  %v35411_v56 = vpop.permute.xlu0 %35410 }
 0xe94   : > { %35423 = vst.msk [vmem:[%s44318_s22] sm:$0x3] %vm35422_vm10, %v35411_v56 }
 0xe96   : > { %v35413_v2 = vpop.permute.xlu1 %35412 }
 0xe97   : > { %35424 = vst.msk [vmem:[%s44318_s22 + $0x2] sm:$0x3] %vm35422_vm10, %v35413_v2  ;;  %v35436_v63 = vpop.permute.xlu0 %35435 }
 0xe98   : > { %35448 = vst.msk [vmem:[%s44318_s22] sm:$0x3] %vm35447_vm11, %v35436_v63 }
 0xe9a   : > { %v35438_v37 = vpop.permute.xlu1 %35437 }
 0xe9b   : > { %35449 = vst.msk [vmem:[%s44318_s22 + $0x2] sm:$0x3] %vm35447_vm11, %v35438_v37  ;;  %v35461_v38 = vpop.permute.xlu0 %35460 }
 0xe9c   : > { %35473 = vst.msk [vmem:[%s44318_s22] sm:$0x3] %vm35472_vm6, %v35461_v38 }
 0xe9e   : > { %v35463_v42 = vpop.permute.xlu1 %35462 }
 0xe9f   : > { %35474 = vst.msk [vmem:[%s44318_s22 + $0x2] sm:$0x3] %vm35472_vm6, %v35463_v42  ;;  %v35486_v22 = vpop.permute.xlu0 %35485 }
 0xea0   : > { %35498 = vst.msk [vmem:[%s44318_s22] sm:$0x3] %vm35497_vm3, %v35486_v22 }
 0xea2   : > { %v35488_v39 = vpop.permute.xlu1 %35487 }
 0xea3   : > { %35499 = vst.msk [vmem:[%s44318_s22 + $0x2] sm:$0x3] %vm35497_vm3, %v35488_v39  ;;  %v35511_v41 = vpop.permute.xlu0 %35510 }
 0xea4   : > { %35523 = vst.msk [vmem:[%s44318_s22] sm:$0x3] %vm35522_vm7, %v35511_v41 }
 0xea6   : > { %v35513_v45 = vpop.permute.xlu1 %35512 }
 0xea7   : > { %35524 = vst.msk [vmem:[%s44318_s22 + $0x2] sm:$0x3] %vm35522_vm7, %v35513_v45  ;;  %v35536_v49 = vpop.permute.xlu0 %35535 }
 0xea8   : > { %35548 = vst.msk [vmem:[%s44318_s22] sm:$0x3] %vm35547_vm13, %v35536_v49 }
 0xeaa   : > { %v35538_v59 = vpop.permute.xlu1 %35537 }
 0xeab   : > { %35549 = vst.msk [vmem:[%s44318_s22 + $0x2] sm:$0x3] %vm35547_vm13, %v35538_v59 }
 0xeb8   : > { %v35365_v29 = vpop.permute.xlu0 %35364 }
 0xeb9   : > { %35375 = vst.msk [vmem:[%s44318_s22 + $0x4] sm:$0x3] %vm35372_vm9, %v35365_v29 }
 0xebb   : > { %v35367_v28 = vpop.permute.xlu1 %35366 }
 0xebc   : > { %35376 = vst.msk [vmem:[%s44318_s22 + $0x6] sm:$0x3] %vm35372_vm9, %v35367_v28  ;;  %v35390_v14 = vpop.permute.xlu0 %35389 }
 0xebd   : > { %35400 = vst.msk [vmem:[%s44318_s22 + $0x4] sm:$0x3] %vm35397_vm0, %v35390_v14 }
 0xebf   : > { %v35392_v9 = vpop.permute.xlu1 %35391 }
 0xec0   : > { %35401 = vst.msk [vmem:[%s44318_s22 + $0x6] sm:$0x3] %vm35397_vm0, %v35392_v9  ;;  %v35415_v19 = vpop.permute.xlu0 %35414 }
 0xec1   : > { %35425 = vst.msk [vmem:[%s44318_s22 + $0x4] sm:$0x3] %vm35422_vm10, %v35415_v19 }
 0xec3   : > { %v35417_v8 = vpop.permute.xlu1 %35416 }
 0xec4   : > { %35426 = vst.msk [vmem:[%s44318_s22 + $0x6] sm:$0x3] %vm35422_vm10, %v35417_v8  ;;  %v35440_v24 = vpop.permute.xlu0 %35439 }
 0xec5   : > { %35450 = vst.msk [vmem:[%s44318_s22 + $0x4] sm:$0x3] %vm35447_vm11, %v35440_v24 }
 0xec7   : > { %v35442_v5 = vpop.permute.xlu1 %35441 }
 0xec8   : > { %35451 = vst.msk [vmem:[%s44318_s22 + $0x6] sm:$0x3] %vm35447_vm11, %v35442_v5  ;;  %v35465_v55 = vpop.permute.xlu0 %35464 }
 0xec9   : > { %35475 = vst.msk [vmem:[%s44318_s22 + $0x4] sm:$0x3] %vm35472_vm6, %v35465_v55 }
 0xecb   : > { %v35467_v7 = vpop.permute.xlu1 %35466 }
 0xecc   : > { %35476 = vst.msk [vmem:[%s44318_s22 + $0x6] sm:$0x3] %vm35472_vm6, %v35467_v7  ;;  %v35490_v21 = vpop.permute.xlu0 %35489 }
 0xecd   : > { %35500 = vst.msk [vmem:[%s44318_s22 + $0x4] sm:$0x3] %vm35497_vm3, %v35490_v21 }
 0xecf   : > { %v35492_v61 = vpop.permute.xlu1 %35491 }
 0xed0   : > { %35501 = vst.msk [vmem:[%s44318_s22 + $0x6] sm:$0x3] %vm35497_vm3, %v35492_v61  ;;  %v35515_v48 = vpop.permute.xlu0 %35514 }
 0xed1   : > { %35525 = vst.msk [vmem:[%s44318_s22 + $0x4] sm:$0x3] %vm35522_vm7, %v35515_v48 }
 0xed3   : > { %v35517_v46 = vpop.permute.xlu1 %35516 }
 0xed4   : > { %35526 = vst.msk [vmem:[%s44318_s22 + $0x6] sm:$0x3] %vm35522_vm7, %v35517_v46  ;;  %v35540_v31 = vpop.permute.xlu0 %35539 }
 0xed5   : > { %35550 = vst.msk [vmem:[%s44318_s22 + $0x4] sm:$0x3] %vm35547_vm13, %v35540_v31 }
 0xed7   : > { %v35542_v20 = vpop.permute.xlu1 %35541 }
 0xed8   : > { %35551 = vst.msk [vmem:[%s44318_s22 + $0x6] sm:$0x3] %vm35547_vm13, %v35542_v20 }
 0xed9   : > { %41042 = shalt.err (!%p41039_p2)
}
 0xeda   : > { %s41043_s22 = scalar_lea.hbm %s44443_s7, 128  ;;  %s41047_s29 = scalar_lea.hbm %s44497_s3, 256 }
 0xedb   : > { %p41044_p4 = scmp.ne.s32.totalorder %s44443_s7, %s41043_s22  ;;  %p41048_p9 = scmp.lt.u32.totalorder %s44443_s7, %s44497_s3 }
 0xedc   : > { %p41049_p1 = scmp.lt.u32.totalorder %s41047_s29, %s41043_s22  ;;  %p41051_p6 = scmp.lt.u32.totalorder %s41043_s22, %s44443_s7 }
 0xedd   : > { %p41045_p5 = pnand %p41044_p4, %p44764_p11 }
 0xede   : > { %p41050_p3 = por %p41049_p1, %p41048_p9 }
 0xedf   : > { %p41046_p7 = pneg %p41045_p5 }
 0xee0   : > { %p41052_p12 = por %p41051_p6, %p41050_p3 }
 0xee2   : > { %p41053_p13 = pnand %p41052_p12, %p41046_p7 }
 0xee4   : > { %41056 = shalt.err (!%p41053_p13)
}
 0xee5   : > { %s41114_s10 = smov 32  }
 0xee6   : > { %40915 = dma.vmem_to_hbm [thread:$0]  (%p44764_p11), %s44447_s4, 128, %s44443_s7, %s35553_s16, %s41114_s10, %s41114_s10, %s41105_s20  }
 0xee7 PF: > { %s35581_s11 = sand.u32 1, %s41083_s12   ;;  %p44765_p8 = scmp.ne.s32.totalorder %s44546_s25, 0 }
 0xee8   : > { %p44766_p10 = scmp.ge.s32.totalorder %s41095_s15, 2  ;;  %s35582_s6 = scalar_lea.sflag [#allocation4], %s35581_s11 }
 0xeea   : > { %p40922_p0 = pnand %p44766_p10, %p44765_p8 }
 0xeec   : > { %41078 = dma.done.wait (!%p40922_p0), %s35582_s6, 128  }
 0xeed   : > { %41080 = vsyncadd (!%p40922_p0), %s35582_s6, 4294967168  ;;  %p16_p2 = scmp.ge.s32.totalorder %s41160_s18, 4   ;;  %s44767_s12 = smov %s41087_s13 }
 0xeee   : > { %s44768_s13 = smov %s41091_s14  ;;  %s44769_s14 = smov %s41172_s21 }
 0xeef   : > { %s44770_s15 = smov %s41160_s18  ;;  %18 = sbr.rel (!%p16_p2) target bundleno = 5 (0x5), region = 77 }
 0xef6   :  { %35587 = vsyncpa [#allocation3], 1 }
 0xef7   :  { %35589 = vsyncpa [#allocation3 + $0x1], 1 }
 0xef8   :  { %35590 = vsyncpa [#allocation4], 1 }
 0xef9   :  { %35592 = vsyncpa [#allocation4 + $0x1], 1 }

</bundles_post_ra>
